<compile_context>
chip_gen: v5e
topology: v5e:2x2
jax: 0.10.0
libtpu: 0.0.40
codegen_flags: <defaults>
</compile_context>

<pallas_src>
import numpy as np
import jax
import jax.numpy as jnp
from jax.experimental import pallas as pl
from jax.experimental.pallas import tpu as pltpu

L_IN = 2998                      # forced by Linear(128*373, .)
L1, P1 = 2996, 1498
L2, P2 = 1496, 748
L3, P3 = 746, 373
C1, C2, C3 = 32, 64, 128
NUM_CLASSES = 3
K_FLAT = C3 * P3                 # 47744 (PyTorch flatten size)

PHW = 376                        # width of each of the 8 input phases (8*376 >= 2998)
W1L = 375                        # pool1 per-phase width
W2L = 374                        # pool2 per-phase width
W3L = 373                        # pool3 width (= P3)
LP = 384                         # lane-padded pool3 length (multiple of 128)
K_PAD = C3 * LP                  # 49152 padded flattened size
TK = 12288                       # K tile of the big Linear
KHB = (K_PAD // 2) // TK         # K tiles per TensorCore half (= 2)


def conv_stack_kernel(x8_ref, w1_ref, b1_ref, w2_ref, b2_ref, w3_ref, b3_ref,
                      o_ref, a1_ref, a2_ref):
    """Fused (conv1d(k=3) + ReLU + maxpool(2)) x 3 for one batch element.

    Activations stay channels-on-sublanes / length-on-lanes; lengths are
    phase-decimated so pooling never needs strided or transposed access.
      x8_ref : (1, 8, 376)   x8[s, j] = x[8j + s]              (f32)
      w1_ref : (3, 32, 1)    conv1 tap columns ; b1_ref (32, 1)
      w2_ref : (64, 96)      [tap0|tap1|tap2] folded, bf16 ; b2_ref (64, 1)
      w3_ref : (128, 192)    folded, bf16 ; b3_ref (128, 1)
      o_ref  : (1, 128, 384) pool3 output, PyTorch (C, L) order, lanes>=373 zero
      a1_ref : (192, 375)    pool1 phases 0..3 + phases 0,1 shifted by one
      a2_ref : (256, 374)    pool2 even/odd + both shifted by one
    """
    x = x8_ref[0]                                    # (8, 376)

    def xrow(u):                                     # x[8i + u] as a (1, 375) row of i
        if u < 8:
            return x[u:u + 1, 0:W1L]
        return x[u - 8:u - 8 + 1, 1:W1L + 1]

    # ---- layer 1: Conv1d(1, 32, 3) + ReLU + MaxPool(2)  (VPU broadcasts) ----
    b1 = b1_ref[...]                                 # (32, 1)
    w10, w11, w12 = w1_ref[0], w1_ref[1], w1_ref[2]  # (32, 1) each
    for r in range(4):                               # pool1 phase r: positions 4i + r
        u = 2 * r
        ce = b1 + w10 * xrow(u) + w11 * xrow(u + 1) + w12 * xrow(u + 2)
        co = b1 + w10 * xrow(u + 1) + w11 * xrow(u + 2) + w12 * xrow(u + 3)
        ph = jnp.maximum(jnp.maximum(ce, 0.0), jnp.maximum(co, 0.0))  # (32, 375)
        a1_ref[32 * r:32 * r + 32, :] = ph
        if r < 2:                                    # phase r evaluated at i + 1
            a1_ref[128 + 32 * r:160 + 32 * r, 0:W2L] = ph[:, 1:W1L]

    # ---- layer 2: Conv1d(32, 64, 3) + ReLU + MaxPool(2)  (MXU, K = 96) ------
    w2 = w2_ref[...]                                 # (64, 96) bf16
    b2 = b2_ref[...]                                 # (64, 1)

    def conv2(j):                                    # conv2 output at positions 4q + j
        s = a1_ref[32 * j:32 * j + 96, 0:W2L].astype(jnp.bfloat16)    # (96, 374)
        return jnp.dot(w2, s, preferred_element_type=jnp.float32) + b2

    a2e = jnp.maximum(conv2(0), 0.0)
    a2e = jnp.maximum(a2e, jnp.maximum(conv2(1), 0.0))   # pool2 at even positions 2q
    a2o = jnp.maximum(conv2(2), 0.0)
    a2o = jnp.maximum(a2o, jnp.maximum(conv2(3), 0.0))   # pool2 at odd positions 2q+1
    a2_ref[0:64, :] = a2e
    a2_ref[64:128, :] = a2o
    a2_ref[128:192, 0:W3L] = a2e[:, 1:W2L]               # even, shifted by one
    a2_ref[192:256, 0:W3L] = a2o[:, 1:W2L]               # odd, shifted by one

    # ---- layer 3: Conv1d(64, 128, 3) + ReLU + MaxPool(2)  (MXU, K = 192) ----
    w3 = w3_ref[...]                                 # (128, 192) bf16
    b3 = b3_ref[...]                                 # (128, 1)
    te = a2_ref[0:192, 0:W3L].astype(jnp.bfloat16)       # conv3 at positions 2p
    ce = jnp.dot(w3, te, preferred_element_type=jnp.float32) + b3
    to = a2_ref[64:256, 0:W3L].astype(jnp.bfloat16)      # conv3 at positions 2p+1
    co = jnp.dot(w3, to, preferred_element_type=jnp.float32) + b3
    out = jnp.maximum(jnp.maximum(ce, 0.0), jnp.maximum(co, 0.0))     # (128, 373)

    o_ref[...] = jnp.zeros_like(o_ref)               # zero the lane padding (373..383)
    o_ref[0, :, 0:W3L] = out.astype(o_ref.dtype)


def linear_kernel(x_ref, w1_ref, w2t_ref, c_ref, o_ref, acc_ref):
    """Half of (Flatten -> Linear(47744,128) -> Linear(128,3)).

    grid = (2, KHB): axis 0 splits the K reduction into two independent halves
    (sharded across TensorCores on v7x); axis 1 streams bf16 (TK, 128) tiles.
    The bias term (B1 @ W2.T + B2) is folded into c_ref and added on half 0.
    """
    h = pl.program_id(0)
    k = pl.program_id(1)

    @pl.when(k == 0)
    def _():
        acc_ref[...] = jnp.zeros_like(acc_ref)

    acc_ref[...] += jnp.dot(x_ref[...], w1_ref[...],
                            preferred_element_type=jnp.float32)

    @pl.when(k == pl.num_programs(1) - 1)
    def _():
        part = jnp.dot(acc_ref[...], w2t_ref[...],
                       preferred_element_type=jnp.float32)            # (N, 3)
        const = jnp.where(h == 0, c_ref[...], jnp.zeros_like(c_ref[...]))
        o_ref[0] = part + const


def pack_params(params):
    """One-time re-layout of the PyTorch parameters for the Pallas kernels."""
    (w1, b1, w2, b2, w3, b3, W1, B1, W2, B2) = params
    w1k = jnp.transpose(w1, (2, 0, 1))                          # (3, 32, 1)
    b1c = b1.reshape(C1, 1)
    w2s = jnp.transpose(w2, (0, 2, 1)).reshape(C2, 3 * C1).astype(jnp.bfloat16)
    b2c = b2.reshape(C2, 1)
    w3s = jnp.transpose(w3, (0, 2, 1)).reshape(C3, 3 * C2).astype(jnp.bfloat16)
    b3c = b3.reshape(C3, 1)
    # Big Linear: rows ordered as (channel * 384 + l) to match the kernel's
    # (C, L)-layout flatten with the pool3 length zero-padded 373 -> 384.
    W1r = jnp.pad(W1.reshape(C3, C3, P3), ((0, 0), (0, 0), (0, LP - P3)))
    W1p = jnp.transpose(W1r, (1, 2, 0)).reshape(K_PAD, C3).astype(jnp.bfloat16)
    w2t = jnp.transpose(W2).astype(jnp.float32)                 # (128, 3)
    cvec = (B1 @ jnp.transpose(W2) + B2).reshape(1, NUM_CLASSES)
    return (w1k, b1c, w2s, b2c, w3s, b3c, W1p, w2t, cvec)


@jax.jit
def cnn_forward(x, packed):
    """x: (N, 1, 2998) float32 (PyTorch NCL).  Returns (N, 3) float32 logits."""
    (w1k, b1c, w2s, b2c, w3s, b3c, W1p, w2t, cvec) = packed
    N = x.shape[0]

    # 8-way phase split of the input (lane-dense; x8[n, s, j] = x[n, 8j + s]).
    xs = jnp.pad(x.reshape(N, L_IN), ((0, 0), (0, 8 * PHW - L_IN)))
    x8 = jnp.transpose(xs.reshape(N, PHW, 8), (0, 2, 1))        # (N, 8, 376)

    conv_out = pl.pallas_call(
        conv_stack_kernel,
        out_shape=jax.ShapeDtypeStruct((N, C3, LP), jnp.bfloat16),
        grid_spec=pltpu.PrefetchScalarGridSpec(
            num_scalar_prefetch=0,
            grid=(N,),
            in_specs=[
                pl.BlockSpec((1, 8, PHW), lambda n: (n, 0, 0)),
                pl.BlockSpec((3, C1, 1), lambda n: (0, 0, 0)),
                pl.BlockSpec((C1, 1), lambda n: (0, 0)),
                pl.BlockSpec((C2, 3 * C1), lambda n: (0, 0)),
                pl.BlockSpec((C2, 1), lambda n: (0, 0)),
                pl.BlockSpec((C3, 3 * C2), lambda n: (0, 0)),
                pl.BlockSpec((C3, 1), lambda n: (0, 0)),
            ],
            out_specs=pl.BlockSpec((1, C3, LP), lambda n: (n, 0, 0)),
            scratch_shapes=[
                pltpu.VMEM((6 * C1, W1L), jnp.float32),   # pool1 phases (+2 shifted)
                pltpu.VMEM((4 * C2, W2L), jnp.float32),   # pool2 even/odd (+shifted)
            ]),
        compiler_params=pltpu.CompilerParams(
            dimension_semantics=("parallel",)),
    )(x8, w1k, b1c, w2s, b2c, w3s, b3c)

    # conv_out is already in PyTorch (C, L) order with zero lane padding, so
    # flatten is a plain reshape and the pre-packed W1 lines up row-for-row.
    xf = conv_out.reshape(N, K_PAD)                              # (N, 49152) bf16

    parts = pl.pallas_call(
        linear_kernel,
        out_shape=jax.ShapeDtypeStruct((2, N, NUM_CLASSES), jnp.float32),
        grid_spec=pltpu.PrefetchScalarGridSpec(
            num_scalar_prefetch=0,
            grid=(2, KHB),
            in_specs=[
                pl.BlockSpec((N, TK), lambda h, k: (0, h * KHB + k)),
                pl.BlockSpec((TK, C3), lambda h, k: (h * KHB + k, 0)),
                pl.BlockSpec((C3, NUM_CLASSES), lambda h, k: (0, 0)),
                pl.BlockSpec((1, NUM_CLASSES), lambda h, k: (0, 0)),
            ],
            out_specs=pl.BlockSpec((1, N, NUM_CLASSES), lambda h, k: (h, 0, 0)),
            scratch_shapes=[pltpu.VMEM((N, C3), jnp.float32)]),
        compiler_params=pltpu.CompilerParams(
            dimension_semantics=("parallel", "arbitrary"),
            vmem_limit_bytes=32 * 1024 * 1024),
    )(xf, W1p, w2t, cvec)

    return parts[0] + parts[1]


def ref_forward(x, params):
    """Pure-JAX reference with identical semantics (for verification)."""
    (w1, b1, w2, b2, w3, b3, W1, B1, W2, B2) = params

    def conv1d(h, w, b):                       # h (N, Cin, L), w (Cout, Cin, 3)
        lout = h.shape[-1] - 2
        y = b[None, :, None]
        for k in range(3):
            y = y + jnp.einsum('ncl,oc->nol', h[:, :, k:k + lout], w[:, :, k])
        return y

    def pool2(h):
        n, c, l = h.shape
        return jnp.max(h.reshape(n, c, l // 2, 2), axis=-1)

    h = pool2(jax.nn.relu(conv1d(x, w1, b1)))
    h = pool2(jax.nn.relu(conv1d(h, w2, b2)))
    h = pool2(jax.nn.relu(conv1d(h, w3, b3)))
    h = h.reshape(x.shape[0], -1)
    h = h @ W1.T + B1
    return h @ W2.T + B2


def init_params(key):
    keys = jax.random.split(key, 10)

    def u(k, shape, fan_in):
        b = 1.0 / float(np.sqrt(fan_in))
        return jax.random.uniform(k, shape, jnp.float32, -b, b)

    w1 = u(keys[0], (C1, 1, 3), 1 * 3);       b1 = u(keys[1], (C1,), 1 * 3)
    w2 = u(keys[2], (C2, C1, 3), C1 * 3);     b2 = u(keys[3], (C2,), C1 * 3)
    w3 = u(keys[4], (C3, C2, 3), C2 * 3);     b3 = u(keys[5], (C3,), C2 * 3)
    W1 = u(keys[6], (C3, K_FLAT), K_FLAT);    B1 = u(keys[7], (C3,), K_FLAT)
    W2 = u(keys[8], (NUM_CLASSES, C3), C3);   B2 = u(keys[9], (NUM_CLASSES,), C3)
    return (w1, b1, w2, b2, w3, b3, W1, B1, W2, B2)


if __name__ == "__main__":
    key = jax.random.PRNGKey(0)
    kx, kp = jax.random.split(key)
    N = 2
    x = jax.random.normal(kx, (N, 1, L_IN), jnp.float32)
    params = init_params(kp)
    packed = pack_params(params)          # one-time parameter packing (hoisted)

    out = cnn_forward(x, packed)
    out = jax.block_until_ready(out)
    assert out.shape == (N, NUM_CLASSES), out.shape

    ref = ref_forward(x, params)
    if not bool(jnp.allclose(out, ref, rtol=3e-2, atol=3e-2)):
        err = float(jnp.max(jnp.abs(out - ref)))
        raise SystemExit(f"kernel/reference mismatch, max abs err = {err}")
    print("KERNEL_OK")
</pallas_src>

<mosaic_0001>
module attributes {stable_mosaic.version = 11 : i64} {
  func.func @linear_kernel(%arg0: i32, %arg1: i32, %arg2: memref<2x12288xbf16, #tpu.memory_space<vmem>>, %arg3: memref<12288x128xbf16, #tpu.memory_space<vmem>>, %arg4: memref<128x3xf32, #tpu.memory_space<vmem>>, %arg5: memref<1x3xf32, #tpu.memory_space<vmem>>, %arg6: memref<1x2x3xf32, #tpu.memory_space<vmem>>, %arg7: memref<2x128xf32, #tpu.memory_space<vmem>>) attributes {dimension_semantics = [#tpu.dimension_semantics<parallel>, #tpu.dimension_semantics<arbitrary>], iteration_bounds = array<i64: 2, 2>, scalar_prefetch = 0 : i64, scratch_operands = 1 : i64, tpu.core_type = #tpu.core_type<tc>, window_params = [{transform_indices = @transform_0, window_bounds = array<i64: 2, 12288>}, {transform_indices = @transform_1, window_bounds = array<i64: 12288, 128>}, {pipeline_mode = #tpu.pipeline_mode<synchronous>, transform_indices = @transform_2, window_bounds = array<i64: 128, 3>}, {pipeline_mode = #tpu.pipeline_mode<synchronous>, transform_indices = @transform_3, window_bounds = array<i64: 1, 3>}, {transform_indices = @transform_4, window_bounds = array<i64: 1, 2, 3>}]} {
    %c0_i32 = arith.constant 0 : i32
    %0 = arith.cmpi eq, %arg1, %c0_i32 : i32
    %1 = arith.extui %0 : i1 to i32
    %c0_i32_0 = arith.constant 0 : i32
    %2 = arith.cmpi ne, %1, %c0_i32_0 : i32
    scf.if %2 {
      %cst_9 = arith.constant 0.000000e+00 : f32
      %12 = vector.broadcast %cst_9 : f32 to vector<2x128xf32>
      %c0_10 = arith.constant 0 : index
      %c0_11 = arith.constant 0 : index
      %13 = vector.load %arg7[%c0_10, %c0_11] : memref<2x128xf32, #tpu.memory_space<vmem>>, vector<2x128xf32>
      tpu.vector_store %arg7[%c0_10, %c0_11], %12 {strides = array<i32>} : memref<2x128xf32, #tpu.memory_space<vmem>>, vector<2x128xf32>,
    } else {
    }
    %c0 = arith.constant 0 : index
    %c0_1 = arith.constant 0 : index
    %3 = vector.load %arg7[%c0, %c0_1] : memref<2x128xf32, #tpu.memory_space<vmem>>, vector<2x128xf32>
    %c0_2 = arith.constant 0 : index
    %c0_3 = arith.constant 0 : index
    %4 = vector.load %arg2[%c0_2, %c0_3] : memref<2x12288xbf16, #tpu.memory_space<vmem>>, vector<2x12288xbf16>
    %c0_4 = arith.constant 0 : index
    %c0_5 = arith.constant 0 : index
    %5 = vector.load %arg3[%c0_4, %c0_5] : memref<12288x128xbf16, #tpu.memory_space<vmem>>, vector<12288x128xbf16>
    %cst = arith.constant dense<0.000000e+00> : vector<2x128xf32>
    %6 = tpu.matmul %4, %5, %cst {dimension_numbers = #tpu.dot_dimension_numbers<[1], [0], [0], [1], [0, 0, 1, 1], [], []>} : vector<2x12288xbf16>, vector<12288x128xbf16>, vector<2x128xf32> -> vector<2x128xf32>
    %7 = arith.addf %3, %6 : vector<2x128xf32>
    %c0_6 = arith.constant 0 : index
    %c0_7 = arith.constant 0 : index
    %8 = vector.load %arg7[%c0_6, %c0_7] : memref<2x128xf32, #tpu.memory_space<vmem>>, vector<2x128xf32>
    tpu.vector_store %arg7[%c0_6, %c0_7], %7 {strides = array<i32>} : memref<2x128xf32, #tpu.memory_space<vmem>>, vector<2x128xf32>,
    %c1_i32 = arith.constant 1 : i32
    %9 = arith.cmpi eq, %arg1, %c1_i32 : i32
    %10 = arith.extui %9 : i1 to i32
    %c0_i32_8 = arith.constant 0 : i32
    %11 = arith.cmpi ne, %10, %c0_i32_8 : i32
    scf.if %11 {
      %c0_9 = arith.constant 0 : index
      %c0_10 = arith.constant 0 : index
      %12 = vector.load %arg7[%c0_9, %c0_10] : memref<2x128xf32, #tpu.memory_space<vmem>>, vector<2x128xf32>
      %c0_11 = arith.constant 0 : index
      %c0_12 = arith.constant 0 : index
      %13 = vector.load %arg4[%c0_11, %c0_12] : memref<128x3xf32, #tpu.memory_space<vmem>>, vector<128x3xf32>
      %cst_13 = arith.constant dense<0.000000e+00> : vector<2x3xf32>
      %14 = tpu.matmul %12, %13, %cst_13 {dimension_numbers = #tpu.dot_dimension_numbers<[1], [0], [0], [1], [0, 0, 1, 1], [], []>} : vector<2x128xf32>, vector<128x3xf32>, vector<2x3xf32> -> vector<2x3xf32>
      %c0_i32_14 = arith.constant 0 : i32
      %15 = arith.cmpi eq, %arg0, %c0_i32_14 : i32
      %c0_15 = arith.constant 0 : index
      %c0_16 = arith.constant 0 : index
      %16 = vector.load %arg5[%c0_15, %c0_16] : memref<1x3xf32, #tpu.memory_space<vmem>>, vector<1x3xf32>
      %cst_17 = arith.constant 0.000000e+00 : f32
      %17 = vector.broadcast %cst_17 : f32 to vector<1x3xf32>
      %18 = arith.select %15, %16, %17 : vector<1x3xf32>
      %19 = vector.broadcast %18 : vector<1x3xf32> to vector<2x3xf32>
      %20 = arith.addf %14, %19 : vector<2x3xf32>
      %c0_18 = arith.constant 0 : index
      %c0_19 = arith.constant 0 : index
      %c0_20 = arith.constant 0 : index
      %21 = vector.load %arg6[%c0_18, %c0_19, %c0_20] : memref<1x2x3xf32, #tpu.memory_space<vmem>>, vector<1x2x3xf32>
      %22 = vector.shape_cast %21 : vector<1x2x3xf32> to vector<2x3xf32>
      %23 = vector.shape_cast %20 : vector<2x3xf32> to vector<1x2x3xf32>
      tpu.vector_store %arg6[%c0_18, %c0_19, %c0_20], %23 {strides = array<i32>} : memref<1x2x3xf32, #tpu.memory_space<vmem>>, vector<1x2x3xf32>,
    } else {
    }
    return
  }
  func.func @transform_0(%arg0: i32, %arg1: i32) -> (i32, i32) {
    %c2_i32 = arith.constant 2 : i32
    %0 = arith.muli %arg0, %c2_i32 : i32
    %1 = arith.addi %0, %arg1 : i32
    %c0_i32 = arith.constant 0 : i32
    %c0_i32_0 = arith.constant 0 : i32
    return %c0_i32, %1 : i32, i32
  }
  func.func @transform_1(%arg0: i32, %arg1: i32) -> (i32, i32) {
    %c2_i32 = arith.constant 2 : i32
    %0 = arith.muli %arg0, %c2_i32 : i32
    %1 = arith.addi %0, %arg1 : i32
    %c0_i32 = arith.constant 0 : i32
    %c0_i32_0 = arith.constant 0 : i32
    return %1, %c0_i32 : i32, i32
  }
  func.func @transform_2(%arg0: i32, %arg1: i32) -> (i32, i32) {
    %c0_i32 = arith.constant 0 : i32
    %c0_i32_0 = arith.constant 0 : i32
    %c0_i32_1 = arith.constant 0 : i32
    return %c0_i32, %c0_i32_0 : i32, i32
  }
  func.func @transform_3(%arg0: i32, %arg1: i32) -> (i32, i32) {
    %c0_i32 = arith.constant 0 : i32
    %c0_i32_0 = arith.constant 0 : i32
    %c0_i32_1 = arith.constant 0 : i32
    return %c0_i32, %c0_i32_0 : i32, i32
  }
  func.func @transform_4(%arg0: i32, %arg1: i32) -> (i32, i32, i32) {
    %c0_i32 = arith.constant 0 : i32
    %c0_i32_0 = arith.constant 0 : i32
    %c0_i32_1 = arith.constant 0 : i32
    return %arg0, %c0_i32, %c0_i32_0 : i32, i32, i32
  }
}

module attributes {stable_mosaic.version = 11 : i64} {
  func.func @conv_stack_kernel(%arg0: i32, %arg1: memref<1x8x376xf32, #tpu.memory_space<vmem>>, %arg2: memref<3x32x1xf32, #tpu.memory_space<vmem>>, %arg3: memref<32x1xf32, #tpu.memory_space<vmem>>, %arg4: memref<64x96xbf16, #tpu.memory_space<vmem>>, %arg5: memref<64x1xf32, #tpu.memory_space<vmem>>, %arg6: memref<128x192xbf16, #tpu.memory_space<vmem>>, %arg7: memref<128x1xf32, #tpu.memory_space<vmem>>, %arg8: memref<1x128x384xbf16, #tpu.memory_space<vmem>>, %arg9: memref<192x375xf32, #tpu.memory_space<vmem>>, %arg10: memref<256x374xf32, #tpu.memory_space<vmem>>) attributes {dimension_semantics = [#tpu.dimension_semantics<parallel>], iteration_bounds = array<i64: 2>, scalar_prefetch = 0 : i64, scratch_operands = 2 : i64, tpu.core_type = #tpu.core_type<tc>, window_params = [{transform_indices = @transform_0, window_bounds = array<i64: 1, 8, 376>}, {pipeline_mode = #tpu.pipeline_mode<synchronous>, transform_indices = @transform_1, window_bounds = array<i64: 3, 32, 1>}, {pipeline_mode = #tpu.pipeline_mode<synchronous>, transform_indices = @transform_2, window_bounds = array<i64: 32, 1>}, {pipeline_mode = #tpu.pipeline_mode<synchronous>, transform_indices = @transform_3, window_bounds = array<i64: 64, 96>}, {pipeline_mode = #tpu.pipeline_mode<synchronous>, transform_indices = @transform_4, window_bounds = array<i64: 64, 1>}, {pipeline_mode = #tpu.pipeline_mode<synchronous>, transform_indices = @transform_5, window_bounds = array<i64: 128, 192>}, {pipeline_mode = #tpu.pipeline_mode<synchronous>, transform_indices = @transform_6, window_bounds = array<i64: 128, 1>}, {transform_indices = @transform_7, window_bounds = array<i64: 1, 128, 384>}]} {
    %c0 = arith.constant 0 : index
    %c0_0 = arith.constant 0 : index
    %c0_1 = arith.constant 0 : index
    %0 = vector.load %arg1[%c0, %c0_0, %c0_1] : memref<1x8x376xf32, #tpu.memory_space<vmem>>, vector<1x8x376xf32>
    %1 = vector.shape_cast %0 : vector<1x8x376xf32> to vector<8x376xf32>
    %c0_2 = arith.constant 0 : index
    %c0_3 = arith.constant 0 : index
    %2 = vector.load %arg3[%c0_2, %c0_3] : memref<32x1xf32, #tpu.memory_space<vmem>>, vector<32x1xf32>
    %c0_4 = arith.constant 0 : index
    %c0_5 = arith.constant 0 : index
    %c0_6 = arith.constant 0 : index
    %3 = vector.load %arg2[%c0_4, %c0_5, %c0_6] : memref<3x32x1xf32, #tpu.memory_space<vmem>>, vector<1x32x1xf32>
    %4 = vector.shape_cast %3 : vector<1x32x1xf32> to vector<32x1xf32>
    %c1 = arith.constant 1 : index
    %c0_7 = arith.constant 0 : index
    %c0_8 = arith.constant 0 : index
    %5 = vector.load %arg2[%c1, %c0_7, %c0_8] : memref<3x32x1xf32, #tpu.memory_space<vmem>>, vector<1x32x1xf32>
    %6 = vector.shape_cast %5 : vector<1x32x1xf32> to vector<32x1xf32>
    %c2 = arith.constant 2 : index
    %c0_9 = arith.constant 0 : index
    %c0_10 = arith.constant 0 : index
    %7 = vector.load %arg2[%c2, %c0_9, %c0_10] : memref<3x32x1xf32, #tpu.memory_space<vmem>>, vector<1x32x1xf32>
    %8 = vector.shape_cast %7 : vector<1x32x1xf32> to vector<32x1xf32>
    %9 = vector.extract_strided_slice %1 {offsets = [0, 0], sizes = [1, 375], strides = [1, 1]} : vector<8x376xf32> to vector<1x375xf32>
    %10 = vector.broadcast %4 : vector<32x1xf32> to vector<32x375xf32>
    %11 = vector.broadcast %9 : vector<1x375xf32> to vector<32x375xf32>
    %12 = arith.mulf %10, %11 : vector<32x375xf32>
    %13 = vector.broadcast %2 : vector<32x1xf32> to vector<32x375xf32>
    %14 = arith.addf %13, %12 : vector<32x375xf32>
    %15 = vector.extract_strided_slice %1 {offsets = [1, 0], sizes = [1, 375], strides = [1, 1]} : vector<8x376xf32> to vector<1x375xf32>
    %16 = vector.broadcast %6 : vector<32x1xf32> to vector<32x375xf32>
    %17 = vector.broadcast %15 : vector<1x375xf32> to vector<32x375xf32>
    %18 = arith.mulf %16, %17 : vector<32x375xf32>
    %19 = arith.addf %14, %18 : vector<32x375xf32>
    %20 = vector.extract_strided_slice %1 {offsets = [2, 0], sizes = [1, 375], strides = [1, 1]} : vector<8x376xf32> to vector<1x375xf32>
    %21 = vector.broadcast %8 : vector<32x1xf32> to vector<32x375xf32>
    %22 = vector.broadcast %20 : vector<1x375xf32> to vector<32x375xf32>
    %23 = arith.mulf %21, %22 : vector<32x375xf32>
    %24 = arith.addf %19, %23 : vector<32x375xf32>
    %25 = vector.extract_strided_slice %1 {offsets = [1, 0], sizes = [1, 375], strides = [1, 1]} : vector<8x376xf32> to vector<1x375xf32>
    %26 = vector.broadcast %4 : vector<32x1xf32> to vector<32x375xf32>
    %27 = vector.broadcast %25 : vector<1x375xf32> to vector<32x375xf32>
    %28 = arith.mulf %26, %27 : vector<32x375xf32>
    %29 = vector.broadcast %2 : vector<32x1xf32> to vector<32x375xf32>
    %30 = arith.addf %29, %28 : vector<32x375xf32>
    %31 = vector.extract_strided_slice %1 {offsets = [2, 0], sizes = [1, 375], strides = [1, 1]} : vector<8x376xf32> to vector<1x375xf32>
    %32 = vector.broadcast %6 : vector<32x1xf32> to vector<32x375xf32>
    %33 = vector.broadcast %31 : vector<1x375xf32> to vector<32x375xf32>
    %34 = arith.mulf %32, %33 : vector<32x375xf32>
    %35 = arith.addf %30, %34 : vector<32x375xf32>
    %36 = vector.extract_strided_slice %1 {offsets = [3, 0], sizes = [1, 375], strides = [1, 1]} : vector<8x376xf32> to vector<1x375xf32>
    %37 = vector.broadcast %8 : vector<32x1xf32> to vector<32x375xf32>
    %38 = vector.broadcast %36 : vector<1x375xf32> to vector<32x375xf32>
    %39 = arith.mulf %37, %38 : vector<32x375xf32>
    %40 = arith.addf %35, %39 : vector<32x375xf32>
    %cst = arith.constant 0.000000e+00 : f32
    %41 = vector.broadcast %cst : f32 to vector<32x375xf32>
    %42 = arith.maximumf %24, %41 : vector<32x375xf32>
    %cst_11 = arith.constant 0.000000e+00 : f32
    %43 = vector.broadcast %cst_11 : f32 to vector<32x375xf32>
    %44 = arith.maximumf %40, %43 : vector<32x375xf32>
    %45 = arith.maximumf %42, %44 : vector<32x375xf32>
    %c0_12 = arith.constant 0 : index
    %c0_13 = arith.constant 0 : index
    %46 = vector.load %arg9[%c0_12, %c0_13] : memref<192x375xf32, #tpu.memory_space<vmem>>, vector<32x375xf32>
    tpu.vector_store %arg9[%c0_12, %c0_13], %45 {strides = array<i32>} : memref<192x375xf32, #tpu.memory_space<vmem>>, vector<32x375xf32>,
    %47 = vector.extract_strided_slice %45 {offsets = [0, 1], sizes = [32, 374], strides = [1, 1]} : vector<32x375xf32> to vector<32x374xf32>
    %c128 = arith.constant 128 : index
    %c0_14 = arith.constant 0 : index
    %48 = vector.load %arg9[%c128, %c0_14] : memref<192x375xf32, #tpu.memory_space<vmem>>, vector<32x374xf32>
    tpu.vector_store %arg9[%c128, %c0_14], %47 {strides = array<i32>} : memref<192x375xf32, #tpu.memory_space<vmem>>, vector<32x374xf32>,
    %49 = vector.extract_strided_slice %1 {offsets = [2, 0], sizes = [1, 375], strides = [1, 1]} : vector<8x376xf32> to vector<1x375xf32>
    %50 = vector.broadcast %4 : vector<32x1xf32> to vector<32x375xf32>
    %51 = vector.broadcast %49 : vector<1x375xf32> to vector<32x375xf32>
    %52 = arith.mulf %50, %51 : vector<32x375xf32>
    %53 = vector.broadcast %2 : vector<32x1xf32> to vector<32x375xf32>
    %54 = arith.addf %53, %52 : vector<32x375xf32>
    %55 = vector.extract_strided_slice %1 {offsets = [3, 0], sizes = [1, 375], strides = [1, 1]} : vector<8x376xf32> to vector<1x375xf32>
    %56 = vector.broadcast %6 : vector<32x1xf32> to vector<32x375xf32>
    %57 = vector.broadcast %55 : vector<1x375xf32> to vector<32x375xf32>
    %58 = arith.mulf %56, %57 : vector<32x375xf32>
    %59 = arith.addf %54, %58 : vector<32x375xf32>
    %60 = vector.extract_strided_slice %1 {offsets = [4, 0], sizes = [1, 375], strides = [1, 1]} : vector<8x376xf32> to vector<1x375xf32>
    %61 = vector.broadcast %8 : vector<32x1xf32> to vector<32x375xf32>
    %62 = vector.broadcast %60 : vector<1x375xf32> to vector<32x375xf32>
    %63 = arith.mulf %61, %62 : vector<32x375xf32>
    %64 = arith.addf %59, %63 : vector<32x375xf32>
    %65 = vector.extract_strided_slice %1 {offsets = [3, 0], sizes = [1, 375], strides = [1, 1]} : vector<8x376xf32> to vector<1x375xf32>
    %66 = vector.broadcast %4 : vector<32x1xf32> to vector<32x375xf32>
    %67 = vector.broadcast %65 : vector<1x375xf32> to vector<32x375xf32>
    %68 = arith.mulf %66, %67 : vector<32x375xf32>
    %69 = vector.broadcast %2 : vector<32x1xf32> to vector<32x375xf32>
    %70 = arith.addf %69, %68 : vector<32x375xf32>
    %71 = vector.extract_strided_slice %1 {offsets = [4, 0], sizes = [1, 375], strides = [1, 1]} : vector<8x376xf32> to vector<1x375xf32>
    %72 = vector.broadcast %6 : vector<32x1xf32> to vector<32x375xf32>
    %73 = vector.broadcast %71 : vector<1x375xf32> to vector<32x375xf32>
    %74 = arith.mulf %72, %73 : vector<32x375xf32>
    %75 = arith.addf %70, %74 : vector<32x375xf32>
    %76 = vector.extract_strided_slice %1 {offsets = [5, 0], sizes = [1, 375], strides = [1, 1]} : vector<8x376xf32> to vector<1x375xf32>
    %77 = vector.broadcast %8 : vector<32x1xf32> to vector<32x375xf32>
    %78 = vector.broadcast %76 : vector<1x375xf32> to vector<32x375xf32>
    %79 = arith.mulf %77, %78 : vector<32x375xf32>
    %80 = arith.addf %75, %79 : vector<32x375xf32>
    %cst_15 = arith.constant 0.000000e+00 : f32
    %81 = vector.broadcast %cst_15 : f32 to vector<32x375xf32>
    %82 = arith.maximumf %64, %81 : vector<32x375xf32>
    %cst_16 = arith.constant 0.000000e+00 : f32
    %83 = vector.broadcast %cst_16 : f32 to vector<32x375xf32>
    %84 = arith.maximumf %80, %83 : vector<32x375xf32>
    %85 = arith.maximumf %82, %84 : vector<32x375xf32>
    %c32 = arith.constant 32 : index
    %c0_17 = arith.constant 0 : index
    %86 = vector.load %arg9[%c32, %c0_17] : memref<192x375xf32, #tpu.memory_space<vmem>>, vector<32x375xf32>
    tpu.vector_store %arg9[%c32, %c0_17], %85 {strides = array<i32>} : memref<192x375xf32, #tpu.memory_space<vmem>>, vector<32x375xf32>,
    %87 = vector.extract_strided_slice %85 {offsets = [0, 1], sizes = [32, 374], strides = [1, 1]} : vector<32x375xf32> to vector<32x374xf32>
    %c160 = arith.constant 160 : index
    %c0_18 = arith.constant 0 : index
    %88 = vector.load %arg9[%c160, %c0_18] : memref<192x375xf32, #tpu.memory_space<vmem>>, vector<32x374xf32>
    tpu.vector_store %arg9[%c160, %c0_18], %87 {strides = array<i32>} : memref<192x375xf32, #tpu.memory_space<vmem>>, vector<32x374xf32>,
    %89 = vector.extract_strided_slice %1 {offsets = [4, 0], sizes = [1, 375], strides = [1, 1]} : vector<8x376xf32> to vector<1x375xf32>
    %90 = vector.broadcast %4 : vector<32x1xf32> to vector<32x375xf32>
    %91 = vector.broadcast %89 : vector<1x375xf32> to vector<32x375xf32>
    %92 = arith.mulf %90, %91 : vector<32x375xf32>
    %93 = vector.broadcast %2 : vector<32x1xf32> to vector<32x375xf32>
    %94 = arith.addf %93, %92 : vector<32x375xf32>
    %95 = vector.extract_strided_slice %1 {offsets = [5, 0], sizes = [1, 375], strides = [1, 1]} : vector<8x376xf32> to vector<1x375xf32>
    %96 = vector.broadcast %6 : vector<32x1xf32> to vector<32x375xf32>
    %97 = vector.broadcast %95 : vector<1x375xf32> to vector<32x375xf32>
    %98 = arith.mulf %96, %97 : vector<32x375xf32>
    %99 = arith.addf %94, %98 : vector<32x375xf32>
    %100 = vector.extract_strided_slice %1 {offsets = [6, 0], sizes = [1, 375], strides = [1, 1]} : vector<8x376xf32> to vector<1x375xf32>
    %101 = vector.broadcast %8 : vector<32x1xf32> to vector<32x375xf32>
    %102 = vector.broadcast %100 : vector<1x375xf32> to vector<32x375xf32>
    %103 = arith.mulf %101, %102 : vector<32x375xf32>
    %104 = arith.addf %99, %103 : vector<32x375xf32>
    %105 = vector.extract_strided_slice %1 {offsets = [5, 0], sizes = [1, 375], strides = [1, 1]} : vector<8x376xf32> to vector<1x375xf32>
    %106 = vector.broadcast %4 : vector<32x1xf32> to vector<32x375xf32>
    %107 = vector.broadcast %105 : vector<1x375xf32> to vector<32x375xf32>
    %108 = arith.mulf %106, %107 : vector<32x375xf32>
    %109 = vector.broadcast %2 : vector<32x1xf32> to vector<32x375xf32>
    %110 = arith.addf %109, %108 : vector<32x375xf32>
    %111 = vector.extract_strided_slice %1 {offsets = [6, 0], sizes = [1, 375], strides = [1, 1]} : vector<8x376xf32> to vector<1x375xf32>
    %112 = vector.broadcast %6 : vector<32x1xf32> to vector<32x375xf32>
    %113 = vector.broadcast %111 : vector<1x375xf32> to vector<32x375xf32>
    %114 = arith.mulf %112, %113 : vector<32x375xf32>
    %115 = arith.addf %110, %114 : vector<32x375xf32>
    %116 = vector.extract_strided_slice %1 {offsets = [7, 0], sizes = [1, 375], strides = [1, 1]} : vector<8x376xf32> to vector<1x375xf32>
    %117 = vector.broadcast %8 : vector<32x1xf32> to vector<32x375xf32>
    %118 = vector.broadcast %116 : vector<1x375xf32> to vector<32x375xf32>
    %119 = arith.mulf %117, %118 : vector<32x375xf32>
    %120 = arith.addf %115, %119 : vector<32x375xf32>
    %cst_19 = arith.constant 0.000000e+00 : f32
    %121 = vector.broadcast %cst_19 : f32 to vector<32x375xf32>
    %122 = arith.maximumf %104, %121 : vector<32x375xf32>
    %cst_20 = arith.constant 0.000000e+00 : f32
    %123 = vector.broadcast %cst_20 : f32 to vector<32x375xf32>
    %124 = arith.maximumf %120, %123 : vector<32x375xf32>
    %125 = arith.maximumf %122, %124 : vector<32x375xf32>
    %c64 = arith.constant 64 : index
    %c0_21 = arith.constant 0 : index
    %126 = vector.load %arg9[%c64, %c0_21] : memref<192x375xf32, #tpu.memory_space<vmem>>, vector<32x375xf32>
    tpu.vector_store %arg9[%c64, %c0_21], %125 {strides = array<i32>} : memref<192x375xf32, #tpu.memory_space<vmem>>, vector<32x375xf32>,
    %127 = vector.extract_strided_slice %1 {offsets = [6, 0], sizes = [1, 375], strides = [1, 1]} : vector<8x376xf32> to vector<1x375xf32>
    %128 = vector.broadcast %4 : vector<32x1xf32> to vector<32x375xf32>
    %129 = vector.broadcast %127 : vector<1x375xf32> to vector<32x375xf32>
    %130 = arith.mulf %128, %129 : vector<32x375xf32>
    %131 = vector.broadcast %2 : vector<32x1xf32> to vector<32x375xf32>
    %132 = arith.addf %131, %130 : vector<32x375xf32>
    %133 = vector.extract_strided_slice %1 {offsets = [7, 0], sizes = [1, 375], strides = [1, 1]} : vector<8x376xf32> to vector<1x375xf32>
    %134 = vector.broadcast %6 : vector<32x1xf32> to vector<32x375xf32>
    %135 = vector.broadcast %133 : vector<1x375xf32> to vector<32x375xf32>
    %136 = arith.mulf %134, %135 : vector<32x375xf32>
    %137 = arith.addf %132, %136 : vector<32x375xf32>
    %138 = vector.extract_strided_slice %1 {offsets = [0, 1], sizes = [1, 375], strides = [1, 1]} : vector<8x376xf32> to vector<1x375xf32>
    %139 = vector.broadcast %8 : vector<32x1xf32> to vector<32x375xf32>
    %140 = vector.broadcast %138 : vector<1x375xf32> to vector<32x375xf32>
    %141 = arith.mulf %139, %140 : vector<32x375xf32>
    %142 = arith.addf %137, %141 : vector<32x375xf32>
    %143 = vector.extract_strided_slice %1 {offsets = [7, 0], sizes = [1, 375], strides = [1, 1]} : vector<8x376xf32> to vector<1x375xf32>
    %144 = vector.broadcast %4 : vector<32x1xf32> to vector<32x375xf32>
    %145 = vector.broadcast %143 : vector<1x375xf32> to vector<32x375xf32>
    %146 = arith.mulf %144, %145 : vector<32x375xf32>
    %147 = vector.broadcast %2 : vector<32x1xf32> to vector<32x375xf32>
    %148 = arith.addf %147, %146 : vector<32x375xf32>
    %149 = vector.extract_strided_slice %1 {offsets = [0, 1], sizes = [1, 375], strides = [1, 1]} : vector<8x376xf32> to vector<1x375xf32>
    %150 = vector.broadcast %6 : vector<32x1xf32> to vector<32x375xf32>
    %151 = vector.broadcast %149 : vector<1x375xf32> to vector<32x375xf32>
    %152 = arith.mulf %150, %151 : vector<32x375xf32>
    %153 = arith.addf %148, %152 : vector<32x375xf32>
    %154 = vector.extract_strided_slice %1 {offsets = [1, 1], sizes = [1, 375], strides = [1, 1]} : vector<8x376xf32> to vector<1x375xf32>
    %155 = vector.broadcast %8 : vector<32x1xf32> to vector<32x375xf32>
    %156 = vector.broadcast %154 : vector<1x375xf32> to vector<32x375xf32>
    %157 = arith.mulf %155, %156 : vector<32x375xf32>
    %158 = arith.addf %153, %157 : vector<32x375xf32>
    %cst_22 = arith.constant 0.000000e+00 : f32
    %159 = vector.broadcast %cst_22 : f32 to vector<32x375xf32>
    %160 = arith.maximumf %142, %159 : vector<32x375xf32>
    %cst_23 = arith.constant 0.000000e+00 : f32
    %161 = vector.broadcast %cst_23 : f32 to vector<32x375xf32>
    %162 = arith.maximumf %158, %161 : vector<32x375xf32>
    %163 = arith.maximumf %160, %162 : vector<32x375xf32>
    %c96 = arith.constant 96 : index
    %c0_24 = arith.constant 0 : index
    %164 = vector.load %arg9[%c96, %c0_24] : memref<192x375xf32, #tpu.memory_space<vmem>>, vector<32x375xf32>
    tpu.vector_store %arg9[%c96, %c0_24], %163 {strides = array<i32>} : memref<192x375xf32, #tpu.memory_space<vmem>>, vector<32x375xf32>,
    %c0_25 = arith.constant 0 : index
    %c0_26 = arith.constant 0 : index
    %165 = vector.load %arg4[%c0_25, %c0_26] : memref<64x96xbf16, #tpu.memory_space<vmem>>, vector<64x96xbf16>
    %c0_27 = arith.constant 0 : index
    %c0_28 = arith.constant 0 : index
    %166 = vector.load %arg5[%c0_27, %c0_28] : memref<64x1xf32, #tpu.memory_space<vmem>>, vector<64x1xf32>
    %c0_29 = arith.constant 0 : index
    %c0_30 = arith.constant 0 : index
    %167 = vector.load %arg9[%c0_29, %c0_30] : memref<192x375xf32, #tpu.memory_space<vmem>>, vector<96x374xf32>
    %168 = arith.truncf %167 : vector<96x374xf32> to vector<96x374xbf16>
    %cst_31 = arith.constant dense<0.000000e+00> : vector<64x374xf32>
    %169 = tpu.matmul %165, %168, %cst_31 {dimension_numbers = #tpu.dot_dimension_numbers<[1], [0], [0], [1], [0, 0, 1, 1], [], []>} : vector<64x96xbf16>, vector<96x374xbf16>, vector<64x374xf32> -> vector<64x374xf32>
    %170 = vector.broadcast %166 : vector<64x1xf32> to vector<64x374xf32>
    %171 = arith.addf %169, %170 : vector<64x374xf32>
    %cst_32 = arith.constant 0.000000e+00 : f32
    %172 = vector.broadcast %cst_32 : f32 to vector<64x374xf32>
    %173 = arith.maximumf %171, %172 : vector<64x374xf32>
    %c32_33 = arith.constant 32 : index
    %c0_34 = arith.constant 0 : index
    %174 = vector.load %arg9[%c32_33, %c0_34] : memref<192x375xf32, #tpu.memory_space<vmem>>, vector<96x374xf32>
    %175 = arith.truncf %174 : vector<96x374xf32> to vector<96x374xbf16>
    %cst_35 = arith.constant dense<0.000000e+00> : vector<64x374xf32>
    %176 = tpu.matmul %165, %175, %cst_35 {dimension_numbers = #tpu.dot_dimension_numbers<[1], [0], [0], [1], [0, 0, 1, 1], [], []>} : vector<64x96xbf16>, vector<96x374xbf16>, vector<64x374xf32> -> vector<64x374xf32>
    %177 = vector.broadcast %166 : vector<64x1xf32> to vector<64x374xf32>
    %178 = arith.addf %176, %177 : vector<64x374xf32>
    %cst_36 = arith.constant 0.000000e+00 : f32
    %179 = vector.broadcast %cst_36 : f32 to vector<64x374xf32>
    %180 = arith.maximumf %178, %179 : vector<64x374xf32>
    %181 = arith.maximumf %173, %180 : vector<64x374xf32>
    %c64_37 = arith.constant 64 : index
    %c0_38 = arith.constant 0 : index
    %182 = vector.load %arg9[%c64_37, %c0_38] : memref<192x375xf32, #tpu.memory_space<vmem>>, vector<96x374xf32>
    %183 = arith.truncf %182 : vector<96x374xf32> to vector<96x374xbf16>
    %cst_39 = arith.constant dense<0.000000e+00> : vector<64x374xf32>
    %184 = tpu.matmul %165, %183, %cst_39 {dimension_numbers = #tpu.dot_dimension_numbers<[1], [0], [0], [1], [0, 0, 1, 1], [], []>} : vector<64x96xbf16>, vector<96x374xbf16>, vector<64x374xf32> -> vector<64x374xf32>
    %185 = vector.broadcast %166 : vector<64x1xf32> to vector<64x374xf32>
    %186 = arith.addf %184, %185 : vector<64x374xf32>
    %cst_40 = arith.constant 0.000000e+00 : f32
    %187 = vector.broadcast %cst_40 : f32 to vector<64x374xf32>
    %188 = arith.maximumf %186, %187 : vector<64x374xf32>
    %c96_41 = arith.constant 96 : index
    %c0_42 = arith.constant 0 : index
    %189 = vector.load %arg9[%c96_41, %c0_42] : memref<192x375xf32, #tpu.memory_space<vmem>>, vector<96x374xf32>
    %190 = arith.truncf %189 : vector<96x374xf32> to vector<96x374xbf16>
    %cst_43 = arith.constant dense<0.000000e+00> : vector<64x374xf32>
    %191 = tpu.matmul %165, %190, %cst_43 {dimension_numbers = #tpu.dot_dimension_numbers<[1], [0], [0], [1], [0, 0, 1, 1], [], []>} : vector<64x96xbf16>, vector<96x374xbf16>, vector<64x374xf32> -> vector<64x374xf32>
    %192 = vector.broadcast %166 : vector<64x1xf32> to vector<64x374xf32>
    %193 = arith.addf %191, %192 : vector<64x374xf32>
    %cst_44 = arith.constant 0.000000e+00 : f32
    %194 = vector.broadcast %cst_44 : f32 to vector<64x374xf32>
    %195 = arith.maximumf %193, %194 : vector<64x374xf32>
    %196 = arith.maximumf %188, %195 : vector<64x374xf32>
    %c0_45 = arith.constant 0 : index
    %c0_46 = arith.constant 0 : index
    %197 = vector.load %arg10[%c0_45, %c0_46] : memref<256x374xf32, #tpu.memory_space<vmem>>, vector<64x374xf32>
    tpu.vector_store %arg10[%c0_45, %c0_46], %181 {strides = array<i32>} : memref<256x374xf32, #tpu.memory_space<vmem>>, vector<64x374xf32>,
    %c64_47 = arith.constant 64 : index
    %c0_48 = arith.constant 0 : index
    %198 = vector.load %arg10[%c64_47, %c0_48] : memref<256x374xf32, #tpu.memory_space<vmem>>, vector<64x374xf32>
    tpu.vector_store %arg10[%c64_47, %c0_48], %196 {strides = array<i32>} : memref<256x374xf32, #tpu.memory_space<vmem>>, vector<64x374xf32>,
    %199 = vector.extract_strided_slice %181 {offsets = [0, 1], sizes = [64, 373], strides = [1, 1]} : vector<64x374xf32> to vector<64x373xf32>
    %c128_49 = arith.constant 128 : index
    %c0_50 = arith.constant 0 : index
    %200 = vector.load %arg10[%c128_49, %c0_50] : memref<256x374xf32, #tpu.memory_space<vmem>>, vector<64x373xf32>
    tpu.vector_store %arg10[%c128_49, %c0_50], %199 {strides = array<i32>} : memref<256x374xf32, #tpu.memory_space<vmem>>, vector<64x373xf32>,
    %201 = vector.extract_strided_slice %196 {offsets = [0, 1], sizes = [64, 373], strides = [1, 1]} : vector<64x374xf32> to vector<64x373xf32>
    %c192 = arith.constant 192 : index
    %c0_51 = arith.constant 0 : index
    %202 = vector.load %arg10[%c192, %c0_51] : memref<256x374xf32, #tpu.memory_space<vmem>>, vector<64x373xf32>
    tpu.vector_store %arg10[%c192, %c0_51], %201 {strides = array<i32>} : memref<256x374xf32, #tpu.memory_space<vmem>>, vector<64x373xf32>,
    %c0_52 = arith.constant 0 : index
    %c0_53 = arith.constant 0 : index
    %203 = vector.load %arg6[%c0_52, %c0_53] : memref<128x192xbf16, #tpu.memory_space<vmem>>, vector<128x192xbf16>
    %c0_54 = arith.constant 0 : index
    %c0_55 = arith.constant 0 : index
    %204 = vector.load %arg7[%c0_54, %c0_55] : memref<128x1xf32, #tpu.memory_space<vmem>>, vector<128x1xf32>
    %c0_56 = arith.constant 0 : index
    %c0_57 = arith.constant 0 : index
    %205 = vector.load %arg10[%c0_56, %c0_57] : memref<256x374xf32, #tpu.memory_space<vmem>>, vector<192x373xf32>
    %206 = arith.truncf %205 : vector<192x373xf32> to vector<192x373xbf16>
    %cst_58 = arith.constant dense<0.000000e+00> : vector<128x373xf32>
    %207 = tpu.matmul %203, %206, %cst_58 {dimension_numbers = #tpu.dot_dimension_numbers<[1], [0], [0], [1], [0, 0, 1, 1], [], []>} : vector<128x192xbf16>, vector<192x373xbf16>, vector<128x373xf32> -> vector<128x373xf32>
    %208 = vector.broadcast %204 : vector<128x1xf32> to vector<128x373xf32>
    %209 = arith.addf %207, %208 : vector<128x373xf32>
    %c64_59 = arith.constant 64 : index
    %c0_60 = arith.constant 0 : index
    %210 = vector.load %arg10[%c64_59, %c0_60] : memref<256x374xf32, #tpu.memory_space<vmem>>, vector<192x373xf32>
    %211 = arith.truncf %210 : vector<192x373xf32> to vector<192x373xbf16>
    %cst_61 = arith.constant dense<0.000000e+00> : vector<128x373xf32>
    %212 = tpu.matmul %203, %211, %cst_61 {dimension_numbers = #tpu.dot_dimension_numbers<[1], [0], [0], [1], [0, 0, 1, 1], [], []>} : vector<128x192xbf16>, vector<192x373xbf16>, vector<128x373xf32> -> vector<128x373xf32>
    %213 = vector.broadcast %204 : vector<128x1xf32> to vector<128x373xf32>
    %214 = arith.addf %212, %213 : vector<128x373xf32>
    %cst_62 = arith.constant 0.000000e+00 : f32
    %215 = vector.broadcast %cst_62 : f32 to vector<128x373xf32>
    %216 = arith.maximumf %209, %215 : vector<128x373xf32>
    %cst_63 = arith.constant 0.000000e+00 : f32
    %217 = vector.broadcast %cst_63 : f32 to vector<128x373xf32>
    %218 = arith.maximumf %214, %217 : vector<128x373xf32>
    %219 = arith.maximumf %216, %218 : vector<128x373xf32>
    %cst_64 = arith.constant 0.000000e+00 : bf16
    %220 = vector.broadcast %cst_64 : bf16 to vector<1x128x384xbf16>
    %c0_65 = arith.constant 0 : index
    %c0_66 = arith.constant 0 : index
    %c0_67 = arith.constant 0 : index
    %221 = vector.load %arg8[%c0_65, %c0_66, %c0_67] : memref<1x128x384xbf16, #tpu.memory_space<vmem>>, vector<1x128x384xbf16>
    tpu.vector_store %arg8[%c0_65, %c0_66, %c0_67], %220 {strides = array<i32>} : memref<1x128x384xbf16, #tpu.memory_space<vmem>>, vector<1x128x384xbf16>,
    %222 = arith.truncf %219 : vector<128x373xf32> to vector<128x373xbf16>
    %c0_68 = arith.constant 0 : index
    %c0_69 = arith.constant 0 : index
    %c0_70 = arith.constant 0 : index
    %223 = vector.load %arg8[%c0_68, %c0_69, %c0_70] : memref<1x128x384xbf16, #tpu.memory_space<vmem>>, vector<1x128x373xbf16>
    %224 = vector.shape_cast %223 : vector<1x128x373xbf16> to vector<128x373xbf16>
    %225 = vector.shape_cast %222 : vector<128x373xbf16> to vector<1x128x373xbf16>
    tpu.vector_store %arg8[%c0_68, %c0_69, %c0_70], %225 {strides = array<i32>} : memref<1x128x384xbf16, #tpu.memory_space<vmem>>, vector<1x128x373xbf16>,
    return
  }
  func.func @transform_0(%arg0: i32) -> (i32, i32, i32) {
    %c0_i32 = arith.constant 0 : i32
    %c0_i32_0 = arith.constant 0 : i32
    %c0_i32_1 = arith.constant 0 : i32
    return %arg0, %c0_i32, %c0_i32_0 : i32, i32, i32
  }
  func.func @transform_1(%arg0: i32) -> (i32, i32, i32) {
    %c0_i32 = arith.constant 0 : i32
    %c0_i32_0 = arith.constant 0 : i32
    %c0_i32_1 = arith.constant 0 : i32
    %c0_i32_2 = arith.constant 0 : i32
    return %c0_i32, %c0_i32_0, %c0_i32_1 : i32, i32, i32
  }
  func.func @transform_2(%arg0: i32) -> (i32, i32) {
    %c0_i32 = arith.constant 0 : i32
    %c0_i32_0 = arith.constant 0 : i32
    %c0_i32_1 = arith.constant 0 : i32
    return %c0_i32, %c0_i32_0 : i32, i32
  }
  func.func @transform_3(%arg0: i32) -> (i32, i32) {
    %c0_i32 = arith.constant 0 : i32
    %c0_i32_0 = arith.constant 0 : i32
    %c0_i32_1 = arith.constant 0 : i32
    return %c0_i32, %c0_i32_0 : i32, i32
  }
  func.func @transform_4(%arg0: i32) -> (i32, i32) {
    %c0_i32 = arith.constant 0 : i32
    %c0_i32_0 = arith.constant 0 : i32
    %c0_i32_1 = arith.constant 0 : i32
    return %c0_i32, %c0_i32_0 : i32, i32
  }
  func.func @transform_5(%arg0: i32) -> (i32, i32) {
    %c0_i32 = arith.constant 0 : i32
    %c0_i32_0 = arith.constant 0 : i32
    %c0_i32_1 = arith.constant 0 : i32
    return %c0_i32, %c0_i32_0 : i32, i32
  }
  func.func @transform_6(%arg0: i32) -> (i32, i32) {
    %c0_i32 = arith.constant 0 : i32
    %c0_i32_0 = arith.constant 0 : i32
    %c0_i32_1 = arith.constant 0 : i32
    return %c0_i32, %c0_i32_0 : i32, i32
  }
  func.func @transform_7(%arg0: i32) -> (i32, i32, i32) {
    %c0_i32 = arith.constant 0 : i32
    %c0_i32_0 = arith.constant 0 : i32
    %c0_i32_1 = arith.constant 0 : i32
    return %arg0, %c0_i32, %c0_i32_0 : i32, i32, i32
  }
}

</mosaic_0001>

<bundles_post_ra>
// kernel: cnn_forward.2
= control target key start
LH: loop header
LB: loop body
LE: loop exit
PB: predicated region body
PF: predicated region fallthrough
CT: control target
= control target key end

     0   :  { %12 = vsyncpa [#allocation5], 0  ;;  %s4271_s24 = smov 0   ;;  %s7169_s0 = inlined_call_operand.vmem [shape: f32[2,8,376], index: 0, kind: input, shape index: {}]   ;;  %s7170_s1 = inlined_call_operand.vmem [shape: f32[3,32,1], index: 1, kind: input, shape index: {}]   ;;  %s7171_s2 = inlined_call_operand.vmem [shape: f32[32,1], index: 2, kind: input, shape index: {}]   ;;  %s7172_s3 = inlined_call_operand.hbm [shape: bf16[64,96], index: 3, kind: input, shape index: {}]   ;;  %s7173_s4 = inlined_call_operand.vmem [shape: f32[64,1], index: 4, kind: input, shape index: {}]   ;;  %s7174_s5 = inlined_call_operand.vmem [shape: bf16[128,192], index: 5, kind: input, shape index: {}]   ;;  %s7175_s6 = inlined_call_operand.vmem [shape: f32[128,1], index: 6, kind: input, shape index: {}]   ;;  %s7176_s7 = inlined_call_operand.vmem [shape: bf16[2,128,384], index: 7, kind: output, shape index: {}]  }
   0x1 LB: > { %s218_s27 = sshll.u32 %s7172_s3, 4  ;;  %s3936_s28 = sadd.s32 4294967295, %s4224_s24   ;;  %s4224_s24 = sphi %s4271_s24, %s18_s24   ;;  %s219_s27 = int_to_ptr.hbm [resolvable:$true] %s218_s27 }
   0x2   : > { %p3938_p0 = scmp.ge.s32.totalorder %s4224_s24, 1  ;;  %p201_p1 = scmp.lt.s32.totalorder %s4224_s24, 3 }
   0x3   : > { %p4161_p2 = scmp.eq.s32.totalorder %s3936_s28, 0  ;;  %s4226_s29 = smov [#allocation4]  }
   0x4   : > { %p202_p3 = pnand %p3938_p0, %p201_p1  ;;  %s220_s30 = sshll.u32 %s4226_s29, 4  ;;  %s221_s30 = int_to_ptr.vmem [resolvable:$true] %s220_s30 }
   0x5   : > { %s4227_s8 = smov 64   ;;  %s4228_s9 = smov 4  }
   0x6   : > { %p4157_p4 = pneg %p202_p3  ;;  %253 = sbr.rel (%p202_p3) target bundleno = 1312 (0x520), region = 48 }
   0x8   : > { %p4158_p5 = pnand %p4161_p2, %p4157_p4 }
   0xa   : > { %4160 = dma.hbm_to_vmem [thread:$0]  (!%p4158_p5), %s219_s27, 512, %s221_s30, [#allocation5], %s4227_s8, %s4227_s8, %s4228_s9  }
   0xb   : > { %4219 = dma.done.wait (%p4161_p2), [#allocation5], 512  }
   0xc   : > { %4221 = vsyncadd (%p4161_p2), [#allocation5], 4294966784  ;;  %p286_p6 = scmp.lt.s32.totalorder %s3936_s28, 1  ;;  %v4229_v0 = vmov 0   ;;  %v3947_v1 = vld [vmem:[%s7170_s1 + $0x30] sm:$0xff]  ;;  %v3948_v4 = vld [vmem:[%s7170_s1 + $0x38] sm:$0xff] }
   0xd   : > { %4178 = vset.pattern.permute.xlu2 %v4229_v0  ;;  %4177 = vset.pattern.permute.xlu1 %v4229_v0  ;;  %v306_v2 = vld [vmem:[%s7170_s1 + $0x10] sm:$0xff]  ;;  %v307_v5 = vld [vmem:[%s7170_s1 + $0x18] sm:$0xff]  ;;  %v304_v8 = vld [vmem:[%s7170_s1] sm:$0xff]  ;;  %s4230_s9 = smov 127   ;;  %vm592_vm0 = vcmask 973824   ;;  %vm1627_vm1 = vcmask 785408  }
   0xe   : > { %4176 = vset.pattern.permute.xlu0 %v4229_v0  ;;  %s7379_s28 = smov (!%p286_p6, %s3936_s28), 1  ;;  %v302_v3 = vld [vmem:[%s7171_s2 + $0x10] sm:$0xff]  ;;  %397 = vperm.xlu2 %4178, %v3947_v1   ;;  %v303_v6 = vld [vmem:[%s7171_s2 + $0x18] sm:$0xff]  ;;  %v305_v9 = vld [vmem:[%s7170_s1 + $0x8] sm:$0xff]  ;;  %vm639_vm2 = vcmask 1039360   ;;  %vm662_vm3 = vcmask 965632  }
   0xf   : > { %s4152_s10 = smul.u32 192, %s7379_s28  ;;  %330 = vperm.xlu0 %4176, %v306_v2   ;;  %365 = vperm.xlu1 %4177, %v302_v3   ;;  %v3951_v7 = vld [vmem:[%s7170_s1 + $0x50] sm:$0xff]  ;;  %v3952_v10 = vld [vmem:[%s7170_s1 + $0x58] sm:$0xff]  ;;  %v301_v11 = vld [vmem:[%s7171_s2 + $0x8] sm:$0xff]  ;;  %vm2456_vm4 = vcmask 957440   ;;  %vm2907_vm5 = vcmask 523264  }
  0x10   : > { %v300_v12 = vld [vmem:[%s7171_s2] sm:$0xff]  ;;  %v3946_v15 = vld [vmem:[%s7170_s1 + $0x28] sm:$0xff]  ;;  %s4151_s27 = smul.u32 24, %s7379_s28  ;;  %vm3837_vm6 = vcmask 953344  }
  0x11   : > { %s4297_s19 = scalar_lea.vmem %s7176_s7, %s4152_s10  ;;  %v3945_v13 = vld [vmem:[%s7170_s1 + $0x20] sm:$0xff]  ;;  %v3950_v16 = vld [vmem:[%s7170_s1 + $0x48] sm:$0xff] }
  0x12   : > { %3773 = vst [vmem:[%s4297_s19 + $0x8] sm:$0xf] %v4229_v0  ;;  %v3949_v14 = vld [vmem:[%s7170_s1 + $0x40] sm:$0xff]  ;;  %s290_s8 = scalar_lea.vmem %s7169_s0, %s4151_s27 }
  0x13   : > { %3775 = vst [vmem:[%s4297_s19 + $0x14] sm:$0xf] %v4229_v0  ;;  %v297_v17 = vld [vmem:[%s290_s8] sm:$0xff]  ;;  %v298_v18 = vld [vmem:[%s290_s8 + $0x8] sm:$0xff]  ;;  %v4378_v27 = vld [vmem:[%s290_s8 + $0x10] sm:$0xff] }
  0x14   : > { %3777 = vst [vmem:[%s4297_s19 + $0x20] sm:$0xf] %v4229_v0  ;;  %v4358_v19 = vperm.slane %v297_v17, 0  ;;  %v4360_v20 = vperm.slane %v298_v18, 0  ;;  %v4380_v28 = vperm.slane %v297_v17, 2  ;;  %v4382_v29 = vperm.slane %v297_v17, 3 }
  0x15   : > { %3779 = vst [vmem:[%s4297_s19 + $0x2c] sm:$0xf] %v4229_v0  ;;  %v4384_v30 = vperm.slane %v297_v17, 4  ;;  %v4387_v31 = vperm.slane %v4378_v27, 1  ;;  %v4390_v32 = vperm.slane %v4378_v27, 4  ;;  %v4392_v33 = vperm.slane %v297_v17, 5 }
  0x16   : > { %3781 = vst [vmem:[%s4297_s19 + $0x38] sm:$0xf] %v4229_v0  ;;  %402 = vperm.xlu2 %4178, %v3948_v4   ;;  %v4395_v34 = vperm.slane %v4378_v27, 5  ;;  %v4397_v35 = vperm.slane %v297_v17, 6  ;;  %v4400_v36 = vperm.slane %v4378_v27, 6  ;;  %v4402_v37 = vperm.slane %v297_v17, 7 }
  0x17   : > { %3783 = vst [vmem:[%s4297_s19 + $0x44] sm:$0xf] %v4229_v0  ;;  %335 = vperm.xlu0 %4176, %v307_v5   ;;  %370 = vperm.xlu1 %4177, %v303_v6   ;;  %v4405_v38 = vperm.slane %v4378_v27, 7  ;;  %v4409_v40 = vperm.slane %v298_v18, 2  ;;  %v4411_v41 = vperm.slane %v298_v18, 3  ;;  %v4417_v44 = vperm.slane %v298_v18, 4 }
  0x18   : > { %3785 = vst [vmem:[%s4297_s19 + $0x50] sm:$0xf] %v4229_v0  ;;  %v4419_v45 = vperm.slane %v298_v18, 5  ;;  %v4421_v46 = vperm.slane %v298_v18, 6  ;;  %v4423_v47 = vperm.slane %v298_v18, 7  ;;  %v4426_v48 = vperm.slane %v297_v17, 1 }
  0x19   : > { %3787 = vst [vmem:[%s4297_s19 + $0x5c] sm:$0xf] %v4229_v0  ;;  %v4429_v49 = vperm.slane %v298_v18, 1 }
  0x1a   : > { %3789 = vst [vmem:[%s4297_s19 + $0x68] sm:$0xf] %v4229_v0 }
  0x1b   : > { %3791 = vst [vmem:[%s4297_s19 + $0x74] sm:$0xf] %v4229_v0 }
  0x1c   : > { %3793 = vst [vmem:[%s4297_s19 + $0x80] sm:$0xf] %v4229_v0 }
  0x1d   : > { %3795 = vst [vmem:[%s4297_s19 + $0x8c] sm:$0xf] %v4229_v0 }
  0x1e   : > { %3797 = vst [vmem:[%s4297_s19 + $0x98] sm:$0xf] %v4229_v0  ;;  %444 = vperm.xlu2 %4178, %v3951_v7  }
  0x1f   : > { %3799 = vst [vmem:[%s4297_s19 + $0xa4] sm:$0xf] %v4229_v0  ;;  %320 = vperm.xlu0 %4176, %v304_v8   ;;  %325 = vperm.xlu1 %4177, %v305_v9  }
  0x20   : > { %3801 = vst [vmem:[%s4297_s19 + $0xb0] sm:$0xf] %v4229_v0 }
  0x21   : > { %3803 = vst [vmem:[%s4297_s19 + $0xbc] sm:$0xf] %v4229_v0 }
  0x22   : > { %7242 = vst [vmem:[#allocation9_spill] sm:$0xff] %v4378_v27 }
  0x23   : > { %7243 = vst [vmem:[#allocation10_spill] sm:$0xff] %v4380_v28 }
  0x24   : > { %7244 = vst [vmem:[#allocation11_spill] sm:$0xff] %v4382_v29 }
  0x25   : > { %7245 = vst [vmem:[#allocation12_spill] sm:$0xff] %v4384_v30 }
  0x26   : > { %360 = vperm.xlu2 %4178, %v301_v11   ;;  %7246 = vst [vmem:[#allocation13_spill] sm:$0xff] %v4387_v31 }
  0x27   : > { %449 = vperm.xlu0 %4176, %v3952_v10   ;;  %355 = vperm.xlu1 %4177, %v300_v12   ;;  %7247 = vst [vmem:[#allocation14_spill] sm:$0xff] %v4390_v32 }
  0x28   : > { %7248 = vst [vmem:[#allocation15_spill] sm:$0xff] %v4400_v36 }
  0x29   : > { %7249 = vst [vmem:[#allocation16_spill] sm:$0xff] %v4405_v38 }
  0x2a   : > { %7251 = vst [vmem:[#allocation18_spill] sm:$0xff] %v4409_v40 }
  0x2b   : > { %7252 = vst [vmem:[#allocation19_spill] sm:$0xff] %v4411_v41 }
  0x2c   : > { %7253 = vst [vmem:[#allocation20_spill] sm:$0xff] %v4417_v44 }
  0x2d   : > { %7254 = vst [vmem:[#allocation21_spill] sm:$0xff] %v4421_v46 }
  0x2e   : > { %434 = vperm.xlu2 %4178, %v3949_v14   ;;  %7255 = vst [vmem:[#allocation22_spill] sm:$0xff] %v4423_v47 }
  0x2f   : > { %387 = vperm.xlu0 %4176, %v3945_v13   ;;  %392 = vperm.xlu1 %4177, %v3946_v15   ;;  %7256 = vst [vmem:[#allocation23_spill] sm:$0xff] %v4426_v48 }
  0x30   : > { %7257 = vst [vmem:[#allocation24_spill] sm:$0xff] %v4429_v49 }
  0x37   : > { %439 = vperm.xlu0 %4176, %v3950_v16  }
  0x68   : > { %v4362_v21 = vpop.permute.xlu2 %397 }
  0x69   : > { %7240 = vst [vmem:[#allocation7_spill] sm:$0xff] %v4362_v21  ;;  %v1295_v22 = vmul.f32 %v4362_v21, %v4358_v19  ;;  %v1296_v23 = vmul.f32 %v4362_v21, %v4360_v20  ;;  %v969_v50 = vmul.f32 %v4392_v33, %v4362_v21  ;;  %v1044_v51 = vmul.f32 %v4397_v35, %v4362_v21 }
  0x6a   : > { %v970_v52 = vmul.f32 %v4419_v45, %v4362_v21  ;;  %v1045_v53 = vmul.f32 %v4421_v46, %v4362_v21  ;;  %v971_v54 = vmul.f32 %v4395_v34, %v4362_v21  ;;  %v1046_v55 = vmul.f32 %v4400_v36, %v4362_v21 }
  0x6b   : > { %1325 = vrot.lane.b32.xlu1 %v1295_v22, %s4230_s9  ;;  %1327 = vrot.lane.b32.xlu2 %v1296_v23, %s4230_s9  ;;  %v703_v62 = vmul.f32 %v4382_v29, %v4362_v21 }
  0x70   : > { %v4370_v24 = vpop.permute.xlu2 %402 }
  0x71   : > { %7241 = vst [vmem:[#allocation8_spill] sm:$0xff] %v4370_v24  ;;  %v1298_v25 = vmul.f32 %v4370_v24, %v4358_v19  ;;  %v1299_v26 = vmul.f32 %v4370_v24, %v4360_v20  ;;  %v4445_v56 = vmul.f32 %v4392_v33, %v4370_v24  ;;  %v4449_v57 = vmul.f32 %v4397_v35, %v4370_v24 }
  0x72   : > { %v4453_v58 = vmul.f32 %v4419_v45, %v4370_v24  ;;  %v4457_v59 = vmul.f32 %v4421_v46, %v4370_v24  ;;  %v4461_v60 = vmul.f32 %v4395_v34, %v4370_v24  ;;  %v4465_v61 = vmul.f32 %v4400_v36, %v4370_v24 }
  0x73   : > { %1331 = vrot.lane.b32.xlu0 %v1298_v25, %s4230_s9  ;;  %1333 = vrot.lane.b32.xlu1 %v1299_v26, %s4230_s9  ;;  %v4471_v63 = vmul.f32 %v4382_v29, %v4370_v24 }
  0x75   : > { %7258 = vst [vmem:[#allocation25_spill] sm:$0xff] %v4471_v63 }
  0x78   : > { %v4407_v39 = vpop.permute.xlu2 %444 }
  0x79   : > { %7250 = vst [vmem:[#allocation17_spill] sm:$0xff] %v4407_v39  ;;  %v1192_v42 = vmul.f32 %v4407_v39, %v4360_v20  ;;  %v1191_v43 = vmul.f32 %v4407_v39, %v4358_v19  ;;  %v1375_v0 = vmul.f32 %v4407_v39, %v4426_v48  ;;  %v4477_v1 = vmul.f32 %v4407_v39, %v4429_v49 }
  0x7a   : > { %v996_v2 = vmul.f32 %v4397_v35, %v4407_v39  ;;  %v1071_v3 = vmul.f32 %v4402_v37, %v4407_v39  ;;  %v997_v5 = vmul.f32 %v4421_v46, %v4407_v39  ;;  %v1072_v6 = vmul.f32 %v4423_v47, %v4407_v39 }
  0x7b   : > { %1223 = vrot.lane.b32.xlu0 %v1192_v42, %s4230_s9  ;;  %1221 = vrot.lane.b32.xlu2 %v1191_v43, %s4230_s9  ;;  %7259 = vst [vmem:[#allocation26_spill] sm:$0xff] %v4477_v1  ;;  %v998_v7 = vmul.f32 %v4400_v36, %v4407_v39  ;;  %v1073_v8 = vmul.f32 %v4405_v38, %v4407_v39 }
  0x7c   : > { %v730_v1 = vmul.f32 %v4384_v30, %v4407_v39 }
  0x80   : > { %v4503_v14 = vpop.permute.xlu2 %360 }
  0x81   : > { %v4483_v4 = vpop.permute.xlu0 %330  ;;  %v4493_v9 = vpop.permute.xlu1 %365  ;;  %7262 = vst [vmem:[#allocation29_spill] sm:$0xff] %v4503_v14 }
  0x82   : > { %7260 = vst [vmem:[#allocation27_spill] sm:$0xff] %v4483_v4  ;;  %v945_v10 = vmul.f32 %v4384_v30, %v4483_v4  ;;  %v1020_v11 = vmul.f32 %v4392_v33, %v4483_v4  ;;  %v946_v12 = vmul.f32 %v4417_v44, %v4483_v4  ;;  %v1021_v13 = vmul.f32 %v4419_v45, %v4483_v4 }
  0x83   : > { %7261 = vst [vmem:[#allocation28_spill] sm:$0xff] %v4493_v9  ;;  %v947_v15 = vmul.f32 %v4390_v32, %v4483_v4  ;;  %v1022_v16 = vmul.f32 %v4395_v34, %v4483_v4  ;;  %v679_v17 = vmul.f32 %v4380_v28, %v4483_v4  ;;  %v754_v18 = vmul.f32 %v4382_v29, %v4483_v4 }
  0x84   : > { %1405 = vrot.lane.b32.xlu0 %v1375_v0, %s4230_s9  ;;  %v957_v22 = vadd.f32 %v945_v10, %v4493_v9  ;;  %v1032_v23 = vadd.f32 %v1020_v11, %v4493_v9  ;;  %v958_v25 = vadd.f32 %v946_v12, %v4493_v9  ;;  %v1033_v26 = vadd.f32 %v1021_v13, %v4493_v9 }
  0x85   : > { %v959_v42 = vadd.f32 %v947_v15, %v4493_v9  ;;  %v1034_v43 = vadd.f32 %v1022_v16, %v4493_v9  ;;  %v691_v31 = vadd.f32 %v679_v17, %v4493_v9  ;;  %v766_v11 = vadd.f32 %v754_v18, %v4493_v9 }
  0x86   : > { %v981_v63 = vadd.f32 %v969_v50, %v957_v22  ;;  %v1056_v27 = vadd.f32 %v1044_v51, %v1032_v23  ;;  %v982_v0 = vadd.f32 %v970_v52, %v958_v25  ;;  %v1057_v41 = vadd.f32 %v1045_v53, %v1033_v26 }
  0x87   : > { %v983_v10 = vadd.f32 %v971_v54, %v959_v42  ;;  %v1058_v49 = vadd.f32 %v1046_v55, %v1034_v43  ;;  %v778_v12 = vmul.f32 %v4384_v30, %v4362_v21  ;;  %v715_v50 = vadd.f32 %v703_v62, %v691_v31 }
  0x88   : > { %v1008_v13 = vadd.f32 %v996_v2, %v981_v63  ;;  %v1083_v15 = vadd.f32 %v1071_v3, %v1056_v27  ;;  %v1009_v40 = vadd.f32 %v997_v5, %v982_v0  ;;  %v1084_v16 = vadd.f32 %v1072_v6, %v1057_v41  ;;  %v4548_v6 = vpop.permute.xlu2 %434 }
  0x89   : > { %v4526_v17 = vpop.permute.xlu0 %335  ;;  %v1010_v4 = vadd.f32 %v998_v7, %v983_v10  ;;  %v1085_v38 = vadd.f32 %v1073_v8, %v1058_v49  ;;  %v4530_v51 = vmul.f32 %v4384_v30, %v4370_v24  ;;  %v4532_v52 = vpop.permute.xlu1 %370  ;;  %7266 = vst [vmem:[#allocation33_spill] sm:$0xff] %v4548_v6  ;;  %v4558_v25 = vadd.f32 %v730_v1, %v715_v50 }
  0x8a   : > { %7263 = vst [vmem:[#allocation30_spill] sm:$0xff] %v4526_v17  ;;  %v948_v53 = vmul.f32 %v4384_v30, %v4526_v17  ;;  %v1023_v27 = vmul.f32 %v4392_v33, %v4526_v17  ;;  %v1095_v54 = vmax.f32 %v1008_v13, 0.0  ;;  %v1107_v41 = vmax.f32 %v1083_v15, 0.0 }
  0x8b   : > { %7264 = vst [vmem:[#allocation31_spill] sm:$0xff] %v4530_v51  ;;  %v949_v55 = vmul.f32 %v4417_v44, %v4526_v17  ;;  %v1024_v31 = vmul.f32 %v4419_v45, %v4526_v17  ;;  %v1096_v49 = vmax.f32 %v1009_v40, 0.0  ;;  %v1108_v62 = vmax.f32 %v1084_v16, 0.0 }
  0x8c   : > { %7265 = vst [vmem:[#allocation32_spill] sm:$0xff] %v4532_v52  ;;  %v960_v63 = vadd.f32 %v948_v53, %v4532_v52  ;;  %v1035_v2 = vadd.f32 %v1023_v27, %v4532_v52  ;;  %v4544_v3 = vmax.f32 %v1095_v54, %v1107_v41  ;;  %v950_v5 = vmul.f32 %v4390_v32, %v4526_v17 }
  0x8d   : > { %v961_v7 = vadd.f32 %v949_v55, %v4532_v52  ;;  %v1036_v8 = vadd.f32 %v1024_v31, %v4532_v52  ;;  %v4552_v18 = vmax.f32 %v1096_v49, %v1108_v62  ;;  %v1025_v40 = vmul.f32 %v4395_v34, %v4526_v17 }
  0x8e   : > { %1131 = vst [vmem:[#allocation2 + $0xf0] sm:$0xff] %v4544_v3  ;;  %v962_v22 = vadd.f32 %v950_v5, %v4532_v52  ;;  %v1097_v23 = vmax.f32 %v1010_v4, 0.0  ;;  %v790_v26 = vadd.f32 %v778_v12, %v766_v11  ;;  %v4561_v42 = vadd.f32 %v4445_v56, %v960_v63 }
  0x8f   : > { %v4564_v43 = vadd.f32 %v4449_v57, %v1035_v2  ;;  %1132 = vst [vmem:[#allocation2 + $0xf8] sm:$0xff] %v4552_v18  ;;  %v1037_v0 = vadd.f32 %v1025_v40, %v4532_v52  ;;  %v1109_v10 = vmax.f32 %v1085_v38, 0.0  ;;  %v985_v13 = vadd.f32 %v4453_v58, %v961_v7 }
  0x90   : > { %v1060_v15 = vadd.f32 %v4457_v59, %v1036_v8  ;;  %v986_v4 = vadd.f32 %v4461_v60, %v962_v22  ;;  %v4573_v1 = vmul.f32 %v4548_v6, %v4360_v20  ;;  %v4580_v12 = vmul.f32 %v4548_v6, %v4426_v48 }
  0x91   : > { %v4575_v56 = vpop.permute.xlu0 %320  ;;  %v1061_v57 = vadd.f32 %v4465_v61, %v1037_v0  ;;  %v1121_v11 = vmax.f32 %v1097_v23, %v1109_v10  ;;  %v4584_v38 = vmul.f32 %v4548_v6, %v4358_v19  ;;  %v4586_v58 = vpop.permute.xlu1 %325  ;;  %v4592_v60 = vmul.f32 %v4397_v35, %v4548_v6 }
  0x92   : > { %7267 = vst [vmem:[#allocation34_spill] sm:$0xff] %v4575_v56  ;;  %v939_v59 = vmul.f32 %v4384_v30, %v4575_v56  ;;  %v1014_v61 = vmul.f32 %v4392_v33, %v4575_v56  ;;  %v4598_v16 = vmul.f32 %v4402_v37, %v4548_v6  ;;  %v942_v50 = vmul.f32 %v4384_v30, %v4586_v58 }
  0x93   : > { %7268 = vst [vmem:[#allocation35_spill] sm:$0xff] %v4580_v12  ;;  %v1017_v53 = vmul.f32 %v4392_v33, %v4586_v58  ;;  %v940_v27 = vmul.f32 %v4417_v44, %v4575_v56  ;;  %v943_v54 = vmul.f32 %v4417_v44, %v4586_v58  ;;  %v4611_v41 = vmul.f32 %v4421_v46, %v4548_v6 }
  0x94   : > { %7269 = vst [vmem:[#allocation36_spill] sm:$0xff] %v4584_v38  ;;  %v1015_v55 = vmul.f32 %v4419_v45, %v4575_v56  ;;  %v1018_v31 = vmul.f32 %v4419_v45, %v4586_v58  ;;  %v944_v49 = vmul.f32 %v4390_v32, %v4586_v58  ;;  %v4620_v62 = vadd.f32 %v942_v50, %v4503_v14 }
  0x95   : > { %7270 = vst [vmem:[#allocation37_spill] sm:$0xff] %v4586_v58  ;;  %v4623_v63 = vadd.f32 %v1017_v53, %v4503_v14  ;;  %v4627_v2 = vmul.f32 %v4423_v47, %v4548_v6  ;;  %v941_v5 = vmul.f32 %v4390_v32, %v4575_v56  ;;  %v4632_v7 = vadd.f32 %v943_v54, %v4503_v14  ;;  %v7271_v54 = vld [vmem:[#allocation16_spill] sm:$0xff] }
  0x96   : > { %1133 = vst.msk [vmem:[#allocation2 + $0x100] sm:$0xff] %vm592_vm0, %v1121_v11  ;;  %v4635_v8 = vadd.f32 %v1018_v31, %v4503_v14  ;;  %v4639_v40 = vmul.f32 %v4400_v36, %v4548_v6  ;;  %v1019_v22 = vmul.f32 %v4395_v34, %v4586_v58  ;;  %v4644_v23 = vadd.f32 %v944_v49, %v4503_v14  ;;  %v7272_v49 = vld [vmem:[#allocation27_spill] sm:$0xff]  ;;  %v7273_v58 = vld [vmem:[#allocation18_spill] sm:$0xff] }
  0x97   : > { %v682_v0 = vmul.f32 %v4380_v28, %v4526_v17  ;;  %v757_v10 = vmul.f32 %v4382_v29, %v4526_v17  ;;  %v805_v11 = vmul.f32 %v4392_v33, %v4407_v39  ;;  %v1016_v50 = vmul.f32 %v4395_v34, %v4575_v56 }
  0x98   : > { %v4655_v53 = vadd.f32 %v1019_v22, %v4503_v14  ;;  %v4659_v31 = vmul.f32 %v7271_v54, %v4548_v6  ;;  %v4663_v32 = vmul.f32 %v7273_v58, %v7272_v49  ;;  %v4675_v22 = vmul.f32 %v7273_v58, %v4526_v17  ;;  %v7278_v6 = vld [vmem:[#allocation24_spill] sm:$0xff] }
  0x99   : > { %v4665_v28 = vpop.permute.xlu0 %449  ;;  %v694_v29 = vadd.f32 %v682_v0, %v4532_v52  ;;  %v4669_v44 = vadd.f32 %v757_v10, %v4532_v52  ;;  %v4671_v39 = vadd.f32 %v805_v11, %v790_v26  ;;  %v4677_v14 = vpop.permute.xlu1 %355  ;;  %v7279_v10 = vld [vmem:[#allocation19_spill] sm:$0xff] }
  0x9a   : > { %7274 = vst [vmem:[#allocation38_spill] sm:$0xff] %v4663_v32  ;;  %v1379_v56 = vmul.f32 %v4665_v28, %v7278_v6  ;;  %v1194_v49 = vmul.f32 %v4665_v28, %v4358_v19  ;;  %v1195_v0 = vmul.f32 %v4665_v28, %v4360_v20  ;;  %v4687_v24 = vmul.f32 %v7279_v10, %v4362_v21 }
  0x9b   : > { %7275 = vst [vmem:[#allocation39_spill] sm:$0xff] %v4665_v28  ;;  %v999_v26 = vmul.f32 %v4397_v35, %v4665_v28  ;;  %v1074_v11 = vmul.f32 %v4402_v37, %v4665_v28  ;;  %v1000_v58 = vmul.f32 %v4421_v46, %v4665_v28  ;;  %v1075_v17 = vmul.f32 %v4423_v47, %v4665_v28 }
  0x9c   : > { %7276 = vst [vmem:[#allocation40_spill] sm:$0xff] %v4669_v44  ;;  %1413 = vrot.lane.b32.xlu0 %v1379_v56, %s4230_s9  ;;  %1227 = vrot.lane.b32.xlu1 %v1194_v49, %s4230_s9  ;;  %v1378_v21 = vmul.f32 %v4665_v28, %v4426_v48  ;;  %v1076_v10 = vmul.f32 %v7271_v54, %v4665_v28 }
  0x9d   : > { %7277 = vst [vmem:[#allocation41_spill] sm:$0xff] %v4675_v22  ;;  %v7281_v22 = vld [vmem:[#allocation9_spill] sm:$0xff]  ;;  %1229 = vrot.lane.b32.xlu2 %v1195_v0, %s4230_s9  ;;  %v1011_v32 = vadd.f32 %v999_v26, %v4561_v42  ;;  %v1086_v9 = vadd.f32 %v1074_v11, %v4564_v43  ;;  %v1087_v38 = vadd.f32 %v1075_v17, %v1060_v15 }
  0x9e   : > { %7280 = vst [vmem:[#allocation42_spill] sm:$0xff] %v4687_v24  ;;  %v4698_v52 = vperm.slane %v7281_v22, 2  ;;  %v1001_v24 = vmul.f32 %v4400_v36, %v4665_v28  ;;  %v1088_v12 = vadd.f32 %v1076_v10, %v1061_v57  ;;  %v951_v49 = vadd.f32 %v939_v59, %v4677_v14 }
  0x9f   : > { %v1026_v48 = vadd.f32 %v1014_v61, %v4677_v14  ;;  %v1098_v22 = vmax.f32 %v1011_v32, 0.0  ;;  %v1110_v51 = vmax.f32 %v1086_v9, 0.0  ;;  %v1111_v30 = vmax.f32 %v1087_v38, 0.0 }
  0xa0   : > { %7282 = vst [vmem:[#allocation43_spill] sm:$0xff] %v4698_v52  ;;  %v1012_v52 = vadd.f32 %v1000_v58, %v985_v13  ;;  %v1013_v56 = vadd.f32 %v1001_v24, %v986_v4  ;;  %v1112_v28 = vmax.f32 %v1088_v12, 0.0  ;;  %v952_v0 = vadd.f32 %v940_v27, %v4677_v14  ;;  %v7283_v4 = vld [vmem:[#allocation25_spill] sm:$0xff] }
  0xa1   : > { %v1027_v42 = vadd.f32 %v1015_v55, %v4677_v14  ;;  %v4715_v26 = vpop.permute.xlu0 %387  ;;  %v1122_v43 = vmax.f32 %v1098_v22, %v1110_v51  ;;  %v4718_v24 = vadd.f32 %v941_v5, %v4677_v14  ;;  %v4721_v13 = vadd.f32 %v1016_v50, %v4677_v14  ;;  %v4723_v32 = vpop.permute.xlu1 %392 }
  0xa2   : > { %v1099_v44 = vmax.f32 %v1012_v52, 0.0  ;;  %v1100_v6 = vmax.f32 %v1013_v56, 0.0  ;;  %v1289_v52 = vmul.f32 %v4715_v26, %v4358_v19  ;;  %v963_v15 = vmul.f32 %v4392_v33, %v4715_v26 }
  0xa3   : > { %v4730_v57 = vadd.f32 %v7283_v4, %v694_v29  ;;  %1134 = vst [vmem:[#allocation2 + $0x108] sm:$0xff] %v1122_v43  ;;  %v966_v12 = vmul.f32 %v4392_v33, %v4723_v32  ;;  %v1038_v38 = vmul.f32 %v4397_v35, %v4715_v26  ;;  %v829_v58 = vmax.f32 %v4558_v25, 0.0  ;;  %v7301_v25 = vld [vmem:[#allocation20_spill] sm:$0xff] }
  0xa4   : > { %v1123_v17 = vmax.f32 %v1099_v44, %v1111_v30  ;;  %v1124_v9 = vmax.f32 %v1100_v6, %v1112_v28  ;;  %v1292_v30 = vmul.f32 %v4723_v32, %v4358_v19  ;;  %v1564_v44 = vpack.c.bf16 %v1122_v43, %v4544_v3  ;;  %v7284_v6 = vld [vmem:[#allocation26_spill] sm:$0xff] }
  0xa5   : > { %v1290_v28 = vmul.f32 %v4715_v26, %v4360_v20  ;;  %1407 = vrot.lane.b32.xlu1 %v7284_v6, %s4230_s9  ;;  %v975_v29 = vadd.f32 %v963_v15, %v951_v49  ;;  %1411 = vrot.lane.b32.xlu2 %v1378_v21, %s4230_s9  ;;  %v1041_v3 = vmul.f32 %v4397_v35, %v4723_v32  ;;  %v841_v21 = vmax.f32 %v4671_v39, 0.0 }
  0xa6   : > { %v1565_v51 = vpack.c.bf16 %v1123_v17, %v4552_v18  ;;  %1135 = vst [vmem:[#allocation2 + $0x110] sm:$0xff] %v1123_v17  ;;  %1319 = vrot.lane.b32.xlu0 %v1292_v30, %s4230_s9  ;;  %v964_v18 = vmul.f32 %v4419_v45, %v4715_v26  ;;  %v967_v59 = vmul.f32 %v4419_v45, %v4723_v32  ;;  %v1545_v30 = vld [vmem:[#allocation2 + $0x100] sm:$0xff] }
  0xa7   : > { %1136 = vst.msk [vmem:[#allocation2 + $0x118] sm:$0xff] %vm592_vm0, %v1124_v9  ;;  %1642 = vmatpush.bf16.msra.mxu0 %v1564_v44  ;;  %v978_v61 = vadd.f32 %v966_v12, %v4620_v62  ;;  %v1002_v27 = vadd.f32 %v4592_v60, %v975_v29  ;;  %v1050_v55 = vadd.f32 %v1038_v38, %v1026_v48 }
  0xa8   : > { %1671 = vmatpush.bf16.msra.mxu1 %v1565_v51  ;;  %v1053_v5 = vadd.f32 %v1041_v3, %v4623_v63  ;;  %v976_v50 = vadd.f32 %v964_v18, %v952_v0  ;;  %v979_v22 = vadd.f32 %v967_v59, %v4632_v7  ;;  %v1039_v10 = vmul.f32 %v4421_v46, %v4715_v26 }
  0xa9   : > { %v1077_v11 = vadd.f32 %v4598_v16, %v1050_v55  ;;  %v1089_v56 = vmax.f32 %v1002_v27, 0.0  ;;  %v1042_v49 = vmul.f32 %v4421_v46, %v4723_v32  ;;  %v965_v60 = vmul.f32 %v4395_v34, %v4715_v26  ;;  %v4766_v48 = vpop.permute.xlu0 %439 }
  0xaa   : > { %v1003_v62 = vadd.f32 %v4611_v41, %v976_v50  ;;  %v1051_v63 = vadd.f32 %v1039_v10, %v1027_v42  ;;  %v968_v7 = vmul.f32 %v4395_v34, %v4723_v32  ;;  %v1040_v0 = vmul.f32 %v4400_v36, %v4715_v26 }
  0xab   : > { %v993_v16 = vmul.f32 %v4397_v35, %v4766_v48  ;;  %v1068_v43 = vmul.f32 %v4402_v37, %v4766_v48  ;;  %v1101_v17 = vmax.f32 %v1077_v11, 0.0  ;;  %v994_v9 = vmul.f32 %v4421_v46, %v4766_v48 }
  0xac   : > { %v1054_v15 = vadd.f32 %v1042_v49, %v4635_v8  ;;  %v1069_v41 = vmul.f32 %v4423_v47, %v4766_v48  ;;  %v1078_v42 = vadd.f32 %v4627_v2, %v1051_v63  ;;  %v1090_v4 = vmax.f32 %v1003_v62, 0.0  ;;  %v7285_v62 = vld [vmem:[#allocation24_spill] sm:$0xff] }
  0xad   : > { %1313 = vrot.lane.b32.xlu1 %v1289_v52, %s4230_s9  ;;  %v1005_v51 = vadd.f32 %v993_v16, %v978_v61  ;;  %v1080_v6 = vadd.f32 %v1068_v43, %v1053_v5  ;;  %v1113_v12 = vmax.f32 %v1089_v56, %v1101_v17  ;;  %v1006_v29 = vadd.f32 %v994_v9, %v979_v22  ;;  %v7286_v16 = vld [vmem:[#allocation39_spill] sm:$0xff]  ;;  %v7287_v43 = vld [vmem:[#allocation12_spill] sm:$0xff] }
  0xae   : > { %v1548_v44 = vld [vmem:[#allocation2 + $0x118] sm:$0xff]  ;;  %1211 = vrot.lane.b32.xlu0 %v4573_v1, %s4230_s9  ;;  %1315 = vrot.lane.b32.xlu2 %v1290_v28, %s4230_s9  ;;  %v1081_v8 = vadd.f32 %v1069_v41, %v1054_v15  ;;  %v1102_v3 = vmax.f32 %v1078_v42, 0.0  ;;  %v977_v18 = vadd.f32 %v965_v60, %v4718_v24  ;;  %v980_v52 = vadd.f32 %v968_v7, %v4644_v23  ;;  %v7289_v41 = vld [vmem:[#allocation31_spill] sm:$0xff] }
  0xaf   : > { %v1566_v38 = vpack.c.bf16 %v1548_v44, %v1545_v30  ;;  %v1092_v2 = vmax.f32 %v1005_v51, 0.0  ;;  %v1104_v59 = vmax.f32 %v1080_v6, 0.0  ;;  %1125 = vst [vmem:[#allocation2 + $0xc0] sm:$0xff] %v1113_v12  ;;  %v1093_v27 = vmax.f32 %v1006_v29, 0.0  ;;  %v7291_v44 = vld [vmem:[#allocation35_spill] sm:$0xff]  ;;  %v7292_v51 = vld [vmem:[#allocation36_spill] sm:$0xff] }
  0xb0   : > { %v1105_v61 = vmax.f32 %v1081_v8, 0.0  ;;  %v1114_v55 = vmax.f32 %v1090_v4, %v1102_v3  ;;  %v995_v5 = vmul.f32 %v4400_v36, %v4766_v48  ;;  %v1004_v1 = vadd.f32 %v4639_v40, %v977_v18  ;;  %v7290_v4 = vld [vmem:[#allocation9_spill] sm:$0xff]  ;;  %v7293_v29 = vld [vmem:[#allocation28_spill] sm:$0xff] }
  0xb1   : > { %1700 = vmatpush.bf16.msra.mxu2 %v1566_v38  ;;  %v1116_v50 = vmax.f32 %v1092_v2, %v1104_v59  ;;  %v1043_v28 = vmul.f32 %v4400_v36, %v4723_v32  ;;  %v1052_v24 = vadd.f32 %v1040_v0, %v4721_v13  ;;  %v1070_v22 = vmul.f32 %v7271_v54, %v4766_v48  ;;  %v7294_v38 = vld [vmem:[#allocation38_spill] sm:$0xff]  ;;  %v7295_v59 = vld [vmem:[#allocation32_spill] sm:$0xff] }
  0xb2   : > { %v1293_v23 = vmul.f32 %v4723_v32, %v4360_v20  ;;  %v1117_v10 = vmax.f32 %v1093_v27, %v1105_v61  ;;  %1126 = vst [vmem:[#allocation2 + $0xc8] sm:$0xff] %v1114_v55  ;;  %v1007_v11 = vadd.f32 %v995_v5, %v980_v52  ;;  %v1091_v56 = vmax.f32 %v1004_v1, 0.0  ;;  %v7296_v27 = vld [vmem:[#allocation41_spill] sm:$0xff]  ;;  %v7298_v5 = vld [vmem:[#allocation19_spill] sm:$0xff]  ;;  %v7299_v1 = vld [vmem:[#allocation42_spill] sm:$0xff] }
  0xb3   : > { %1128 = vst [vmem:[#allocation2 + $0xd8] sm:$0xff] %v1116_v50  ;;  %v1561_v49 = vpack.c.bf16 %v1116_v50, %v1113_v12  ;;  %v1055_v40 = vadd.f32 %v1043_v28, %v4655_v53  ;;  %v1079_v60 = vadd.f32 %v4659_v31, %v1052_v24  ;;  %v1373_v63 = vmul.f32 %v4766_v48, %v7285_v62  ;;  %v7288_v53 = vld [vmem:[#allocation40_spill] sm:$0xff]  ;;  %v7300_v50 = vld [vmem:[#allocation17_spill] sm:$0xff] }
  0xb4   : > { %1129 = vst [vmem:[#allocation2 + $0xe0] sm:$0xff] %v1117_v10  ;;  %v1562_v13 = vpack.c.bf16 %v1117_v10, %v1114_v55  ;;  %v1094_v7 = vmax.f32 %v1007_v11, 0.0  ;;  %v1188_v0 = vmul.f32 %v4766_v48, %v4358_v19  ;;  %v733_v17 = vmul.f32 %v7287_v43, %v7286_v16  ;;  %v7297_v55 = vld [vmem:[#allocation8_spill] sm:$0xff] }
  0xb5   : > { %1321 = vrot.lane.b32.xlu1 %v1293_v23, %s4230_s9  ;;  %1643 = vmatpush.bf16.msra.mxu0 %v1561_v49  ;;  %v1082_v9 = vadd.f32 %v1070_v22, %v1055_v40  ;;  %v1103_v15 = vmax.f32 %v1079_v60, 0.0  ;;  %v793_v31 = vadd.f32 %v7289_v41, %v7288_v53  ;;  %v808_v42 = vmul.f32 %v4392_v33, %v7286_v16  ;;  %v7302_v22 = vld [vmem:[#allocation27_spill] sm:$0xff] }
  0xb6   : > { %v4813_v30 = vperm.slane %v7290_v4, 3  ;;  %1393 = vrot.lane.b32.xlu0 %v7291_v44, %s4230_s9  ;;  %1209 = vrot.lane.b32.xlu2 %v7292_v51, %s4230_s9  ;;  %v745_v6 = vadd.f32 %v733_v17, %v4730_v57  ;;  %v853_v12 = vmax.f32 %v829_v58, %v841_v21  ;;  %v692_v8 = vadd.f32 %v7294_v38, %v7293_v29  ;;  %v7304_v40 = vld [vmem:[#allocation7_spill] sm:$0xff] }
  0xb7   : > { %1672 = vmatpush.bf16.msra.mxu1 %v1562_v13  ;;  %v1106_v3 = vmax.f32 %v1082_v9, 0.0  ;;  %v1115_v18 = vmax.f32 %v1091_v56, %v1103_v15  ;;  %v820_v2 = vadd.f32 %v808_v42, %v793_v31  ;;  %v695_v52 = vadd.f32 %v7296_v27, %v7295_v59  ;;  %v7303_v56 = vld [vmem:[#allocation30_spill] sm:$0xff] }
  0xb8   : > { %v832_v61 = vmax.f32 %v745_v6, 0.0  ;;  %865 = vst [vmem:[#allocation2 + $0x90] sm:$0xff] %v853_v12  ;;  %v707_v57 = vmul.f32 %v7298_v5, %v7297_v55  ;;  %v716_v39 = vadd.f32 %v7299_v1, %v692_v8  ;;  %v731_v58 = vmul.f32 %v7301_v25, %v7300_v50  ;;  %v7305_v6 = vld [vmem:[#allocation43_spill] sm:$0xff] }
  0xb9   : > { %v1118_v21 = vmax.f32 %v1094_v7, %v1106_v3  ;;  %1127 = vst.msk [vmem:[#allocation2 + $0xd0] sm:$0xff] %vm592_vm0, %v1115_v18  ;;  %v844_v28 = vmax.f32 %v820_v2, 0.0  ;;  %v734_v24 = vmul.f32 %v7301_v25, %v7286_v16  ;;  %v755_v23 = vmul.f32 %v7298_v5, %v7302_v22 }
  0xba   : > { %v719_v10 = vadd.f32 %v707_v57, %v695_v52  ;;  %v743_v11 = vadd.f32 %v731_v58, %v716_v39  ;;  %v758_v49 = vmul.f32 %v7298_v5, %v7303_v56  ;;  %v779_v60 = vmul.f32 %v7301_v25, %v7304_v40  ;;  %v7306_v52 = vld [vmem:[#allocation14_spill] sm:$0xff] }
  0xbb   : > { %1130 = vst.msk [vmem:[#allocation2 + $0xe8] sm:$0xff] %vm592_vm0, %v1118_v21  ;;  %v1189_v13 = vmul.f32 %v4766_v48, %v4360_v20  ;;  %v856_v7 = vmax.f32 %v832_v61, %v844_v28  ;;  %v767_v17 = vadd.f32 %v755_v23, %v7293_v29  ;;  %v806_v9 = vmul.f32 %v4419_v45, %v7300_v50 }
  0xbc   : > { %v746_v15 = vadd.f32 %v734_v24, %v719_v10  ;;  %v770_v53 = vadd.f32 %v758_v49, %v7295_v59  ;;  %v782_v41 = vmul.f32 %v7301_v25, %v7297_v55  ;;  %v809_v31 = vmul.f32 %v4419_v45, %v7286_v16 }
  0xbd   : > { %1215 = vrot.lane.b32.xlu1 %v1188_v0, %s4230_s9  ;;  %868 = vst [vmem:[#allocation2 + $0xa8] sm:$0xff] %v856_v7  ;;  %v1558_v42 = vpack.c.bf16 %v856_v7, %v853_v12  ;;  %v791_v44 = vadd.f32 %v779_v60, %v767_v17  ;;  %v830_v51 = vmax.f32 %v743_v11, 0.0  ;;  %v681_v38 = vmul.f32 %v7305_v6, %v7302_v22 }
  0xbe   : > { %1401 = vrot.lane.b32.xlu0 %v1373_v63, %s4230_s9  ;;  %1217 = vrot.lane.b32.xlu2 %v1189_v13, %s4230_s9  ;;  %v794_v8 = vadd.f32 %v782_v41, %v770_v53  ;;  %v833_v3 = vmax.f32 %v746_v15, 0.0  ;;  %v684_v18 = vmul.f32 %v7305_v6, %v7303_v56  ;;  %v705_v2 = vmul.f32 %v4813_v30, %v7304_v40 }
  0xbf   : > { %1644 = vmatpush.bf16.msra.mxu0 %v1558_v42  ;;  %v818_v0 = vadd.f32 %v806_v9, %v791_v44  ;;  %v693_v12 = vadd.f32 %v681_v38, %v7293_v29  ;;  %v708_v27 = vmul.f32 %v4813_v30, %v7297_v55  ;;  %v732_v63 = vmul.f32 %v7306_v52, %v7300_v50 }
  0xc0   : > { %v821_v61 = vadd.f32 %v809_v31, %v794_v8  ;;  %v696_v57 = vadd.f32 %v684_v18, %v7295_v59  ;;  %v735_v1 = vmul.f32 %v7306_v52, %v7286_v16  ;;  %v756_v39 = vmul.f32 %v4813_v30, %v7302_v22  ;;  %v1539_v23 = vld [vmem:[#allocation2 + $0xd0] sm:$0xff]  ;;  %v7308_v18 = vld [vmem:[#allocation10_spill] sm:$0xff] }
  0xc1   : > { %v842_v58 = vmax.f32 %v818_v0, 0.0  ;;  %v717_v21 = vadd.f32 %v705_v2, %v693_v12  ;;  %v759_v28 = vmul.f32 %v4813_v30, %v7303_v56  ;;  %v780_v24 = vmul.f32 %v7306_v52, %v7304_v40 }
  0xc2   : > { %v1542_v10 = vld [vmem:[#allocation2 + $0xe8] sm:$0xff]  ;;  %v845_v11 = vmax.f32 %v821_v61, 0.0  ;;  %v720_v49 = vadd.f32 %v708_v27, %v696_v57  ;;  %v768_v60 = vadd.f32 %v756_v39, %v7293_v29  ;;  %v783_v13 = vmul.f32 %v7306_v52, %v7297_v55  ;;  %v7309_v27 = vld [vmem:[#allocation37_spill] sm:$0xff] }
  0xc3   : > { %v1563_v7 = vpack.c.bf16 %v1542_v10, %v1539_v23  ;;  %v4879_v17 = vmax.f32 %v830_v51, %v842_v58  ;;  %v744_v9 = vadd.f32 %v732_v63, %v717_v21  ;;  %v771_v15 = vadd.f32 %v759_v28, %v7295_v59  ;;  %v7307_v51 = vld [vmem:[#allocation34_spill] sm:$0xff]  ;;  %v7311_v28 = vld [vmem:[#allocation29_spill] sm:$0xff] }
  0xc4   : > { %v4882_v53 = vmax.f32 %v833_v3, %v845_v11  ;;  %v747_v41 = vadd.f32 %v735_v1, %v720_v49  ;;  %v792_v31 = vadd.f32 %v780_v24, %v768_v60  ;;  %v807_v42 = vmul.f32 %v4395_v34, %v7300_v50  ;;  %v7310_v1 = vld [vmem:[#allocation11_spill] sm:$0xff]  ;;  %v7312_v23 = vld [vmem:[#allocation33_spill] sm:$0xff] }
  0xc5   : > { %1701 = vmatpush.bf16.msra.mxu2 %v1563_v7  ;;  %866 = vst [vmem:[#allocation2 + $0x98] sm:$0xff] %v4879_v17  ;;  %v795_v44 = vadd.f32 %v783_v13, %v771_v15  ;;  %v810_v38 = vmul.f32 %v4395_v34, %v7286_v16  ;;  %v831_v8 = vmax.f32 %v744_v9, 0.0  ;;  %v673_v2 = vmul.f32 %v7308_v18, %v7307_v51 }
  0xc6   : > { %869 = vst [vmem:[#allocation2 + $0xb0] sm:$0xff] %v4882_v53  ;;  %v1559_v3 = vpack.c.bf16 %v4882_v53, %v4879_v17  ;;  %v819_v0 = vadd.f32 %v807_v42, %v792_v31  ;;  %v834_v12 = vmax.f32 %v747_v41, 0.0  ;;  %v676_v63 = vmul.f32 %v7308_v18, %v7309_v27 }
  0xc7   : > { %v822_v61 = vadd.f32 %v810_v38, %v795_v44  ;;  %v685_v57 = vadd.f32 %v673_v2, %v4677_v14  ;;  %v697_v39 = vmul.f32 %v7310_v1, %v4715_v26  ;;  %v700_v58 = vmul.f32 %v7310_v1, %v4723_v32 }
  0xc8   : > { %1673 = vmatpush.bf16.msra.mxu1 %v1559_v3  ;;  %v843_v21 = vmax.f32 %v819_v0, 0.0  ;;  %v688_v24 = vadd.f32 %v676_v63, %v7311_v28  ;;  %v724_v10 = vmul.f32 %v7287_v43, %v7312_v23  ;;  %v727_v11 = vmul.f32 %v7287_v43, %v4766_v48  ;;  %v7313_v63 = vld [vmem:[#allocation18_spill] sm:$0xff] }
  0xc9   : > { %v846_v49 = vmax.f32 %v822_v61, 0.0  ;;  %v709_v60 = vadd.f32 %v697_v39, %v685_v57  ;;  %v748_v13 = vmul.f32 %v7310_v1, %v7307_v51  ;;  %v751_v7 = vmul.f32 %v7310_v1, %v7309_v27 }
  0xca   : > { %v4910_v9 = vmax.f32 %v831_v8, %v843_v21  ;;  %v712_v15 = vadd.f32 %v700_v58, %v688_v24  ;;  %v772_v41 = vmul.f32 %v7287_v43, %v4715_v26  ;;  %v775_v31 = vmul.f32 %v7287_v43, %v4723_v32 }
  0xcb   : > { %v4916_v42 = vmax.f32 %v834_v12, %v846_v49  ;;  %v736_v44 = vadd.f32 %v724_v10, %v709_v60  ;;  %v760_v38 = vadd.f32 %v748_v13, %v4677_v14  ;;  %v763_v2 = vadd.f32 %v751_v7, %v7311_v28 }
  0xcc   : > { %867 = vst.msk [vmem:[#allocation2 + $0xa0] sm:$0xff] %vm592_vm0, %v4910_v9  ;;  %v739_v3 = vadd.f32 %v727_v11, %v712_v15  ;;  %v799_v8 = vmul.f32 %v4392_v33, %v7312_v23  ;;  %v802_v0 = vmul.f32 %v4392_v33, %v4766_v48  ;;  %v674_v43 = vmul.f32 %v7313_v63, %v7307_v51 }
  0xcd   : > { %870 = vst.msk [vmem:[#allocation2 + $0xb8] sm:$0xff] %vm592_vm0, %v4916_v42  ;;  %v784_v12 = vadd.f32 %v772_v41, %v760_v38  ;;  %v787_v61 = vadd.f32 %v775_v31, %v763_v2  ;;  %v823_v57 = vmax.f32 %v736_v44, 0.0  ;;  %v677_v39 = vmul.f32 %v7313_v63, %v7309_v27 }
  0xce   : > { %v826_v58 = vmax.f32 %v739_v3, 0.0  ;;  %v686_v21 = vadd.f32 %v674_v43, %v4677_v14  ;;  %v698_v24 = vmul.f32 %v7298_v5, %v4715_v26  ;;  %v701_v33 = vmul.f32 %v7298_v5, %v4723_v32 }
  0xcf   : > { %v811_v10 = vadd.f32 %v799_v8, %v784_v12  ;;  %v814_v11 = vadd.f32 %v802_v0, %v787_v61  ;;  %v689_v49 = vadd.f32 %v677_v39, %v7311_v28  ;;  %v725_v60 = vmul.f32 %v7301_v25, %v7312_v23 }
  0xd0   : > { %v710_v13 = vadd.f32 %v698_v24, %v686_v21  ;;  %v728_v7 = vmul.f32 %v7301_v25, %v4766_v48  ;;  %v749_v15 = vmul.f32 %v7298_v5, %v7307_v51  ;;  %v752_v41 = vmul.f32 %v7298_v5, %v7309_v27 }
  0xd1   : > { %v835_v31 = vmax.f32 %v811_v10, 0.0  ;;  %v838_v44 = vmax.f32 %v814_v11, 0.0  ;;  %v713_v38 = vadd.f32 %v701_v33, %v689_v49  ;;  %v773_v2 = vmul.f32 %v7301_v25, %v4715_v26 }
  0xd2   : > { %v737_v3 = vadd.f32 %v725_v60, %v710_v13  ;;  %v761_v8 = vadd.f32 %v749_v15, %v4677_v14  ;;  %v764_v0 = vadd.f32 %v752_v41, %v7311_v28  ;;  %v776_v43 = vmul.f32 %v7301_v25, %v4723_v32 }
  0xd3   : > { %v4952_v12 = vmax.f32 %v823_v57, %v835_v31  ;;  %v4954_v61 = vmax.f32 %v826_v58, %v838_v44  ;;  %v740_v39 = vadd.f32 %v728_v7, %v713_v38  ;;  %v800_v21 = vmul.f32 %v4419_v45, %v7312_v23  ;;  %v1533_v24 = vld [vmem:[#allocation2 + $0xa0] sm:$0xff] }
  0xd4   : > { %v1536_v33 = vld [vmem:[#allocation2 + $0xb8] sm:$0xff]  ;;  %v785_v10 = vadd.f32 %v773_v2, %v761_v8  ;;  %v788_v11 = vadd.f32 %v776_v43, %v764_v0  ;;  %v803_v49 = vmul.f32 %v4419_v45, %v4766_v48  ;;  %v824_v60 = vmax.f32 %v737_v3, 0.0 }
  0xd5   : > { %7314 = vst [vmem:[#allocation25_spill] sm:$0xff] %v4952_v12  ;;  %v1560_v13 = vpack.c.bf16 %v1536_v33, %v1533_v24  ;;  %v1555_v25 = vpack.c.bf16 %v4954_v61, %v4952_v12  ;;  %v827_v57 = vmax.f32 %v740_v39, 0.0  ;;  %v675_v58 = vmul.f32 %v7305_v6, %v7307_v51 }
  0xd6   : > { %859 = vst [vmem:[#allocation2 + $0x60] sm:$0xff] %v4952_v12  ;;  %v812_v7 = vadd.f32 %v800_v21, %v785_v10  ;;  %v815_v15 = vadd.f32 %v803_v49, %v788_v11  ;;  %v678_v41 = vmul.f32 %v7305_v6, %v7309_v27  ;;  %v699_v45 = vmul.f32 %v4813_v30, %v4715_v26 }
  0xd7   : > { %862 = vst [vmem:[#allocation2 + $0x78] sm:$0xff] %v4954_v61  ;;  %1702 = vmatpush.bf16.msra.mxu2 %v1560_v13  ;;  %1645 = vmatpush.bf16.msra.mxu0 %v1555_v25  ;;  %v687_v31 = vadd.f32 %v675_v58, %v4677_v14  ;;  %v702_v44 = vmul.f32 %v4813_v30, %v4723_v32  ;;  %v4976_v2 = vperm.slane %v7290_v4, 0 }
  0xd8   : > { %v726_v38 = vmul.f32 %v7306_v52, %v7312_v23  ;;  %v836_v3 = vmax.f32 %v812_v7, 0.0  ;;  %v839_v8 = vmax.f32 %v815_v15, 0.0  ;;  %v690_v0 = vadd.f32 %v678_v41, %v7311_v28 }
  0xd9   : > { %v729_v43 = vmul.f32 %v7306_v52, %v4766_v48  ;;  %v711_v39 = vadd.f32 %v699_v45, %v687_v31  ;;  %v750_v21 = vmul.f32 %v4813_v30, %v7307_v51  ;;  %v753_v24 = vmul.f32 %v4813_v30, %v7309_v27 }
  0xda   : > { %v774_v33 = vmul.f32 %v7306_v52, %v4715_v26  ;;  %v4987_v10 = vmax.f32 %v824_v60, %v836_v3  ;;  %v4989_v4 = vmax.f32 %v827_v57, %v839_v8  ;;  %v714_v11 = vadd.f32 %v702_v44, %v690_v0  ;;  %v7315_v3 = vld [vmem:[#allocation23_spill] sm:$0xff] }
  0xdb   : > { %v777_v49 = vmul.f32 %v7306_v52, %v4723_v32  ;;  %v738_v13 = vadd.f32 %v726_v38, %v711_v39  ;;  %v762_v25 = vadd.f32 %v750_v21, %v4677_v14  ;;  %v765_v58 = vadd.f32 %v753_v24, %v7311_v28 }
  0xdc   : > { %v801_v7 = vmul.f32 %v4395_v34, %v7312_v23  ;;  %860 = vst [vmem:[#allocation2 + $0x68] sm:$0xff] %v4987_v10  ;;  %v1556_v60 = vpack.c.bf16 %v4989_v4, %v4987_v10  ;;  %v741_v15 = vadd.f32 %v729_v43, %v714_v11  ;;  %v804_v57 = vmul.f32 %v4395_v34, %v4766_v48 }
  0xdd   : > { %v1297_v52 = vmul.f32 %v7304_v40, %v4976_v2  ;;  %863 = vst [vmem:[#allocation2 + $0x80] sm:$0xff] %v4989_v4  ;;  %v786_v41 = vadd.f32 %v774_v33, %v762_v25  ;;  %v789_v45 = vadd.f32 %v777_v49, %v765_v58  ;;  %v825_v31 = vmax.f32 %v738_v13, 0.0 }
  0xde   : > { %v1370_v44 = vmul.f32 %v7312_v23, %v7285_v62  ;;  %1674 = vmatpush.bf16.msra.mxu1 %v1556_v60  ;;  %v828_v38 = vmax.f32 %v741_v15, 0.0  ;;  %v1372_v8 = vmul.f32 %v4766_v48, %v7315_v3  ;;  %v347_v34 = vmul.f32 %v4358_v19, %v7302_v22 }
  0xdf   : > { %1329 = vrot.lane.b32.xlu0 %v1297_v52, %s4230_s9  ;;  %v350_v0 = vmul.f32 %v4358_v19, %v7303_v56  ;;  %v813_v43 = vadd.f32 %v801_v7, %v786_v41  ;;  %v816_v39 = vadd.f32 %v804_v57, %v789_v45  ;;  %v414_v21 = vmul.f32 %v7315_v3, %v7304_v40 }
  0xe0   : > { %1395 = vrot.lane.b32.xlu1 %v1370_v44, %s4230_s9  ;;  %v417_v24 = vmul.f32 %v7315_v3, %v7297_v55  ;;  %1399 = vrot.lane.b32.xlu2 %v1372_v8, %s4230_s9  ;;  %v379_v33 = vadd.f32 %v7293_v29, %v347_v34  ;;  %v461_v49 = vmul.f32 %v7308_v18, %v7300_v50 }
  0xe1   : > { %v382_v11 = vadd.f32 %v7295_v59, %v350_v0  ;;  %v464_v13 = vmul.f32 %v7308_v18, %v7286_v16  ;;  %v837_v25 = vmax.f32 %v813_v43, 0.0  ;;  %v840_v58 = vmax.f32 %v816_v39, 0.0 }
  0xe2   : > { %v485_v7 = vmul.f32 %v7315_v3, %v7302_v22  ;;  %v488_v60 = vmul.f32 %v7315_v3, %v7303_v56  ;;  %v426_v15 = vadd.f32 %v414_v21, %v379_v33  ;;  %v509_v52 = vmul.f32 %v7308_v18, %v7304_v40 }
  0xe3   : > { %v429_v57 = vadd.f32 %v417_v24, %v382_v11  ;;  %v512_v41 = vmul.f32 %v7308_v18, %v7297_v55  ;;  %v5034_v45 = vmax.f32 %v825_v31, %v837_v25  ;;  %v5036_v44 = vmax.f32 %v828_v38, %v840_v58 }
  0xe4   : > { %v497_v8 = vadd.f32 %v485_v7, %v7293_v29  ;;  %v500_v34 = vadd.f32 %v488_v60, %v7295_v59  ;;  %v473_v0 = vadd.f32 %v461_v49, %v426_v15  ;;  %v536_v39 = vmul.f32 %v7310_v1, %v7300_v50 }
  0xe5   : > { %v476_v43 = vadd.f32 %v464_v13, %v429_v57  ;;  %v539_v21 = vmul.f32 %v7310_v1, %v7286_v16  ;;  %861 = vst.msk [vmem:[#allocation2 + $0x70] sm:$0xff] %vm592_vm0, %v5034_v45  ;;  %v348_v38 = vmul.f32 %v4360_v20, %v7302_v22  ;;  %v351_v33 = vmul.f32 %v4360_v20, %v7303_v56 }
  0xe6   : > { %v521_v24 = vadd.f32 %v509_v52, %v497_v8  ;;  %v524_v31 = vadd.f32 %v512_v41, %v500_v34  ;;  %864 = vst.msk [vmem:[#allocation2 + $0x88] sm:$0xff] %vm592_vm0, %v5036_v44  ;;  %v560_v11 = vmax.f32 %v473_v0, 0.0  ;;  %v415_v13 = vmul.f32 %v7285_v62, %v7304_v40 }
  0xe7   : > { %v563_v49 = vmax.f32 %v476_v43, 0.0  ;;  %v418_v25 = vmul.f32 %v7285_v62, %v7297_v55  ;;  %v380_v60 = vadd.f32 %v7293_v29, %v348_v38  ;;  %v383_v15 = vadd.f32 %v7295_v59, %v351_v33 }
  0xe8   : > { %v548_v58 = vadd.f32 %v536_v39, %v521_v24  ;;  %v551_v7 = vadd.f32 %v539_v21, %v524_v31  ;;  %v462_v57 = vmul.f32 %v7313_v63, %v7300_v50  ;;  %v465_v52 = vmul.f32 %v7313_v63, %v7286_v16 }
  0xe9   : > { %v486_v41 = vmul.f32 %v7285_v62, %v7302_v22  ;;  %v489_v8 = vmul.f32 %v7285_v62, %v7303_v56  ;;  %v427_v43 = vadd.f32 %v415_v13, %v380_v60  ;;  %v430_v39 = vadd.f32 %v418_v25, %v383_v15 }
  0xea   : > { %v572_v34 = vmax.f32 %v548_v58, 0.0  ;;  %v575_v0 = vmax.f32 %v551_v7, 0.0  ;;  %v510_v31 = vmul.f32 %v7313_v63, %v7304_v40  ;;  %v513_v38 = vmul.f32 %v7313_v63, %v7297_v55 }
  0xeb   : > { %v498_v21 = vadd.f32 %v486_v41, %v7293_v29  ;;  %v501_v24 = vadd.f32 %v489_v8, %v7295_v59  ;;  %v474_v54 = vadd.f32 %v462_v57, %v427_v43  ;;  %v477_v46 = vadd.f32 %v465_v52, %v430_v39  ;;  %v7316_v43 = vld [vmem:[#allocation13_spill] sm:$0xff] }
  0xec   : > { %v5072_v33 = vmax.f32 %v560_v11, %v572_v34  ;;  %v587_v47 = vmax.f32 %v563_v49, %v575_v0  ;;  %v537_v13 = vmul.f32 %v7298_v5, %v7300_v50  ;;  %v540_v25 = vmul.f32 %v7298_v5, %v7286_v16  ;;  %v1527_v7 = vld [vmem:[#allocation2 + $0x70] sm:$0xff] }
  0xed   : > { %v522_v36 = vadd.f32 %v510_v31, %v498_v21  ;;  %v525_v58 = vadd.f32 %v513_v38, %v501_v24  ;;  %v1530_v60 = vld [vmem:[#allocation2 + $0x88] sm:$0xff]  ;;  %v561_v41 = vmax.f32 %v474_v54, 0.0  ;;  %v564_v8 = vmax.f32 %v477_v46, 0.0 }
  0xee   : > { %v1552_v15 = vpack.c.bf16 %v587_v47, %v5072_v33  ;;  %v349_v11 = vmul.f32 %v4976_v2, %v7302_v22  ;;  %633 = vrot.lane.b32.xlu0 %v587_v47, %s4230_s9  ;;  %v1557_v49 = vpack.c.bf16 %v1530_v60, %v1527_v7  ;;  %v352_v34 = vmul.f32 %v4976_v2, %v7303_v56 }
  0xef   : > { %v549_v57 = vadd.f32 %v537_v13, %v522_v36  ;;  %v552_v52 = vadd.f32 %v540_v25, %v525_v58  ;;  %v416_v39 = vmul.f32 %v7316_v43, %v7304_v40  ;;  %v419_v46 = vmul.f32 %v7316_v43, %v7297_v55 }
  0xf0   : > { %1646 = vmatpush.bf16.msra.mxu0 %v1552_v15  ;;  %v381_v0 = vadd.f32 %v7293_v29, %v349_v11  ;;  %v463_v54 = vmul.f32 %v7305_v6, %v7300_v50  ;;  %1703 = vmatpush.bf16.msra.mxu2 %v1557_v49  ;;  %v384_v36 = vadd.f32 %v7295_v59, %v352_v34 }
  0xf1   : > { %v573_v47 = vmax.f32 %v549_v57, 0.0  ;;  %v576_v21 = vmax.f32 %v552_v52, 0.0  ;;  %v466_v24 = vmul.f32 %v7305_v6, %v7286_v16  ;;  %v487_v38 = vmul.f32 %v7316_v43, %v7302_v22 }
  0xf2   : > { %v428_v31 = vadd.f32 %v416_v39, %v381_v0  ;;  %v490_v58 = vmul.f32 %v7316_v43, %v7303_v56  ;;  %v511_v13 = vmul.f32 %v7305_v6, %v7304_v40  ;;  %v431_v60 = vadd.f32 %v419_v46, %v384_v36 }
  0xf3   : > { %v5100_v25 = vmax.f32 %v561_v41, %v573_v47  ;;  %v5102_v7 = vmax.f32 %v564_v8, %v576_v21  ;;  %v514_v15 = vmul.f32 %v7305_v6, %v7297_v55  ;;  %v499_v49 = vadd.f32 %v487_v38, %v7293_v29 }
  0xf4   : > { %v475_v11 = vadd.f32 %v463_v54, %v428_v31  ;;  %v502_v57 = vadd.f32 %v490_v58, %v7295_v59  ;;  %v538_v52 = vmul.f32 %v4813_v30, %v7300_v50  ;;  %v478_v0 = vadd.f32 %v466_v24, %v431_v60 }
  0xf5   : > { %v1553_v34 = vpack.c.bf16 %v5102_v7, %v5100_v25  ;;  %v541_v41 = vmul.f32 %v4813_v30, %v7286_v16  ;;  %v342_v8 = vmul.f32 %v4360_v20, %v7307_v51  ;;  %v523_v39 = vadd.f32 %v511_v13, %v499_v49 }
  0xf6   : > { %v526_v46 = vadd.f32 %v514_v15, %v502_v57  ;;  %v562_v54 = vmax.f32 %v475_v11, 0.0  ;;  %v345_v47 = vmul.f32 %v4360_v20, %v7309_v27  ;;  %v565_v21 = vmax.f32 %v478_v0, 0.0 }
  0xf7   : > { %1675 = vmatpush.bf16.msra.mxu1 %v1553_v34  ;;  %v374_v36 = vadd.f32 %v4677_v14, %v342_v8  ;;  %v409_v31 = vmul.f32 %v7285_v62, %v4715_v26  ;;  %v412_v24 = vmul.f32 %v7285_v62, %v4723_v32  ;;  %v550_v38 = vadd.f32 %v538_v52, %v523_v39 }
  0xf8   : > { %v553_v58 = vadd.f32 %v541_v41, %v526_v46  ;;  %v377_v60 = vadd.f32 %v7311_v28, %v345_v47  ;;  %v456_v13 = vmul.f32 %v7313_v63, %v7312_v23  ;;  %v459_v20 = vmul.f32 %v7313_v63, %v4766_v48 }
  0xf9   : > { %v421_v15 = vadd.f32 %v409_v31, %v374_v36  ;;  %v480_v11 = vmul.f32 %v7285_v62, %v7307_v51  ;;  %v483_v49 = vmul.f32 %v7285_v62, %v7309_v27  ;;  %v574_v57 = vmax.f32 %v550_v38, 0.0 }
  0xfa   : > { %v577_v34 = vmax.f32 %v553_v58, 0.0  ;;  %v424_v0 = vadd.f32 %v412_v24, %v377_v60  ;;  %v504_v52 = vmul.f32 %v7313_v63, %v4715_v26  ;;  %v507_v46 = vmul.f32 %v7313_v63, %v4723_v32 }
  0xfb   : > { %v468_v41 = vadd.f32 %v456_v13, %v421_v15  ;;  %v492_v8 = vadd.f32 %v480_v11, %v4677_v14  ;;  %v495_v39 = vadd.f32 %v483_v49, %v7311_v28  ;;  %v5138_v47 = vmax.f32 %v562_v54, %v574_v57 }
  0xfc   : > { %v5140_v36 = vmax.f32 %v565_v21, %v577_v34  ;;  %v471_v31 = vadd.f32 %v459_v20, %v424_v0  ;;  %v531_v62 = vmul.f32 %v7298_v5, %v7312_v23  ;;  %v534_v58 = vmul.f32 %v7298_v5, %v4766_v48 }
  0xfd   : > { %v516_v24 = vadd.f32 %v504_v52, %v492_v8  ;;  %v519_v38 = vadd.f32 %v507_v46, %v495_v39  ;;  %v555_v60 = vmax.f32 %v468_v41, 0.0  ;;  %599 = vst.msk [vmem:[#allocation2 + $0x40] sm:$0xff] %vm592_vm0, %v5138_v47  ;;  %v343_v63 = vmul.f32 %v4976_v2, %v7307_v51 }
  0xfe   : > { %v558_v13 = vmax.f32 %v471_v31, 0.0  ;;  %v346_v54 = vmul.f32 %v4976_v2, %v7309_v27  ;;  %v410_v21 = vmul.f32 %v7316_v43, %v4715_v26  ;;  %602 = vst.msk [vmem:[#allocation2 + $0x58] sm:$0xff] %vm592_vm0, %v5140_v36  ;;  %v413_v5 = vmul.f32 %v7316_v43, %v4723_v32 }
  0xff   : > { %v543_v15 = vadd.f32 %v531_v62, %v516_v24  ;;  %v546_v20 = vadd.f32 %v534_v58, %v519_v38  ;;  %v457_v11 = vmul.f32 %v7305_v6, %v7312_v23  ;;  %v375_v49 = vadd.f32 %v4677_v14, %v343_v63 }
 0x100   : > { %v378_v57 = vadd.f32 %v7311_v28, %v346_v54  ;;  %v460_v34 = vmul.f32 %v7305_v6, %v4766_v48  ;;  %v481_v0 = vmul.f32 %v7316_v43, %v7307_v51  ;;  %v484_v8 = vmul.f32 %v7316_v43, %v7309_v27 }
 0x101   : > { %v567_v52 = vmax.f32 %v543_v15, 0.0  ;;  %v570_v41 = vmax.f32 %v546_v20, 0.0  ;;  %v505_v39 = vmul.f32 %v7305_v6, %v4715_v26  ;;  %v422_v46 = vadd.f32 %v410_v21, %v375_v49 }
 0x102   : > { %v425_v31 = vadd.f32 %v413_v5, %v378_v57  ;;  %v493_v62 = vadd.f32 %v481_v0, %v4677_v14  ;;  %v508_v24 = vmul.f32 %v7305_v6, %v4723_v32  ;;  %v496_v63 = vadd.f32 %v484_v8, %v7311_v28 }
 0x103   : > { %v579_v38 = vmax.f32 %v555_v60, %v567_v52  ;;  %v5173_v58 = vmax.f32 %v558_v13, %v570_v41  ;;  %v532_v54 = vmul.f32 %v4813_v30, %v7312_v23  ;;  %v469_v15 = vadd.f32 %v457_v11, %v422_v46 }
 0x104   : > { %v472_v20 = vadd.f32 %v460_v34, %v425_v31  ;;  %v517_v12 = vadd.f32 %v505_v39, %v493_v62  ;;  %v535_v21 = vmul.f32 %v4813_v30, %v4766_v48  ;;  %v520_v49 = vadd.f32 %v508_v24, %v496_v63  ;;  %v1521_v13 = vld [vmem:[#allocation2 + $0x40] sm:$0xff] }
 0x105   : > { %v1550_v5 = vpack.c.bf16 %v5173_v58, %v579_v38  ;;  %v1300_v6 = vmul.f32 %v7297_v55, %v4976_v2  ;;  %v1193_v60 = vmul.f32 %v7300_v50, %v4976_v2  ;;  %v1524_v57 = vld [vmem:[#allocation2 + $0x58] sm:$0xff]  ;;  %v556_v52 = vmax.f32 %v469_v15, 0.0  ;;  %617 = vrot.lane.b32.xlu0 %v579_v38, %s4230_s9  ;;  %v5197_v62 = vld [vmem:[#allocation4] sm:$0xff] }
 0x106   : > { %v544_v0 = vadd.f32 %v532_v54, %v517_v12  ;;  %v559_v41 = vmax.f32 %v472_v20, 0.0  ;;  %v341_v11 = vmul.f32 %v4358_v19, %v7307_v51  ;;  %v1554_v30 = vpack.c.bf16 %v1524_v57, %v1521_v13  ;;  %v5204_v54 = vpop.permute.xlu2 %1327 }
 0x107   : > { %1676 = vmatpush.bf16.msra.mxu1 %v1550_v5  ;;  %v547_v34 = vadd.f32 %v535_v21, %v520_v49  ;;  %1335 = vrot.lane.b32.xlu1 %v1300_v6, %s4230_s9  ;;  %v344_v8 = vmul.f32 %v4358_v19, %v7309_v27  ;;  %v408_v46 = vmul.f32 %v7315_v3, %v4715_v26 }
 0x108   : > { %v568_v39 = vmax.f32 %v544_v0, 0.0  ;;  %1225 = vrot.lane.b32.xlu2 %v1193_v60, %s4230_s9  ;;  %v373_v12 = vadd.f32 %v4677_v14, %v341_v11  ;;  %v411_v31 = vmul.f32 %v7315_v3, %v4723_v32  ;;  %1704 = vmatpush.bf16.msra.mxu2 %v1554_v30  ;;  %v455_v19 = vmul.f32 %v7308_v18, %v7312_v23 }
 0x109   : > { %v571_v24 = vmax.f32 %v547_v34, 0.0  ;;  %v376_v38 = vadd.f32 %v7311_v28, %v344_v8  ;;  %v458_v63 = vmul.f32 %v7308_v18, %v4766_v48  ;;  %v479_v21 = vmul.f32 %v7315_v3, %v7307_v51 }
 0x10a   : > { %v5206_v15 = vmax.f32 %v556_v52, %v568_v39  ;;  %v420_v20 = vadd.f32 %v408_v46, %v373_v12  ;;  %v482_v5 = vmul.f32 %v7315_v3, %v7309_v27  ;;  %3973 = vmatmul.msk.bf16.vlgmr.msra.gmra.mxu1 %vm1627_vm1, %v5197_v62  ;;  %v503_v60 = vmul.f32 %v7308_v18, %v4715_v26 }
 0x10b   : > { %v5214_v49 = vmax.f32 %v559_v41, %v571_v24  ;;  %v423_v6 = vadd.f32 %v411_v31, %v376_v38  ;;  %v506_v13 = vmul.f32 %v7308_v18, %v4723_v32  ;;  %v491_v0 = vadd.f32 %v479_v21, %v4677_v14  ;;  %v1332_v31 = vpop.permute.xlu0 %1331 }
 0x10c   : > { %593 = vst.msk [vmem:[#allocation2 + $0x10] sm:$0xff] %vm592_vm0, %v5206_v15  ;;  %v467_v57 = vadd.f32 %v455_v19, %v420_v20  ;;  %v494_v3 = vadd.f32 %v482_v5, %v7311_v28  ;;  %v533_v41 = vmul.f32 %v7310_v1, %v4766_v48  ;;  %v1196_v11 = vmul.f32 %v7286_v16, %v4976_v2 }
 0x10d   : > { %596 = vst.msk [vmem:[#allocation2 + $0x28] sm:$0xff] %vm592_vm0, %v5214_v49  ;;  %v470_v52 = vadd.f32 %v458_v63, %v423_v6  ;;  %v515_v30 = vadd.f32 %v503_v60, %v491_v0  ;;  %v530_v34 = vmul.f32 %v7310_v1, %v7312_v23  ;;  %v1291_v6 = vmul.f32 %v4715_v26, %v4976_v2  ;;  %v1326_v60 = vpop.permute.xlu1 %1325 }
 0x10e   : > { %v518_v18 = vadd.f32 %v506_v13, %v494_v3  ;;  %1231 = vrot.lane.b32.xlu0 %v1196_v11, %s4230_s9  ;;  %v554_v12 = vmax.f32 %v467_v57, 0.0  ;;  %v5237_v19 = vpop.permute.xlu2 %1221  ;;  %v1190_v57 = vmul.f32 %v4766_v48, %v4976_v2  ;;  %v1274_v11 = vmul.f32 %v4402_v37, %v7303_v56 }
 0x10f   : > { %627 = vrot.lane.b32.xlu1 %v5072_v33, %s4230_s9  ;;  %v542_v8 = vadd.f32 %v530_v34, %v515_v30  ;;  %v557_v46 = vmax.f32 %v470_v52, 0.0  ;;  %v1377_v30 = vmul.f32 %v7300_v50, %v7316_v43  ;;  %v5277_v34 = vld [vmem:[#allocation4 + $0x10] sm:$0xff]  ;;  %v1170_v50 = vmul.f32 %v4402_v37, %v7297_v55 }
 0x110   : > { %v545_v39 = vadd.f32 %v533_v41, %v518_v18  ;;  %629 = vrot.lane.b32.xlu2 %v5100_v25, %s4230_s9  ;;  %v5244_v25 = vld [vmem:[#allocation4 + $0x8] sm:$0xff]  ;;  %v1146_v41 = vmul.f32 %v4397_v35, %v7303_v56  ;;  %v1380_v18 = vmul.f32 %v7286_v16, %v7316_v43  ;;  %v1143_v16 = vmul.f32 %v4397_v35, %v7302_v22 }
 0x111   : > { %v566_v24 = vmax.f32 %v542_v8, 0.0 }
 0x112   : > { %v569_v38 = vmax.f32 %v545_v39, 0.0  ;;  %v1158_v8 = vadd.f32 %v1146_v41, %v7295_v59  ;;  %v1286_v39 = vadd.f32 %v1274_v11, %v7295_v59  ;;  %v1341_v11 = vsel %vm639_vm2, %v1326_v60, %v5204_v54 }
 0x113   : > { %v1515_v63 = vld [vmem:[#allocation2 + $0x10] sm:$0xff]  ;;  %v578_v1 = vmax.f32 %v554_v12, %v566_v24  ;;  %v1371_v60 = vmul.f32 %v7312_v23, %v7316_v43 }
 0x114   : > { %v1518_v20 = vld [vmem:[#allocation2 + $0x28] sm:$0xff]  ;;  %v581_v21 = vmax.f32 %v557_v46, %v569_v38  ;;  %v1271_v38 = vmul.f32 %v4402_v37, %v7302_v22 }
 0x115   : > { %v1551_v5 = vpack.c.bf16 %v1518_v20, %v1515_v63  ;;  %v5263_v52 = vpop.permute.xlu1 %1333  ;;  %v1294_v63 = vmul.f32 %v4723_v32, %v4976_v2 }
 0x116   : > { %v1549_v33 = vpack.c.bf16 %v581_v21, %v578_v1  ;;  %1317 = vrot.lane.b32.xlu0 %v1291_v6, %s4230_s9  ;;  %v5255_v13 = vpop.permute.xlu2 %1229  ;;  %v1187_v6 = vmul.f32 %v7312_v23, %v4976_v2 }
 0x117   : > { %1705 = vmatpush.bf16.msra.mxu2 %v1551_v5  ;;  %635 = vrot.lane.b32.xlu1 %v5102_v7, %s4230_s9  ;;  %v5253_v7 = vpop.permute.xlu0 %1223  ;;  %v1155_v5 = vadd.f32 %v1143_v16, %v7293_v29 }
 0x118   : > { %1647 = vmatpush.bf16.msra.mxu0 %v1549_v33  ;;  %615 = vrot.lane.b32.xlu2 %v578_v1, %s4230_s9  ;;  %v1167_v33 = vmul.f32 %v4402_v37, %v7304_v40 }
 0x11a   : > { %3977 = vmatmul.msk.bf16.vlgmr.msra.gmra.mxu2 %vm1627_vm1, %v5197_v62  ;;  %3974 = vmatmul.msk.bf16.gmra.mxu1 %vm1627_vm1, %v5244_v25  ;;  %v1179_v2 = vadd.f32 %v1167_v33, %v1155_v5  ;;  %v4179_v5 = vld [vmem:[#allocation2 + $0x90] sm:$0xff] }
 0x11b   : > { %3969 = vmatmul.msk.bf16.vlgmr.msra.gmra.mxu0 %vm1627_vm1, %v5197_v62 }
 0x11d   : > { %v1228_v24 = vpop.permute.xlu1 %1227 }
 0x11e   : > { %1219 = vrot.lane.b32.xlu0 %v1190_v57, %s4230_s9  ;;  %v1412_v3 = vpop.permute.xlu2 %1411 }
 0x11f   : > { %621 = vrot.lane.b32.xlu1 %v581_v21, %s4230_s9  ;;  %v1406_v0 = vpop.permute.xlu0 %1405  ;;  %v1239_v21 = vsel %vm639_vm2, %v1228_v24, %v5255_v13  ;;  %v5330_v24 = vld [vmem:[#allocation4 + $0x18] sm:$0xff] }
 0x120   : > { %623 = vrot.lane.b32.xlu2 %v5173_v58, %s4230_s9  ;;  %v1343_v58 = vsel %vm639_vm2, %v1332_v31, %v5263_v52  ;;  %v1182_v31 = vadd.f32 %v1170_v50, %v1158_v8 }
 0x121   : > { %v1366_v12 = vadd.f32 %v1343_v58, %v1286_v39 }
 0x122   : > { %v1262_v57 = vadd.f32 %v1239_v21, %v1182_v31 }
 0x124   : > { %v1458_v41 = vmax.f32 %v1262_v57, 0.0 }
 0x125   : > { %v5320_v50 = vpop.permute.xlu1 %1407 }
 0x126   : > { %631 = vrot.lane.b32.xlu0 %v5138_v47, %s4230_s9  ;;  %v5301_v20 = vpop.permute.xlu2 %1315 }
 0x127   : > { %1409 = vrot.lane.b32.xlu1 %v1377_v30, %s4230_s9  ;;  %v5293_v46 = vpop.permute.xlu0 %1413  ;;  %v1237_v30 = vsel %vm639_vm2, %v5237_v19, %v5253_v7  ;;  %v1374_v19 = vmul.f32 %v4766_v48, %v7316_v43 }
 0x128   : > { %1415 = vrot.lane.b32.xlu2 %v1380_v18, %s4230_s9  ;;  %v1423_v47 = vsel %vm639_vm2, %v1412_v3, %v5293_v46  ;;  %v1283_v18 = vadd.f32 %v1271_v38, %v7293_v29  ;;  %v1259_v16 = vadd.f32 %v1237_v30, %v1179_v2  ;;  %v1137_v2 = vmul.f32 %v4397_v35, %v7307_v51 }
 0x129   : > { %v1446_v1 = vadd.f32 %v1423_v47, %v1366_v12  ;;  %v1421_v12 = vsel %vm639_vm2, %v1406_v0, %v5320_v50 }
 0x12a   : > { %3978 = vmatmul.msk.bf16.gmra.mxu2 %vm1627_vm1, %v5244_v25  ;;  %3975 = vmatmul.msk.bf16.gmra.mxu1 %vm1627_vm1, %v5277_v34  ;;  %v1363_v39 = vadd.f32 %v1341_v11, %v1283_v18  ;;  %v1455_v31 = vmax.f32 %v1259_v16, 0.0  ;;  %v1149_v16 = vadd.f32 %v1137_v2, %v4677_v14  ;;  %v1507_v2 = vld [vmem:[%s7173_s4 + $0x10] sm:$0xff] }
 0x12b   : > { %3970 = vmatmul.msk.bf16.gmra.mxu0 %vm1627_vm1, %v5244_v25  ;;  %v1470_v3 = vmax.f32 %v1446_v1, 0.0  ;;  %v1268_v1 = vmul.f32 %v4402_v37, %v7309_v27 }
 0x12d   : > { %v1482_v58 = vmax.f32 %v1458_v41, %v1470_v3  ;;  %v1314_v43 = vpop.permute.xlu1 %1313  ;;  %v1280_v33 = vadd.f32 %v1268_v1, %v7311_v28 }
 0x12e   : > { %899 = vrot.lane.b32.xlu0 %v4910_v9, %s4230_s9  ;;  %v1443_v9 = vadd.f32 %v1421_v12, %v1363_v39  ;;  %v1210_v47 = vpop.permute.xlu2 %1209 }
 0x12f   : > { %1323 = vrot.lane.b32.xlu1 %v1294_v63, %s4230_s9  ;;  %v1320_v8 = vpop.permute.xlu0 %1319  ;;  %1494 = vst [vmem:[#allocation2 + $0x168] sm:$0xff] %v1482_v58 }
 0x130   : > { %1213 = vrot.lane.b32.xlu2 %v1187_v6, %s4230_s9  ;;  %v1467_v38 = vmax.f32 %v1443_v9, 0.0 }
 0x132   : > { %v5338_v48 = vmax.f32 %v1455_v31, %v1467_v38 }
 0x134   : > { %v5357_v21 = vpack.c.bf16 %v1482_v58, %v5338_v48  ;;  %v1161_v58 = vmul.f32 %v4402_v37, %v4715_v26 }
 0x135   : > { %v5352_v63 = vpop.permute.xlu1 %1321 }
 0x136   : > { %619 = vrot.lane.b32.xlu0 %v5206_v15, %s4230_s9  ;;  %v5350_v15 = vpop.permute.xlu2 %1217  ;;  %1807 = vmatpush.bf16.msra.mxu3 %v5357_v21 }
 0x137   : > { %1397 = vrot.lane.b32.xlu1 %v1371_v60, %s4230_s9  ;;  %v5342_v23 = vpop.permute.xlu0 %1211  ;;  %v1265_v60 = vmul.f32 %v4402_v37, %v7307_v51 }
 0x138   : > { %1403 = vrot.lane.b32.xlu2 %v1374_v19, %s4230_s9  ;;  %v1337_v19 = vsel %vm639_vm2, %v1314_v43, %v5301_v20 }
 0x139   : > { %v1277_v9 = vadd.f32 %v1265_v60, %v4677_v14  ;;  %v1757_v60 = vld [vmem:[#allocation2 + $0x90] sm:$0xff] }
 0x13a   : > { %3979 = vmatmul.msk.bf16.gmra.mxu2 %vm1627_vm1, %v5277_v34  ;;  %3976 = vmatmul.msk.bf16.gmra.mxu1 %vm1627_vm1, %v5330_v24 }
 0x13b   : > { %3971 = vmatmul.msk.bf16.gmra.mxu0 %vm1627_vm1, %v5277_v34  ;;  %v1357_v38 = vadd.f32 %v1337_v19, %v1277_v9  ;;  %v1754_v19 = vld [vmem:[#allocation2 + $0x78] sm:$0xff]  ;;  %v1506_v9 = vld [vmem:[%s7173_s4 + $0x8] sm:$0xff] }
 0x13d   : > { %v1216_v11 = vpop.permute.xlu1 %1215 }
 0x13e   : > { %887 = vrot.lane.b32.xlu0 %v5034_v45, %s4230_s9  ;;  %v1164_v45 = vmul.f32 %v4402_v37, %v4723_v32  ;;  %v1235_v18 = vsel %vm639_vm2, %v1216_v11, %v5350_v15 }
 0x13f   : > { %637 = vrot.lane.b32.xlu1 %v5140_v36, %s4230_s9  ;;  %v1394_v0 = vpop.permute.xlu0 %1393  ;;  %v1140_v36 = vmul.f32 %v4397_v35, %v7309_v27  ;;  %v1233_v35 = vsel %vm639_vm2, %v1210_v47, %v5342_v23 }
 0x140   : > { %897 = vrot.lane.b32.xlu2 %v4879_v17, %s4230_s9  ;;  %v1339_v17 = vsel %vm639_vm2, %v1320_v8, %v5352_v63 }
 0x141   : > { %v1360_v6 = vadd.f32 %v1339_v17, %v1280_v33 }
 0x146   : > { %895 = vrot.lane.b32.xlu0 %v4179_v5, %s4230_s9  ;;  %v7317_v5 = vld [vmem:[#allocation25_spill] sm:$0xff] }
 0x147   : > { %903 = vrot.lane.b32.xlu1 %v4882_v53, %s4230_s9  ;;  %v1152_v53 = vadd.f32 %v1140_v36, %v7311_v28  ;;  %v5377_v57 = vpop.permute.xlu0 %1401 }
 0x148   : > { %905 = vrot.lane.b32.xlu2 %v4916_v42, %s4230_s9  ;;  %v1400_v42 = vpop.permute.xlu2 %1399 }
 0x149   : > { %v1419_v3 = vsel %vm639_vm2, %v1400_v42, %v5377_v57  ;;  %v1176_v41 = vadd.f32 %v1164_v45, %v1152_v53  ;;  %v1508_v45 = vld [vmem:[%s7173_s4 + $0x18] sm:$0xff] }
 0x14a   : > { %3980 = vmatmul.msk.bf16.gmra.mxu2 %vm1627_vm1, %v5330_v24  ;;  %v1440_v30 = vadd.f32 %v1419_v3, %v1360_v6  ;;  %v1512_v53 = vld [vmem:[%s7173_s4 + $0x38] sm:$0xff]  ;;  %v1772_v6 = vld [vmem:[#allocation2 + $0x108] sm:$0xff]  ;;  %v1769_v3 = vld [vmem:[#allocation2 + $0xf0] sm:$0xff] }
 0x14b   : > { %3972 = vmatmul.msk.bf16.gmra.mxu0 %vm1627_vm1, %v5330_v24  ;;  %v1256_v8 = vadd.f32 %v1235_v18, %v1176_v41  ;;  %v5433_v11 = vpack.c.bf16 %v1772_v6, %v1769_v3  ;;  %v1510_v18 = vld [vmem:[%s7173_s4 + $0x28] sm:$0xff] }
 0x14c   : > { %v1464_v39 = vmax.f32 %v1440_v30, 0.0  ;;  %v1766_v30 = vld [vmem:[#allocation2 + $0xd8] sm:$0xff] }
 0x14d   : > { %v1452_v12 = vmax.f32 %v1256_v8, 0.0 }
 0x14e   : > { %889 = vrot.lane.b32.xlu0 %v4954_v61, %s4230_s9  ;;  %v1509_v61 = vld [vmem:[%s7173_s4 + $0x20] sm:$0xff] }
 0x14f   : > { %625 = vrot.lane.b32.xlu1 %v5214_v49, %s4230_s9  ;;  %v1173_v49 = vadd.f32 %v1161_v58, %v1149_v16  ;;  %v1476_v31 = vmax.f32 %v1452_v12, %v1464_v39  ;;  %v1763_v58 = vld [vmem:[#allocation2 + $0xc0] sm:$0xff]  ;;  %v1760_v16 = vld [vmem:[#allocation2 + $0xa8] sm:$0xff] }
 0x150   : > { %885 = vrot.lane.b32.xlu2 %v4987_v10, %s4230_s9  ;;  %v5442_v39 = vpack.c.bf16 %v1766_v30, %v1763_v58 }
 0x151   : > { %v1253_v10 = vadd.f32 %v1233_v35, %v1173_v49  ;;  %v1790_v35 = vpack.c.bf16 %v1760_v16, %v1757_v60  ;;  %v1505_v49 = vld [vmem:[%s7173_s4] sm:$0xff] }
 0x152   : > { %v5401_v1 = vpop.permute.xlu1 %1395 }
 0x153   : > { %v1417_v37 = vsel %vm639_vm2, %v1394_v0, %v5401_v1  ;;  %v1449_v47 = vmax.f32 %v1253_v10, 0.0  ;;  %v4180_v0 = vld [vmem:[#allocation2 + $0xa8] sm:$0xff] }
 0x154   : > { %v1437_v36 = vadd.f32 %v1417_v37, %v1357_v38  ;;  %v7318_v37 = vld [vmem:[#allocation15_spill] sm:$0xff] }
 0x156   : > { %v1461_v43 = vmax.f32 %v1437_v36, 0.0  ;;  %1589 = vperm.xlu0 %4176, %v1509_v61   ;;  %v1148_v61 = vmul.f32 %v7318_v37, %v7303_v56 }
 0x157   : > { %891 = vrot.lane.b32.xlu1 %v4989_v4, %s4230_s9  ;;  %v1511_v4 = vld [vmem:[%s7173_s4 + $0x30] sm:$0xff] }
 0x158   : > { %893 = vrot.lane.b32.xlu2 %v5036_v44, %s4230_s9  ;;  %v1473_v17 = vmax.f32 %v1449_v47, %v1461_v43  ;;  %v5423_v44 = vpop.permute.xlu0 %1329  ;;  %v7319_v43 = vld [vmem:[#allocation21_spill] sm:$0xff]  ;;  %v1160_v6 = vadd.f32 %v1148_v61, %v7295_v59 }
 0x15a   : > { %v5428_v42 = vpack.c.bf16 %v1476_v31, %v1473_v17  ;;  %v1751_v31 = vld [vmem:[#allocation2 + $0x60] sm:$0xff]  ;;  %v1147_v17 = vmul.f32 %v7319_v43, %v7303_v56 }
 0x15b   : > { %v1787_v10 = vpack.c.bf16 %v1754_v19, %v1751_v31 }
 0x15c   : > { %1808 = vmatpush.bf16.msra.mxu3 %v5428_v42  ;;  %v1159_v3 = vadd.f32 %v1147_v17, %v7295_v59 }
 0x15e   : > { %1584 = vperm.xlu0 %4176, %v1508_v45  }
 0x15f   : > { %901 = vrot.lane.b32.xlu1 %v4180_v0, %s4230_s9  ;;  %v7320_v0 = vld [vmem:[#allocation16_spill] sm:$0xff] }
 0x160   : > { %883 = vrot.lane.b32.xlu2 %v7317_v5, %s4230_s9  ;;  %1809 = vmatpush.bf16.msra.mxu3 %v5433_v11  ;;  %v634_v8 = vpop.permute.xlu0 %633  ;;  %v1276_v5 = vmul.f32 %v7320_v0, %v7303_v56  ;;  %v1172_v30 = vmul.f32 %v7320_v0, %v7297_v55 }
 0x162   : > { %v5418_v33 = vpop.permute.xlu2 %1225  ;;  %v1184_v60 = vadd.f32 %v1172_v30, %v1160_v6 }
 0x164   : > { %1810 = vmatpush.bf16.msra.mxu3 %v5442_v39 }
 0x167   : > { %1599 = vperm.xlu1 %4177, %v1511_v4   ;;  %v7321_v4 = vld [vmem:[#allocation22_spill] sm:$0xff] }
 0x168   : > { %1604 = vperm.xlu2 %4178, %v1512_v53   ;;  %1811 = vmatpush.bf16.msra.mxu3 %v1790_v35  ;;  %v1275_v53 = vmul.f32 %v7321_v4, %v7303_v56  ;;  %v1171_v58 = vmul.f32 %v7321_v4, %v7297_v55 }
 0x16a   : > { %v5431_v41 = vpop.permute.xlu2 %629  ;;  %v1287_v16 = vadd.f32 %v1275_v53, %v7295_v59  ;;  %v1183_v35 = vadd.f32 %v1171_v58, %v1159_v3 }
 0x16c   : > { %1812 = vmatpush.bf16.msra.mxu3 %v1787_v10 }
 0x16f   : > { %1594 = vperm.xlu1 %4177, %v1510_v18   ;;  %3981 = vmatmul.msk.bf16.vlgmr.msra.gmra.mxu3 %vm1627_vm1, %v5197_v62  ;;  %v1288_v18 = vadd.f32 %v1276_v5, %v7295_v59 }
 0x170   : > { %1579 = vperm.xlu2 %4178, %v1507_v2  }
 0x172   : > { %v616_v12 = vpop.permute.xlu2 %615 }
 0x177   : > { %1569 = vperm.xlu1 %4177, %v1505_v49   ;;  %v5451_v38 = vpop.permute.xlu0 %617 }
 0x178   : > { %1574 = vperm.xlu2 %4178, %v1506_v9   ;;  %v640_v47 = vsel %vm639_vm2, %v616_v12, %v5451_v38 }
 0x179   : > { %v1336_v36 = vpop.permute.xlu1 %1335 }
 0x17a   : > { %v5459_v45 = vpop.permute.xlu2 %623  ;;  %v1344_v2 = vsel %vm639_vm2, %v5263_v52, %v1336_v36  ;;  %v1368_v12 = vadd.f32 %v1336_v36, %v1288_v18 }
 0x17b   : > { %v1367_v49 = vadd.f32 %v1344_v2, %v1287_v16  ;;  %v1145_v16 = vmul.f32 %v7318_v37, %v7302_v22 }
 0x17f   : > { %3982 = vmatmul.msk.bf16.gmra.mxu3 %vm1627_vm1, %v5244_v25 }
 0x180   : > { %v1232_v19 = vpop.permute.xlu0 %1231 }
 0x181   : > { %v628_v56 = vpop.permute.xlu1 %627  ;;  %v1240_v10 = vsel %vm639_vm2, %v5255_v13, %v1232_v19  ;;  %v1264_v61 = vadd.f32 %v1232_v19, %v1184_v60  ;;  %v1144_v60 = vmul.f32 %v7319_v43, %v7302_v22 }
 0x182   : > { %v644_v9 = vsel %vm639_vm2, %v628_v56, %v5431_v41  ;;  %v1416_v31 = vpop.permute.xlu2 %1415  ;;  %v1263_v17 = vadd.f32 %v1240_v10, %v1183_v35  ;;  %v1169_v56 = vmul.f32 %v7320_v0, %v7304_v40  ;;  %v1273_v35 = vmul.f32 %v7320_v0, %v7302_v22 }
 0x183   : > { %v1424_v52 = vsel %vm639_vm2, %v5293_v46, %v1416_v31  ;;  %v1448_v55 = vadd.f32 %v1416_v31, %v1368_v12  ;;  %v1460_v5 = vmax.f32 %v1264_v61, 0.0  ;;  %v1168_v31 = vmul.f32 %v7321_v4, %v7304_v40 }
 0x184   : > { %v1447_v59 = vadd.f32 %v1424_v52, %v1367_v49  ;;  %v1459_v53 = vmax.f32 %v1263_v17, 0.0  ;;  %v1272_v10 = vmul.f32 %v7321_v4, %v7302_v22  ;;  %v1238_v17 = vsel %vm639_vm2, %v5253_v7, %v5418_v33 }
 0x185   : > { %v1472_v36 = vmax.f32 %v1448_v55, 0.0  ;;  %v1142_v7 = vmul.f32 %v7318_v37, %v7309_v27 }
 0x186   : > { %v1471_v6 = vmax.f32 %v1447_v59, 0.0  ;;  %v1285_v59 = vadd.f32 %v1273_v35, %v7293_v29  ;;  %v1165_v35 = vmul.f32 %v7321_v4, %v4723_v32 }
 0x187   : > { %v1484_v3 = vmax.f32 %v1460_v5, %v1472_v36  ;;  %v1342_v5 = vsel %vm639_vm2, %v5204_v54, %v5423_v44  ;;  %v1284_v36 = vadd.f32 %v1272_v10, %v7293_v29  ;;  %v1154_v10 = vadd.f32 %v1142_v7, %v7311_v28 }
 0x188   : > { %v5483_v30 = vmax.f32 %v1459_v53, %v1471_v6  ;;  %v5492_v46 = vpop.permute.xlu0 %1317  ;;  %v1267_v7 = vmul.f32 %v7320_v0, %v7307_v51 }
 0x189   : > { %1496 = vst.msk [vmem:[#allocation2 + $0x178] sm:$0xff] %vm592_vm0, %v1484_v3  ;;  %v5486_v18 = vpop.permute.xlu1 %635  ;;  %v1364_v6 = vadd.f32 %v1342_v5, %v1284_v36  ;;  %v1266_v5 = vmul.f32 %v7321_v4, %v7307_v51 }
 0x18a   : > { %v646_v13 = vsel %vm639_vm2, %v634_v8, %v5486_v18  ;;  %v5490_v2 = vpop.permute.xlu2 %1213  ;;  %v1157_v8 = vadd.f32 %v1145_v16, %v7293_v29 }
 0x18b   : > { %v5494_v58 = vpack.c.bf16 %v646_v13, %v644_v9  ;;  %v1156_v9 = vadd.f32 %v1144_v60, %v7293_v29  ;;  %v1141_v29 = vmul.f32 %v7319_v43, %v7309_v27 }
 0x18c   : > { %v1181_v55 = vadd.f32 %v1169_v56, %v1157_v8 }
 0x18d   : > { %1996 = vmatpush.bf16.msrb.mxu2 %v5494_v58  ;;  %v1180_v40 = vadd.f32 %v1168_v31, %v1156_v9  ;;  %v1269_v9 = vmul.f32 %v7321_v4, %v7309_v27  ;;  %v1138_v31 = vmul.f32 %v7319_v43, %v7307_v51 }
 0x18e   : > { %v1261_v22 = vadd.f32 %v5418_v33, %v1181_v55  ;;  %v1166_v33 = vmul.f32 %v7320_v0, %v4723_v32  ;;  %v1163_v32 = vmul.f32 %v7320_v0, %v4715_v26 }
 0x18f   : > { %v1260_v53 = vadd.f32 %v1238_v17, %v1180_v40  ;;  %3983 = vmatmul.msk.bf16.gmra.mxu3 %vm1627_vm1, %v5277_v34  ;;  %v1162_v17 = vmul.f32 %v7321_v4, %v4715_v26 }
 0x190   : > { %v1220_v61 = vpop.permute.xlu0 %1219  ;;  %v1178_v40 = vadd.f32 %v1166_v33, %v1154_v10  ;;  %v1234_v33 = vsel %vm639_vm2, %v5342_v23, %v5490_v2 }
 0x191   : > { %v622_v12 = vpop.permute.xlu1 %621  ;;  %v1456_v56 = vmax.f32 %v1260_v53, 0.0  ;;  %v1236_v43 = vsel %vm639_vm2, %v5350_v15, %v1220_v61 }
 0x192   : > { %v642_v19 = vsel %vm639_vm2, %v622_v12, %v5459_v45  ;;  %v5510_v49 = vpop.permute.xlu2 %1403  ;;  %v1258_v4 = vadd.f32 %v1220_v61, %v1178_v40 }
 0x193   : > { %v5517_v52 = vpack.c.bf16 %v642_v19, %v640_v47  ;;  %v1365_v47 = vadd.f32 %v5423_v44, %v1285_v59  ;;  %v1153_v59 = vadd.f32 %v1141_v29, %v7311_v28 }
 0x195   : > { %1997 = vmatpush.bf16.msrb.mxu2 %v5517_v52  ;;  %v1177_v36 = vadd.f32 %v1165_v35, %v1153_v59  ;;  %v1786_v35 = vld [vmem:[#allocation2 + $0x178] sm:$0xff] }
 0x198   : > { %v632_v60 = vpop.permute.xlu0 %631 }
 0x199   : > { %v1410_v3 = vpop.permute.xlu1 %1409  ;;  %1998 = vmatpush.bf16.msrb.mxu2 %v5357_v21  ;;  %v1457_v21 = vmax.f32 %v1261_v22, 0.0  ;;  %v5545_v8 = vsel %vm639_vm2, %v5431_v41, %v632_v60  ;;  %669 = vst.msk [vmem:[#allocation2 + $0x1c0] sm:$0xff] %vm662_vm3, %v632_v60  ;;  %v1139_v41 = vmul.f32 %v7318_v37, %v7307_v51  ;;  %v1281_v22 = vadd.f32 %v1269_v9, %v7311_v28 }
 0x19a   : > { %v1422_v13 = vsel %vm639_vm2, %v5320_v50, %v1410_v3  ;;  %v1445_v54 = vadd.f32 %v1410_v3, %v1365_v47  ;;  %v5535_v16 = vpop.permute.xlu2 %897  ;;  %v1270_v50 = vmul.f32 %v7320_v0, %v7309_v27  ;;  %v1279_v0 = vadd.f32 %v1267_v7, %v4677_v14  ;;  %v1767_v7 = vld [vmem:[#allocation2 + $0xe0] sm:$0xff] }
 0x19b   : > { %v1444_v44 = vadd.f32 %v1422_v13, %v1364_v6  ;;  %v1151_v53 = vadd.f32 %v1139_v41, %v4677_v14  ;;  %v1257_v13 = vadd.f32 %v1236_v43, %v1177_v36 }
 0x19c   : > { %v1469_v12 = vmax.f32 %v1445_v54, 0.0  ;;  %v1282_v37 = vadd.f32 %v1270_v50, %v7311_v28 }
 0x19d   : > { %v1468_v19 = vmax.f32 %v1444_v44, 0.0  ;;  %1999 = vmatpush.bf16.msrb.mxu2 %v5428_v42  ;;  %v1175_v51 = vadd.f32 %v1163_v32, %v1151_v53 }
 0x19e   : > { %v1481_v55 = vmax.f32 %v1457_v21, %v1469_v12  ;;  %v1278_v21 = vadd.f32 %v1266_v5, %v4677_v14  ;;  %v1453_v12 = vmax.f32 %v1257_v13, 0.0 }
 0x19f   : > { %v1480_v27 = vmax.f32 %v1456_v56, %v1468_v19  ;;  %v1255_v19 = vadd.f32 %v5490_v2, %v1175_v51  ;;  %3984 = vmatmul.msk.bf16.gmra.mxu3 %vm1627_vm1, %v5330_v24 }
 0x1a0   : > { %1493 = vst.msk [vmem:[#allocation2 + $0x160] sm:$0xff] %vm592_vm0, %v1481_v55 }
 0x1a1   : > { %v1324_v47 = vpop.permute.xlu1 %1323  ;;  %2000 = vmatpush.bf16.msrb.mxu2 %v5433_v11  ;;  %v5574_v26 = vpack.c.bf16 %v5483_v30, %v1480_v27  ;;  %v900_v11 = vpop.permute.xlu0 %899  ;;  %v1150_v30 = vadd.f32 %v1138_v31, %v4677_v14  ;;  %v1451_v32 = vmax.f32 %v1255_v19, 0.0 }
 0x1a2   : > { %v1340_v6 = vsel %vm639_vm2, %v5352_v63, %v1324_v47  ;;  %v1362_v15 = vadd.f32 %v1324_v47, %v1282_v37  ;;  %v5579_v3 = vpop.permute.xlu2 %905  ;;  %v1420_v63 = vsel %vm639_vm2, %v5377_v57, %v5510_v49  ;;  %v5593_v54 = vsel %vm639_vm2, %v5535_v16, %v900_v11  ;;  %935 = vst.msk [vmem:[#allocation2 + $0x220] sm:$0xff] %vm662_vm3, %v900_v11  ;;  %v1764_v11 = vld [vmem:[#allocation2 + $0xc8] sm:$0xff] }
 0x1a3   : > { %v1361_v28 = vadd.f32 %v1340_v6, %v1281_v22  ;;  %938 = vst.msk [vmem:[#allocation2 + $0x238] sm:$0xff] %vm662_vm3, %v5579_v3  ;;  %1836 = vmatpush.bf16.msrb.mxu0 %v5574_v26  ;;  %v1338_v57 = vsel %vm639_vm2, %v5301_v20, %v5492_v46  ;;  %v1174_v60 = vadd.f32 %v1162_v17, %v1150_v30 }
 0x1a4   : > { %v1442_v61 = vadd.f32 %v5510_v49, %v1362_v15  ;;  %v1454_v49 = vmax.f32 %v1258_v4, 0.0  ;;  %v1358_v23 = vadd.f32 %v1338_v57, %v1278_v21  ;;  %v1770_v15 = vld [vmem:[#allocation2 + $0xf8] sm:$0xff]  ;;  %v1771_v57 = vld [vmem:[#allocation2 + $0x100] sm:$0xff] }
 0x1a5   : > { %v1441_v29 = vadd.f32 %v1420_v63, %v1361_v28  ;;  %2001 = vmatpush.bf16.msrb.mxu2 %v5442_v39  ;;  %v1359_v39 = vadd.f32 %v5492_v46, %v1279_v0  ;;  %v1254_v20 = vadd.f32 %v1234_v33, %v1174_v60  ;;  %v1774_v63 = vld [vmem:[#allocation2 + $0x118] sm:$0xff] }
 0x1a6   : > { %v1466_v44 = vmax.f32 %v1442_v61, 0.0  ;;  %v5650_v61 = vpack.c.bf16 %v1767_v7, %v1764_v11  ;;  %v5661_v60 = vpack.c.bf16 %v1774_v63, %v1771_v57  ;;  %v2114_v11 = vld [vmem:[#allocation2 + $0x168] sm:$0xff]  ;;  %v5736_v63 = vpop.f32.mrf.mxu1 }
 0x1a7   : > { %v1465_v50 = vmax.f32 %v1441_v29, 0.0  ;;  %v1783_v56 = vld [vmem:[#allocation2 + $0x160] sm:$0xff]  ;;  %v1450_v5 = vmax.f32 %v1254_v20, 0.0  ;;  %v1761_v29 = vld [vmem:[#allocation2 + $0xb0] sm:$0xff] }
 0x1a8   : > { %v1478_v9 = vmax.f32 %v1454_v49, %v1466_v44  ;;  %v5607_v31 = vpack.c.bf16 %v1786_v35, %v1783_v56  ;;  %3993 = vmatmul.msk.bf16.vlgmr.msrb.gmra.mxu2 %vm1627_vm1, %v5197_v62  ;;  %v1755_v56 = vld [vmem:[#allocation2 + $0x80] sm:$0xff]  ;;  %v1765_v35 = vld [vmem:[#allocation2 + $0xd0] sm:$0xff] }
 0x1a9   : > { %v1477_v41 = vmax.f32 %v1453_v12, %v1465_v50  ;;  %v1398_v10 = vpop.permute.xlu1 %1397  ;;  %v620_v46 = vpop.permute.xlu0 %619  ;;  %v1758_v12 = vld [vmem:[#allocation2 + $0x98] sm:$0xff] }
 0x1aa   : > { %1490 = vst.msk [vmem:[#allocation2 + $0x148] sm:$0xff] %vm592_vm0, %v1478_v9  ;;  %v1418_v14 = vsel %vm639_vm2, %v5401_v1, %v1398_v10  ;;  %v1439_v55 = vadd.f32 %v1398_v10, %v1359_v39  ;;  %v886_v17 = vpop.permute.xlu2 %885  ;;  %1865 = vmatpush.bf16.msrb.mxu1 %v5607_v31  ;;  %v5619_v27 = vsel %vm639_vm2, %v5451_v38, %v620_v46  ;;  %v1773_v38 = vld [vmem:[#allocation2 + $0x110] sm:$0xff]  ;;  %v1752_v9 = vld [vmem:[#allocation2 + $0x68] sm:$0xff] }
 0x1ab   : > { %v1438_v2 = vadd.f32 %v1418_v14, %v1358_v23  ;;  %663 = vst.msk [vmem:[#allocation2 + $0x190] sm:$0xff] %vm662_vm3, %v620_v46  ;;  %v1791_v50 = vpack.c.bf16 %v1761_v29, %v1758_v12  ;;  %v1762_v23 = vld [vmem:[#allocation2 + $0xb8] sm:$0xff]  ;;  %v1759_v14 = vld [vmem:[#allocation2 + $0xa0] sm:$0xff] }
 0x1ac   : > { %v1463_v59 = vmax.f32 %v1439_v55, 0.0 }
 0x1ad   : > { %v1462_v40 = vmax.f32 %v1438_v2, 0.0  ;;  %v1756_v2 = vld [vmem:[#allocation2 + $0x88] sm:$0xff] }
 0x1ae   : > { %v1475_v1 = vmax.f32 %v1451_v32, %v1463_v59  ;;  %v1753_v32 = vld [vmem:[#allocation2 + $0x70] sm:$0xff] }
 0x1af   : > { %v1474_v43 = vmax.f32 %v1450_v5, %v1462_v40  ;;  %v1789_v59 = vpack.c.bf16 %v1756_v2, %v1753_v32 }
 0x1b0   : > { %1487 = vst.msk [vmem:[#allocation2 + $0x130] sm:$0xff] %vm592_vm0, %v1475_v1 }
 0x1b1   : > { %v638_v37 = vpop.permute.xlu1 %637  ;;  %v5623_v36 = vpack.c.bf16 %v1477_v41, %v1474_v43  ;;  %v888_v53 = vpop.permute.xlu0 %887  ;;  %v1780_v28 = vld [vmem:[#allocation2 + $0x148] sm:$0xff]  ;;  %v1972_v41 = vld [vmem:[#allocation2 + $0x1c0] sm:$0xff] }
 0x1b2   : > { %v647_v22 = vsel %vm639_vm2, %v5486_v18, %v638_v37  ;;  %672 = vst.msk [vmem:[#allocation2 + $0x1d8] sm:$0xff] %vm662_vm3, %v638_v37  ;;  %v5628_v47 = vpop.permute.xlu2 %893  ;;  %v5637_v6 = vsel %vm639_vm2, %v886_v17, %v888_v53  ;;  %v5640_v18 = vpack.c.bf16 %v1773_v38, %v1770_v15  ;;  %v1966_v5 = vld [vmem:[#allocation2 + $0x190] sm:$0xff] }
 0x1b3   : > { %1837 = vmatpush.bf16.msrb.mxu0 %v5623_v36  ;;  %v5632_v4 = vpack.c.bf16 %v647_v22, %v5545_v8  ;;  %932 = vst.msk [vmem:[#allocation2 + $0x208] sm:$0xff] %vm662_vm3, %v5628_v47 }
 0x1b4   : > { %929 = vst.msk [vmem:[#allocation2 + $0x1f0] sm:$0xff] %vm662_vm3, %v888_v53 }
 0x1b5   : > { %2025 = vmatpush.bf16.msrb.mxu3 %v5632_v4 }
 0x1b7   : > { %v1777_v13 = vld [vmem:[#allocation2 + $0x130] sm:$0xff]  ;;  %1838 = vmatpush.bf16.msrb.mxu0 %v5640_v18 }
 0x1b8   : > { %v5644_v8 = vpack.c.bf16 %v1780_v28, %v1777_v13  ;;  %3994 = vmatmul.msk.bf16.gmra.mxu2 %vm1627_vm1, %v5244_v25  ;;  %v5698_v28 = vpop.f32.mrf.mxu2 }
 0x1b9   : > { %v5648_v30 = vpop.permute.xlu1 %903  ;;  %v896_v49 = vpop.permute.xlu0 %895  ;;  %v1975_v19 = vld [vmem:[#allocation2 + $0x1d8] sm:$0xff] }
 0x1ba   : > { %v914_v51 = vsel %vm639_vm2, %v5648_v30, %v5579_v3  ;;  %v884_v0 = vpop.permute.xlu2 %883  ;;  %1866 = vmatpush.bf16.msrb.mxu1 %v5644_v8  ;;  %v911_v21 = vsel %vm639_vm2, %v896_v49, %v5535_v16  ;;  %v1768_v3 = vld [vmem:[#allocation2 + $0xe8] sm:$0xff]  ;;  %v1993_v16 = vpack.c.bf16 %v1975_v19, %v1972_v41 }
 0x1bb   : > { %v5657_v33 = vsel %vm639_vm2, %v884_v0, %v886_v17  ;;  %1839 = vmatpush.bf16.msrb.mxu0 %v5650_v61  ;;  %v2157_v44 = vpack.c.bf16 %v914_v51, %v5593_v54  ;;  %v1795_v39 = vpack.c.bf16 %v1768_v3, %v1765_v35  ;;  %v1788_v54 = vpack.c.bf16 %v1755_v56, %v1752_v9  ;;  %v2131_v7 = vld [vmem:[#allocation2 + $0x1f0] sm:$0xff] }
 0x1bc   : > { %v1792_v17 = vpack.c.bf16 %v1762_v23, %v1759_v14  ;;  %v4182_v23 = vld [vmem:[#allocation4 + $0x8] sm:$0xff] }
 0x1bd   : > { %2190 = vmatpush.bf16.msra.mxu2 %v2157_v44 }
 0x1be   : > { %1867 = vmatpush.bf16.msrb.mxu1 %v5661_v60 }
 0x1bf   : > { %1840 = vmatpush.bf16.msrb.mxu0 %v1791_v50 }
 0x1c1   : > { %v626_v20 = vpop.permute.xlu1 %625  ;;  %v890_v46 = vpop.permute.xlu0 %889 }
 0x1c2   : > { %v643_v10 = vsel %vm639_vm2, %v5459_v45, %v626_v20  ;;  %666 = vst.msk [vmem:[#allocation2 + $0x1a8] sm:$0xff] %vm662_vm3, %v626_v20  ;;  %1868 = vmatpush.bf16.msrb.mxu1 %v1795_v39 }
 0x1c3   : > { %1841 = vmatpush.bf16.msrb.mxu0 %v1788_v54  ;;  %v1989_v55 = vpack.c.bf16 %v643_v10, %v5619_v27 }
 0x1c5   : > { %2026 = vmatpush.bf16.msrb.mxu3 %v1989_v55 }
 0x1c6   : > { %1869 = vmatpush.bf16.msrb.mxu1 %v1792_v17  ;;  %3985 = vmatmul.msk.bf16.vlgmr.msrb.gmra.mxu0 %vm1627_vm1, %v5197_v62 }
 0x1c7   : > { %2054 = vmatpush.bf16.msra.mxu0 %v1993_v16 }
 0x1c8   : > { %3995 = vmatmul.msk.bf16.gmra.mxu2 %vm1627_vm1, %v5277_v34 }
 0x1c9   : > { %v892_v45 = vpop.permute.xlu1 %891  ;;  %v1969_v40 = vld [vmem:[#allocation2 + $0x1a8] sm:$0xff]  ;;  %2027 = vmatpush.bf16.msrb.mxu3 %v5574_v26  ;;  %v5780_v14 = vpop.permute.xlu0 %1589 }
 0x1ca   : > { %v909_v27 = vsel %vm639_vm2, %v890_v46, %v892_v45  ;;  %v910_v1 = vsel %vm639_vm2, %v892_v45, %v5628_v47  ;;  %1870 = vmatpush.bf16.msrb.mxu1 %v1789_v59  ;;  %v1990_v43 = vpack.c.bf16 %v1969_v40, %v1966_v5  ;;  %v2137_v47 = vld [vmem:[#allocation2 + $0x220] sm:$0xff] }
 0x1cb   : > { %v2154_v37 = vpack.c.bf16 %v910_v1, %v5637_v6  ;;  %v2140_v6 = vld [vmem:[#allocation2 + $0x238] sm:$0xff] }
 0x1cc   : > { %2055 = vmatpush.bf16.msra.mxu0 %v1990_v43  ;;  %v2158_v15 = vpack.c.bf16 %v2140_v6, %v2137_v47 }
 0x1cd   : > { %3989 = vmatmul.msk.bf16.vlgmr.msrb.gmra.mxu1 %vm1627_vm1, %v5197_v62  ;;  %2028 = vmatpush.bf16.msrb.mxu3 %v5623_v36 }
 0x1ce   : > { %2191 = vmatpush.bf16.msra.mxu2 %v2154_v37 }
 0x1d0   : > { %2056 = vmatpush.bf16.msra.mxu0 %v5607_v31 }
 0x1d1   : > { %v902_v22 = vpop.permute.xlu1 %901  ;;  %2029 = vmatpush.bf16.msrb.mxu3 %v5640_v18  ;;  %v2153_v18 = vpack.c.bf16 %v909_v27, %v5657_v33  ;;  %v4183_v27 = vld [vmem:[#allocation4 + $0x10] sm:$0xff] }
 0x1d2   : > { %v913_v38 = vsel %vm639_vm2, %v902_v22, %v5648_v30  ;;  %2192 = vmatpush.bf16.msra.mxu2 %v5632_v4  ;;  %v2134_v4 = vld [vmem:[#allocation2 + $0x208] sm:$0xff] }
 0x1d3   : > { %v2156_v53 = vpack.c.bf16 %v913_v38, %v911_v21  ;;  %v2155_v13 = vpack.c.bf16 %v2134_v4, %v2131_v7 }
 0x1d4   : > { %2057 = vmatpush.bf16.msra.mxu0 %v5644_v8 }
 0x1d5   : > { %2030 = vmatpush.bf16.msrb.mxu3 %v5650_v61  ;;  %2161 = vmatpush.bf16.msra.mxu1 %v2156_v53 }
 0x1d6   : > { %2193 = vmatpush.bf16.msra.mxu2 %v1989_v55  ;;  %3986 = vmatmul.msk.bf16.gmra.mxu0 %vm1627_vm1, %v5244_v25 }
 0x1d8   : > { %2058 = vmatpush.bf16.msra.mxu0 %v5661_v60  ;;  %3996 = vmatmul.msk.bf16.gmra.mxu2 %vm1627_vm1, %v5330_v24  ;;  %v5748_v60 = vpop.f32.mrf.mxu1 }
 0x1d9   : > { %2219 = vmatpush.bf16.msra.mxu3 %v2158_v15  ;;  %2162 = vmatpush.bf16.msra.mxu1 %v2153_v18  ;;  %v5706_v30 = vpop.permute.xlu1 %1599 }
 0x1da   : > { %3997 = vmatmul.msk.bf16.vlgmr.msrb.gmra.mxu3 %vm1627_vm1, %v5197_v62  ;;  %2194 = vmatpush.bf16.msra.mxu2 %v5574_v26  ;;  %v2144_v62 = vpack.c.bf16 %v2114_v11, %v5338_v48  ;;  %v5710_v26 = vpop.f32.mrf.mxu2  ;;  %v1649_v48 = vpop.f32.mrf.mxu0 }
 0x1dc   : > { %2059 = vmatpush.bf16.msra.mxu0 %v1795_v39 }
 0x1dd   : > { %2220 = vmatpush.bf16.msra.mxu3 %v2155_v13  ;;  %3990 = vmatmul.msk.bf16.gmra.mxu1 %vm1627_vm1, %v5244_v25 }
 0x1de   : > { %2163 = vmatpush.bf16.msra.mxu1 %v5494_v58  ;;  %2195 = vmatpush.bf16.msra.mxu2 %v5623_v36  ;;  %v4181_v58 = vld [vmem:[#allocation4] sm:$0xff] }
 0x1e0   : > { %v5766_v39 = vpop.f32.mrf.mxu1 }
 0x1e1   : > { %2221 = vmatpush.bf16.msra.mxu3 %v1993_v16 }
 0x1e2   : > { %2164 = vmatpush.bf16.msra.mxu1 %v5517_v52  ;;  %v5720_v52 = vpop.permute.xlu1 %1594  ;;  %v5722_v36 = vpop.f32.mrf.mxu2 }
 0x1e5   : > { %2222 = vmatpush.bf16.msra.mxu3 %v1990_v43 }
 0x1e6   : > { %2165 = vmatpush.bf16.msra.mxu1 %v2144_v62  ;;  %3987 = vmatmul.msk.bf16.gmra.mxu0 %vm1627_vm1, %v5277_v34 }
 0x1e8   : > { %4009 = vmatmul.msk.bf16.vlgmr.msra.gmra.mxu2 %vm1627_vm1, %v4181_v58  ;;  %v5778_v16 = vpop.f32.mrf.mxu1 }
 0x1e9   : > { %2223 = vmatpush.bf16.msra.mxu3 %v5607_v31 }
 0x1ea   : > { %3998 = vmatmul.msk.bf16.gmra.mxu3 %vm1627_vm1, %v5244_v25  ;;  %2166 = vmatpush.bf16.msra.mxu1 %v5428_v42  ;;  %v5730_v42 = vpop.f32.mrf.mxu0  ;;  %v5732_v31 = vpop.permute.xlu1 %1569 }
 0x1eb   : > { %v1650_v61 = vadd.f32 %v1649_v48, %v5732_v31 }
 0x1ed   : > { %2224 = vmatpush.bf16.msra.mxu3 %v5644_v8  ;;  %3991 = vmatmul.msk.bf16.gmra.mxu1 %vm1627_vm1, %v5277_v34  ;;  %v5734_v8 = vpop.f32.mrf.mxu2  ;;  %v1727_v29 = vmax.f32 %v1650_v61, 0.0 }
 0x1f0   : > { %v5791_v40 = vpop.f32.mrf.mxu1 }
 0x1f2   : > { %v1814_v51 = vpop.f32.mrf.mxu3  ;;  %v1654_v49 = vpop.f32.mrf.mxu0 }
 0x1f3   : > { %v1815_v0 = vadd.f32 %v1814_v51, %v5732_v31 }
 0x1f5   : > { %v1892_v33 = vmax.f32 %v1815_v0, 0.0  ;;  %v5746_v44 = vpop.f32.mrf.mxu2 }
 0x1f6   : > { %3988 = vmatmul.msk.bf16.gmra.mxu0 %vm1627_vm1, %v5330_v24 }
 0x1f7   : > { %v5744_v57 = vmax.f32 %v1727_v29, %v1892_v33 }
 0x1f8   : > { %4010 = vmatmul.msk.bf16.gmra.mxu2 %vm1627_vm1, %v5244_v25  ;;  %v5742_v25 = vpop.permute.xlu2 %1604  ;;  %v5799_v38 = vpop.f32.mrf.mxu1 }
 0x1fa   : > { %3999 = vmatmul.msk.bf16.gmra.mxu3 %vm1627_vm1, %v5277_v34  ;;  %v5751_v21 = vpop.f32.mrf.mxu3  ;;  %v5761_v50 = vpop.f32.mrf.mxu0 }
 0x1fd   : > { %3992 = vmatmul.msk.bf16.gmra.mxu1 %vm1627_vm1, %v5330_v24  ;;  %v5763_v35 = vpop.f32.mrf.mxu2 }
 0x200   : > { %v5757_v12 = vpop.permute.xlu2 %1579  ;;  %v5808_v4 = vpop.f32.mrf.mxu1 }
 0x201   : > { %v1655_v3 = vadd.f32 %v1654_v49, %v5757_v12  ;;  %v1708_v49 = vadd.f32 %v5698_v28, %v5732_v31  ;;  %v1684_v28 = vadd.f32 %v5766_v39, %v5757_v12 }
 0x202   : > { %v1819_v56 = vpop.f32.mrf.mxu3  ;;  %v1659_v41 = vpop.f32.mrf.mxu0 }
 0x203   : > { %v1820_v19 = vadd.f32 %v1819_v56, %v5757_v12  ;;  %v1733_v9 = vmax.f32 %v1655_v3, 0.0  ;;  %v1660_v55 = vadd.f32 %v1659_v41, %v5780_v14 }
 0x205   : > { %v5775_v10 = vpop.f32.mrf.mxu2  ;;  %v1739_v46 = vmax.f32 %v1660_v55, 0.0 }
 0x206   : > { %4001 = vmatmul.msk.bf16.vlgmr.msra.gmra.mxu0 %vm1627_vm1, %v4181_v58 }
 0x208   : > { %4011 = vmatmul.msk.bf16.gmra.mxu2 %vm1627_vm1, %v5277_v34  ;;  %v1898_v34 = vmax.f32 %v1820_v19, 0.0  ;;  %v5817_v62 = vpop.f32.mrf.mxu1 }
 0x20a   : > { %4000 = vmatmul.msk.bf16.gmra.mxu3 %vm1627_vm1, %v5330_v24  ;;  %v5768_v20 = vmax.f32 %v1733_v9, %v1898_v34  ;;  %v5771_v54 = vpop.f32.mrf.mxu3  ;;  %v5785_v59 = vpop.f32.mrf.mxu0  ;;  %v1729_v9 = vmax.f32 %v1708_v49, 0.0 }
 0x20d   : > { %4005 = vmatmul.msk.bf16.vlgmr.msra.gmra.mxu1 %vm1627_vm1, %v4181_v58  ;;  %v5787_v45 = vpop.f32.mrf.mxu2 }
 0x212   : > { %v1824_v17 = vpop.f32.mrf.mxu3  ;;  %v1664_v37 = vpop.f32.mrf.mxu0 }
 0x213   : > { %v1825_v2 = vadd.f32 %v1824_v17, %v5780_v14  ;;  %v1665_v22 = vadd.f32 %v1664_v37, %v5706_v30  ;;  %v5845_v17 = vpop.permute.xlu2 %1574 }
 0x215   : > { %v1904_v32 = vmax.f32 %v1825_v2, 0.0  ;;  %v1745_v6 = vmax.f32 %v1665_v22, 0.0  ;;  %v5852_v22 = vpop.permute.xlu0 %1584 }
 0x216   : > { %4002 = vmatmul.msk.bf16.gmra.mxu0 %vm1627_vm1, %v4182_v23 }
 0x217   : > { %v5789_v5 = vmax.f32 %v1739_v46, %v1904_v32  ;;  %v1817_v32 = vadd.f32 %v5751_v21, %v5845_v17  ;;  %v1686_v21 = vadd.f32 %v5778_v16, %v5852_v22  ;;  %v1662_v16 = vadd.f32 %v5785_v59, %v5720_v52 }
 0x218   : > { %4012 = vmatmul.msk.bf16.gmra.mxu2 %vm1627_vm1, %v5330_v24 }
 0x21a   : > { %4013 = vmatmul.msk.bf16.vlgmr.msra.gmra.mxu3 %vm1627_vm1, %v4181_v58  ;;  %v1826_v1 = vpop.f32.mrf.mxu3  ;;  %v5811_v13 = vpop.f32.mrf.mxu0  ;;  %v1679_v58 = vadd.f32 %v5736_v63, %v5732_v31 }
 0x21b   : > { %v1827_v49 = vadd.f32 %v1826_v1, %v5720_v52  ;;  %v1715_v1 = vadd.f32 %v5734_v8, %v5852_v22 }
 0x21c   : > { %v1728_v0 = vmax.f32 %v1679_v58, 0.0 }
 0x21d   : > { %4006 = vmatmul.msk.bf16.gmra.mxu1 %vm1627_vm1, %v4182_v23 }
 0x222   : > { %v1829_v47 = vpop.f32.mrf.mxu3 }
 0x223   : > { %v1830_v53 = vadd.f32 %v1829_v47, %v5706_v30  ;;  %v1652_v47 = vadd.f32 %v5730_v42, %v5845_v17 }
 0x225   : > { %v1910_v15 = vmax.f32 %v1830_v53, 0.0  ;;  %v1895_v53 = vmax.f32 %v1817_v32, 0.0 }
 0x226   : > { %4003 = vmatmul.msk.bf16.gmra.mxu0 %vm1627_vm1, %v4183_v27 }
 0x227   : > { %v5804_v18 = vmax.f32 %v1745_v6, %v1910_v15  ;;  %v1713_v6 = vadd.f32 %v5722_v36, %v5757_v12 }
 0x22a   : > { %4014 = vmatmul.msk.bf16.gmra.mxu3 %vm1627_vm1, %v4182_v23  ;;  %v5847_v2 = vpop.f32.mrf.mxu3 }
 0x22b   : > { %v5795_v43 = vpop.f32.mrf.mxu2 }
 0x22d   : > { %4007 = vmatmul.msk.bf16.gmra.mxu1 %vm1627_vm1, %v4183_v27 }
 0x233   : > { %v5802_v7 = vpop.f32.mrf.mxu2 }
 0x236   : > { %4004 = vmatmul.msk.bf16.gmra.mxu0 %vm1627_vm1, %v5330_v24 }
 0x23a   : > { %4015 = vmatmul.msk.bf16.gmra.mxu3 %vm1627_vm1, %v4183_v27  ;;  %v1734_v27 = vmax.f32 %v1684_v28, 0.0 }
 0x23b   : > { %v5813_v11 = vpop.f32.mrf.mxu2 }
 0x23d   : > { %4008 = vmatmul.msk.bf16.gmra.mxu1 %vm1627_vm1, %v5330_v24 }
 0x243   : > { %v1843_v48 = vpop.f32.mrf.mxu0  ;;  %v5821_v61 = vpop.f32.mrf.mxu2 }
 0x244   : > { %v1844_v51 = vadd.f32 %v1843_v48, %v5732_v31 }
 0x246   : > { %v1893_v29 = vmax.f32 %v1844_v51, 0.0 }
 0x248   : > { %v5824_v33 = vmax.f32 %v1728_v0, %v1893_v29  ;;  %v1730_v0 = vmax.f32 %v1652_v47, 0.0 }
 0x24a   : > { %4016 = vmatmul.msk.bf16.gmra.mxu3 %vm1627_vm1, %v5330_v24  ;;  %v1872_v3 = vpop.f32.mrf.mxu1 }
 0x24b   : > { %v1873_v56 = vadd.f32 %v1872_v3, %v5732_v31  ;;  %v5831_v19 = vpop.f32.mrf.mxu0  ;;  %v5833_v63 = vpop.f32.mrf.mxu2  ;;  %v1735_v3 = vmax.f32 %v1713_v6, 0.0 }
 0x24d   : > { %v1894_v34 = vmax.f32 %v1873_v56, 0.0  ;;  %v5869_v56 = vmax.f32 %v1730_v0, %v1895_v53  ;;  %v1742_v53 = vmax.f32 %v1662_v16, 0.0 }
 0x24f   : > { %v5835_v23 = vmax.f32 %v1729_v9, %v1894_v34  ;;  %v1737_v34 = vmax.f32 %v1686_v21, 0.0  ;;  %v1822_v21 = vadd.f32 %v5771_v54, %v5852_v22 }
 0x251   : > { %2296 = vst.msk [vmem:[#allocation3 + $0x10] sm:$0xff] %vm662_vm3, %v5835_v23 }
 0x252   : > { %v5839_v41 = vpop.f32.mrf.mxu1 }
 0x253   : > { %v1848_v24 = vpop.f32.mrf.mxu0  ;;  %v5843_v55 = vpop.f32.mrf.mxu2 }
 0x254   : > { %v1849_v46 = vadd.f32 %v1848_v24, %v5757_v12 }
 0x256   : > { %v1899_v37 = vmax.f32 %v1849_v46, 0.0  ;;  %v1907_v46 = vmax.f32 %v1827_v49, 0.0 }
 0x258   : > { %v5856_v39 = vmax.f32 %v1734_v27, %v1899_v37  ;;  %v1689_v27 = vadd.f32 %v5791_v40, %v5780_v14  ;;  %v1657_v40 = vadd.f32 %v5761_v50, %v5852_v22 }
 0x25a   : > { %v1877_v15 = vpop.f32.mrf.mxu1  ;;  %2380 = vrot.lane.b32.xlu1 %v5856_v39, %s4230_s9  ;;  %v1740_v0 = vmax.f32 %v1689_v27, 0.0 }
 0x25b   : > { %v1878_v58 = vadd.f32 %v1877_v15, %v5757_v12  ;;  %v1850_v48 = vpop.f32.mrf.mxu0  ;;  %v5865_v51 = vpop.f32.mrf.mxu2 }
 0x25c   : > { %v1851_v42 = vadd.f32 %v1850_v48, %v5852_v22  ;;  %v5889_v48 = vmax.f32 %v1742_v53, %v1907_v46 }
 0x25d   : > { %v2032_v29 = vpop.f32.mrf.mxu3  ;;  %v1900_v36 = vmax.f32 %v1878_v58, 0.0  ;;  %v1738_v58 = vmax.f32 %v1715_v1, 0.0  ;;  %v1736_v1 = vmax.f32 %v1657_v40, 0.0 }
 0x25e   : > { %v1902_v9 = vmax.f32 %v1851_v42, 0.0  ;;  %v2033_v54 = vadd.f32 %v2032_v29, %v5732_v31 }
 0x25f   : > { %v1924_v28 = vmax.f32 %v1735_v3, %v1900_v36  ;;  %v1901_v36 = vmax.f32 %v1822_v21, 0.0 }
 0x260   : > { %v5873_v24 = vmax.f32 %v1737_v34, %v1902_v9  ;;  %v1718_v9 = vadd.f32 %v5746_v44, %v5780_v14 }
 0x261   : > { %2302 = vst.msk [vmem:[#allocation3 + $0x40] sm:$0xff] %vm662_vm3, %v1924_v28  ;;  %2382 = vrot.lane.b32.xlu2 %v1924_v28, %s4230_s9  ;;  %v1691_v28 = vadd.f32 %v5799_v38, %v5720_v52  ;;  %v5907_v29 = vmax.f32 %v1736_v1, %v1901_v36 }
 0x262   : > { %v1879_v32 = vpop.f32.mrf.mxu1  ;;  %2386 = vrot.lane.b32.xlu0 %v5873_v24, %s4230_s9 }
 0x263   : > { %v1880_v37 = vadd.f32 %v1879_v32, %v5852_v22  ;;  %v1853_v59 = vpop.f32.mrf.mxu0  ;;  %v5884_v47 = vpop.f32.mrf.mxu2 }
 0x264   : > { %v1854_v6 = vadd.f32 %v1853_v59, %v5780_v14  ;;  %v1741_v59 = vmax.f32 %v1718_v9, 0.0 }
 0x265   : > { %v2034_v15 = vpop.f32.mrf.mxu3  ;;  %v1903_v8 = vmax.f32 %v1880_v37, 0.0  ;;  %v1875_v37 = vadd.f32 %v5839_v41, %v5845_v17  ;;  %v1720_v41 = vadd.f32 %v5763_v35, %v5720_v52 }
 0x266   : > { %v1905_v42 = vmax.f32 %v1854_v6, 0.0  ;;  %v2082_v6 = vmax.f32 %v2033_v54, 0.0  ;;  %v2035_v36 = vadd.f32 %v2034_v15, %v5845_v17 }
 0x267   : > { %v1927_v49 = vmax.f32 %v1738_v58, %v1903_v8  ;;  %v1743_v8 = vmax.f32 %v1691_v28, 0.0  ;;  %v1897_v40 = vmax.f32 %v1875_v37, 0.0  ;;  %v1744_v1 = vmax.f32 %v1720_v41, 0.0 }
 0x268   : > { %v5893_v3 = vmax.f32 %v1740_v0, %v1905_v42  ;;  %v1710_v0 = vadd.f32 %v5710_v26, %v5845_v17  ;;  %v1694_v26 = vadd.f32 %v5808_v4, %v5706_v30 }
 0x269   : > { %2305 = vst.msk [vmem:[#allocation3 + $0x58] sm:$0xff] %vm662_vm3, %v1927_v49  ;;  %2388 = vrot.lane.b32.xlu1 %v1927_v49, %s4230_s9 }
 0x26a   : > { %v1882_v34 = vpop.f32.mrf.mxu1  ;;  %v1746_v37 = vmax.f32 %v1694_v26, 0.0 }
 0x26b   : > { %v1883_v16 = vadd.f32 %v1882_v34, %v5780_v14  ;;  %v1855_v46 = vpop.f32.mrf.mxu0  ;;  %v2197_v50 = vpop.f32.mrf.mxu2 }
 0x26c   : > { %v1856_v32 = vadd.f32 %v1855_v46, %v5720_v52  ;;  %v2198_v44 = vadd.f32 %v2197_v50, %v5732_v31 }
 0x26d   : > { %v2037_v27 = vpop.f32.mrf.mxu3  ;;  %v1906_v53 = vmax.f32 %v1883_v16, 0.0  ;;  %v1732_v16 = vmax.f32 %v1710_v0, 0.0 }
 0x26e   : > { %v1908_v21 = vmax.f32 %v1856_v32, 0.0  ;;  %v2247_v38 = vmax.f32 %v2198_v44, 0.0  ;;  %v2085_v44 = vmax.f32 %v2035_v36, 0.0 }
 0x26f   : > { %v1930_v58 = vmax.f32 %v1741_v59, %v1906_v53  ;;  %v5930_v32 = vmax.f32 %v1732_v16, %v1897_v40  ;;  %v1696_v40 = vadd.f32 %v5817_v62, %v5742_v25 }
 0x270   : > { %v5911_v42 = vmax.f32 %v2082_v6, %v2247_v38  ;;  %v5913_v49 = vmax.f32 %v1743_v8, %v1908_v21  ;;  %v1846_v38 = vadd.f32 %v5831_v19, %v5845_v17  ;;  %v1723_v8 = vadd.f32 %v5775_v10, %v5706_v30 }
 0x271   : > { %2308 = vst.msk [vmem:[#allocation3 + $0x70] sm:$0xff] %vm662_vm3, %v1930_v58  ;;  %2394 = vrot.lane.b32.xlu2 %v1930_v58, %s4230_s9  ;;  %2392 = vrot.lane.b32.xlu1 %v5893_v3, %s4230_s9  ;;  %v2038_v58 = vadd.f32 %v2037_v27, %v5757_v12  ;;  %v1681_v10 = vadd.f32 %v5748_v60, %v5845_v17 }
 0x272   : > { %v1884_v9 = vpop.f32.mrf.mxu1  ;;  %2319 = vst [vmem:[#allocation3 + $0xc8] sm:$0xff] %v5911_v42  ;;  %2398 = vrot.lane.b32.xlu0 %v5913_v49, %s4230_s9 }
 0x273   : > { %v1885_v54 = vadd.f32 %v1884_v9, %v5720_v52  ;;  %v1858_v34 = vpop.f32.mrf.mxu0  ;;  %v2199_v28 = vpop.f32.mrf.mxu2  ;;  %2299 = vst.msk [vmem:[#allocation3 + $0x28] sm:$0xff] %vm662_vm3, %v5930_v32  ;;  %v2088_v16 = vmax.f32 %v2038_v58, 0.0  ;;  %v1731_v60 = vmax.f32 %v1681_v10, 0.0 }
 0x274   : > { %v1859_v46 = vadd.f32 %v1858_v34, %v5706_v30  ;;  %v2200_v35 = vadd.f32 %v2199_v28, %v5845_v17  ;;  %v1896_v34 = vmax.f32 %v1846_v38, 0.0  ;;  %v1747_v28 = vmax.f32 %v1723_v8, 0.0 }
 0x275   : > { %v2039_v50 = vpop.f32.mrf.mxu3  ;;  %v1909_v15 = vmax.f32 %v1885_v54, 0.0  ;;  %v1832_v54 = vadd.f32 %v5847_v2, %v5742_v25 }
 0x276   : > { %v1911_v59 = vmax.f32 %v1859_v46, 0.0  ;;  %v2250_v53 = vmax.f32 %v2200_v35, 0.0 }
 0x277   : > { %v1933_v6 = vmax.f32 %v1744_v1, %v1909_v15  ;;  %v1749_v15 = vmax.f32 %v1696_v40, 0.0  ;;  %v1667_v1 = vadd.f32 %v5811_v13, %v5742_v25  ;;  %v1913_v2 = vmax.f32 %v1832_v54, 0.0 }
 0x278   : > { %v5934_v4 = vmax.f32 %v1746_v37, %v1911_v59  ;;  %v5936_v21 = vmax.f32 %v2085_v44, %v2250_v53  ;;  %v1725_v53 = vadd.f32 %v5787_v45, %v5742_v25  ;;  %v2040_v13 = vadd.f32 %v2039_v50, %v5852_v22 }
 0x279   : > { %2390 = vrot.lane.b32.xlu2 %v5789_v5, %s4230_s9  ;;  %2311 = vst.msk [vmem:[#allocation3 + $0x88] sm:$0xff] %vm662_vm3, %v1933_v6  ;;  %2400 = vrot.lane.b32.xlu1 %v1933_v6, %s4230_s9  ;;  %v5971_v6 = vmax.f32 %v1731_v60, %v1896_v34  ;;  %v1748_v8 = vmax.f32 %v1667_v1, 0.0  ;;  %v2004_v50 = vadd.f32 %v5795_v43, %v5732_v31 }
 0x27a   : > { %v1887_v0 = vpop.f32.mrf.mxu1  ;;  %2396 = vrot.lane.b32.xlu0 %v5889_v48, %s4230_s9  ;;  %2322 = vst [vmem:[#allocation3 + $0xe0] sm:$0xff] %v5936_v21  ;;  %v2091_v10 = vmax.f32 %v2040_v13, 0.0 }
 0x27b   : > { %v1888_v19 = vadd.f32 %v1887_v0, %v5706_v30  ;;  %v1860_v41 = vpop.f32.mrf.mxu0  ;;  %v2202_v36 = vpop.f32.mrf.mxu2 }
 0x27c   : > { %v1861_v9 = vadd.f32 %v1860_v41, %v5742_v25  ;;  %v2203_v27 = vadd.f32 %v2202_v36, %v5757_v12  ;;  %v5978_v36 = vmax.f32 %v1748_v8, %v1913_v2 }
 0x27d   : > { %v2042_v26 = vpop.f32.mrf.mxu3  ;;  %v1912_v62 = vmax.f32 %v1888_v19, 0.0  ;;  %v1750_v19 = vmax.f32 %v1725_v53, 0.0 }
 0x27e   : > { %v1914_v46 = vmax.f32 %v1861_v9, 0.0  ;;  %v2253_v35 = vmax.f32 %v2203_v27, 0.0  ;;  %v2043_v34 = vadd.f32 %v2042_v26, %v5780_v14 }
 0x27f   : > { %v1936_v44 = vmax.f32 %v1747_v28, %v1912_v62 }
 0x280   : > { %v5961_v37 = vmax.f32 %v2088_v16, %v2253_v35  ;;  %v5963_v59 = vmax.f32 %v1749_v15, %v1914_v46  ;;  %v2081_v15 = vmax.f32 %v2004_v50, 0.0 }
 0x281   : > { %2314 = vst.msk [vmem:[#allocation3 + $0xa0] sm:$0xff] %vm662_vm3, %v1936_v44  ;;  %2402 = vrot.lane.b32.xlu2 %v5804_v18, %s4230_s9  ;;  %2406 = vrot.lane.b32.xlu1 %v1936_v44, %s4230_s9  ;;  %v2094_v44 = vmax.f32 %v2043_v34, 0.0 }
 0x282   : > { %v1889_v38 = vpop.f32.mrf.mxu1  ;;  %2404 = vrot.lane.b32.xlu0 %v5934_v4, %s4230_s9 }
 0x283   : > { %v1890_v58 = vadd.f32 %v1889_v38, %v5742_v25  ;;  %v2204_v45 = vpop.f32.mrf.mxu2  ;;  %v2061_v62 = vpop.f32.mrf.mxu0 }
 0x284   : > { %v2205_v40 = vadd.f32 %v2204_v45, %v5852_v22 }
 0x285   : > { %v2044_v0 = vpop.f32.mrf.mxu3  ;;  %v1915_v41 = vmax.f32 %v1890_v58, 0.0 }
 0x286   : > { %v2256_v9 = vmax.f32 %v2205_v40, 0.0  ;;  %v2045_v26 = vadd.f32 %v2044_v0, %v5720_v52 }
 0x287   : > { %v1939_v27 = vmax.f32 %v1750_v19, %v1915_v41 }
 0x288   : > { %v5980_v54 = vmax.f32 %v2091_v10, %v2256_v9  ;;  %v2097_v40 = vmax.f32 %v2045_v26, 0.0  ;;  %v2062_v10 = vadd.f32 %v2061_v62, %v5732_v31 }
 0x289   : > { %2368 = vrot.lane.b32.xlu1 %v5824_v33, %s4230_s9  ;;  %2410 = vrot.lane.b32.xlu2 %v5963_v59, %s4230_s9  ;;  %2317 = vst.msk [vmem:[#allocation3 + $0xb8] sm:$0xff] %vm662_vm3, %v1939_v27 }
 0x28a   : > { %v2168_v28 = vpop.f32.mrf.mxu1  ;;  %2412 = vrot.lane.b32.xlu0 %v1939_v27, %s4230_s9 }
 0x28b   : > { %v2169_v16 = vadd.f32 %v2168_v28, %v5732_v31  ;;  %v2207_v46 = vpop.f32.mrf.mxu2  ;;  %v6005_v8 = vpop.f32.mrf.mxu0 }
 0x28c   : > { %v2208_v43 = vadd.f32 %v2207_v46, %v5780_v14 }
 0x28d   : > { %v2047_v35 = vpop.f32.mrf.mxu3  ;;  %v2246_v1 = vmax.f32 %v2169_v16, 0.0 }
 0x28e   : > { %v2259_v60 = vmax.f32 %v2208_v43, 0.0 }
 0x28f   : > { %v5993_v53 = vmax.f32 %v2081_v15, %v2246_v1 }
 0x290   : > { %v5995_v2 = vmax.f32 %v2094_v44, %v2259_v60 }
 0x291   : > { %2318 = vst [vmem:[#allocation3 + $0xc0] sm:$0xff] %v5993_v53  ;;  %2376 = vrot.lane.b32.xlu1 %v5930_v32, %s4230_s9  ;;  %2370 = vrot.lane.b32.xlu2 %v5835_v23, %s4230_s9  ;;  %v2009_v32 = vadd.f32 %v5813_v11, %v5757_v12  ;;  %v2048_v23 = vadd.f32 %v2047_v35, %v5706_v30  ;;  %v2083_v35 = vmax.f32 %v2062_v10, 0.0 }
 0x292   : > { %v2170_v13 = vpop.f32.mrf.mxu1  ;;  %2374 = vrot.lane.b32.xlu0 %v5971_v6, %s4230_s9 }
 0x293   : > { %v2209_v38 = vpop.f32.mrf.mxu2  ;;  %v2087_v34 = vmax.f32 %v2009_v32, 0.0  ;;  %v2100_v46 = vmax.f32 %v2048_v23, 0.0  ;;  %v2066_v43 = vpop.f32.mrf.mxu0 }
 0x294   : > { %v2210_v45 = vadd.f32 %v2209_v38, %v5720_v52 }
 0x295   : > { %v2049_v58 = vpop.f32.mrf.mxu3 }
 0x296   : > { %v2262_v19 = vmax.f32 %v2210_v45, 0.0  ;;  %v2050_v26 = vadd.f32 %v2049_v58, %v5742_v25 }
 0x298   : > { %v6008_v41 = vmax.f32 %v2097_v40, %v2262_v19 }
 0x299   : > { %2378 = vrot.lane.b32.xlu2 %v5768_v20, %s4230_s9  ;;  %2366 = vrot.lane.b32.xlu1 %v5744_v57, %s4230_s9 }
 0x29a   : > { %v2173_v0 = vpop.f32.mrf.mxu1  ;;  %2408 = vrot.lane.b32.xlu0 %v5978_v36, %s4230_s9 }
 0x29b   : > { %v2174_v9 = vadd.f32 %v2173_v0, %v5757_v12  ;;  %v2212_v27 = vpop.f32.mrf.mxu2  ;;  %v2103_v0 = vmax.f32 %v2050_v26, 0.0 }
 0x29c   : > { %v2213_v50 = vadd.f32 %v2212_v27, %v5706_v30 }
 0x29d   : > { %v2226_v11 = vpop.f32.mrf.mxu3  ;;  %v2252_v28 = vmax.f32 %v2174_v9, 0.0  ;;  %v2068_v9 = vpop.f32.mrf.mxu0 }
 0x29e   : > { %v2227_v16 = vadd.f32 %v2226_v11, %v5732_v31  ;;  %v2265_v15 = vmax.f32 %v2213_v50, 0.0  ;;  %v2011_v31 = vadd.f32 %v5821_v61, %v5852_v22  ;;  %v2014_v61 = vadd.f32 %v5833_v63, %v5780_v14 }
 0x29f   : > { %v6023_v1 = vmax.f32 %v2087_v34, %v2252_v28  ;;  %v2171_v28 = vadd.f32 %v2170_v13, %v5845_v17 }
 0x2a0   : > { %v2248_v44 = vmax.f32 %v2227_v16, 0.0  ;;  %v6025_v60 = vmax.f32 %v2100_v46, %v2265_v15  ;;  %v2090_v10 = vmax.f32 %v2011_v31, 0.0  ;;  %v2067_v16 = vadd.f32 %v2066_v43, %v5757_v12 }
 0x2a1   : > { %2372 = vrot.lane.b32.xlu2 %v5869_v56, %s4230_s9  ;;  %v2006_v15 = vadd.f32 %v5802_v7, %v5845_v17  ;;  %v2249_v31 = vmax.f32 %v2171_v28, 0.0 }
 0x2a2   : > { %v6029_v62 = vmax.f32 %v2083_v35, %v2248_v44  ;;  %v2175_v38 = vpop.f32.mrf.mxu1  ;;  %2384 = vrot.lane.b32.xlu0 %v5907_v29, %s4230_s9  ;;  %v2093_v35 = vmax.f32 %v2014_v61, 0.0  ;;  %v2089_v13 = vmax.f32 %v2067_v16, 0.0 }
 0x2a3   : > { %v2176_v45 = vadd.f32 %v2175_v38, %v5852_v22  ;;  %v2214_v40 = vpop.f32.mrf.mxu2  ;;  %v6065_v38 = vpack.c.bf16 %v6008_v41, %v5995_v2 }
 0x2a4   : > { %2320 = vst.msk [vmem:[#allocation3 + $0xd0] sm:$0xff] %vm662_vm3, %v6029_v62  ;;  %v2215_v19 = vadd.f32 %v2214_v40, %v5742_v25  ;;  %v2084_v40 = vmax.f32 %v2006_v15, 0.0 }
 0x2a5   : > { %v6040_v32 = vpop.f32.mrf.mxu3  ;;  %v2255_v23 = vmax.f32 %v2176_v45, 0.0  ;;  %v2071_v7 = vpop.f32.mrf.mxu0 }
 0x2a6   : > { %v2268_v58 = vmax.f32 %v2215_v19, 0.0  ;;  %v2016_v19 = vadd.f32 %v5843_v55, %v5720_v52  ;;  %v6085_v55 = vmax.f32 %v2084_v40, %v2249_v31 }
 0x2a7   : > { %v6048_v50 = vmax.f32 %v2090_v10, %v2255_v23 }
 0x2a8   : > { %v6042_v27 = vmax.f32 %v2103_v0, %v2268_v58  ;;  %v6080_v0 = vpack.c.bf16 %v5980_v54, %v5961_v37  ;;  %v2096_v61 = vmax.f32 %v2016_v19, 0.0  ;;  %v2069_v19 = vadd.f32 %v2068_v9, %v5852_v22 }
 0x2a9   : > { %2515 = vrot.lane.b32.xlu2 %v6023_v1, %s4230_s9 }
 0x2aa   : > { %v2178_v11 = vpop.f32.mrf.mxu1  ;;  %2517 = vrot.lane.b32.xlu0 %v5961_v37, %s4230_s9  ;;  %v6054_v34 = vpack.c.bf16 %v6042_v27, %v6025_v60  ;;  %v2019_v37 = vadd.f32 %v5865_v51, %v5706_v30 }
 0x2ab   : > { %v2179_v46 = vadd.f32 %v2178_v11, %v5780_v14  ;;  %v2732_v11 = vpack.c.bf16 %v5936_v21, %v5911_v42 }
 0x2ac   : > { %3030 = vmatpush.bf16.msrb.mxu2 %v6054_v34 }
 0x2ad   : > { %v2231_v63 = vpop.f32.mrf.mxu3  ;;  %v2258_v44 = vmax.f32 %v2179_v46, 0.0  ;;  %v2729_v46 = vpack.c.bf16 %v5963_v59, %v5934_v4 }
 0x2ae   : > { %v2232_v26 = vadd.f32 %v2231_v63, %v5757_v12  ;;  %v2072_v63 = vadd.f32 %v2071_v7, %v5780_v14  ;;  %v2021_v7 = vadd.f32 %v5884_v47, %v5742_v25  ;;  %v2092_v47 = vmax.f32 %v2069_v19, 0.0 }
 0x2af   : > { %v6067_v45 = vmax.f32 %v2093_v35, %v2258_v44  ;;  %v2073_v44 = vpop.f32.mrf.mxu0  ;;  %v2731_v19 = vpack.c.bf16 %v6085_v55, %v5993_v53 }
 0x2b0   : > { %v2254_v43 = vmax.f32 %v2232_v26, 0.0  ;;  %3031 = vmatpush.bf16.msrb.mxu2 %v6065_v38  ;;  %v2099_v26 = vmax.f32 %v2019_v37, 0.0  ;;  %v2095_v4 = vmax.f32 %v2072_v63, 0.0 }
 0x2b1   : > { %2527 = vrot.lane.b32.xlu1 %v6067_v45, %s4230_s9  ;;  %2529 = vrot.lane.b32.xlu2 %v5995_v2, %s4230_s9 }
 0x2b2   : > { %v6076_v12 = vmax.f32 %v2089_v13, %v2254_v43  ;;  %v2180_v23 = vpop.f32.mrf.mxu1  ;;  %v2726_v43 = vpack.c.bf16 %v5913_v49, %v5893_v3  ;;  %v2723_v3 = vpack.c.bf16 %v5873_v24, %v5856_v39  ;;  %v2074_v49 = vadd.f32 %v2073_v44, %v5720_v52 }
 0x2b3   : > { %v2181_v58 = vadd.f32 %v2180_v23, %v5720_v52 }
 0x2b4   : > { %2326 = vst.msk [vmem:[#allocation3 + $0x100] sm:$0xff] %vm662_vm3, %v6076_v12  ;;  %3032 = vmatpush.bf16.msrb.mxu2 %v6080_v0 }
 0x2b5   : > { %v2233_v10 = vpop.f32.mrf.mxu3  ;;  %v2261_v2 = vmax.f32 %v2181_v58, 0.0 }
 0x2b6   : > { %v2234_v13 = vadd.f32 %v2233_v10, %v5852_v22  ;;  %v4136_v10 = vld [vmem:[%s7174_s5 + $0x4] sm:$0xf0] }
 0x2b7   : > { %v6090_v28 = vmax.f32 %v2096_v61, %v2261_v2  ;;  %v2102_v61 = vmax.f32 %v2021_v7, 0.0  ;;  %v2076_v2 = vpop.f32.mrf.mxu0 }
 0x2b8   : > { %3033 = vmatpush.bf16.msrb.mxu2 %v2732_v11  ;;  %v2257_v23 = vmax.f32 %v2234_v13, 0.0  ;;  %v2720_v11 = vpack.c.bf16 %v5971_v6, %v5824_v33  ;;  %v2229_v33 = vadd.f32 %v6040_v32, %v5845_v17  ;;  %v2077_v6 = vadd.f32 %v2076_v2, %v5706_v30 }
 0x2b9   : > { %2535 = vrot.lane.b32.xlu1 %v6008_v41, %s4230_s9  ;;  %2533 = vrot.lane.b32.xlu0 %v6090_v28, %s4230_s9  ;;  %v6161_v13 = vpack.c.bf16 %v6090_v28, %v6067_v45 }
 0x2ba   : > { %v2183_v16 = vpop.f32.mrf.mxu1  ;;  %v6130_v37 = vmax.f32 %v2092_v47, %v2257_v23 }
 0x2bb   : > { %v2184_v15 = vadd.f32 %v2183_v16, %v5706_v30  ;;  %v2383_v35 = vpop.permute.xlu2 %2382  ;;  %v2098_v16 = vmax.f32 %v2074_v49, 0.0  ;;  %v2728_v49 = vpack.c.bf16 %v5978_v36, %v5804_v18  ;;  %v2725_v18 = vpack.c.bf16 %v5889_v48, %v5789_v5 }
 0x2bc   : > { %2463 = vst.msk [vmem:[#allocation3 + $0x1c0] sm:$0xff] %vm2456_vm4, %v2383_v35  ;;  %3034 = vmatpush.bf16.msrb.mxu2 %v2729_v46 }
 0x2bd   : > { %v2236_v51 = vpop.f32.mrf.mxu3  ;;  %v2264_v41 = vmax.f32 %v2184_v15, 0.0  ;;  %2329 = vst.msk [vmem:[#allocation3 + $0x118] sm:$0xff] %vm662_vm3, %v6130_v37 }
 0x2be   : > { %v2237_v31 = vadd.f32 %v2236_v51, %v5780_v14 }
 0x2bf   : > { %v2288_v59 = vmax.f32 %v2099_v26, %v2264_v41  ;;  %v2064_v26 = vadd.f32 %v6005_v8, %v5845_v17  ;;  %v2078_v8 = vpop.f32.mrf.mxu0 }
 0x2c0   : > { %v2260_v40 = vmax.f32 %v2237_v31, 0.0  ;;  %3035 = vmatpush.bf16.msrb.mxu2 %v2726_v43  ;;  %v2251_v43 = vmax.f32 %v2229_v33, 0.0  ;;  %v2079_v28 = vadd.f32 %v2078_v8, %v5742_v25  ;;  %v4043_v8 = vld [vmem:[%s7174_s5 + $0x30] sm:$0xf] }
 0x2c1   : > { %2541 = vrot.lane.b32.xlu1 %v6025_v60, %s4230_s9  ;;  %2539 = vrot.lane.b32.xlu0 %v2288_v59, %s4230_s9  ;;  %v4019_v60 = vld [vmem:[%s7174_s5] sm:$0xf]  ;;  %v2086_v17 = vmax.f32 %v2064_v26, 0.0  ;;  %v2673_v26 = vld [vmem:[#allocation3 + $0xd0] sm:$0xff] }
 0x2c2   : > { %v6113_v14 = vmax.f32 %v2095_v4, %v2260_v40  ;;  %v2185_v58 = vpop.f32.mrf.mxu1  ;;  %v6132_v15 = vor.u32 %v4136_v10, %v4019_v60  ;;  %v2101_v4 = vmax.f32 %v2077_v6, 0.0  ;;  %v2104_v7 = vmax.f32 %v2079_v28, 0.0  ;;  %v2631_v6 = vld [vmem:[%s7175_s6] sm:$0xff] }
 0x2c3   : > { %v2186_v22 = vadd.f32 %v2185_v58, %v5742_v25  ;;  %v6174_v45 = vmax.f32 %v2086_v17, %v2251_v43 }
 0x2c4   : > { %2332 = vst.msk [vmem:[#allocation3 + $0x130] sm:$0xff] %vm662_vm3, %v6113_v14  ;;  %3036 = vmatpush.bf16.msrb.mxu2 %v2723_v3 }
 0x2c5   : > { %v2238_v9 = vpop.f32.mrf.mxu3  ;;  %v2267_v39 = vmax.f32 %v2186_v22, 0.0  ;;  %2323 = vst.msk [vmem:[#allocation3 + $0xe8] sm:$0xff] %vm662_vm3, %v6174_v45 }
 0x2c6   : > { %v2239_v24 = vadd.f32 %v2238_v9, %v5720_v52 }
 0x2c7   : > { %v2291_v46 = vmax.f32 %v2102_v61, %v2267_v39  ;;  %v4035_v61 = vld [vmem:[%s7174_s5 + $0x20] sm:$0xf] }
 0x2c8   : > { %v2263_v63 = vmax.f32 %v2239_v24, 0.0  ;;  %3037 = vmatpush.bf16.msrb.mxu2 %v2720_v11 }
 0x2c9   : > { %2545 = vrot.lane.b32.xlu2 %v2291_v46, %s4230_s9  ;;  %2521 = vrot.lane.b32.xlu1 %v6048_v50, %s4230_s9  ;;  %v6139_v52 = vpack.c.bf16 %v2291_v46, %v2288_v59  ;;  %v2682_v46 = vld [vmem:[#allocation3 + $0x118] sm:$0xff] }
 0x2ca   : > { %v2287_v44 = vmax.f32 %v2098_v16, %v2263_v63  ;;  %2547 = vrot.lane.b32.xlu0 %v6042_v27, %s4230_s9 }
 0x2cb   : > { %v2395_v51 = vpop.permute.xlu2 %2394  ;;  %2932 = vmatpush.bf16.msrb.mxu0 %v6139_v52  ;;  %3038 = vmatmul.bf16.vlgmr.msrb.gmra.mxu2 %v6132_v15  ;;  %v2685_v11 = vld [vmem:[#allocation3 + $0x130] sm:$0xff] }
 0x2cc   : > { %2335 = vst.msk [vmem:[#allocation3 + $0x148] sm:$0xff] %vm662_vm3, %v2287_v44  ;;  %v6152_v31 = vpop.permute.xlu1 %2380 }
 0x2cd   : > { %2469 = vst.msk [vmem:[#allocation3 + $0x1f0] sm:$0xff] %vm2456_vm4, %v2395_v51  ;;  %v2241_v41 = vpop.f32.mrf.mxu3  ;;  %v6157_v27 = vsel %vm639_vm2, %v6152_v31, %v2383_v35  ;;  %v6170_v35 = vpack.c.bf16 %v6048_v50, %v6023_v1  ;;  %v4138_v1 = vld [vmem:[%s7174_s5 + $0x14] sm:$0xf0] }
 0x2ce   : > { %v2242_v32 = vadd.f32 %v2241_v41, %v5706_v30 }
 0x2cf   : > { %2933 = vmatpush.bf16.msrb.mxu0 %v6161_v13 }
 0x2d0   : > { %v2266_v59 = vmax.f32 %v2242_v32, 0.0 }
 0x2d1   : > { %2523 = vrot.lane.b32.xlu2 %v5980_v54, %s4230_s9  ;;  %2505 = vrot.lane.b32.xlu1 %v5911_v42, %s4230_s9  ;;  %v4027_v42 = vld [vmem:[%s7174_s5 + $0x10] sm:$0xf] }
 0x2d2   : > { %v2290_v30 = vmax.f32 %v2101_v4, %v2266_v59  ;;  %2503 = vrot.lane.b32.xlu0 %v5993_v53, %s4230_s9  ;;  %v6190_v58 = vor.u32 %v4138_v1, %v4027_v42  ;;  %v2670_v4 = vld [vmem:[#allocation3 + $0xb8] sm:$0xff] }
 0x2d3   : > { %v2391_v40 = vpop.permute.xlu2 %2390  ;;  %2934 = vmatpush.bf16.msrb.mxu0 %v6170_v35  ;;  %v2688_v24 = vld [vmem:[#allocation3 + $0x148] sm:$0xff]  ;;  %v2634_v1 = vld [vmem:[%s7175_s6 + $0x18] sm:$0xff] }
 0x2d4   : > { %2338 = vst.msk [vmem:[#allocation3 + $0x160] sm:$0xff] %vm662_vm3, %v2290_v30 }
 0x2d5   : > { %v2243_v54 = vpop.f32.mrf.mxu3 }
 0x2d6   : > { %v2244_v50 = vadd.f32 %v2243_v54, %v5742_v25  ;;  %v6199_v25 = vpop.permute.xlu0 %2386  ;;  %v2635_v54 = vld [vmem:[%s7175_s6 + $0x20] sm:$0xff] }
 0x2d7   : > { %2935 = vmatpush.bf16.msrb.mxu0 %v2731_v19 }
 0x2d8   : > { %v2269_v23 = vmax.f32 %v2244_v50, 0.0  ;;  %v2664_v50 = vld [vmem:[#allocation3 + $0x88] sm:$0xff] }
 0x2d9   : > { %2509 = vrot.lane.b32.xlu2 %v6085_v55, %s4230_s9  ;;  %2543 = vrot.lane.b32.xlu1 %v2290_v30, %s4230_s9  ;;  %v4142_v30 = vld [vmem:[%s7174_s5 + $0x34] sm:$0xf0] }
 0x2da   : > { %v2293_v3 = vmax.f32 %v2104_v7, %v2269_v23  ;;  %2511 = vrot.lane.b32.xlu0 %v5936_v21, %s4230_s9  ;;  %v2722_v21 = vpack.c.bf16 %v5907_v29, %v5768_v20  ;;  %v4140_v20 = vld [vmem:[%s7174_s5 + $0x24] sm:$0xf0]  ;;  %v2719_v29 = vpack.c.bf16 %v5869_v56, %v5744_v57  ;;  %v6246_v57 = vpack.c.bf16 %v2688_v24, %v2685_v11  ;;  %v2661_v7 = vld [vmem:[#allocation3 + $0x70] sm:$0xff] }
 0x2db   : > { %v6201_v53 = vpop.permute.xlu2 %2402  ;;  %v2389_v22 = vpop.permute.xlu1 %2388  ;;  %2936 = vmatpush.bf16.msrb.mxu0 %v2728_v49  ;;  %3043 = vmatmul.bf16.gmra.mxu2 %v6190_v58  ;;  %v6236_v2 = vor.u32 %v4140_v20, %v4035_v61  ;;  %v6297_v19 = vor.u32 %v4142_v30, %v4043_v8  ;;  %v2727_v23 = vpack.c.bf16 %v2664_v50, %v2661_v7  ;;  %v2658_v49 = vld [vmem:[#allocation3 + $0x58] sm:$0xff]  ;;  %v2637_v20 = vld [vmem:[%s7175_s6 + $0x30] sm:$0xff] }
 0x2dc   : > { %2341 = vst.msk [vmem:[#allocation3 + $0x178] sm:$0xff] %vm662_vm3, %v2293_v3  ;;  %v6207_v47 = vsel %vm639_vm2, %v6199_v25, %v2389_v22  ;;  %v4146_v7 = vld [vmem:[%s7174_s5 + $0x54] sm:$0xf0] }
 0x2dd   : > { %2466 = vst.msk [vmem:[#allocation3 + $0x1d8] sm:$0xff] %vm2456_vm4, %v2389_v22 }
 0x2df   : > { %2937 = vmatpush.bf16.msrb.mxu0 %v2725_v18 }
 0x2e1   : > { %2549 = vrot.lane.b32.xlu2 %v2293_v3, %s4230_s9  ;;  %2537 = vrot.lane.b32.xlu1 %v2287_v44, %s4230_s9  ;;  %v2632_v44 = vld [vmem:[%s7175_s6 + $0x8] sm:$0xff] }
 0x2e2   : > { %2531 = vrot.lane.b32.xlu0 %v6113_v14, %s4230_s9  ;;  %v2691_v14 = vld [vmem:[#allocation3 + $0x160] sm:$0xff] }
 0x2e3   : > { %v2393_v36 = vpop.permute.xlu1 %2392  ;;  %v6218_v9 = vpop.permute.xlu2 %2410  ;;  %2938 = vmatpush.bf16.msrb.mxu0 %v2722_v21  ;;  %v2694_v60 = vld [vmem:[#allocation3 + $0x178] sm:$0xff]  ;;  %v2655_v21 = vld [vmem:[#allocation3 + $0x40] sm:$0xff] }
 0x2e4   : > { %v6221_v10 = vsel %vm639_vm2, %v2391_v40, %v2393_v36  ;;  %v6224_v5 = vsel %vm639_vm2, %v2393_v36, %v2395_v51  ;;  %v2399_v48 = vpop.permute.xlu0 %2398  ;;  %v6234_v39 = vpack.c.bf16 %v2694_v60, %v2691_v14  ;;  %v2676_v51 = vld [vmem:[#allocation3 + $0xe8] sm:$0xff]  ;;  %v2667_v40 = vld [vmem:[#allocation3 + $0xa0] sm:$0xff]  ;;  %v2638_v60 = vld [vmem:[%s7175_s6 + $0x38] sm:$0xff] }
 0x2e5   : > { %v6269_v41 = vpack.c.bf16 %v2676_v51, %v2673_v26  ;;  %v2730_v42 = vpack.c.bf16 %v2670_v4, %v2667_v40  ;;  %v2636_v36 = vld [vmem:[%s7175_s6 + $0x28] sm:$0xff]  ;;  %v2649_v14 = vld [vmem:[#allocation3 + $0x10] sm:$0xff]  ;;  %v2747_v51 = vpack.c.bf16 %v6207_v47, %v6157_v27  ;;  %v2642_v40 = vld [vmem:[%s7175_s6 + $0x58] sm:$0xff] }
 0x2e6   : > { %v2640_v26 = vld [vmem:[%s7175_s6 + $0x48] sm:$0xff] }
 0x2e7   : > { %2939 = vmatpush.bf16.msrb.mxu0 %v2719_v29  ;;  %v2652_v29 = vld [vmem:[#allocation3 + $0x28] sm:$0xff] }
 0x2e8   : > { %v2721_v24 = vpack.c.bf16 %v2652_v29, %v2649_v14  ;;  %v4021_v4 = vld [vmem:[%s7174_s5 + $0x8] sm:$0xf0]  ;;  %v2709_v29 = vld [vmem:[#allocation3 + $0x1f0] sm:$0xff] }
 0x2e9   : > { %2519 = vrot.lane.b32.xlu2 %v6076_v12, %s4230_s9  ;;  %2507 = vrot.lane.b32.xlu1 %v6029_v62, %s4230_s9  ;;  %v3227_v14 = vld [vmem:[#allocation3 + $0xc8] sm:$0xff] }
 0x2ea   : > { %2525 = vrot.lane.b32.xlu0 %v6130_v37, %s4230_s9  ;;  %2940 = vmatmul.bf16.vlgmr.msrb.gmra.mxu0 %v6132_v15  ;;  %v2679_v37 = vld [vmem:[#allocation3 + $0x100] sm:$0xff] }
 0x2eb   : > { %3128 = vmatpush.bf16.msra.mxu0 %v6234_v39  ;;  %v2401_v56 = vpop.permute.xlu1 %2400  ;;  %v2371_v16 = vpop.permute.xlu2 %2370  ;;  %3048 = vmatmul.bf16.gmra.mxu2 %v6236_v2  ;;  %v6261_v33 = vpack.c.bf16 %v2682_v46, %v2679_v37  ;;  %v4144_v37 = vld [vmem:[%s7174_s5 + $0x44] sm:$0xf0] }
 0x2ec   : > { %v6250_v63 = vsel %vm639_vm2, %v2399_v48, %v2401_v56  ;;  %2472 = vst.msk [vmem:[#allocation3 + $0x208] sm:$0xff] %vm2456_vm4, %v2401_v56  ;;  %v2397_v12 = vpop.permute.xlu0 %2396 }
 0x2ed   : > { %v6255_v62 = vsel %vm639_vm2, %v2397_v12, %v2399_v48  ;;  %2457 = vst.msk [vmem:[#allocation3 + $0x190] sm:$0xff] %vm2456_vm4, %v2371_v16  ;;  %v2724_v48 = vpack.c.bf16 %v2658_v49, %v2655_v21  ;;  %v2750_v11 = vpack.c.bf16 %v6250_v63, %v6224_v5  ;;  %v4051_v12 = vld [vmem:[%s7174_s5 + $0x40] sm:$0xf]  ;;  %v2641_v63 = vld [vmem:[%s7175_s6 + $0x50] sm:$0xff] }
 0x2ee   : > { %v2639_v5 = vld [vmem:[%s7175_s6 + $0x40] sm:$0xff] }
 0x2ef   : > { %3129 = vmatpush.bf16.msra.mxu0 %v6246_v57 }
 0x2f1   : > { %2513 = vrot.lane.b32.xlu2 %v6174_v45, %s4230_s9  ;;  %2762 = vperm.xlu1 %4177, %v2632_v44  }
 0x2f2   : > { %2757 = vperm.xlu0 %4176, %v2631_v6  }
 0x2f3   : > { %3130 = vmatpush.bf16.msra.mxu0 %v6261_v33  ;;  %v2407_v32 = vpop.permute.xlu1 %2406  ;;  %v2379_v43 = vpop.permute.xlu2 %2378 }
 0x2f4   : > { %2475 = vst.msk [vmem:[#allocation3 + $0x220] sm:$0xff] %vm2456_vm4, %v2407_v32  ;;  %v6274_v59 = vsel %vm639_vm2, %v2379_v43, %v6152_v31  ;;  %v2405_v17 = vpop.permute.xlu0 %2404  ;;  %v2633_v31 = vld [vmem:[%s7175_s6 + $0x10] sm:$0xff]  ;;  %v4135_v43 = vld [vmem:[%s7174_s5 + $0x4] sm:$0xf] }
 0x2f5   : > { %v6285_v45 = vsel %vm639_vm2, %v6201_v53, %v2405_v17  ;;  %v2427_v28 = vsel %vm639_vm2, %v2405_v17, %v2407_v32  ;;  %v6336_v32 = vor.u32 %v4144_v37, %v4051_v12  ;;  %v6346_v17 = vor.u32 %v4135_v43, %v4021_v4 }
 0x2f7   : > { %3131 = vmatpush.bf16.msra.mxu0 %v6269_v41 }
 0x2f9   : > { %2767 = vperm.xlu2 %4178, %v2633_v31   ;;  %2777 = vperm.xlu1 %4177, %v2635_v54   ;;  %v2644_v31 = vld [vmem:[%s7175_s6 + $0x68] sm:$0xff] }
 0x2fa   : > { %2772 = vperm.xlu0 %4176, %v2634_v1   ;;  %2945 = vmatmul.bf16.gmra.mxu0 %v6190_v58  ;;  %v2749_v1 = vpack.c.bf16 %v6255_v62, %v6221_v10  ;;  %v2646_v62 = vld [vmem:[%s7175_s6 + $0x78] sm:$0xff] }
 0x2fb   : > { %3132 = vmatpush.bf16.msra.mxu0 %v2730_v42  ;;  %v2369_v3 = vpop.permute.xlu1 %2368  ;;  %3053 = vmatmul.bf16.gmra.mxu2 %v6297_v19  ;;  %v2643_v42 = vld [vmem:[%s7175_s6 + $0x60] sm:$0xff] }
 0x2fc   : > { %v2415_v53 = vsel %vm639_vm2, %v2369_v3, %v2371_v16  ;;  %v2413_v22 = vpop.permute.xlu0 %2412  ;;  %v2373_v16 = vpop.permute.xlu2 %2372 }
 0x2fd   : > { %v2429_v18 = vsel %vm639_vm2, %v6218_v9, %v2413_v22  ;;  %2478 = vst.msk [vmem:[#allocation3 + $0x238] sm:$0xff] %vm2456_vm4, %v2413_v22 }
 0x2fe   : > { %v2753_v61 = vpack.c.bf16 %v2429_v18, %v2427_v28  ;;  %v2715_v18 = vld [vmem:[#allocation3 + $0x220] sm:$0xff] }
 0x2ff   : > { %3133 = vmatpush.bf16.msra.mxu0 %v2727_v23 }
 0x300   : > { %3083 = vmatpush.bf16.msrb.mxu3 %v2753_v61 }
 0x301   : > { %2782 = vperm.xlu2 %4178, %v2636_v36   ;;  %2792 = vperm.xlu1 %4177, %v2638_v60  }
 0x302   : > { %2787 = vperm.xlu0 %4176, %v2637_v20   ;;  %v3230_v20 = vld [vmem:[#allocation3 + $0xe0] sm:$0xff] }
 0x303   : > { %3134 = vmatpush.bf16.msra.mxu0 %v2724_v48  ;;  %v2377_v56 = vpop.permute.xlu1 %2376  ;;  %v2712_v48 = vld [vmem:[#allocation3 + $0x208] sm:$0xff] }
 0x304   : > { %2460 = vst.msk [vmem:[#allocation3 + $0x1a8] sm:$0xff] %vm2456_vm4, %v2377_v56  ;;  %v2375_v46 = vpop.permute.xlu0 %2374  ;;  %3084 = vmatpush.bf16.msrb.mxu3 %v2750_v11 }
 0x305   : > { %v2416_v44 = vsel %vm639_vm2, %v2373_v16, %v2375_v46  ;;  %v2417_v6 = vsel %vm639_vm2, %v2375_v46, %v2377_v56  ;;  %v2703_v56 = vld [vmem:[#allocation3 + $0x1c0] sm:$0xff] }
 0x306   : > { %v2744_v27 = vpack.c.bf16 %v2417_v6, %v2415_v53  ;;  %v2718_v53 = vld [vmem:[#allocation3 + $0x238] sm:$0xff]  ;;  %v2697_v6 = vld [vmem:[#allocation3 + $0x190] sm:$0xff] }
 0x307   : > { %3135 = vmatpush.bf16.msra.mxu0 %v2721_v24  ;;  %v2754_v21 = vpack.c.bf16 %v2718_v53, %v2715_v18  ;;  %v2706_v24 = vld [vmem:[#allocation3 + $0x1d8] sm:$0xff] }
 0x308   : > { %3085 = vmatpush.bf16.msrb.mxu3 %v2747_v51  ;;  %v2748_v12 = vpack.c.bf16 %v2706_v24, %v2703_v56 }
 0x309   : > { %2797 = vperm.xlu2 %4178, %v2639_v5   ;;  %2807 = vperm.xlu1 %4177, %v2641_v63  }
 0x30a   : > { %2802 = vperm.xlu0 %4176, %v2640_v26   ;;  %2950 = vmatmul.bf16.gmra.mxu0 %v6236_v2  ;;  %v4037_v26 = vld [vmem:[%s7174_s5 + $0x28] sm:$0xf0] }
 0x30b   : > { %3432 = vmatpush.bf16.msrb.mxu0 %v2753_v61  ;;  %v2367_v47 = vpop.permute.xlu1 %2366  ;;  %3058 = vmatmul.bf16.gmra.mxu2 %v6336_v32  ;;  %v2700_v37 = vld [vmem:[#allocation3 + $0x1a8] sm:$0xff] }
 0x30c   : > { %v2414_v8 = vsel %vm639_vm2, %v2367_v47, %v2369_v3  ;;  %v2409_v30 = vpop.permute.xlu0 %2408  ;;  %3086 = vmatpush.bf16.msrb.mxu3 %v2744_v27  ;;  %v2645_v3 = vld [vmem:[%s7175_s6 + $0x70] sm:$0xff]  ;;  %v2745_v5 = vpack.c.bf16 %v2700_v37, %v2697_v6 }
 0x30d   : > { %v2428_v28 = vsel %vm639_vm2, %v2409_v30, %v6218_v9  ;;  %v2516_v9 = vpop.permute.xlu2 %2515  ;;  %v2743_v22 = vpack.c.bf16 %v2416_v44, %v2414_v8  ;;  %v4067_v44 = vld [vmem:[%s7174_s5 + $0x60] sm:$0xf] }
 0x30e   : > { %v2752_v54 = vpack.c.bf16 %v2428_v28, %v6285_v45  ;;  %v4059_v45 = vld [vmem:[%s7174_s5 + $0x50] sm:$0xf] }
 0x30f   : > { %3433 = vmatpush.bf16.msrb.mxu0 %v2750_v11  ;;  %4089 = vmatmul.msk.bf16.vlgmr.msrb.gmra.mxu3 %vm2907_vm5, %v6346_v17  ;;  %v6381_v49 = vor.u32 %v4146_v7, %v4059_v45  ;;  %v3299_v11 = vpack.c.bf16 %v3230_v20, %v3227_v14 }
 0x310   : > { %2985 = vmatpush.bf16.msrb.mxu1 %v2752_v54  ;;  %3334 = vmatpush.bf16.msra.mxu2 %v2752_v54 }
 0x311   : > { %2812 = vperm.xlu2 %4178, %v2642_v40   ;;  %2822 = vperm.xlu1 %4177, %v2644_v31   ;;  %v4075_v40 = vld [vmem:[%s7174_s5 + $0x70] sm:$0xf]  ;;  %v4150_v31 = vld [vmem:[%s7174_s5 + $0x74] sm:$0xf0] }
 0x312   : > { %2817 = vperm.xlu0 %4176, %v2643_v42   ;;  %v6448_v42 = vor.u32 %v4150_v31, %v4075_v40 }
 0x313   : > { %3434 = vmatpush.bf16.msrb.mxu0 %v2747_v51  ;;  %v3226_v51 = vld [vmem:[#allocation3 + $0xc0] sm:$0xff] }
 0x314   : > { %v2385_v50 = vpop.permute.xlu0 %2384  ;;  %2986 = vmatpush.bf16.msrb.mxu1 %v2749_v1  ;;  %3335 = vmatpush.bf16.msra.mxu2 %v2749_v1  ;;  %v3298_v43 = vpack.c.bf16 %v6085_v55, %v3226_v51  ;;  %v4045_v1 = vld [vmem:[%s7174_s5 + $0x38] sm:$0xf0]  ;;  %v4145_v51 = vld [vmem:[%s7174_s5 + $0x54] sm:$0xf] }
 0x315   : > { %v2420_v23 = vsel %vm639_vm2, %v2385_v50, %v6199_v25  ;;  %v4137_v25 = vld [vmem:[%s7174_s5 + $0x14] sm:$0xf] }
 0x316   : > { %v2746_v10 = vpack.c.bf16 %v2420_v23, %v6274_v59  ;;  %v4029_v59 = vld [vmem:[%s7174_s5 + $0x18] sm:$0xf0] }
 0x317   : > { %3435 = vmatpush.bf16.msrb.mxu0 %v2744_v27  ;;  %v6396_v60 = vor.u32 %v4137_v25, %v4029_v59 }
 0x318   : > { %2987 = vmatpush.bf16.msrb.mxu1 %v2746_v10  ;;  %3336 = vmatpush.bf16.msra.mxu2 %v2746_v10 }
 0x319   : > { %2827 = vperm.xlu2 %4178, %v2645_v3  }
 0x31a   : > { %2832 = vperm.xlu0 %4176, %v2646_v62   ;;  %2955 = vmatmul.bf16.gmra.mxu0 %v6297_v19 }
 0x31b   : > { %3436 = vmatpush.bf16.msrb.mxu0 %v6054_v34  ;;  %v6390_v34 = vpop.permute.xlu2 %2529  ;;  %3063 = vmatmul.bf16.gmra.mxu2 %v6381_v49 }
 0x31c   : > { %v6394_v36 = vpop.permute.xlu0 %2517  ;;  %2988 = vmatpush.bf16.msrb.mxu1 %v2743_v22  ;;  %3337 = vmatpush.bf16.msra.mxu2 %v2743_v22 }
 0x31d   : > { %v6400_v61 = vsel %vm639_vm2, %v2516_v9, %v6394_v36  ;;  %v4141_v9 = vld [vmem:[%s7174_s5 + $0x34] sm:$0xf] }
 0x31e   : > { %v6464_v62 = vor.u32 %v4141_v9, %v4045_v1 }
 0x31f   : > { %3437 = vmatpush.bf16.msrb.mxu0 %v6065_v38  ;;  %4081 = vmatmul.msk.bf16.vlgmr.msrb.gmra.mxu1 %vm2907_vm5, %v6346_v17  ;;  %v2751_v38 = vpack.c.bf16 %v2712_v48, %v2709_v29 }
 0x320   : > { %3181 = vmatpush.bf16.msra.mxu1 %v2754_v21  ;;  %4090 = vmatmul.msk.bf16.gmra.mxu3 %vm2907_vm5, %v6396_v60 }
 0x321   : > { %3338 = vmatpush.bf16.msra.mxu2 %v6139_v52  ;;  %v4148_v52 = vld [vmem:[%s7174_s5 + $0x64] sm:$0xf0] }
 0x322   : > { %v6417_v63 = vor.u32 %v4148_v52, %v4067_v44 }
 0x323   : > { %3438 = vmatpush.bf16.msrb.mxu0 %v6080_v0  ;;  %v2546_v16 = vpop.permute.xlu2 %2545  ;;  %v2528_v46 = vpop.permute.xlu1 %2527 }
 0x324   : > { %3182 = vmatpush.bf16.msra.mxu1 %v2751_v38  ;;  %v2559_v0 = vsel %vm639_vm2, %v2528_v46, %v6390_v34 }
 0x325   : > { %3339 = vmatpush.bf16.msra.mxu2 %v6161_v13  ;;  %v4139_v13 = vld [vmem:[%s7174_s5 + $0x24] sm:$0xf] }
 0x326   : > { %v6433_v47 = vor.u32 %v4139_v13, %v4037_v26 }
 0x327   : > { %3439 = vmatpush.bf16.msrb.mxu0 %v3299_v11 }
 0x328   : > { %3183 = vmatpush.bf16.msra.mxu1 %v2748_v12 }
 0x329   : > { %3340 = vmatpush.bf16.msra.mxu2 %v6170_v35 }
 0x32a   : > { %2960 = vmatmul.bf16.gmra.mxu0 %v6336_v32 }
 0x32b   : > { %v6428_v4 = vpop.permute.xlu2 %2523  ;;  %v6430_v27 = vpop.permute.xlu1 %2535  ;;  %3068 = vmatmul.bf16.gmra.mxu2 %v6417_v63 }
 0x32c   : > { %3184 = vmatpush.bf16.msra.mxu1 %v2745_v5  ;;  %v2534_v35 = vpop.permute.xlu0 %2533 }
 0x32d   : > { %3341 = vmatpush.bf16.msra.mxu2 %v3298_v43  ;;  %v2561_v8 = vsel %vm639_vm2, %v2534_v35, %v6430_v27 }
 0x32e   : > { %v3328_v25 = vpack.c.bf16 %v2561_v8, %v2559_v0 }
 0x32f   : > { %4082 = vmatmul.msk.bf16.gmra.mxu1 %vm2907_vm5, %v6396_v60 }
 0x330   : > { %4091 = vmatmul.msk.bf16.gmra.mxu3 %vm2907_vm5, %v6433_v47 }
 0x331   : > { %3530 = vmatpush.bf16.msrb.mxu2 %v2754_v21 }
 0x333   : > { %v2510_v55 = vpop.permute.xlu2 %2509  ;;  %v2542_v30 = vpop.permute.xlu1 %2541 }
 0x334   : > { %v2540_v28 = vpop.permute.xlu0 %2539 }
 0x335   : > { %3531 = vmatpush.bf16.msrb.mxu2 %v2751_v38  ;;  %v2563_v54 = vsel %vm639_vm2, %v2540_v28, %v2542_v30 }
 0x339   : > { %3532 = vmatpush.bf16.msrb.mxu2 %v2748_v12 }
 0x33a   : > { %2965 = vmatmul.bf16.gmra.mxu0 %v6381_v49 }
 0x33b   : > { %v2522_v50 = vpop.permute.xlu1 %2521  ;;  %v2550_v45 = vpop.permute.xlu2 %2549  ;;  %3073 = vmatmul.bf16.gmra.mxu2 %v6448_v42 }
 0x33c   : > { %v2557_v7 = vsel %vm639_vm2, %v2522_v50, %v6428_v4  ;;  %v2548_v23 = vpop.permute.xlu0 %2547  ;;  %2614 = vst.msk [vmem:[#allocation3 + $0x2f8] sm:$0xff] %vm2456_vm4, %v2550_v45 }
 0x33d   : > { %3533 = vmatpush.bf16.msrb.mxu2 %v2745_v5  ;;  %v2565_v3 = vsel %vm639_vm2, %v2546_v16, %v2548_v23  ;;  %v2566_v10 = vsel %vm639_vm2, %v2548_v23, %v2550_v45  ;;  %v3325_v48 = vpack.c.bf16 %v2557_v7, %v6400_v61 }
 0x33e   : > { %v3331_v53 = vpack.c.bf16 %v2565_v3, %v2563_v54  ;;  %v4147_v3 = vld [vmem:[%s7174_s5 + $0x64] sm:$0xf] }
 0x33f   : > { %4083 = vmatmul.msk.bf16.gmra.mxu1 %vm2907_vm5, %v6433_v47 }
 0x340   : > { %3387 = vmatpush.bf16.msra.mxu3 %v3331_v53 }
 0x341   : > { %3534 = vmatpush.bf16.msrb.mxu2 %v6234_v39  ;;  %4092 = vmatmul.msk.bf16.gmra.mxu3 %vm2907_vm5, %v6464_v62 }
 0x343   : > { %v2506_v59 = vpop.permute.xlu1 %2505  ;;  %v2520_v22 = vpop.permute.xlu2 %2519  ;;  %v3297_v6 = vld [vmem:[#allocation3 + $0x2f8] sm:$0xff] }
 0x344   : > { %v2504_v18 = vpop.permute.xlu0 %2503  ;;  %v2556_v21 = vsel %vm639_vm2, %v6394_v36, %v2520_v22  ;;  %2599 = vst.msk [vmem:[#allocation3 + $0x280] sm:$0xff] %vm2456_vm4, %v2520_v22  ;;  %3388 = vmatpush.bf16.msra.mxu3 %v3328_v25  ;;  %v4053_v36 = vld [vmem:[%s7174_s5 + $0x48] sm:$0xf0] }
 0x345   : > { %3535 = vmatpush.bf16.msrb.mxu2 %v6246_v57  ;;  %v2551_v39 = vsel %vm639_vm2, %v2504_v18, %v2506_v59  ;;  %v4143_v57 = vld [vmem:[%s7174_s5 + $0x44] sm:$0xf] }
 0x346   : > { %v6490_v24 = vor.u32 %v4143_v57, %v4053_v36 }
 0x348   : > { %3389 = vmatpush.bf16.msra.mxu3 %v3325_v48 }
 0x349   : > { %3536 = vmatpush.bf16.msrb.mxu2 %v6261_v33 }
 0x34a   : > { %2970 = vmatmul.bf16.gmra.mxu0 %v6417_v63 }
 0x34b   : > { %v2514_v20 = vpop.permute.xlu2 %2513  ;;  %v2544_v29 = vpop.permute.xlu1 %2543  ;;  %3342 = vmatmul.bf16.vlgmr.msra.gmra.mxu2 %v6132_v15  ;;  %v3282_v54 = vld [vmem:[#allocation3 + $0x280] sm:$0xff] }
 0x34c   : > { %v2512_v33 = vpop.permute.xlu0 %2511  ;;  %2596 = vst.msk [vmem:[#allocation3 + $0x268] sm:$0xff] %vm2456_vm4, %v2514_v20  ;;  %v2564_v61 = vsel %vm639_vm2, %v2542_v30, %v2544_v29 }
 0x34d   : > { %3537 = vmatpush.bf16.msrb.mxu2 %v6269_v41  ;;  %v2553_v41 = vsel %vm639_vm2, %v2510_v55, %v2512_v33  ;;  %v2554_v38 = vsel %vm639_vm2, %v2512_v33, %v2514_v20  ;;  %v3332_v14 = vpack.c.bf16 %v2566_v10, %v2564_v61  ;;  %2611 = vst.msk [vmem:[#allocation3 + $0x2e0] sm:$0xff] %vm2456_vm4, %v2544_v29  ;;  %v4069_v10 = vld [vmem:[%s7174_s5 + $0x68] sm:$0xf0] }
 0x34e   : > { %v3322_v11 = vpack.c.bf16 %v2553_v41, %v2551_v39  ;;  %v6492_v56 = vpop.f32.mrf.mxu2  ;;  %v6538_v53 = vor.u32 %v4147_v3, %v4069_v10  ;;  %v4077_v39 = vld [vmem:[%s7174_s5 + $0x78] sm:$0xf0] }
 0x34f   : > { %3485 = vmatpush.bf16.msrb.mxu1 %v3332_v14 }
 0x350   : > { %3390 = vmatpush.bf16.msra.mxu3 %v3322_v11  ;;  %4084 = vmatmul.msk.bf16.gmra.mxu1 %vm2907_vm5, %v6464_v62 }
 0x351   : > { %4093 = vmatmul.msk.bf16.gmra.mxu3 %vm2907_vm5, %v6490_v24 }
 0x353   : > { %v2538_v16 = vpop.permute.xlu1 %2537  ;;  %v3279_v7 = vld [vmem:[#allocation3 + $0x268] sm:$0xff] }
 0x354   : > { %v2532_v46 = vpop.permute.xlu0 %2531  ;;  %v2562_v12 = vsel %vm639_vm2, %v6430_v27, %v2538_v16  ;;  %2608 = vst.msk [vmem:[#allocation3 + $0x2c8] sm:$0xff] %vm2456_vm4, %v2538_v16  ;;  %v3294_v52 = vld [vmem:[#allocation3 + $0x2e0] sm:$0xff] }
 0x355   : > { %v2560_v0 = vsel %vm639_vm2, %v6390_v34, %v2532_v46  ;;  %2605 = vst.msk [vmem:[#allocation3 + $0x2b0] sm:$0xff] %vm2456_vm4, %v2532_v46  ;;  %v3333_v5 = vpack.c.bf16 %v3297_v6, %v3294_v52  ;;  %v4061_v34 = vld [vmem:[%s7174_s5 + $0x58] sm:$0xf0] }
 0x356   : > { %v3329_v37 = vpack.c.bf16 %v2562_v12, %v2560_v0  ;;  %v6505_v44 = vpop.f32.mrf.mxu2  ;;  %v6520_v30 = vor.u32 %v4145_v51, %v4061_v34 }
 0x357   : > { %3583 = vmatpush.bf16.msrb.mxu3 %v3333_v5 }
 0x358   : > { %3486 = vmatpush.bf16.msrb.mxu1 %v3329_v37 }
 0x35a   : > { %2975 = vmatmul.bf16.gmra.mxu0 %v6448_v42 }
 0x35b   : > { %v2508_v13 = vpop.permute.xlu1 %2507  ;;  %v3291_v26 = vld [vmem:[#allocation3 + $0x2c8] sm:$0xff]  ;;  %3347 = vmatmul.bf16.gmra.mxu2 %v6190_v58 }
 0x35c   : > { %v2526_v43 = vpop.permute.xlu0 %2525  ;;  %v2552_v27 = vsel %vm639_vm2, %v2506_v59, %v2508_v13  ;;  %2593 = vst.msk [vmem:[#allocation3 + $0x250] sm:$0xff] %vm2456_vm4, %v2508_v13  ;;  %v3288_v35 = vld [vmem:[#allocation3 + $0x2b0] sm:$0xff]  ;;  %v6601_v13 = vpop.permute.xlu2 %2767 }
 0x35d   : > { %v2558_v8 = vsel %vm639_vm2, %v6428_v4, %v2526_v43  ;;  %2602 = vst.msk [vmem:[#allocation3 + $0x298] sm:$0xff] %vm2456_vm4, %v2526_v43  ;;  %v3330_v55 = vpack.c.bf16 %v3291_v26, %v3288_v35  ;;  %v3323_v31 = vpack.c.bf16 %v2554_v38, %v2552_v27 }
 0x35e   : > { %v3326_v28 = vpack.c.bf16 %v2558_v8, %v2556_v21  ;;  %v6522_v40 = vpop.f32.mrf.mxu2  ;;  %v4149_v21 = vld [vmem:[%s7174_s5 + $0x74] sm:$0xf] }
 0x35f   : > { %3584 = vmatpush.bf16.msrb.mxu3 %v3330_v55  ;;  %v6556_v48 = vor.u32 %v4149_v21, %v4077_v39 }
 0x360   : > { %3487 = vmatpush.bf16.msrb.mxu1 %v3326_v28 }
 0x361   : > { %4085 = vmatmul.msk.bf16.gmra.mxu1 %vm2907_vm5, %v6490_v24  ;;  %4094 = vmatmul.msk.bf16.gmra.mxu3 %vm2907_vm5, %v6520_v30  ;;  %7322 = vst [vmem:[#allocation26_spill] sm:$0xff] %v6556_v48 }
 0x363   : > { %v3276_v1 = vld [vmem:[#allocation3 + $0x250] sm:$0xff]  ;;  %v6582_v16 = vpop.permute.xlu1 %2762 }
 0x364   : > { %v3285_v9 = vld [vmem:[#allocation3 + $0x298] sm:$0xff]  ;;  %3488 = vmatpush.bf16.msrb.mxu1 %v3323_v31  ;;  %v3324_v23 = vpack.c.bf16 %v3279_v7, %v3276_v1  ;;  %v6568_v33 = vpop.permute.xlu0 %2757  ;;  %v3042_v0 = vadd.f32 %v6505_v44, %v6582_v16  ;;  %v3045_v44 = vadd.f32 %v6522_v40, %v6601_v13 }
 0x365   : > { %v3327_v4 = vpack.c.bf16 %v3285_v9, %v3282_v54  ;;  %v3040_v38 = vadd.f32 %v6492_v56, %v6568_v33 }
 0x366   : > { %v6528_v50 = vpop.f32.mrf.mxu2 }
 0x367   : > { %3585 = vmatpush.bf16.msrb.mxu3 %v3327_v4  ;;  %v2941_v45 = vpop.f32.mrf.mxu0 }
 0x368   : > { %v2942_v52 = vadd.f32 %v2941_v45, %v6568_v33 }
 0x36a   : > { %3136 = vmatmul.bf16.vlgmr.msra.gmra.mxu0 %v6132_v15 }
 0x36b   : > { %3586 = vmatpush.bf16.msrb.mxu3 %v3324_v23  ;;  %3352 = vmatmul.bf16.gmra.mxu2 %v6236_v2  ;;  %v6633_v3 = vpop.permute.xlu1 %2777 }
 0x36c   : > { %v6616_v28 = vpop.permute.xlu0 %2772 }
 0x36d   : > { %v3047_v54 = vadd.f32 %v6528_v50, %v6616_v28 }
 0x36e   : > { %v6540_v25 = vpop.f32.mrf.mxu2 }
 0x36f   : > { %v2943_v59 = vpop.f32.mrf.mxu0  ;;  %v3050_v50 = vadd.f32 %v6540_v25, %v6633_v3 }
 0x370   : > { %v2944_v26 = vadd.f32 %v2943_v59, %v6582_v16 }
 0x371   : > { %4086 = vmatmul.msk.bf16.gmra.mxu1 %vm2907_vm5, %v6520_v30  ;;  %4095 = vmatmul.msk.bf16.gmra.mxu3 %vm2907_vm5, %v6538_v53 }
 0x376   : > { %v6546_v22 = vpop.f32.mrf.mxu2 }
 0x377   : > { %v2946_v18 = vpop.f32.mrf.mxu0 }
 0x378   : > { %v2947_v40 = vadd.f32 %v2946_v18, %v6601_v13 }
 0x37a   : > { %3141 = vmatmul.bf16.gmra.mxu0 %v6190_v58 }
 0x37b   : > { %3357 = vmatmul.bf16.gmra.mxu2 %v6297_v19 }
 0x37e   : > { %v6558_v57 = vpop.f32.mrf.mxu2 }
 0x37f   : > { %v2948_v36 = vpop.f32.mrf.mxu0 }
 0x380   : > { %v2949_v10 = vadd.f32 %v2948_v36, %v6616_v28 }
 0x381   : > { %4087 = vmatmul.msk.bf16.gmra.mxu1 %vm2907_vm5, %v6538_v53  ;;  %4096 = vmatmul.msk.bf16.gmra.mxu3 %vm2907_vm5, %v6556_v48 }
 0x386   : > { %v6564_v20 = vpop.f32.mrf.mxu2 }
 0x387   : > { %v2951_v29 = vpop.f32.mrf.mxu0 }
 0x388   : > { %v2952_v25 = vadd.f32 %v2951_v29, %v6633_v3 }
 0x38a   : > { %3146 = vmatmul.bf16.gmra.mxu0 %v6236_v2 }
 0x38b   : > { %3362 = vmatmul.bf16.gmra.mxu2 %v6336_v32 }
 0x38e   : > { %v6570_v61 = vpop.f32.mrf.mxu2 }
 0x38f   : > { %v6572_v41 = vpop.f32.mrf.mxu0 }
 0x391   : > { %4088 = vmatmul.msk.bf16.gmra.mxu1 %vm2907_vm5, %v6556_v48  ;;  %4105 = vmatmul.msk.bf16.vlgmr.msra.gmra.mxu3 %vm2907_vm5, %v6346_v17 }
 0x392   : > { %v3088_v14 = vpop.f32.mrf.mxu3 }
 0x393   : > { %v6580_v11 = vadd.f32 %v3088_v14, %v3040_v38 }
 0x395   : > { %7323 = vst [vmem:[#allocation24_spill] sm:$0xff] %v6580_v11 }
 0x396   : > { %v6584_v46 = vpop.f32.mrf.mxu2 }
 0x397   : > { %v6586_v12 = vpop.f32.mrf.mxu0 }
 0x39a   : > { %3151 = vmatmul.bf16.gmra.mxu0 %v6297_v19  ;;  %v3090_v37 = vpop.f32.mrf.mxu3 }
 0x39b   : > { %v6592_v6 = vadd.f32 %v3090_v37, %v3042_v0  ;;  %3367 = vmatmul.bf16.gmra.mxu2 %v6381_v49  ;;  %v6650_v0 = vpop.permute.xlu2 %2782 }
 0x39c   : > { %v2990_v56 = vpop.f32.mrf.mxu1  ;;  %v3052_v37 = vadd.f32 %v6546_v22, %v6650_v0  ;;  %v6669_v22 = vpop.permute.xlu0 %2787 }
 0x39d   : > { %7324 = vst [vmem:[#allocation39_spill] sm:$0xff] %v6592_v6  ;;  %v6595_v5 = vadd.f32 %v2990_v56, %v2942_v52  ;;  %v3055_v29 = vadd.f32 %v6558_v57, %v6669_v22 }
 0x39e   : > { %v6597_v51 = vpop.f32.mrf.mxu2 }
 0x39f   : > { %v6599_v34 = vpop.f32.mrf.mxu0 }
 0x3a1   : > { %4097 = vmatmul.msk.bf16.vlgmr.msra.gmra.mxu1 %vm2907_vm5, %v6346_v17  ;;  %4106 = vmatmul.msk.bf16.gmra.mxu3 %vm2907_vm5, %v6396_v60 }
 0x3a3   : > { %v3093_v43 = vpop.f32.mrf.mxu3 }
 0x3a4   : > { %v6610_v27 = vadd.f32 %v3093_v43, %v3045_v44  ;;  %v2992_v35 = vpop.f32.mrf.mxu1 }
 0x3a5   : > { %v6612_v8 = vadd.f32 %v2992_v35, %v2944_v26  ;;  %v2954_v35 = vadd.f32 %v6572_v41, %v6650_v0  ;;  %v2957_v41 = vadd.f32 %v6586_v12, %v6669_v22 }
 0x3a6   : > { %7325 = vst [vmem:[#allocation12_spill] sm:$0xff] %v6610_v27  ;;  %v6614_v55 = vpop.f32.mrf.mxu2 }
 0x3a7   : > { %v6618_v31 = vpop.f32.mrf.mxu0 }
 0x3aa   : > { %3156 = vmatmul.bf16.gmra.mxu0 %v6336_v32 }
 0x3ab   : > { %v3095_v9 = vpop.f32.mrf.mxu3  ;;  %3372 = vmatmul.bf16.gmra.mxu2 %v6417_v63 }
 0x3ac   : > { %v6625_v4 = vadd.f32 %v3095_v9, %v3047_v54  ;;  %v2995_v1 = vpop.f32.mrf.mxu1 }
 0x3ad   : > { %v6627_v45 = vadd.f32 %v2995_v1, %v2947_v40 }
 0x3ae   : > { %7326 = vst [vmem:[#allocation40_spill] sm:$0xff] %v6625_v4  ;;  %v6629_v7 = vpop.f32.mrf.mxu2 }
 0x3af   : > { %v6631_v23 = vpop.f32.mrf.mxu0 }
 0x3b1   : > { %4098 = vmatmul.msk.bf16.gmra.mxu1 %vm2907_vm5, %v6396_v60  ;;  %4107 = vmatmul.msk.bf16.gmra.mxu3 %vm2907_vm5, %v6433_v47 }
 0x3b3   : > { %v3098_v59 = vpop.f32.mrf.mxu3 }
 0x3b4   : > { %v6642_v18 = vadd.f32 %v3098_v59, %v3050_v50  ;;  %v2997_v21 = vpop.f32.mrf.mxu1  ;;  %v6683_v59 = vpop.permute.xlu1 %2792 }
 0x3b5   : > { %v6644_v39 = vadd.f32 %v2997_v21, %v2949_v10  ;;  %v3057_v57 = vadd.f32 %v6564_v20, %v6683_v59  ;;  %v6703_v20 = vpop.permute.xlu2 %2797 }
 0x3b6   : > { %7327 = vst [vmem:[#allocation31_spill] sm:$0xff] %v6642_v18  ;;  %v6646_v38 = vpop.f32.mrf.mxu2  ;;  %v3060_v12 = vadd.f32 %v6570_v61, %v6703_v20 }
 0x3b7   : > { %v6648_v14 = vpop.f32.mrf.mxu0 }
 0x3ba   : > { %3161 = vmatmul.bf16.gmra.mxu0 %v6381_v49 }
 0x3bb   : > { %v3100_v36 = vpop.f32.mrf.mxu3  ;;  %3377 = vmatmul.bf16.gmra.mxu2 %v6448_v42 }
 0x3bc   : > { %v6657_v52 = vadd.f32 %v3100_v36, %v3052_v37  ;;  %v3000_v56 = vpop.f32.mrf.mxu1 }
 0x3bd   : > { %v6659_v44 = vadd.f32 %v3000_v56, %v2952_v25  ;;  %v6749_v18 = vpop.permute.xlu2 %2812 }
 0x3be   : > { %7328 = vst [vmem:[#allocation9_spill] sm:$0xff] %v6657_v52  ;;  %v6661_v26 = vpop.f32.mrf.mxu2 }
 0x3bf   : > { %v6663_v43 = vpop.f32.mrf.mxu0 }
 0x3c1   : > { %4099 = vmatmul.msk.bf16.gmra.mxu1 %vm2907_vm5, %v6433_v47  ;;  %4108 = vmatmul.msk.bf16.gmra.mxu3 %vm2907_vm5, %v6464_v62 }
 0x3c4   : > { %v3103_v54 = vpop.f32.mrf.mxu3  ;;  %v3002_v40 = vpop.f32.mrf.mxu1 }
 0x3c5   : > { %v6675_v9 = vadd.f32 %v3103_v54, %v3055_v29  ;;  %v6677_v1 = vadd.f32 %v3002_v40, %v2954_v35  ;;  %v2959_v35 = vadd.f32 %v6599_v34, %v6683_v59  ;;  %v2962_v34 = vadd.f32 %v6618_v31, %v6703_v20 }
 0x3c6   : > { %v6681_v10 = vpop.f32.mrf.mxu2 }
 0x3c7   : > { %7329 = vst [vmem:[#allocation35_spill] sm:$0xff] %v6675_v9  ;;  %v6679_v50 = vpop.f32.mrf.mxu0 }
 0x3ca   : > { %3166 = vmatmul.bf16.gmra.mxu0 %v6417_v63 }
 0x3cb   : > { %3538 = vmatmul.bf16.vlgmr.msrb.gmra.mxu2 %v6132_v15 }
 0x3cc   : > { %v3105_v21 = vpop.f32.mrf.mxu3 }
 0x3cd   : > { %v6691_v37 = vadd.f32 %v3105_v21, %v3057_v57  ;;  %v3005_v25 = vpop.f32.mrf.mxu1 }
 0x3ce   : > { %v6693_v36 = vadd.f32 %v3005_v25, %v2957_v41  ;;  %v6697_v29 = vpop.f32.mrf.mxu2  ;;  %v6715_v25 = vpop.permute.xlu0 %2802 }
 0x3cf   : > { %7330 = vst [vmem:[#allocation36_spill] sm:$0xff] %v6691_v37  ;;  %v6695_v56 = vpop.f32.mrf.mxu0  ;;  %v3062_v37 = vadd.f32 %v6584_v46, %v6715_v25  ;;  %v6735_v46 = vpop.permute.xlu1 %2807  ;;  %v2964_v31 = vadd.f32 %v6631_v23, %v6715_v25 }
 0x3d0   : > { %v2967_v23 = vadd.f32 %v6648_v14, %v6735_v46  ;;  %v2969_v14 = vadd.f32 %v6663_v43, %v6749_v18 }
 0x3d1   : > { %4100 = vmatmul.msk.bf16.gmra.mxu1 %vm2907_vm5, %v6464_v62  ;;  %4109 = vmatmul.msk.bf16.gmra.mxu3 %vm2907_vm5, %v6490_v24 }
 0x3d4   : > { %v3108_v54 = vpop.f32.mrf.mxu3 }
 0x3d5   : > { %v6709_v40 = vadd.f32 %v3108_v54, %v3060_v12  ;;  %v3007_v57 = vpop.f32.mrf.mxu1 }
 0x3d6   : > { %v6711_v41 = vadd.f32 %v3007_v57, %v2959_v35  ;;  %v6720_v9 = vpop.f32.mrf.mxu2 }
 0x3d7   : > { %7331 = vst [vmem:[#allocation28_spill] sm:$0xff] %v6709_v40  ;;  %v6713_v21 = vpop.f32.mrf.mxu0  ;;  %v3065_v40 = vadd.f32 %v6597_v51, %v6735_v46  ;;  %v3067_v51 = vadd.f32 %v6614_v55, %v6749_v18  ;;  %v6783_v6 = vpop.permute.xlu1 %2822 }
 0x3d8   : > { %7337 = vst [vmem:[#allocation42_spill] sm:$0xff] %v6783_v6 }
 0x3da   : > { %3171 = vmatmul.bf16.gmra.mxu0 %v6448_v42 }
 0x3db   : > { %3543 = vmatmul.bf16.gmra.mxu2 %v6190_v58 }
 0x3dc   : > { %v3110_v61 = vpop.f32.mrf.mxu3 }
 0x3dd   : > { %v6725_v12 = vadd.f32 %v3110_v61, %v3062_v37 }
 0x3de   : > { %v3010_v35 = vpop.f32.mrf.mxu1  ;;  %v6741_v37 = vpop.f32.mrf.mxu2 }
 0x3df   : > { %7332 = vst [vmem:[#allocation38_spill] sm:$0xff] %v6725_v12  ;;  %v6727_v54 = vpop.f32.mrf.mxu0  ;;  %v6729_v57 = vadd.f32 %v3010_v35, %v2962_v34 }
 0x3e1   : > { %4101 = vmatmul.msk.bf16.gmra.mxu1 %vm2907_vm5, %v6490_v24  ;;  %4110 = vmatmul.msk.bf16.gmra.mxu3 %vm2907_vm5, %v6520_v30 }
 0x3e4   : > { %v3113_v52 = vpop.f32.mrf.mxu3 }
 0x3e5   : > { %v6743_v61 = vadd.f32 %v3113_v52, %v3065_v40 }
 0x3e6   : > { %v3012_v34 = vpop.f32.mrf.mxu1 }
 0x3e7   : > { %7333 = vst [vmem:[#allocation32_spill] sm:$0xff] %v6743_v61  ;;  %v6745_v35 = vpop.f32.mrf.mxu0  ;;  %v6747_v12 = vadd.f32 %v3012_v34, %v2964_v31  ;;  %v6759_v61 = vpop.f32.mrf.mxu2 }
 0x3ea   : > { %3440 = vmatmul.bf16.vlgmr.msrb.gmra.mxu0 %v6132_v15  ;;  %v6769_v15 = vpop.permute.xlu0 %2817 }
 0x3eb   : > { %3548 = vmatmul.bf16.gmra.mxu2 %v6236_v2  ;;  %7335 = vst [vmem:[#allocation8_spill] sm:$0xff] %v6769_v15  ;;  %v3070_v55 = vadd.f32 %v6629_v7, %v6769_v15  ;;  %v3072_v7 = vadd.f32 %v6646_v38, %v6783_v6  ;;  %v2972_v43 = vadd.f32 %v6679_v50, %v6769_v15 }
 0x3ec   : > { %v3115_v4 = vpop.f32.mrf.mxu3  ;;  %v2974_v50 = vadd.f32 %v6695_v56, %v6783_v6 }
 0x3ed   : > { %v6757_v52 = vadd.f32 %v3115_v4, %v3067_v51 }
 0x3ee   : > { %v3015_v40 = vpop.f32.mrf.mxu1 }
 0x3ef   : > { %7334 = vst [vmem:[#allocation41_spill] sm:$0xff] %v6757_v52  ;;  %v6761_v31 = vpop.f32.mrf.mxu0  ;;  %v6763_v34 = vadd.f32 %v3015_v40, %v2967_v23  ;;  %v6781_v27 = vpop.f32.mrf.mxu2 }
 0x3f1   : > { %4102 = vmatmul.msk.bf16.gmra.mxu1 %vm2907_vm5, %v6520_v30  ;;  %4111 = vmatmul.msk.bf16.gmra.mxu3 %vm2907_vm5, %v6538_v53 }
 0x3f4   : > { %v3118_v4 = vpop.f32.mrf.mxu3 }
 0x3f5   : > { %v6775_v51 = vadd.f32 %v3118_v4, %v3070_v55 }
 0x3f6   : > { %v3017_v52 = vpop.f32.mrf.mxu1 }
 0x3f7   : > { %7336 = vst [vmem:[#allocation19_spill] sm:$0xff] %v6775_v51  ;;  %v6777_v23 = vpop.f32.mrf.mxu0  ;;  %v6779_v40 = vadd.f32 %v3017_v52, %v2969_v14  ;;  %v6805_v51 = vpop.f32.mrf.mxu2 }
 0x3fa   : > { %3445 = vmatmul.bf16.gmra.mxu0 %v6190_v58  ;;  %v6801_v58 = vpop.permute.xlu2 %2827 }
 0x3fb   : > { %3553 = vmatmul.bf16.gmra.mxu2 %v6297_v19  ;;  %7340 = vst [vmem:[#allocation27_spill] sm:$0xff] %v6801_v58  ;;  %v3075_v38 = vadd.f32 %v6661_v26, %v6801_v58  ;;  %v2977_v56 = vadd.f32 %v6713_v21, %v6801_v58 }
 0x3fc   : > { %v3120_v11 = vpop.f32.mrf.mxu3 }
 0x3fd   : > { %v6791_v55 = vadd.f32 %v3120_v11, %v3072_v7 }
 0x3fe   : > { %v3020_v4 = vpop.f32.mrf.mxu1 }
 0x3ff   : > { %7338 = vst [vmem:[#allocation17_spill] sm:$0xff] %v6791_v55  ;;  %v6793_v52 = vpop.f32.mrf.mxu0  ;;  %v6795_v14 = vadd.f32 %v3020_v4, %v2972_v43 }
 0x401   : > { %7339 = vst [vmem:[#allocation20_spill] sm:$0xff] %v6795_v14  ;;  %4103 = vmatmul.msk.bf16.gmra.mxu1 %vm2907_vm5, %v6538_v53  ;;  %4112 = vmatmul.msk.bf16.gmra.mxu3 %vm2907_vm5, %v6556_v48  ;;  %v6815_v14 = vpop.permute.xlu0 %2832 }
 0x402   : > { %v3077_v26 = vadd.f32 %v6681_v10, %v6815_v14  ;;  %v2979_v21 = vadd.f32 %v6727_v54, %v6815_v14 }
 0x404   : > { %v3123_v11 = vpop.f32.mrf.mxu3 }
 0x405   : > { %v6809_v7 = vadd.f32 %v3123_v11, %v3075_v38  ;;  %v6823_v38 = vpop.f32.mrf.mxu2 }
 0x406   : > { %v3022_v43 = vpop.f32.mrf.mxu1 }
 0x407   : > { %7341 = vst [vmem:[#allocation30_spill] sm:$0xff] %v6809_v7  ;;  %v6811_v4 = vpop.f32.mrf.mxu0  ;;  %v6813_v55 = vadd.f32 %v3022_v43, %v2974_v50 }
 0x40a   : > { %3450 = vmatmul.bf16.gmra.mxu0 %v6236_v2  ;;  %v3344_v2 = vadd.f32 %v6697_v29, %v6568_v33  ;;  %v3346_v29 = vadd.f32 %v6720_v9, %v6582_v16  ;;  %v3349_v9 = vadd.f32 %v6741_v37, %v6601_v13 }
 0x40b   : > { %3558 = vmatmul.bf16.gmra.mxu2 %v6336_v32 }
 0x40c   : > { %v3125_v15 = vpop.f32.mrf.mxu3 }
 0x40d   : > { %v6825_v11 = vadd.f32 %v3125_v15, %v3077_v26  ;;  %v6840_v58 = vpop.f32.mrf.mxu2 }
 0x40e   : > { %v3025_v7 = vpop.f32.mrf.mxu1 }
 0x40f   : > { %7342 = vst [vmem:[#allocation7_spill] sm:$0xff] %v6825_v11  ;;  %v6827_v50 = vpop.f32.mrf.mxu0  ;;  %v6829_v43 = vadd.f32 %v3025_v7, %v2977_v56  ;;  %v3628_v11 = vmax.f32 %v6595_v5, 0.0  ;;  %v3138_v5 = vadd.f32 %v6745_v35, %v6568_v33 }
 0x411   : > { %7343 = vst [vmem:[#allocation43_spill] sm:$0xff] %v6829_v43  ;;  %4104 = vmatmul.msk.bf16.gmra.mxu1 %vm2907_vm5, %v6556_v48  ;;  %4121 = vmatmul.msk.bf16.vlgmr.msrb.gmra.mxu3 %vm2907_vm5, %v6346_v17 }
 0x414   : > { %v3392_v10 = vpop.f32.mrf.mxu3 }
 0x415   : > { %v3393_v15 = vadd.f32 %v3392_v10, %v3344_v2 }
 0x416   : > { %v3027_v26 = vpop.f32.mrf.mxu1 }
 0x417   : > { %v3676_v7 = vmax.f32 %v3393_v15, 0.0  ;;  %v6842_v56 = vadd.f32 %v3027_v26, %v2979_v21  ;;  %v6844_v43 = vpop.f32.mrf.mxu0  ;;  %v3631_v21 = vmax.f32 %v6612_v8, 0.0  ;;  %v3140_v8 = vadd.f32 %v6761_v31, %v6582_v16 }
 0x419   : > { %v6846_v48 = vmax.f32 %v3628_v11, %v3676_v7  ;;  %v6857_v11 = vpop.f32.mrf.mxu2 }
 0x41a   : > { %3455 = vmatmul.bf16.gmra.mxu0 %v6297_v19 }
 0x41b   : > { %3563 = vmatmul.bf16.gmra.mxu2 %v6381_v49 }
 0x41c   : > { %v3394_v54 = vpop.f32.mrf.mxu3 }
 0x41d   : > { %v3395_v2 = vadd.f32 %v3394_v54, %v3346_v29 }
 0x41e   : > { %v3186_v10 = vpop.f32.mrf.mxu1 }
 0x41f   : > { %v3679_v15 = vmax.f32 %v3395_v2, 0.0  ;;  %v6855_v26 = vadd.f32 %v3186_v10, %v3138_v5  ;;  %v6865_v19 = vpop.f32.mrf.mxu0  ;;  %v3634_v5 = vmax.f32 %v6627_v45, 0.0  ;;  %v3143_v45 = vadd.f32 %v6777_v23, %v6601_v13 }
 0x420   : > { %v3145_v23 = vadd.f32 %v6793_v52, %v6616_v28 }
 0x421   : > { %v6859_v7 = vmax.f32 %v3631_v21, %v3679_v15  ;;  %4113 = vmatmul.msk.bf16.vlgmr.msrb.gmra.mxu1 %vm2907_vm5, %v6346_v17  ;;  %4122 = vmatmul.msk.bf16.gmra.mxu3 %vm2907_vm5, %v6396_v60  ;;  %v3351_v21 = vadd.f32 %v6759_v61, %v6616_v28  ;;  %v6879_v15 = vpop.f32.mrf.mxu2  ;;  %v3354_v61 = vadd.f32 %v6781_v27, %v6633_v3 }
 0x422   : > { %v3356_v27 = vadd.f32 %v6805_v51, %v6650_v0  ;;  %v3359_v51 = vadd.f32 %v6823_v38, %v6669_v22  ;;  %v3361_v38 = vadd.f32 %v6840_v58, %v6683_v59 }
 0x424   : > { %v3397_v35 = vpop.f32.mrf.mxu3 }
 0x425   : > { %v3398_v29 = vadd.f32 %v3397_v35, %v3349_v9 }
 0x426   : > { %v3188_v54 = vpop.f32.mrf.mxu1 }
 0x427   : > { %v3682_v2 = vmax.f32 %v3398_v29, 0.0  ;;  %v6872_v10 = vadd.f32 %v3188_v54, %v3140_v8  ;;  %v6882_v37 = vpop.f32.mrf.mxu0  ;;  %v3637_v8 = vmax.f32 %v6644_v39, 0.0 }
 0x429   : > { %v6874_v17 = vmax.f32 %v3634_v5, %v3682_v2  ;;  %v6899_v2 = vpop.f32.mrf.mxu2 }
 0x42a   : > { %3460 = vmatmul.bf16.gmra.mxu0 %v6336_v32 }
 0x42b   : > { %3568 = vmatmul.bf16.gmra.mxu2 %v6417_v63 }
 0x42c   : > { %v3399_v31 = vpop.f32.mrf.mxu3 }
 0x42d   : > { %v3400_v9 = vadd.f32 %v3399_v31, %v3351_v21 }
 0x42e   : > { %v3191_v35 = vpop.f32.mrf.mxu1 }
 0x42f   : > { %v3685_v29 = vmax.f32 %v3400_v9, 0.0  ;;  %v6887_v54 = vadd.f32 %v3191_v35, %v3143_v45  ;;  %v6901_v21 = vpop.f32.mrf.mxu0  ;;  %v3640_v45 = vmax.f32 %v6659_v44, 0.0  ;;  %v3643_v44 = vmax.f32 %v6677_v1, 0.0 }
 0x430   : > { %v3150_v1 = vadd.f32 %v6827_v50, %v6650_v0  ;;  %v3153_v50 = vadd.f32 %v6844_v43, %v6669_v22 }
 0x431   : > { %v6889_v32 = vmax.f32 %v3637_v8, %v3685_v29  ;;  %4114 = vmatmul.msk.bf16.gmra.mxu1 %vm2907_vm5, %v6396_v60  ;;  %4123 = vmatmul.msk.bf16.gmra.mxu3 %vm2907_vm5, %v6433_v47  ;;  %v3148_v8 = vadd.f32 %v6811_v4, %v6633_v3 }
 0x434   : > { %v3402_v5 = vpop.f32.mrf.mxu3 }
 0x435   : > { %v3403_v39 = vadd.f32 %v3402_v5, %v3354_v61  ;;  %v6915_v5 = vpop.f32.mrf.mxu2 }
 0x436   : > { %v3193_v31 = vpop.f32.mrf.mxu1 }
 0x437   : > { %v3688_v9 = vmax.f32 %v3403_v39, 0.0  ;;  %v6904_v60 = vadd.f32 %v3193_v31, %v3145_v23  ;;  %v6919_v31 = vpop.f32.mrf.mxu0 }
 0x439   : > { %v6906_v35 = vmax.f32 %v3640_v45, %v3688_v9 }
 0x43a   : > { %3465 = vmatmul.bf16.gmra.mxu0 %v6381_v49 }
 0x43b   : > { %3573 = vmatmul.bf16.gmra.mxu2 %v6448_v42 }
 0x43c   : > { %v3404_v52 = vpop.f32.mrf.mxu3 }
 0x43d   : > { %v3405_v29 = vadd.f32 %v3404_v52, %v3356_v27  ;;  %v3646_v27 = vmax.f32 %v6693_v36, 0.0 }
 0x43e   : > { %v3196_v61 = vpop.f32.mrf.mxu1 }
 0x43f   : > { %v3691_v23 = vmax.f32 %v3405_v29, 0.0  ;;  %v6917_v39 = vadd.f32 %v3196_v61, %v3148_v8  ;;  %v6934_v29 = vpop.f32.mrf.mxu2  ;;  %v6938_v61 = vpop.f32.mrf.mxu0 }
 0x441   : > { %v6921_v49 = vmax.f32 %v3643_v44, %v3691_v23  ;;  %4115 = vmatmul.msk.bf16.gmra.mxu1 %vm2907_vm5, %v6433_v47  ;;  %4124 = vmatmul.msk.bf16.gmra.mxu3 %vm2907_vm5, %v6464_v62 }
 0x444   : > { %v3407_v4 = vpop.f32.mrf.mxu3 }
 0x445   : > { %v3408_v45 = vadd.f32 %v3407_v4, %v3359_v51  ;;  %v3649_v51 = vmax.f32 %v6711_v41, 0.0  ;;  %v3155_v41 = vadd.f32 %v6865_v19, %v6683_v59 }
 0x446   : > { %v3198_v9 = vpop.f32.mrf.mxu1 }
 0x447   : > { %v3694_v52 = vmax.f32 %v3408_v45, 0.0  ;;  %v6932_v8 = vadd.f32 %v3198_v9, %v3150_v1  ;;  %v3375_v58 = vpop.f32.mrf.mxu2  ;;  %v3167_v43 = vpop.f32.mrf.mxu0 }
 0x449   : > { %v6936_v47 = vmax.f32 %v3646_v27, %v3694_v52 }
 0x44a   : > { %3470 = vmatmul.bf16.gmra.mxu0 %v6417_v63  ;;  %v3364_v63 = vadd.f32 %v6857_v11, %v6703_v20  ;;  %v3366_v11 = vadd.f32 %v6879_v15, %v6715_v25 }
 0x44c   : > { %v3409_v44 = vpop.f32.mrf.mxu3 }
 0x44d   : > { %v3410_v23 = vadd.f32 %v3409_v44, %v3361_v38  ;;  %v3652_v38 = vmax.f32 %v6729_v57, 0.0  ;;  %v3655_v57 = vmax.f32 %v6747_v12, 0.0 }
 0x44e   : > { %v3201_v36 = vpop.f32.mrf.mxu1 }
 0x44f   : > { %v3697_v4 = vmax.f32 %v3410_v23, 0.0  ;;  %v6946_v1 = vadd.f32 %v3201_v36, %v3153_v50  ;;  %v3158_v36 = vadd.f32 %v6882_v37, %v6703_v20  ;;  %v3160_v37 = vadd.f32 %v6901_v21, %v6715_v25 }
 0x451   : > { %v6948_v45 = vmax.f32 %v3649_v51, %v3697_v4  ;;  %4116 = vmatmul.msk.bf16.gmra.mxu1 %vm2907_vm5, %v6464_v62  ;;  %4125 = vmatmul.msk.bf16.gmra.mxu3 %vm2907_vm5, %v6490_v24  ;;  %v3378_v51 = vpop.f32.mrf.mxu2  ;;  %v3169_v4 = vpop.f32.mrf.mxu0 }
 0x454   : > { %v3412_v9 = vpop.f32.mrf.mxu3 }
 0x455   : > { %v3413_v27 = vadd.f32 %v3412_v9, %v3364_v63 }
 0x456   : > { %v3203_v52 = vpop.f32.mrf.mxu1 }
 0x457   : > { %v3700_v44 = vmax.f32 %v3413_v27, 0.0  ;;  %v6959_v50 = vadd.f32 %v3203_v52, %v3155_v41 }
 0x459   : > { %v6961_v62 = vmax.f32 %v3652_v38, %v3700_v44  ;;  %v3658_v38 = vmax.f32 %v6763_v34, 0.0  ;;  %v3380_v44 = vpop.f32.mrf.mxu2 }
 0x45a   : > { %3475 = vmatmul.bf16.gmra.mxu0 %v6448_v42  ;;  %v3369_v42 = vadd.f32 %v6899_v2, %v6735_v46  ;;  %v3163_v2 = vadd.f32 %v6919_v31, %v6735_v46 }
 0x45c   : > { %v3414_v23 = vpop.f32.mrf.mxu3 }
 0x45d   : > { %v3415_v19 = vadd.f32 %v3414_v23, %v3366_v11 }
 0x45e   : > { %v3206_v63 = vpop.f32.mrf.mxu1 }
 0x45f   : > { %v3703_v9 = vmax.f32 %v3415_v19, 0.0  ;;  %v6969_v41 = vadd.f32 %v3206_v63, %v3158_v36  ;;  %v3172_v36 = vpop.f32.mrf.mxu0  ;;  %v3371_v19 = vadd.f32 %v6915_v5, %v6749_v18 }
 0x461   : > { %v6971_v27 = vmax.f32 %v3655_v57, %v3703_v9  ;;  %4117 = vmatmul.msk.bf16.gmra.mxu1 %vm2907_vm5, %v6490_v24  ;;  %4126 = vmatmul.msk.bf16.gmra.mxu3 %vm2907_vm5, %v6520_v30  ;;  %v3661_v9 = vmax.f32 %v6779_v40, 0.0  ;;  %v3165_v40 = vadd.f32 %v6938_v61, %v6749_v18  ;;  %v3667_v61 = vmax.f32 %v6813_v55, 0.0 }
 0x463   : > { %7344 = vst [vmem:[#allocation14_spill] sm:$0xff] %v6971_v27 }
 0x464   : > { %v3417_v15 = vpop.f32.mrf.mxu3 }
 0x465   : > { %v3418_v52 = vadd.f32 %v3417_v15, %v3369_v42  ;;  %v3539_v15 = vpop.f32.mrf.mxu2 }
 0x466   : > { %v3208_v12 = vpop.f32.mrf.mxu1 }
 0x467   : > { %v3706_v11 = vmax.f32 %v3418_v52, 0.0  ;;  %v6982_v23 = vadd.f32 %v3208_v12, %v3160_v37  ;;  %v3174_v5 = vpop.f32.mrf.mxu0  ;;  %v7347_v52 = vld [vmem:[#allocation8_spill] sm:$0xff] }
 0x468   : > { %v3374_v31 = vadd.f32 %v6934_v29, %v7347_v52  ;;  %v3168_v29 = vadd.f32 %v3167_v43, %v7347_v52  ;;  %v3170_v43 = vadd.f32 %v3169_v4, %v6783_v6  ;;  %v3673_v4 = vmax.f32 %v6842_v56, 0.0 }
 0x469   : > { %v6984_v24 = vmax.f32 %v3658_v38, %v3706_v11  ;;  %v3630_v56 = vmax.f32 %v6855_v26, 0.0  ;;  %v3633_v26 = vmax.f32 %v6872_v10, 0.0 }
 0x46b   : > { %7345 = vst [vmem:[#allocation34_spill] sm:$0xff] %v6984_v24 }
 0x46c   : > { %v3419_v63 = vpop.f32.mrf.mxu3 }
 0x46d   : > { %v3420_v57 = vadd.f32 %v3419_v63, %v3371_v19  ;;  %v7348_v19 = vld [vmem:[#allocation20_spill] sm:$0xff] }
 0x46e   : > { %v3211_v21 = vpop.f32.mrf.mxu1  ;;  %v3664_v63 = vmax.f32 %v7348_v19, 0.0 }
 0x46f   : > { %v3709_v42 = vmax.f32 %v3420_v57, 0.0  ;;  %v6991_v34 = vadd.f32 %v3211_v21, %v3163_v2 }
 0x471   : > { %v6993_v37 = vmax.f32 %v3661_v9, %v3709_v42  ;;  %4118 = vmatmul.msk.bf16.gmra.mxu1 %vm2907_vm5, %v6520_v30  ;;  %4127 = vmatmul.msk.bf16.gmra.mxu3 %vm2907_vm5, %v6538_v53  ;;  %v3376_v30 = vadd.f32 %v3375_v58, %v6783_v6  ;;  %v3541_v9 = vpop.f32.mrf.mxu2  ;;  %v3441_v42 = vpop.f32.mrf.mxu0  ;;  %v7353_v58 = vld [vmem:[#allocation27_spill] sm:$0xff] }
 0x473   : > { %7346 = vst [vmem:[#allocation10_spill] sm:$0xff] %v6993_v37 }
 0x474   : > { %v3422_v12 = vpop.f32.mrf.mxu3 }
 0x475   : > { %v3423_v38 = vadd.f32 %v3422_v12, %v3374_v31 }
 0x476   : > { %v3213_v11 = vpop.f32.mrf.mxu1 }
 0x477   : > { %v3712_v2 = vmax.f32 %v3423_v38, 0.0  ;;  %v7004_v57 = vadd.f32 %v3213_v11, %v3165_v40  ;;  %v7352_v40 = vld [vmem:[#allocation26_spill] sm:$0xff]  ;;  %v3379_v38 = vadd.f32 %v3378_v51, %v7353_v58 }
 0x479   : > { %v7006_v21 = vmax.f32 %v3664_v63, %v3712_v2  ;;  %v3443_v2 = vpop.f32.mrf.mxu0 }
 0x47b   : > { %7349 = vst [vmem:[#allocation37_spill] sm:$0xff] %v7006_v21 }
 0x47c   : > { %v3424_v37 = vpop.f32.mrf.mxu3 }
 0x47d   : > { %v3425_v24 = vadd.f32 %v3424_v37, %v3376_v30  ;;  %v3544_v37 = vpop.f32.mrf.mxu2 }
 0x47e   : > { %v3216_v27 = vpop.f32.mrf.mxu1 }
 0x47f   : > { %v3715_v31 = vmax.f32 %v3425_v24, 0.0  ;;  %v7011_v12 = vadd.f32 %v3216_v27, %v3168_v29  ;;  %v7354_v24 = vld [vmem:[#allocation43_spill] sm:$0xff] }
 0x480   : > { %v3670_v27 = vmax.f32 %v7354_v24, 0.0 }
 0x481   : > { %7350 = vst [vmem:[#allocation11_spill] sm:$0xff] %v7011_v12  ;;  %v7013_v19 = vmax.f32 %v3667_v61, %v3715_v31  ;;  %4119 = vmatmul.msk.bf16.gmra.mxu1 %vm2907_vm5, %v6538_v53  ;;  %4128 = vmatmul.msk.bf16.gmra.mxu3 %vm2907_vm5, %v7352_v40  ;;  %v3381_v53 = vadd.f32 %v3380_v44, %v6815_v14  ;;  %v3446_v12 = vpop.f32.mrf.mxu0 }
 0x483   : > { %7351 = vst [vmem:[#allocation29_spill] sm:$0xff] %v7013_v19  ;;  %v3173_v19 = vadd.f32 %v3172_v36, %v7353_v58  ;;  %v3175_v36 = vadd.f32 %v3174_v5, %v6815_v14 }
 0x484   : > { %v3427_v11 = vpop.f32.mrf.mxu3 }
 0x485   : > { %v3428_v63 = vadd.f32 %v3427_v11, %v3379_v38  ;;  %v3546_v6 = vpop.f32.mrf.mxu2 }
 0x486   : > { %v3218_v55 = vpop.f32.mrf.mxu1 }
 0x487   : > { %v3718_v30 = vmax.f32 %v3428_v63, 0.0  ;;  %v7022_v29 = vadd.f32 %v3218_v55, %v3170_v43  ;;  %v3540_v43 = vadd.f32 %v3539_v15, %v6568_v33  ;;  %v3442_v15 = vadd.f32 %v3441_v42, %v6568_v33 }
 0x489   : > { %v7024_v61 = vmax.f32 %v3670_v27, %v3718_v30 }
 0x48c   : > { %v3429_v31 = vpop.f32.mrf.mxu3 }
 0x48d   : > { %v3430_v51 = vadd.f32 %v3429_v31, %v3381_v53  ;;  %v3448_v53 = vpop.f32.mrf.mxu0  ;;  %v3542_v31 = vadd.f32 %v3541_v9, %v6582_v16  ;;  %v3545_v9 = vadd.f32 %v3544_v37, %v6601_v13  ;;  %v7356_v37 = vld [vmem:[#allocation39_spill] sm:$0xff] }
 0x48e   : > { %v3221_v21 = vpop.f32.mrf.mxu1 }
 0x48f   : > { %v3721_v38 = vmax.f32 %v3430_v51, 0.0  ;;  %v7029_v11 = vadd.f32 %v3221_v21, %v3173_v19  ;;  %v3549_v21 = vpop.f32.mrf.mxu2 }
 0x491   : > { %v7031_v24 = vmax.f32 %v3673_v4, %v3721_v38  ;;  %4120 = vmatmul.msk.bf16.gmra.mxu1 %vm2907_vm5, %v7352_v40 }
 0x494   : > { %v3588_v44 = vpop.f32.mrf.mxu3 }
 0x495   : > { %v3589_v63 = vadd.f32 %v3588_v44, %v3540_v43  ;;  %v7355_v44 = vld [vmem:[#allocation24_spill] sm:$0xff]  ;;  %v3451_v33 = vpop.f32.mrf.mxu0 }
 0x496   : > { %v3223_v55 = vpop.f32.mrf.mxu1 }
 0x497   : > { %v3678_v27 = vmax.f32 %v3589_v63, 0.0  ;;  %v7038_v30 = vadd.f32 %v3223_v55, %v3175_v36  ;;  %v3629_v36 = vmax.f32 %v7355_v44, 0.0  ;;  %v3547_v44 = vadd.f32 %v3546_v6, %v6616_v28 }
 0x499   : > { %v3726_v19 = vmax.f32 %v3630_v56, %v3678_v27  ;;  %v3551_v56 = vpop.f32.mrf.mxu2 }
 0x49b   : > { %v3805_v40 = vpack.c.bf16 %v3726_v19, %v3726_v19 }
 0x49c   : > { %v3590_v51 = vpop.f32.mrf.mxu3 }
 0x49d   : > { %3838 = vst.msk [vmem:[%s4297_s19 + $0x8] sm:$0xf] %vm3837_vm6, %v3805_v40  ;;  %v3591_v5 = vadd.f32 %v3590_v51, %v3542_v31  ;;  %v3444_v40 = vadd.f32 %v3443_v2, %v6582_v16 }
 0x49e   : > { %v3490_v4 = vpop.f32.mrf.mxu1 }
 0x49f   : > { %v3681_v38 = vmax.f32 %v3591_v5, 0.0  ;;  %v3491_v43 = vadd.f32 %v3490_v4, %v3442_v15  ;;  %v3636_v15 = vmax.f32 %v6887_v54, 0.0 }
 0x4a1   : > { %v3729_v63 = vmax.f32 %v3633_v26, %v3681_v38  ;;  %v3677_v55 = vmax.f32 %v3491_v43, 0.0  ;;  %v3632_v26 = vmax.f32 %v7356_v37, 0.0 }
 0x4a3   : > { %v3807_v27 = vpack.c.bf16 %v3729_v63, %v3729_v63  ;;  %v3725_v19 = vmax.f32 %v3629_v36, %v3677_v55  ;;  %v3554_v63 = vpop.f32.mrf.mxu2 }
 0x4a4   : > { %v3593_v42 = vpop.f32.mrf.mxu3 }
 0x4a5   : > { %3840 = vst.msk [vmem:[%s4297_s19 + $0x14] sm:$0xf] %vm3837_vm6, %v3807_v27  ;;  %v3804_v10 = vpack.c.bf16 %v3725_v19, %v6846_v48  ;;  %v3594_v31 = vadd.f32 %v3593_v42, %v3545_v9  ;;  %v3447_v48 = vadd.f32 %v3446_v12, %v6601_v13  ;;  %v3453_v9 = vpop.f32.mrf.mxu0  ;;  %v3639_v19 = vmax.f32 %v6904_v60, 0.0 }
 0x4a6   : > { %v3492_v51 = vpop.f32.mrf.mxu1  ;;  %v3550_v13 = vadd.f32 %v3549_v21, %v6633_v3 }
 0x4a7   : > { %3836 = vst [vmem:[%s4297_s19] sm:$0xff] %v3804_v10  ;;  %v3684_v5 = vmax.f32 %v3594_v31, 0.0  ;;  %v3493_v4 = vadd.f32 %v3492_v51, %v3444_v40  ;;  %v7357_v40 = vld [vmem:[#allocation12_spill] sm:$0xff] }
 0x4a8   : > { %v3635_v10 = vmax.f32 %v7357_v40, 0.0 }
 0x4a9   : > { %v3732_v38 = vmax.f32 %v3636_v15, %v3684_v5  ;;  %v3680_v43 = vmax.f32 %v3493_v4, 0.0 }
 0x4ab   : > { %v3809_v16 = vpack.c.bf16 %v3732_v38, %v3732_v38  ;;  %v3728_v2 = vmax.f32 %v3632_v26, %v3680_v43  ;;  %v3642_v26 = vmax.f32 %v6917_v39, 0.0  ;;  %v3556_v38 = vpop.f32.mrf.mxu2 }
 0x4ac   : > { %v3595_v36 = vpop.f32.mrf.mxu3 }
 0x4ad   : > { %3842 = vst.msk [vmem:[%s4297_s19 + $0x20] sm:$0xf] %vm3837_vm6, %v3809_v16  ;;  %v3806_v54 = vpack.c.bf16 %v3728_v2, %v6859_v7  ;;  %v3596_v55 = vadd.f32 %v3595_v36, %v3547_v44  ;;  %v3449_v7 = vadd.f32 %v3448_v53, %v6616_v28  ;;  %v3456_v21 = vpop.f32.mrf.mxu0  ;;  %v7358_v16 = vld [vmem:[#allocation40_spill] sm:$0xff]  ;;  %v3552_v28 = vadd.f32 %v3551_v56, %v6650_v0 }
 0x4ae   : > { %v3495_v27 = vpop.f32.mrf.mxu1  ;;  %v3638_v2 = vmax.f32 %v7358_v16, 0.0 }
 0x4af   : > { %3839 = vst [vmem:[%s4297_s19 + $0xc] sm:$0xff] %v3806_v54  ;;  %v3687_v42 = vmax.f32 %v3596_v55, 0.0  ;;  %v3496_v6 = vadd.f32 %v3495_v27, %v3447_v48  ;;  %v3452_v55 = vadd.f32 %v3451_v33, %v6633_v3  ;;  %v3555_v3 = vadd.f32 %v3554_v63, %v6669_v22 }
 0x4b1   : > { %v3735_v31 = vmax.f32 %v3639_v19, %v3687_v42  ;;  %v3683_v51 = vmax.f32 %v3496_v6, 0.0  ;;  %v3645_v42 = vmax.f32 %v6932_v8, 0.0 }
 0x4b3   : > { %v3811_v12 = vpack.c.bf16 %v3735_v31, %v3735_v31  ;;  %v3731_v15 = vmax.f32 %v3635_v10, %v3683_v51  ;;  %v7359_v10 = vld [vmem:[#allocation31_spill] sm:$0xff]  ;;  %v3559_v31 = vpop.f32.mrf.mxu2 }
 0x4b4   : > { %v3598_v5 = vpop.f32.mrf.mxu3  ;;  %v3641_v56 = vmax.f32 %v7359_v10, 0.0 }
 0x4b5   : > { %3844 = vst.msk [vmem:[%s4297_s19 + $0x2c] sm:$0xf] %vm3837_vm6, %v3811_v12  ;;  %v3808_v4 = vpack.c.bf16 %v3731_v15, %v6874_v17  ;;  %v3599_v60 = vadd.f32 %v3598_v5, %v3550_v13  ;;  %v3458_v12 = vpop.f32.mrf.mxu0  ;;  %v3454_v5 = vadd.f32 %v3453_v9, %v6650_v0 }
 0x4b6   : > { %v3497_v37 = vpop.f32.mrf.mxu1 }
 0x4b7   : > { %3841 = vst [vmem:[%s4297_s19 + $0x18] sm:$0xff] %v3808_v4  ;;  %v3690_v43 = vmax.f32 %v3599_v60, 0.0  ;;  %v3498_v44 = vadd.f32 %v3497_v37, %v3449_v7  ;;  %v3648_v60 = vmax.f32 %v6946_v1, 0.0 }
 0x4b9   : > { %v3738_v36 = vmax.f32 %v3642_v26, %v3690_v43  ;;  %v3686_v48 = vmax.f32 %v3498_v44, 0.0  ;;  %v7360_v43 = vld [vmem:[#allocation9_spill] sm:$0xff] }
 0x4ba   : > { %v3644_v63 = vmax.f32 %v7360_v43, 0.0 }
 0x4bb   : > { %v3813_v53 = vpack.c.bf16 %v3738_v36, %v3738_v36  ;;  %v3734_v54 = vmax.f32 %v3638_v2, %v3686_v48  ;;  %v3557_v2 = vadd.f32 %v3556_v38, %v6683_v59  ;;  %v3561_v0 = vpop.f32.mrf.mxu2  ;;  %v7361_v38 = vld [vmem:[#allocation35_spill] sm:$0xff] }
 0x4bc   : > { %v3600_v17 = vpop.f32.mrf.mxu3 }
 0x4bd   : > { %3846 = vst.msk [vmem:[%s4297_s19 + $0x38] sm:$0xf] %vm3837_vm6, %v3813_v53  ;;  %v3810_v39 = vpack.c.bf16 %v3734_v54, %v6889_v32  ;;  %v3601_v27 = vadd.f32 %v3600_v17, %v3552_v28  ;;  %v3461_v48 = vpop.f32.mrf.mxu0  ;;  %v3457_v28 = vadd.f32 %v3456_v21, %v6669_v22  ;;  %v3651_v17 = vmax.f32 %v6959_v50, 0.0 }
 0x4be   : > { %v3500_v19 = vpop.f32.mrf.mxu1 }
 0x4bf   : > { %3843 = vst [vmem:[%s4297_s19 + $0x24] sm:$0xff] %v3810_v39  ;;  %v3693_v6 = vmax.f32 %v3601_v27, 0.0  ;;  %v3501_v40 = vadd.f32 %v3500_v19, %v3452_v55  ;;  %v3647_v27 = vmax.f32 %v7361_v38, 0.0 }
 0x4c1   : > { %v3741_v51 = vmax.f32 %v3645_v42, %v3693_v6  ;;  %v3689_v13 = vmax.f32 %v3501_v40, 0.0  ;;  %v3560_v6 = vadd.f32 %v3559_v31, %v6703_v20 }
 0x4c3   : > { %v3815_v33 = vpack.c.bf16 %v3741_v51, %v3741_v51  ;;  %v3737_v15 = vmax.f32 %v3641_v56, %v3689_v13  ;;  %v3564_v10 = vpop.f32.mrf.mxu2 }
 0x4c4   : > { %v3603_v32 = vpop.f32.mrf.mxu3 }
 0x4c5   : > { %3848 = vst.msk [vmem:[%s4297_s19 + $0x44] sm:$0xf] %vm3837_vm6, %v3815_v33  ;;  %v3812_v8 = vpack.c.bf16 %v3737_v15, %v6906_v35  ;;  %v3604_v7 = vadd.f32 %v3603_v32, %v3555_v3  ;;  %v3463_v51 = vpop.f32.mrf.mxu0  ;;  %v3654_v3 = vmax.f32 %v6969_v41, 0.0  ;;  %v7362_v15 = vld [vmem:[#allocation36_spill] sm:$0xff] }
 0x4c6   : > { %v3502_v4 = vpop.f32.mrf.mxu1  ;;  %v3650_v32 = vmax.f32 %v7362_v15, 0.0 }
 0x4c7   : > { %3845 = vst [vmem:[%s4297_s19 + $0x30] sm:$0xff] %v3812_v8  ;;  %v3696_v37 = vmax.f32 %v3604_v7, 0.0  ;;  %v3503_v26 = vadd.f32 %v3502_v4, %v3454_v5 }
 0x4c9   : > { %v3744_v44 = vmax.f32 %v3648_v60, %v3696_v37  ;;  %v3692_v16 = vmax.f32 %v3503_v26, 0.0  ;;  %v3657_v26 = vmax.f32 %v6982_v23, 0.0 }
 0x4cb   : > { %v3817_v9 = vpack.c.bf16 %v3744_v44, %v3744_v44  ;;  %v3740_v36 = vmax.f32 %v3644_v63, %v3692_v16  ;;  %v3566_v43 = vpop.f32.mrf.mxu2 }
 0x4cc   : > { %v3605_v35 = vpop.f32.mrf.mxu3 }
 0x4cd   : > { %3850 = vst.msk [vmem:[%s4297_s19 + $0x50] sm:$0xf] %vm3837_vm6, %v3817_v9  ;;  %v3814_v1 = vpack.c.bf16 %v3740_v36, %v6921_v49  ;;  %v3606_v53 = vadd.f32 %v3605_v35, %v3557_v2  ;;  %v3459_v49 = vadd.f32 %v3458_v12, %v6683_v59  ;;  %v3562_v59 = vadd.f32 %v3561_v0, %v6715_v25  ;;  %v3466_v16 = vpop.f32.mrf.mxu0  ;;  %v7363_v2 = vld [vmem:[#allocation28_spill] sm:$0xff] }
 0x4ce   : > { %v3505_v54 = vpop.f32.mrf.mxu1  ;;  %v3653_v0 = vmax.f32 %v7363_v2, 0.0 }
 0x4cf   : > { %3847 = vst [vmem:[%s4297_s19 + $0x3c] sm:$0xff] %v3814_v1  ;;  %v3699_v55 = vmax.f32 %v3606_v53, 0.0  ;;  %v3506_v39 = vadd.f32 %v3505_v54, %v3457_v28  ;;  %v3464_v28 = vadd.f32 %v3463_v51, %v6715_v25  ;;  %v3660_v54 = vmax.f32 %v6991_v34, 0.0  ;;  %v7365_v34 = vld [vmem:[#allocation14_spill] sm:$0xff] }
 0x4d0   : > { %v3567_v25 = vadd.f32 %v3566_v43, %v6749_v18 }
 0x4d1   : > { %v3747_v19 = vmax.f32 %v3651_v17, %v3699_v55  ;;  %v3695_v42 = vmax.f32 %v3506_v39, 0.0  ;;  %v7364_v39 = vld [vmem:[#allocation38_spill] sm:$0xff] }
 0x4d2   : > { %v3656_v38 = vmax.f32 %v7364_v39, 0.0  ;;  %v7372_v39 = vld [vmem:[#allocation19_spill] sm:$0xff] }
 0x4d3   : > { %v3819_v22 = vpack.c.bf16 %v3747_v19, %v3747_v19  ;;  %v3743_v21 = vmax.f32 %v3647_v27, %v3695_v42  ;;  %v3569_v27 = vpop.f32.mrf.mxu2 }
 0x4d4   : > { %v3608_v40 = vpop.f32.mrf.mxu3 }
 0x4d5   : > { %3852 = vst.msk [vmem:[%s4297_s19 + $0x5c] sm:$0xf] %vm3837_vm6, %v3819_v22  ;;  %v3816_v50 = vpack.c.bf16 %v3743_v21, %v6936_v47  ;;  %v3609_v56 = vadd.f32 %v3608_v40, %v3560_v6  ;;  %v3462_v47 = vadd.f32 %v3461_v48, %v6703_v20  ;;  %v3565_v20 = vadd.f32 %v3564_v10, %v6735_v46  ;;  %v3468_v6 = vpop.f32.mrf.mxu0 }
 0x4d6   : > { %v3507_v13 = vpop.f32.mrf.mxu1  ;;  %v3467_v40 = vadd.f32 %v3466_v16, %v6735_v46 }
 0x4d7   : > { %3849 = vst [vmem:[%s4297_s19 + $0x48] sm:$0xff] %v3816_v50  ;;  %v3702_v33 = vmax.f32 %v3609_v56, 0.0  ;;  %v3508_v31 = vadd.f32 %v3507_v13, %v3459_v49  ;;  %v3663_v56 = vmax.f32 %v7004_v57, 0.0  ;;  %v7367_v57 = vld [vmem:[#allocation34_spill] sm:$0xff] }
 0x4d9   : > { %v3750_v5 = vmax.f32 %v3654_v3, %v3702_v33  ;;  %v3698_v8 = vmax.f32 %v3508_v31, 0.0  ;;  %v7366_v3 = vld [vmem:[#allocation32_spill] sm:$0xff] }
 0x4da   : > { %v3659_v33 = vmax.f32 %v7366_v3, 0.0 }
 0x4db   : > { %v3821_v12 = vpack.c.bf16 %v3750_v5, %v3750_v5  ;;  %v3746_v7 = vmax.f32 %v3650_v32, %v3698_v8  ;;  %v3570_v32 = vadd.f32 %v3569_v27, %v7347_v52  ;;  %v3571_v46 = vpop.f32.mrf.mxu2 }
 0x4dc   : > { %v3610_v4 = vpop.f32.mrf.mxu3 }
 0x4dd   : > { %3854 = vst.msk [vmem:[%s4297_s19 + $0x68] sm:$0xf] %vm3837_vm6, %v3821_v12  ;;  %v3818_v60 = vpack.c.bf16 %v3746_v7, %v6948_v45  ;;  %v3611_v41 = vadd.f32 %v3610_v4, %v3562_v59  ;;  %v3471_v59 = vpop.f32.mrf.mxu0  ;;  %v3469_v7 = vadd.f32 %v3468_v6, %v6749_v18 }
 0x4de   : > { %v3510_v37 = vpop.f32.mrf.mxu1 }
 0x4df   : > { %3851 = vst [vmem:[%s4297_s19 + $0x54] sm:$0xff] %v3818_v60  ;;  %v3705_v63 = vmax.f32 %v3611_v41, 0.0  ;;  %v3511_v44 = vadd.f32 %v3510_v37, %v3462_v47  ;;  %v7368_v41 = vld [vmem:[#allocation11_spill] sm:$0xff] }
 0x4e0   : > { %v3666_v37 = vmax.f32 %v7368_v41, 0.0 }
 0x4e1   : > { %v3753_v9 = vmax.f32 %v3657_v26, %v3705_v63  ;;  %v3701_v36 = vmax.f32 %v3511_v44, 0.0  ;;  %v7369_v63 = vld [vmem:[#allocation41_spill] sm:$0xff] }
 0x4e2   : > { %v3662_v44 = vmax.f32 %v7369_v63, 0.0 }
 0x4e3   : > { %v3823_v48 = vpack.c.bf16 %v3753_v9, %v3753_v9  ;;  %v3749_v35 = vmax.f32 %v3653_v0, %v3701_v36  ;;  %v7370_v0 = vld [vmem:[#allocation42_spill] sm:$0xff] }
 0x4e4   : > { %v3613_v45 = vpop.f32.mrf.mxu3  ;;  %v3572_v9 = vadd.f32 %v3571_v46, %v7370_v0 }
 0x4e5   : > { %3856 = vst.msk [vmem:[%s4297_s19 + $0x74] sm:$0xf] %vm3837_vm6, %v3823_v48  ;;  %v3820_v23 = vpack.c.bf16 %v3749_v35, %v6961_v62  ;;  %v3614_v1 = vadd.f32 %v3613_v45, %v3565_v20  ;;  %v3574_v48 = vpop.f32.mrf.mxu2  ;;  %v3472_v35 = vadd.f32 %v3471_v59, %v7347_v52  ;;  %v7371_v45 = vld [vmem:[#allocation10_spill] sm:$0xff] }
 0x4e6   : > { %v3512_v53 = vpop.f32.mrf.mxu1  ;;  %v3575_v52 = vadd.f32 %v3574_v48, %v7353_v58 }
 0x4e7   : > { %3853 = vst [vmem:[%s4297_s19 + $0x60] sm:$0xff] %v3820_v23  ;;  %v3708_v17 = vmax.f32 %v3614_v1, 0.0  ;;  %v3513_v55 = vadd.f32 %v3512_v53, %v3464_v28  ;;  %v3473_v1 = vpop.f32.mrf.mxu0 }
 0x4e9   : > { %v3756_v19 = vmax.f32 %v3660_v54, %v3708_v17  ;;  %v3704_v42 = vmax.f32 %v3513_v55, 0.0  ;;  %v3669_v54 = vmax.f32 %v7022_v29, 0.0 }
 0x4eb   : > { %v3825_v22 = vpack.c.bf16 %v3756_v19, %v3756_v19  ;;  %v3752_v21 = vmax.f32 %v3656_v38, %v3704_v42  ;;  %v3665_v38 = vmax.f32 %v7372_v39, 0.0 }
 0x4ec   : > { %v3615_v62 = vpop.f32.mrf.mxu3 }
 0x4ed   : > { %3858 = vst.msk [vmem:[%s4297_s19 + $0x80] sm:$0xf] %vm3837_vm6, %v3825_v22  ;;  %v3822_v49 = vpack.c.bf16 %v3752_v21, %v7365_v34  ;;  %v3616_v10 = vadd.f32 %v3615_v62, %v3567_v25  ;;  %v3474_v22 = vadd.f32 %v3473_v1, %v7370_v0  ;;  %v7373_v21 = vld [vmem:[#allocation37_spill] sm:$0xff]  ;;  %v3672_v34 = vmax.f32 %v7029_v11, 0.0 }
 0x4ee   : > { %v3515_v50 = vpop.f32.mrf.mxu1  ;;  %v7375_v11 = vld [vmem:[#allocation29_spill] sm:$0xff] }
 0x4ef   : > { %3855 = vst [vmem:[%s4297_s19 + $0x6c] sm:$0xff] %v3822_v49  ;;  %v3711_v51 = vmax.f32 %v3616_v10, 0.0  ;;  %v3516_v13 = vadd.f32 %v3515_v50, %v3467_v40  ;;  %v3576_v50 = vpop.f32.mrf.mxu2 }
 0x4f1   : > { %v3759_v31 = vmax.f32 %v3663_v56, %v3711_v51  ;;  %v3707_v15 = vmax.f32 %v3516_v13, 0.0  ;;  %v3476_v56 = vpop.f32.mrf.mxu0  ;;  %v7374_v51 = vld [vmem:[#allocation17_spill] sm:$0xff] }
 0x4f2   : > { %v3668_v13 = vmax.f32 %v7374_v51, 0.0 }
 0x4f3   : > { %v3827_v5 = vpack.c.bf16 %v3759_v31, %v3759_v31  ;;  %v3755_v8 = vmax.f32 %v3659_v33, %v3707_v15  ;;  %v3577_v31 = vadd.f32 %v3576_v50, %v6815_v14 }
 0x4f4   : > { %v3618_v12 = vpop.f32.mrf.mxu3 }
 0x4f5   : > { %3860 = vst.msk [vmem:[%s4297_s19 + $0x8c] sm:$0xf] %vm3837_vm6, %v3827_v5  ;;  %v3824_v4 = vpack.c.bf16 %v3755_v8, %v7367_v57  ;;  %v3619_v47 = vadd.f32 %v3618_v12, %v3570_v32  ;;  %v3477_v5 = vadd.f32 %v3476_v56, %v7353_v58 }
 0x4f6   : > { %v3517_v60 = vpop.f32.mrf.mxu1 }
 0x4f7   : > { %3857 = vst [vmem:[%s4297_s19 + $0x78] sm:$0xff] %v3824_v4  ;;  %v3714_v26 = vmax.f32 %v3619_v47, 0.0  ;;  %v3518_v43 = vadd.f32 %v3517_v60, %v3469_v7  ;;  %v3675_v7 = vmax.f32 %v7038_v30, 0.0  ;;  %v7376_v47 = vld [vmem:[#allocation30_spill] sm:$0xff] }
 0x4f8   : > { %v3671_v60 = vmax.f32 %v7376_v47, 0.0 }
 0x4f9   : > { %v3762_v16 = vmax.f32 %v3666_v37, %v3714_v26  ;;  %v3710_v2 = vmax.f32 %v3518_v43, 0.0  ;;  %v3478_v26 = vpop.f32.mrf.mxu0 }
 0x4fa   : > { %v3479_v63 = vadd.f32 %v3478_v26, %v6815_v14 }
 0x4fb   : > { %v3829_v18 = vpack.c.bf16 %v3762_v16, %v3762_v16  ;;  %v3758_v36 = vmax.f32 %v3662_v44, %v3710_v2  ;;  %v7377_v2 = vld [vmem:[#allocation7_spill] sm:$0xff] }
 0x4fc   : > { %v3620_v20 = vpop.f32.mrf.mxu3  ;;  %v3674_v0 = vmax.f32 %v7377_v2, 0.0 }
 0x4fd   : > { %3862 = vst.msk [vmem:[%s4297_s19 + $0x98] sm:$0xf] %vm3837_vm6, %v3829_v18  ;;  %v3826_v28 = vpack.c.bf16 %v3758_v36, %v7371_v45  ;;  %v3621_v23 = vadd.f32 %v3620_v20, %v3572_v9 }
 0x4fe   : > { %v3520_v53 = vpop.f32.mrf.mxu1 }
 0x4ff   : > { %3859 = vst [vmem:[%s4297_s19 + $0x84] sm:$0xff] %v3826_v28  ;;  %v3717_v17 = vmax.f32 %v3621_v23, 0.0  ;;  %v3521_v55 = vadd.f32 %v3520_v53, %v3472_v35 }
 0x501   : > { %v3765_v27 = vmax.f32 %v3669_v54, %v3717_v17  ;;  %v3713_v19 = vmax.f32 %v3521_v55, 0.0 }
 0x503   : > { %v3831_v42 = vpack.c.bf16 %v3765_v27, %v3765_v27  ;;  %v3761_v6 = vmax.f32 %v3665_v38, %v3713_v19 }
 0x504   : > { %v3623_v25 = vpop.f32.mrf.mxu3 }
 0x505   : > { %3864 = vst.msk [vmem:[%s4297_s19 + $0xa4] sm:$0xf] %vm3837_vm6, %v3831_v42  ;;  %v3828_v62 = vpack.c.bf16 %v3761_v6, %v7373_v21  ;;  %v3624_v29 = vadd.f32 %v3623_v25, %v3575_v52 }
 0x506   : > { %v3522_v40 = vpop.f32.mrf.mxu1 }
 0x507   : > { %3861 = vst [vmem:[%s4297_s19 + $0x90] sm:$0xff] %v3828_v62  ;;  %v3720_v49 = vmax.f32 %v3624_v29, 0.0  ;;  %v3523_v10 = vadd.f32 %v3522_v40, %v3474_v22 }
 0x509   : > { %v3768_v3 = vmax.f32 %v3672_v34, %v3720_v49  ;;  %v3716_v33 = vmax.f32 %v3523_v10, 0.0 }
 0x50b   : > { %v3833_v15 = vpack.c.bf16 %v3768_v3, %v3768_v3  ;;  %v3764_v32 = vmax.f32 %v3668_v13, %v3716_v33 }
 0x50c   : > { %v3625_v46 = vpop.f32.mrf.mxu3 }
 0x50d   : > { %3866 = vst.msk [vmem:[%s4297_s19 + $0xb0] sm:$0xf] %vm3837_vm6, %v3833_v15  ;;  %v3830_v8 = vpack.c.bf16 %v3764_v32, %v7375_v11  ;;  %v3626_v59 = vadd.f32 %v3625_v46, %v3577_v31 }
 0x50e   : > { %v3525_v12 = vpop.f32.mrf.mxu1 }
 0x50f   : > { %3863 = vst [vmem:[%s4297_s19 + $0x9c] sm:$0xff] %v3830_v8  ;;  %v3723_v57 = vmax.f32 %v3626_v59, 0.0  ;;  %v3526_v4 = vadd.f32 %v3525_v12, %v3477_v5 }
 0x511   : > { %v3771_v41 = vmax.f32 %v3675_v7, %v3723_v57  ;;  %v3719_v37 = vmax.f32 %v3526_v4, 0.0 }
 0x513   : > { %v3835_v58 = vpack.c.bf16 %v3771_v41, %v3771_v41  ;;  %v3767_v43 = vmax.f32 %v3671_v60, %v3719_v37 }
 0x515   : > { %3868 = vst.msk [vmem:[%s4297_s19 + $0xbc] sm:$0xf] %vm3837_vm6, %v3835_v58  ;;  %v3832_v44 = vpack.c.bf16 %v3767_v43, %v7024_v61 }
 0x516   : > { %v3527_v16 = vpop.f32.mrf.mxu1 }
 0x517   : > { %3865 = vst [vmem:[%s4297_s19 + $0xa8] sm:$0xff] %v3832_v44  ;;  %v3528_v30 = vadd.f32 %v3527_v16, %v3479_v63 }
 0x519   : > { %v3722_v9 = vmax.f32 %v3528_v30, 0.0 }
 0x51b   : > { %v3770_v18 = vmax.f32 %v3674_v0, %v3722_v9 }
 0x51d   : > { %v3834_v36 = vpack.c.bf16 %v3770_v18, %v7031_v24 }
 0x51f   : > { %3867 = vst [vmem:[%s4297_s19 + $0xb4] sm:$0xff] %v3834_v36 }
 0x520 PF: > { %s18_s24 = sadd.s32 1, %s4224_s24  }
 0x521   : > { %p15_p7 = scmp.ge.s32.totalorder %s18_s24, 4  }
 0x523   :  { %17 = sbr.rel (!%p15_p7) target bundleno = 1 (0x1), region = 85 }
 0x528   :  { %3890 = vsyncpa [#allocation5], 1 }
 0x529   :  { %3892 = vsyncpa [#allocation5 + $0x1], 1 }

// kernel: cnn_forward.3
= control target key start
LH: loop header
LB: loop body
LE: loop exit
PB: predicated region body
PF: predicated region fallthrough
CT: control target
= control target key end

     0   :  { %s13174_s0 = inlined_call_operand.vmem [shape: bf16[2,49152], index: 0, kind: input, shape index: {}]   ;;  %s13175_s1 = inlined_call_operand.hbm [shape: bf16[49152,128], index: 1, kind: input, shape index: {}]   ;;  %s13176_s2 = inlined_call_operand.vmem [shape: f32[128,3], index: 2, kind: input, shape index: {}]   ;;  %s13177_s3 = inlined_call_operand.hbm [shape: f32[1,3], index: 3, kind: input, shape index: {}]   ;;  %s13178_s4 = inlined_call_operand.vmem [shape: f32[2,2,3], index: 4, kind: output, shape index: {}]  }
   0x1   :  { %13183 = sst [smem:[#allocation12_spill]] %s13176_s2 }
   0x2   :  { %13184 = sst [smem:[#allocation13_spill]] %s13177_s3 }
   0x3   :  { %9 = vsyncpa [#allocation4], 0 }
   0x4   :  { %11 = vsyncpa [#allocation4 + $0x1], 0 }
   0x5   :  { %12 = vsyncpa [#allocation6], 0  ;;  %s12172_s15 = smov 0   ;;  %s12174_s16 = smov 0  }
   0x6   :  { %s12176_s17 = smov 0   ;;  %s12178_s18 = smov 0  }
   0x7   :  { %s12180_s19 = smov 0   ;;  %s12182_s20 = smov 0  }
   0x8   :  { %s12184_s21 = smov 0   ;;  %s12186_s22 = smov 0  }
   0x9 LB: > { %13185 = sst [smem:[#allocation9_spill]] %s12133_s20  ;;  %s8064_s23 = sadd.s32 4294967295, %s12141_s22   ;;  %s12141_s22 = sphi %s12186_s22, %s18_s22   ;;  %s12137_s21 = sphi %s12184_s21, %s13201_s21   ;;  %s12133_s20 = sphi %s12182_s20, %s13200_s20   ;;  %s12129_s19 = sphi %s12180_s19, %s13196_s19   ;;  %s12125_s18 = sphi %s12178_s18, %s13195_s18   ;;  %s12121_s17 = sphi %s12176_s17, %s13199_s17   ;;  %s12117_s16 = sphi %s12174_s16, %s13198_s16   ;;  %s12113_s15 = sphi %s12172_s15, %s13197_s15  }
   0xa   : > { %13186 = sst [smem:[#allocation10_spill]] %s12137_s21  ;;  %p78_p0 = scmp.ne.s32.totalorder %s12121_s17, %s12117_s16 }
   0xb   : > { %13187 = sst [smem:[#allocation11_spill]] %s12141_s22  ;;  %p79_p1 = scmp.eq.s32.totalorder %s12141_s22, 0 }
   0xc   : > { %p84_p2 = scmp.ne.s32.totalorder %s12117_s16, %s12113_s15  ;;  %p12215_p3 = scmp.eq.s32.totalorder %s8064_s23, 0 }
   0xd   : > { %p8070_p4 = scmp.ge.s32.totalorder %s12141_s22, 1  ;;  %p80_p5 = por %p79_p1, %p78_p0 }
   0xe   : > { %p163_p6 = scmp.lt.s32.totalorder %s12141_s22, 5  ;;  %p12223_p7 = por %p12215_p3, %p84_p2 }
   0xf   : > { %s13191_s3 = sld [smem:[#allocation13_spill]]  ;;  %s12143_s30 = smov [#allocation5]  }
  0x10   : > { %p12227_p8 = pnand %p8070_p4, %p163_p6  ;;  %s180_s5 = sshll.u32 %s12143_s30, 4  ;;  %s181_s5 = int_to_ptr.vmem [resolvable:$true] %s180_s5 }
  0x11   : > { %p11941_p11 = scmp.lt.s32.totalorder %s12141_s22, 4  ;;  %s30_s7 = sadd.s32 1, %s12137_s21 }
  0x12   : > { %p11932_p9 = pneg %p12227_p8  ;;  %s27_s8 = sadd.s32 1, %s12133_s20 }
  0x13   : > { %p12239_p12 = pnand %p11941_p11, %p80_p5  ;;  %s8068_s9 = sshll.u32 %s12137_s21, 1 }
  0x14   : > { %p11933_p10 = pnand %p11932_p9, %p12215_p3  ;;  %p28_p13 = scmp.ge.s32.totalorder %s27_s8, 2 }
  0x15   : > { %s178_s29 = sshll.u32 %s13191_s3, 4  ;;  %s65_s10 = sadd.s32 %s12133_s20, %s8068_s9  ;;  %s179_s29 = int_to_ptr.hbm [resolvable:$true] %s178_s29 }
  0x16   : > { %11935 = dma.hbm_to_vmem [thread:$0]  (!%p11933_p10), %s179_s29, 16, %s181_s5, [#allocation6]  }
  0x17   : > { %s71_s11 = sadd.s32 1, %s12121_s17  ;;  %s203_s12 = sand.u32 1, %s12121_s17  }
  0x18   : > { %s13203_s8 = smov (%p28_p13, %s27_s8), 0  ;;  %s13205_s7 = smov (!%p28_p13, %s30_s7), %s12137_s21 }
  0x19   : > { %s11924_s13 = smul.u32 6144, %s203_s12  ;;  %p32_p0 = scmp.ge.s32.totalorder %s13205_s7, 2 }
  0x1a   : > { %s11155_s14 = smul.u32 6144, %s65_s10  ;;  %s204_s21 = scalar_lea.sflag [#allocation4], %s203_s12 }
  0x1b   : > { %s13207_s7 = smov (%p32_p0, %s13205_s7), 0  ;;  %s207_s28 = scalar_lea.vmem [#allocation3], %s11924_s13 }
  0x1c   : > { %s214_s27 = scalar_lea.hbm %s13175_s1, %s11155_s14  ;;  %s217_s29 = sshll.u32 %s207_s28, 4  ;;  %s218_s29 = int_to_ptr.vmem [resolvable:$true] %s217_s29 }
  0x1d   : > { %s8069_s30 = sshll.u32 %s13207_s7, 1  ;;  %s215_s5 = sshll.u32 %s214_s27, 4  ;;  %s216_s5 = int_to_ptr.hbm [resolvable:$true] %s215_s5 }
  0x1e   : > { %s67_s9 = sadd.s32 %s8069_s30, %s13203_s8  ;;  %s12144_s20 = smov 64  }
  0x1f   : > { %s68_s3 = ssub.s32 %s65_s10, %s67_s9  ;;  %s12145_s22 = smov 4  }
  0x20   : > { %p69_p1 = scmp.eq.s32.totalorder %s68_s3, 0  ;;  %229 = sbr.rel (%p12227_p8) target bundleno = 1125 (0x465), region = 36 }
  0x21   : > { %11939 = dma.hbm_to_vmem [thread:$0]  (!%p12239_p12), %s216_s5, 98304, %s218_s29, %s204_s21, %s12144_s20, %s12144_s20, %s12145_s22  }
  0x22   : > { %s12262_s2 = scalar_select %p69_p1, %s12121_s17, %s71_s11  }
  0x23   : > { %s231_s13 = sand.u32 (!%p12227_p8), 1, %s12117_s16  }
  0x24   : > { %s11925_s14 = smul.u32 (!%p12227_p8), 6144, %s231_s13  ;;  %s232_s15 = scalar_lea.sflag (!%p12227_p8), [#allocation4], %s231_s13 }
  0x26   : > { %s12267_s23 = scalar_lea.vmem [#allocation3], %s11925_s14 }
  0x27   : > { %12104 = dma.done.wait (%p12223_p7), %s232_s15, 98304  }
  0x28   : > { %12106 = vsyncadd (%p12223_p7), %s232_s15, 4294868992 }
  0x29   : > { %12108 = dma.done.wait (%p12215_p3), [#allocation6], 16  }
  0x2a   : > { %12110 = vsyncadd (%p12215_p3), [#allocation6], 4294967280  ;;  %s8077_s3 = sshll.u32 %s12129_s19, 1  ;;  %p283_p2 = scmp.lt.s32.totalorder %s12129_s19, 1 }
  0x2b   : > { %s272_s20 = sadd.s32 %s12125_s18, %s8077_s3  ;;  %p8079_p3 = scmp.ne.s32.totalorder %s12125_s18, 0 }
  0x2c   : > { %s273_s21 = smul.u32 96, %s272_s20 }
  0x2d   : > { %s284_s22 = scalar_select %p283_p2, %s12129_s19, 1 }
  0x2e   : > { %p274_p4 = scmp.lt.s32.totalorder %s273_s21, 383  ;;  %290 = sbr.rel (%p8079_p3) target bundleno = 53 (0x35), region = 48 }
  0x2f   : > { %s8078_s26 = sshll.u32 %s284_s22, 1 }
  0x30   : > { %s13209_s21 = smov (!%p274_p4, %s273_s21), 383  ;;  %s12284_s10 = scalar_lea.vmem %s13178_s4, %s8078_s26 }
  0x31   : > { %s12289_s12 = scalar_lea.vmem %s13174_s0, %s13209_s21 }
  0x33   : > { %v12146_v0 = vmov 0.0  }
  0x34   : > { %291 = vst [vmem:[#allocation2] sm:$0x3] %v12146_v0 }
  0x35 PF: > { %v11163_v1 = vld [vmem:[%s12267_s23 + $0x38] sm:$0xff]  ;;  %v11162_v5 = vld [vmem:[%s12267_s23 + $0x30] sm:$0xff]  ;;  %v11161_v9 = vld [vmem:[%s12267_s23 + $0x28] sm:$0xff]  ;;  %p11152_p5 = scmp.ne.s32.totalorder %s12125_s18, 1 }
  0x36   : > { %v11171_v2 = vld [vmem:[%s12267_s23 + $0x78] sm:$0xff]  ;;  %6665 = vmatpush.bf16.msra.mxu0 %v11163_v1  ;;  %v11170_v6 = vld [vmem:[%s12267_s23 + $0x70] sm:$0xff]  ;;  %v11169_v10 = vld [vmem:[%s12267_s23 + $0x68] sm:$0xff]  ;;  %s13193_s29 = sld [smem:[#allocation12_spill]] (!%p11152_p5)  ;;  %p7936_p6 = scmp.eq.s32.totalorder (!%p11152_p5), %s12129_s19, 0 }
  0x37   : > { %v11179_v3 = vld [vmem:[%s12267_s23 + $0xb8] sm:$0xff]  ;;  %6678 = vmatpush.bf16.msra.mxu1 %v11171_v2  ;;  %v11178_v7 = vld [vmem:[%s12267_s23 + $0xb0] sm:$0xff]  ;;  %v11177_v11 = vld [vmem:[%s12267_s23 + $0xa8] sm:$0xff] }
  0x38   : > { %v11187_v4 = vld [vmem:[%s12267_s23 + $0xf8] sm:$0xff]  ;;  %6691 = vmatpush.bf16.msra.mxu2 %v11179_v3  ;;  %v11186_v8 = vld [vmem:[%s12267_s23 + $0xf0] sm:$0xff]  ;;  %v11185_v12 = vld [vmem:[%s12267_s23 + $0xe8] sm:$0xff] }
  0x39   : > { %6704 = vmatpush.bf16.msra.mxu3 %v11187_v4  ;;  %v11160_v13 = vld [vmem:[%s12267_s23 + $0x20] sm:$0xff]  ;;  %v11159_v17 = vld [vmem:[%s12267_s23 + $0x18] sm:$0xff]  ;;  %v11158_v22 = vld [vmem:[%s12267_s23 + $0x10] sm:$0xff] }
  0x3a   : > { %6666 = vmatpush.bf16.msra.mxu0 %v11162_v5  ;;  %v11168_v14 = vld [vmem:[%s12267_s23 + $0x60] sm:$0xff]  ;;  %v11167_v18 = vld [vmem:[%s12267_s23 + $0x58] sm:$0xff]  ;;  %v11166_v23 = vld [vmem:[%s12267_s23 + $0x50] sm:$0xff] }
  0x3b   : > { %6679 = vmatpush.bf16.msra.mxu1 %v11170_v6  ;;  %v11176_v15 = vld [vmem:[%s12267_s23 + $0xa0] sm:$0xff]  ;;  %v11175_v19 = vld [vmem:[%s12267_s23 + $0x98] sm:$0xff]  ;;  %v11174_v24 = vld [vmem:[%s12267_s23 + $0x90] sm:$0xff] }
  0x3c   : > { %6692 = vmatpush.bf16.msra.mxu2 %v11178_v7  ;;  %v11184_v16 = vld [vmem:[%s12267_s23 + $0xe0] sm:$0xff]  ;;  %v11183_v20 = vld [vmem:[%s12267_s23 + $0xd8] sm:$0xff]  ;;  %v11182_v25 = vld [vmem:[%s12267_s23 + $0xd0] sm:$0xff] }
  0x3d   : > { %6705 = vmatpush.bf16.msra.mxu3 %v11186_v8  ;;  %v293_v21 = vld [vmem:[%s12289_s12] sm:$0xff]  ;;  %v11157_v26 = vld [vmem:[%s12267_s23 + $0x8] sm:$0xff]  ;;  %v11156_v30 = vld [vmem:[%s12267_s23] sm:$0xff] }
  0x3e   : > { %6667 = vmatpush.bf16.msra.mxu0 %v11161_v9  ;;  %1842 = vst [vmem:[#allocation1] ss:$9 sm:$0xff] %v293_v21  ;;  %v11165_v27 = vld [vmem:[%s12267_s23 + $0x48] sm:$0xff]  ;;  %v11164_v31 = vld [vmem:[%s12267_s23 + $0x40] sm:$0xff]  ;;  %v11195_v34 = vld [vmem:[%s12267_s23 + $0x138] sm:$0xff] }
  0x3f   : > { %6680 = vmatpush.bf16.msra.mxu1 %v11169_v10  ;;  %v11173_v28 = vld [vmem:[%s12267_s23 + $0x88] sm:$0xff]  ;;  %v11172_v32 = vld [vmem:[%s12267_s23 + $0x80] sm:$0xff]  ;;  %v11203_v35 = vld [vmem:[%s12267_s23 + $0x178] sm:$0xff] }
  0x40   : > { %6693 = vmatpush.bf16.msra.mxu2 %v11177_v11  ;;  %v11181_v29 = vld [vmem:[%s12267_s23 + $0xc8] sm:$0xff]  ;;  %v11180_v33 = vld [vmem:[%s12267_s23 + $0xc0] sm:$0xff]  ;;  %v11211_v36 = vld [vmem:[%s12267_s23 + $0x1b8] sm:$0xff] }
  0x41   : > { %6706 = vmatpush.bf16.msra.mxu3 %v11185_v12  ;;  %v11219_v37 = vld [vmem:[%s12267_s23 + $0x1f8] sm:$0xff]  ;;  %v11194_v38 = vld [vmem:[%s12267_s23 + $0x130] sm:$0xff]  ;;  %v11193_v46 = vld [vmem:[%s12267_s23 + $0x128] sm:$0xff] }
  0x42   : > { %6668 = vmatpush.bf16.msra.mxu0 %v11160_v13  ;;  %v11202_v41 = vld [vmem:[%s12267_s23 + $0x170] sm:$0xff]  ;;  %v11201_v47 = vld [vmem:[%s12267_s23 + $0x168] sm:$0xff]  ;;  %v11192_v50 = vld [vmem:[%s12267_s23 + $0x120] sm:$0xff] }
  0x43   : > { %6681 = vmatpush.bf16.msra.mxu1 %v11168_v14  ;;  %v11210_v44 = vld [vmem:[%s12267_s23 + $0x1b0] sm:$0xff]  ;;  %v11209_v48 = vld [vmem:[%s12267_s23 + $0x1a8] sm:$0xff]  ;;  %v11200_v51 = vld [vmem:[%s12267_s23 + $0x160] sm:$0xff] }
  0x44   : > { %6694 = vmatpush.bf16.msra.mxu2 %v11176_v15  ;;  %v11218_v45 = vld [vmem:[%s12267_s23 + $0x1f0] sm:$0xff]  ;;  %v11217_v49 = vld [vmem:[%s12267_s23 + $0x1e8] sm:$0xff]  ;;  %v11208_v52 = vld [vmem:[%s12267_s23 + $0x1a0] sm:$0xff] }
  0x45   : > { %6707 = vmatpush.bf16.msra.mxu3 %v11184_v16  ;;  %v1845_v39 = vld [vmem:[#allocation1 + $0x12] sm:$0xff]  ;;  %v1843_v40 = vld [vmem:[#allocation1] sm:$0xff]  ;;  %v1844_v43 = vld [vmem:[#allocation1 + $0x9] sm:$0xff] }
  0x46   : > { %6669 = vmatpush.bf16.msra.mxu0 %v11159_v17  ;;  %v1846_v42 = vld [vmem:[#allocation1 + $0x1b] sm:$0xff]  ;;  %v11216_v53 = vld [vmem:[%s12267_s23 + $0x1e0] sm:$0xff]  ;;  %v11189_v62 = vld [vmem:[%s12267_s23 + $0x108] sm:$0xff] }
  0x47   : > { %6682 = vmatpush.bf16.msra.mxu1 %v11167_v18  ;;  %v11191_v54 = vld [vmem:[%s12267_s23 + $0x118] sm:$0xff]  ;;  %v11190_v58 = vld [vmem:[%s12267_s23 + $0x110] sm:$0xff]  ;;  %v11197_v63 = vld [vmem:[%s12267_s23 + $0x148] sm:$0xff] }
  0x48   : > { %6695 = vmatpush.bf16.msra.mxu2 %v11175_v19  ;;  %v11199_v55 = vld [vmem:[%s12267_s23 + $0x158] sm:$0xff]  ;;  %v11198_v59 = vld [vmem:[%s12267_s23 + $0x150] sm:$0xff]  ;;  %v11205_v0 = vld [vmem:[%s12267_s23 + $0x188] sm:$0xff] }
  0x49   : > { %6708 = vmatpush.bf16.msra.mxu3 %v11183_v20  ;;  %v11207_v56 = vld [vmem:[%s12267_s23 + $0x198] sm:$0xff]  ;;  %v11206_v60 = vld [vmem:[%s12267_s23 + $0x190] sm:$0xff]  ;;  %v11213_v1 = vld [vmem:[%s12267_s23 + $0x1c8] sm:$0xff] }
  0x4a   : > { %6670 = vmatpush.bf16.msra.mxu0 %v11158_v22  ;;  %v11215_v57 = vld [vmem:[%s12267_s23 + $0x1d8] sm:$0xff]  ;;  %v11214_v61 = vld [vmem:[%s12267_s23 + $0x1d0] sm:$0xff]  ;;  %v1848_v5 = vld [vmem:[#allocation1 + $0x2d] sm:$0xff] }
  0x4b   : > { %6683 = vmatpush.bf16.msra.mxu1 %v11166_v23  ;;  %v1849_v2 = vld [vmem:[#allocation1 + $0x36] sm:$0xff]  ;;  %v1847_v3 = vld [vmem:[#allocation1 + $0x24] sm:$0xff] }
  0x4c   : > { %6696 = vmatpush.bf16.msra.mxu2 %v11174_v24  ;;  %v1850_v4 = vld [vmem:[#allocation1 + $0x3f] sm:$0xff]  ;;  %v294_v6 = vld [vmem:[%s12289_s12 + $0x8] sm:$0xff]  ;;  %v11225_v19 = vld [vmem:[%s12267_s23 + $0x228] sm:$0xff] }
  0x4d   : > { %6709 = vmatpush.bf16.msra.mxu3 %v11182_v25  ;;  %1852 = vst [vmem:[#allocation1] ss:$9 sm:$0xff] %v294_v6  ;;  %v11188_v7 = vld [vmem:[%s12267_s23 + $0x100] sm:$0xff]  ;;  %v11227_v11 = vld [vmem:[%s12267_s23 + $0x238] sm:$0xff]  ;;  %v11226_v15 = vld [vmem:[%s12267_s23 + $0x230] sm:$0xff] }
  0x4e   : > { %6671 = vmatpush.bf16.msra.mxu0 %v11157_v26  ;;  %v11196_v8 = vld [vmem:[%s12267_s23 + $0x140] sm:$0xff]  ;;  %v11235_v12 = vld [vmem:[%s12267_s23 + $0x278] sm:$0xff]  ;;  %v11234_v16 = vld [vmem:[%s12267_s23 + $0x270] sm:$0xff] }
  0x4f   : > { %6684 = vmatpush.bf16.msra.mxu1 %v11165_v27  ;;  %v11204_v9 = vld [vmem:[%s12267_s23 + $0x180] sm:$0xff]  ;;  %v11243_v13 = vld [vmem:[%s12267_s23 + $0x2b8] sm:$0xff]  ;;  %v11242_v17 = vld [vmem:[%s12267_s23 + $0x2b0] sm:$0xff] }
  0x50   : > { %6697 = vmatpush.bf16.msra.mxu2 %v11173_v28  ;;  %v11212_v10 = vld [vmem:[%s12267_s23 + $0x1c0] sm:$0xff]  ;;  %v11251_v14 = vld [vmem:[%s12267_s23 + $0x2f8] sm:$0xff]  ;;  %v11250_v18 = vld [vmem:[%s12267_s23 + $0x2f0] sm:$0xff] }
  0x51   : > { %6710 = vmatpush.bf16.msra.mxu3 %v11181_v29  ;;  %v11233_v20 = vld [vmem:[%s12267_s23 + $0x268] sm:$0xff]  ;;  %v11224_v23 = vld [vmem:[%s12267_s23 + $0x220] sm:$0xff]  ;;  %v11223_v27 = vld [vmem:[%s12267_s23 + $0x218] sm:$0xff] }
  0x52   : > { %6672 = vmatpush.bf16.msra.mxu0 %v11156_v30  ;;  %v11241_v21 = vld [vmem:[%s12267_s23 + $0x2a8] sm:$0xff]  ;;  %v11232_v24 = vld [vmem:[%s12267_s23 + $0x260] sm:$0xff]  ;;  %v11231_v28 = vld [vmem:[%s12267_s23 + $0x258] sm:$0xff] }
  0x53   : > { %6685 = vmatpush.bf16.msra.mxu1 %v11164_v31  ;;  %v11249_v22 = vld [vmem:[%s12267_s23 + $0x2e8] sm:$0xff]  ;;  %v11240_v25 = vld [vmem:[%s12267_s23 + $0x2a0] sm:$0xff]  ;;  %v11239_v29 = vld [vmem:[%s12267_s23 + $0x298] sm:$0xff] }
  0x54   : > { %6698 = vmatpush.bf16.msra.mxu2 %v11172_v32  ;;  %v11248_v26 = vld [vmem:[%s12267_s23 + $0x2e0] sm:$0xff]  ;;  %v11247_v30 = vld [vmem:[%s12267_s23 + $0x2d8] sm:$0xff]  ;;  %v11222_v31 = vld [vmem:[%s12267_s23 + $0x210] sm:$0xff] }
  0x55   : > { %6711 = vmatpush.bf16.msra.mxu3 %v11180_v33  ;;  %6673 = vmatmul.bf16.vlgmr.msra.gmra.mxu0 %v1843_v40  ;;  %v11230_v32 = vld [vmem:[%s12267_s23 + $0x250] sm:$0xff]  ;;  %v11228_v40 = vld [vmem:[%s12267_s23 + $0x240] sm:$0xff] }
  0x56   : > { %6717 = vmatpush.bf16.msrb.mxu0 %v11195_v34  ;;  %6686 = vmatmul.bf16.vlgmr.msra.gmra.mxu1 %v1844_v43  ;;  %v11238_v33 = vld [vmem:[%s12267_s23 + $0x290] sm:$0xff]  ;;  %v11259_v43 = vld [vmem:[%s12267_s23 + $0x338] sm:$0xff] }
  0x57   : > { %6730 = vmatpush.bf16.msrb.mxu1 %v11203_v35  ;;  %6699 = vmatmul.bf16.vlgmr.msra.gmra.mxu2 %v1845_v39  ;;  %v11246_v34 = vld [vmem:[%s12267_s23 + $0x2d0] sm:$0xff]  ;;  %v11221_v35 = vld [vmem:[%s12267_s23 + $0x208] sm:$0xff]  ;;  %v11220_v39 = vld [vmem:[%s12267_s23 + $0x200] sm:$0xff] }
  0x58   : > { %6743 = vmatpush.bf16.msrb.mxu2 %v11211_v36  ;;  %6712 = vmatmul.bf16.vlgmr.msra.gmra.mxu3 %v1846_v42  ;;  %v11229_v36 = vld [vmem:[%s12267_s23 + $0x248] sm:$0xff]  ;;  %v11244_v42 = vld [vmem:[%s12267_s23 + $0x2c0] sm:$0xff]  ;;  %v11278_v6 = vld [vmem:[%s12267_s23 + $0x3d0] sm:$0xff] }
  0x59   : > { %6756 = vmatpush.bf16.msrb.mxu3 %v11219_v37  ;;  %v11237_v37 = vld [vmem:[%s12267_s23 + $0x288] sm:$0xff] }
  0x5a   : > { %6718 = vmatpush.bf16.msrb.mxu0 %v11194_v38  ;;  %v11245_v38 = vld [vmem:[%s12267_s23 + $0x2c8] sm:$0xff] }
  0x5b   : > { %6731 = vmatpush.bf16.msrb.mxu1 %v11202_v41  ;;  %v11236_v41 = vld [vmem:[%s12267_s23 + $0x280] sm:$0xff] }
  0x5c   : > { %6744 = vmatpush.bf16.msrb.mxu2 %v11210_v44  ;;  %v11267_v44 = vld [vmem:[%s12267_s23 + $0x378] sm:$0xff] }
  0x5d   : > { %6757 = vmatpush.bf16.msrb.mxu3 %v11218_v45  ;;  %v11275_v45 = vld [vmem:[%s12267_s23 + $0x3b8] sm:$0xff] }
  0x5e   : > { %6719 = vmatpush.bf16.msrb.mxu0 %v11193_v46  ;;  %v11283_v46 = vld [vmem:[%s12267_s23 + $0x3f8] sm:$0xff] }
  0x5f   : > { %6732 = vmatpush.bf16.msrb.mxu1 %v11201_v47  ;;  %v1853_v47 = vld [vmem:[#allocation1] sm:$0xff] }
  0x60   : > { %6745 = vmatpush.bf16.msrb.mxu2 %v11209_v48  ;;  %v1855_v48 = vld [vmem:[#allocation1 + $0x12] sm:$0xff] }
  0x61   : > { %6758 = vmatpush.bf16.msrb.mxu3 %v11217_v49  ;;  %v1854_v49 = vld [vmem:[#allocation1 + $0x9] sm:$0xff] }
  0x62   : > { %6720 = vmatpush.bf16.msrb.mxu0 %v11192_v50  ;;  %v1856_v50 = vld [vmem:[#allocation1 + $0x1b] sm:$0xff] }
  0x63   : > { %6733 = vmatpush.bf16.msrb.mxu1 %v11200_v51  ;;  %v11258_v51 = vld [vmem:[%s12267_s23 + $0x330] sm:$0xff] }
  0x64   : > { %6746 = vmatpush.bf16.msrb.mxu2 %v11208_v52  ;;  %v11266_v52 = vld [vmem:[%s12267_s23 + $0x370] sm:$0xff] }
  0x65   : > { %6759 = vmatpush.bf16.msrb.mxu3 %v11216_v53  ;;  %v11274_v53 = vld [vmem:[%s12267_s23 + $0x3b0] sm:$0xff] }
  0x66   : > { %6721 = vmatpush.bf16.msrb.mxu0 %v11191_v54  ;;  %v11282_v54 = vld [vmem:[%s12267_s23 + $0x3f0] sm:$0xff] }
  0x67   : > { %6734 = vmatpush.bf16.msrb.mxu1 %v11199_v55  ;;  %v11257_v55 = vld [vmem:[%s12267_s23 + $0x328] sm:$0xff] }
  0x68   : > { %6747 = vmatpush.bf16.msrb.mxu2 %v11207_v56  ;;  %v11265_v56 = vld [vmem:[%s12267_s23 + $0x368] sm:$0xff] }
  0x69   : > { %6760 = vmatpush.bf16.msrb.mxu3 %v11215_v57  ;;  %v11273_v57 = vld [vmem:[%s12267_s23 + $0x3a8] sm:$0xff] }
  0x6a   : > { %6722 = vmatpush.bf16.msrb.mxu0 %v11190_v58  ;;  %v11281_v58 = vld [vmem:[%s12267_s23 + $0x3e8] sm:$0xff] }
  0x6b   : > { %6735 = vmatpush.bf16.msrb.mxu1 %v11198_v59  ;;  %v11256_v59 = vld [vmem:[%s12267_s23 + $0x320] sm:$0xff] }
  0x6c   : > { %6748 = vmatpush.bf16.msrb.mxu2 %v11206_v60  ;;  %v11264_v60 = vld [vmem:[%s12267_s23 + $0x360] sm:$0xff] }
  0x6d   : > { %6761 = vmatpush.bf16.msrb.mxu3 %v11214_v61  ;;  %v11272_v61 = vld [vmem:[%s12267_s23 + $0x3a0] sm:$0xff] }
  0x6e   : > { %6723 = vmatpush.bf16.msrb.mxu0 %v11189_v62  ;;  %v11280_v62 = vld [vmem:[%s12267_s23 + $0x3e0] sm:$0xff] }
  0x6f   : > { %6736 = vmatpush.bf16.msrb.mxu1 %v11197_v63  ;;  %v11255_v63 = vld [vmem:[%s12267_s23 + $0x318] sm:$0xff] }
  0x70   : > { %6749 = vmatpush.bf16.msrb.mxu2 %v11205_v0  ;;  %v11263_v0 = vld [vmem:[%s12267_s23 + $0x358] sm:$0xff] }
  0x71   : > { %6762 = vmatpush.bf16.msrb.mxu3 %v11213_v1  ;;  %v11271_v1 = vld [vmem:[%s12267_s23 + $0x398] sm:$0xff] }
  0x72   : > { %6724 = vmatpush.bf16.msrb.mxu0 %v11188_v7  ;;  %v11253_v7 = vld [vmem:[%s12267_s23 + $0x308] sm:$0xff] }
  0x73   : > { %6737 = vmatpush.bf16.msrb.mxu1 %v11196_v8  ;;  %v11261_v8 = vld [vmem:[%s12267_s23 + $0x348] sm:$0xff] }
  0x74   : > { %6750 = vmatpush.bf16.msrb.mxu2 %v11204_v9  ;;  %v11269_v9 = vld [vmem:[%s12267_s23 + $0x388] sm:$0xff] }
  0x75   : > { %6763 = vmatpush.bf16.msrb.mxu3 %v11212_v10  ;;  %6725 = vmatmul.bf16.vlgmr.msrb.gmra.mxu0 %v1847_v3  ;;  %v11254_v3 = vld [vmem:[%s12267_s23 + $0x310] sm:$0xff]  ;;  %v11277_v10 = vld [vmem:[%s12267_s23 + $0x3c8] sm:$0xff] }
  0x76   : > { %6769 = vmatpush.bf16.msra.mxu0 %v11227_v11  ;;  %6738 = vmatmul.bf16.vlgmr.msrb.gmra.mxu1 %v1848_v5  ;;  %v11270_v5 = vld [vmem:[%s12267_s23 + $0x390] sm:$0xff]  ;;  %v1857_v11 = vld [vmem:[#allocation1 + $0x24] sm:$0xff] }
  0x77   : > { %6782 = vmatpush.bf16.msra.mxu1 %v11235_v12  ;;  %6751 = vmatmul.bf16.vlgmr.msrb.gmra.mxu2 %v1849_v2  ;;  %v11279_v2 = vld [vmem:[%s12267_s23 + $0x3d8] sm:$0xff]  ;;  %v1859_v12 = vld [vmem:[#allocation1 + $0x36] sm:$0xff] }
  0x78   : > { %6795 = vmatpush.bf16.msra.mxu2 %v11243_v13  ;;  %6764 = vmatmul.bf16.vlgmr.msrb.gmra.mxu3 %v1850_v4  ;;  %v11262_v4 = vld [vmem:[%s12267_s23 + $0x350] sm:$0xff]  ;;  %v1858_v13 = vld [vmem:[#allocation1 + $0x2d] sm:$0xff] }
  0x79   : > { %6808 = vmatpush.bf16.msra.mxu3 %v11251_v14  ;;  %v1860_v14 = vld [vmem:[#allocation1 + $0x3f] sm:$0xff] }
  0x7a   : > { %6770 = vmatpush.bf16.msra.mxu0 %v11226_v15  ;;  %v295_v15 = vld [vmem:[%s12289_s12 + $0x10] sm:$0xff] }
  0x7b   : > { %6783 = vmatpush.bf16.msra.mxu1 %v11234_v16  ;;  %1862 = vst [vmem:[#allocation1] ss:$9 sm:$0xff] %v295_v15  ;;  %v11252_v16 = vld [vmem:[%s12267_s23 + $0x300] sm:$0xff] }
  0x7c   : > { %6796 = vmatpush.bf16.msra.mxu2 %v11242_v17  ;;  %v11260_v17 = vld [vmem:[%s12267_s23 + $0x340] sm:$0xff] }
  0x7d   : > { %6809 = vmatpush.bf16.msra.mxu3 %v11250_v18  ;;  %v11268_v18 = vld [vmem:[%s12267_s23 + $0x380] sm:$0xff] }
  0x7e   : > { %6771 = vmatpush.bf16.msra.mxu0 %v11225_v19  ;;  %v11276_v19 = vld [vmem:[%s12267_s23 + $0x3c0] sm:$0xff] }
  0x7f   : > { %6784 = vmatpush.bf16.msra.mxu1 %v11233_v20  ;;  %v11291_v20 = vld [vmem:[%s12267_s23 + $0x438] sm:$0xff] }
  0x80   : > { %6797 = vmatpush.bf16.msra.mxu2 %v11241_v21  ;;  %v11299_v21 = vld [vmem:[%s12267_s23 + $0x478] sm:$0xff] }
  0x81   : > { %6810 = vmatpush.bf16.msra.mxu3 %v11249_v22  ;;  %v11307_v22 = vld [vmem:[%s12267_s23 + $0x4b8] sm:$0xff] }
  0x82   : > { %6772 = vmatpush.bf16.msra.mxu0 %v11224_v23  ;;  %v11315_v23 = vld [vmem:[%s12267_s23 + $0x4f8] sm:$0xff] }
  0x83   : > { %6785 = vmatpush.bf16.msra.mxu1 %v11232_v24  ;;  %v11290_v24 = vld [vmem:[%s12267_s23 + $0x430] sm:$0xff] }
  0x84   : > { %6798 = vmatpush.bf16.msra.mxu2 %v11240_v25  ;;  %v11298_v25 = vld [vmem:[%s12267_s23 + $0x470] sm:$0xff] }
  0x85   : > { %6811 = vmatpush.bf16.msra.mxu3 %v11248_v26  ;;  %v11306_v26 = vld [vmem:[%s12267_s23 + $0x4b0] sm:$0xff] }
  0x86   : > { %6773 = vmatpush.bf16.msra.mxu0 %v11223_v27  ;;  %v11314_v27 = vld [vmem:[%s12267_s23 + $0x4f0] sm:$0xff] }
  0x87   : > { %6786 = vmatpush.bf16.msra.mxu1 %v11231_v28  ;;  %v11289_v28 = vld [vmem:[%s12267_s23 + $0x428] sm:$0xff] }
  0x88   : > { %6799 = vmatpush.bf16.msra.mxu2 %v11239_v29  ;;  %v11297_v29 = vld [vmem:[%s12267_s23 + $0x468] sm:$0xff] }
  0x89   : > { %6812 = vmatpush.bf16.msra.mxu3 %v11247_v30  ;;  %v11305_v30 = vld [vmem:[%s12267_s23 + $0x4a8] sm:$0xff] }
  0x8a   : > { %6774 = vmatpush.bf16.msra.mxu0 %v11222_v31  ;;  %v11313_v31 = vld [vmem:[%s12267_s23 + $0x4e8] sm:$0xff] }
  0x8b   : > { %6787 = vmatpush.bf16.msra.mxu1 %v11230_v32  ;;  %v11288_v32 = vld [vmem:[%s12267_s23 + $0x420] sm:$0xff] }
  0x8c   : > { %6800 = vmatpush.bf16.msra.mxu2 %v11238_v33  ;;  %v11296_v33 = vld [vmem:[%s12267_s23 + $0x460] sm:$0xff] }
  0x8d   : > { %6813 = vmatpush.bf16.msra.mxu3 %v11246_v34  ;;  %v11304_v34 = vld [vmem:[%s12267_s23 + $0x4a0] sm:$0xff] }
  0x8e   : > { %6775 = vmatpush.bf16.msra.mxu0 %v11221_v35  ;;  %v11312_v35 = vld [vmem:[%s12267_s23 + $0x4e0] sm:$0xff] }
  0x8f   : > { %6788 = vmatpush.bf16.msra.mxu1 %v11229_v36  ;;  %v11287_v36 = vld [vmem:[%s12267_s23 + $0x418] sm:$0xff] }
  0x90   : > { %6801 = vmatpush.bf16.msra.mxu2 %v11237_v37  ;;  %v11295_v37 = vld [vmem:[%s12267_s23 + $0x458] sm:$0xff] }
  0x91   : > { %6814 = vmatpush.bf16.msra.mxu3 %v11245_v38  ;;  %v11303_v38 = vld [vmem:[%s12267_s23 + $0x498] sm:$0xff] }
  0x92   : > { %6776 = vmatpush.bf16.msra.mxu0 %v11220_v39  ;;  %v11311_v39 = vld [vmem:[%s12267_s23 + $0x4d8] sm:$0xff] }
  0x93   : > { %6789 = vmatpush.bf16.msra.mxu1 %v11228_v40  ;;  %v11286_v40 = vld [vmem:[%s12267_s23 + $0x410] sm:$0xff] }
  0x94   : > { %6802 = vmatpush.bf16.msra.mxu2 %v11236_v41  ;;  %v11294_v41 = vld [vmem:[%s12267_s23 + $0x450] sm:$0xff] }
  0x95   : > { %6815 = vmatpush.bf16.msra.mxu3 %v11244_v42  ;;  %6777 = vmatmul.bf16.vlgmr.msra.gmra.mxu0 %v1853_v47  ;;  %v11302_v42 = vld [vmem:[%s12267_s23 + $0x490] sm:$0xff]  ;;  %v11309_v47 = vld [vmem:[%s12267_s23 + $0x4c8] sm:$0xff] }
  0x96   : > { %6821 = vmatpush.bf16.msrb.mxu0 %v11259_v43  ;;  %6790 = vmatmul.bf16.vlgmr.msra.gmra.mxu1 %v1854_v49  ;;  %v11310_v43 = vld [vmem:[%s12267_s23 + $0x4d0] sm:$0xff]  ;;  %v11292_v49 = vld [vmem:[%s12267_s23 + $0x440] sm:$0xff] }
  0x97   : > { %6834 = vmatpush.bf16.msrb.mxu1 %v11267_v44  ;;  %6803 = vmatmul.bf16.vlgmr.msra.gmra.mxu2 %v1855_v48  ;;  %v11285_v44 = vld [vmem:[%s12267_s23 + $0x408] sm:$0xff]  ;;  %v11284_v48 = vld [vmem:[%s12267_s23 + $0x400] sm:$0xff] }
  0x98   : > { %6847 = vmatpush.bf16.msrb.mxu2 %v11275_v45  ;;  %6816 = vmatmul.bf16.vlgmr.msra.gmra.mxu3 %v1856_v50  ;;  %v11293_v45 = vld [vmem:[%s12267_s23 + $0x448] sm:$0xff]  ;;  %v11300_v50 = vld [vmem:[%s12267_s23 + $0x480] sm:$0xff] }
  0x99   : > { %6860 = vmatpush.bf16.msrb.mxu3 %v11283_v46  ;;  %v11301_v46 = vld [vmem:[%s12267_s23 + $0x488] sm:$0xff] }
  0x9a   : > { %6822 = vmatpush.bf16.msrb.mxu0 %v11258_v51  ;;  %v11308_v51 = vld [vmem:[%s12267_s23 + $0x4c0] sm:$0xff] }
  0x9b   : > { %6835 = vmatpush.bf16.msrb.mxu1 %v11266_v52  ;;  %v11323_v52 = vld [vmem:[%s12267_s23 + $0x538] sm:$0xff] }
  0x9c   : > { %6848 = vmatpush.bf16.msrb.mxu2 %v11274_v53  ;;  %v11331_v53 = vld [vmem:[%s12267_s23 + $0x578] sm:$0xff] }
  0x9d   : > { %6861 = vmatpush.bf16.msrb.mxu3 %v11282_v54  ;;  %v11339_v54 = vld [vmem:[%s12267_s23 + $0x5b8] sm:$0xff] }
  0x9e   : > { %6823 = vmatpush.bf16.msrb.mxu0 %v11257_v55  ;;  %v11347_v55 = vld [vmem:[%s12267_s23 + $0x5f8] sm:$0xff] }
  0x9f   : > { %6836 = vmatpush.bf16.msrb.mxu1 %v11265_v56  ;;  %v1863_v56 = vld [vmem:[#allocation1] sm:$0xff] }
  0xa0   : > { %6849 = vmatpush.bf16.msrb.mxu2 %v11273_v57  ;;  %v1865_v57 = vld [vmem:[#allocation1 + $0x12] sm:$0xff] }
  0xa1   : > { %6862 = vmatpush.bf16.msrb.mxu3 %v11281_v58  ;;  %v1864_v58 = vld [vmem:[#allocation1 + $0x9] sm:$0xff] }
  0xa2   : > { %6824 = vmatpush.bf16.msrb.mxu0 %v11256_v59  ;;  %v1866_v59 = vld [vmem:[#allocation1 + $0x1b] sm:$0xff] }
  0xa3   : > { %6837 = vmatpush.bf16.msrb.mxu1 %v11264_v60  ;;  %v11322_v60 = vld [vmem:[%s12267_s23 + $0x530] sm:$0xff] }
  0xa4   : > { %6850 = vmatpush.bf16.msrb.mxu2 %v11272_v61  ;;  %v11330_v61 = vld [vmem:[%s12267_s23 + $0x570] sm:$0xff] }
  0xa5   : > { %6863 = vmatpush.bf16.msrb.mxu3 %v11280_v62  ;;  %v11338_v62 = vld [vmem:[%s12267_s23 + $0x5b0] sm:$0xff] }
  0xa6   : > { %6825 = vmatpush.bf16.msrb.mxu0 %v11255_v63  ;;  %v11346_v63 = vld [vmem:[%s12267_s23 + $0x5f0] sm:$0xff] }
  0xa7   : > { %6838 = vmatpush.bf16.msrb.mxu1 %v11263_v0  ;;  %v11321_v0 = vld [vmem:[%s12267_s23 + $0x528] sm:$0xff] }
  0xa8   : > { %6851 = vmatpush.bf16.msrb.mxu2 %v11271_v1  ;;  %v11329_v1 = vld [vmem:[%s12267_s23 + $0x568] sm:$0xff] }
  0xa9   : > { %6864 = vmatpush.bf16.msrb.mxu3 %v11279_v2  ;;  %v11337_v2 = vld [vmem:[%s12267_s23 + $0x5a8] sm:$0xff] }
  0xaa   : > { %6826 = vmatpush.bf16.msrb.mxu0 %v11254_v3  ;;  %v11345_v3 = vld [vmem:[%s12267_s23 + $0x5e8] sm:$0xff] }
  0xab   : > { %6839 = vmatpush.bf16.msrb.mxu1 %v11262_v4 }
  0xac   : > { %6852 = vmatpush.bf16.msrb.mxu2 %v11270_v5  ;;  %v11320_v5 = vld [vmem:[%s12267_s23 + $0x520] sm:$0xff] }
  0xad   : > { %6865 = vmatpush.bf16.msrb.mxu3 %v11278_v6  ;;  %v11328_v6 = vld [vmem:[%s12267_s23 + $0x560] sm:$0xff] }
  0xae   : > { %6827 = vmatpush.bf16.msrb.mxu0 %v11253_v7 }
  0xaf   : > { %6840 = vmatpush.bf16.msrb.mxu1 %v11261_v8  ;;  %v11336_v8 = vld [vmem:[%s12267_s23 + $0x5a0] sm:$0xff] }
  0xb0   : > { %6853 = vmatpush.bf16.msrb.mxu2 %v11269_v9  ;;  %v11344_v9 = vld [vmem:[%s12267_s23 + $0x5e0] sm:$0xff] }
  0xb1   : > { %6866 = vmatpush.bf16.msrb.mxu3 %v11277_v10 }
  0xb2   : > { %6828 = vmatpush.bf16.msrb.mxu0 %v11252_v16 }
  0xb3   : > { %6841 = vmatpush.bf16.msrb.mxu1 %v11260_v17 }
  0xb4   : > { %6854 = vmatpush.bf16.msrb.mxu2 %v11268_v18 }
  0xb5   : > { %6867 = vmatpush.bf16.msrb.mxu3 %v11276_v19  ;;  %6829 = vmatmul.bf16.vlgmr.msrb.gmra.mxu0 %v1857_v11  ;;  %v11319_v11 = vld [vmem:[%s12267_s23 + $0x518] sm:$0xff]  ;;  %v11318_v19 = vld [vmem:[%s12267_s23 + $0x510] sm:$0xff] }
  0xb6   : > { %6873 = vmatpush.bf16.msra.mxu0 %v11291_v20  ;;  %6842 = vmatmul.bf16.vlgmr.msrb.gmra.mxu1 %v1858_v13  ;;  %v11335_v13 = vld [vmem:[%s12267_s23 + $0x598] sm:$0xff]  ;;  %v11326_v20 = vld [vmem:[%s12267_s23 + $0x550] sm:$0xff] }
  0xb7   : > { %6886 = vmatpush.bf16.msra.mxu1 %v11299_v21  ;;  %6855 = vmatmul.bf16.vlgmr.msrb.gmra.mxu2 %v1859_v12  ;;  %v11327_v12 = vld [vmem:[%s12267_s23 + $0x558] sm:$0xff] }
  0xb8   : > { %6899 = vmatpush.bf16.msra.mxu2 %v11307_v22  ;;  %6868 = vmatmul.bf16.vlgmr.msrb.gmra.mxu3 %v1860_v14  ;;  %v11343_v14 = vld [vmem:[%s12267_s23 + $0x5d8] sm:$0xff] }
  0xb9   : > { %6912 = vmatpush.bf16.msra.mxu3 %v11315_v23  ;;  %v11334_v23 = vld [vmem:[%s12267_s23 + $0x590] sm:$0xff] }
  0xba   : > { %6874 = vmatpush.bf16.msra.mxu0 %v11290_v24  ;;  %v11342_v24 = vld [vmem:[%s12267_s23 + $0x5d0] sm:$0xff] }
  0xbb   : > { %6887 = vmatpush.bf16.msra.mxu1 %v11298_v25  ;;  %v11317_v25 = vld [vmem:[%s12267_s23 + $0x508] sm:$0xff] }
  0xbc   : > { %6900 = vmatpush.bf16.msra.mxu2 %v11306_v26  ;;  %v11325_v26 = vld [vmem:[%s12267_s23 + $0x548] sm:$0xff] }
  0xbd   : > { %6913 = vmatpush.bf16.msra.mxu3 %v11314_v27  ;;  %v11333_v27 = vld [vmem:[%s12267_s23 + $0x588] sm:$0xff] }
  0xbe   : > { %6875 = vmatpush.bf16.msra.mxu0 %v11289_v28  ;;  %v11341_v28 = vld [vmem:[%s12267_s23 + $0x5c8] sm:$0xff] }
  0xbf   : > { %6888 = vmatpush.bf16.msra.mxu1 %v11297_v29  ;;  %v1867_v29 = vld [vmem:[#allocation1 + $0x24] sm:$0xff] }
  0xc0   : > { %6901 = vmatpush.bf16.msra.mxu2 %v11305_v30  ;;  %v1869_v30 = vld [vmem:[#allocation1 + $0x36] sm:$0xff] }
  0xc1   : > { %6914 = vmatpush.bf16.msra.mxu3 %v11313_v31 }
  0xc2   : > { %6876 = vmatpush.bf16.msra.mxu0 %v11288_v32  ;;  %v1868_v32 = vld [vmem:[#allocation1 + $0x2d] sm:$0xff] }
  0xc3   : > { %6889 = vmatpush.bf16.msra.mxu1 %v11296_v33  ;;  %v1870_v33 = vld [vmem:[#allocation1 + $0x3f] sm:$0xff] }
  0xc4   : > { %6902 = vmatpush.bf16.msra.mxu2 %v11304_v34 }
  0xc5   : > { %6915 = vmatpush.bf16.msra.mxu3 %v11312_v35  ;;  %v296_v35 = vld [vmem:[%s12289_s12 + $0x18] sm:$0xff] }
  0xc6   : > { %6877 = vmatpush.bf16.msra.mxu0 %v11287_v36  ;;  %1872 = vst [vmem:[#allocation1] ss:$9 sm:$0xff] %v296_v35  ;;  %v11316_v36 = vld [vmem:[%s12267_s23 + $0x500] sm:$0xff]  ;;  %v11409_v35 = vld [vmem:[%s12267_s23 + $0x7e8] sm:$0xff] }
  0xc7   : > { %6890 = vmatpush.bf16.msra.mxu1 %v11295_v37  ;;  %v11324_v37 = vld [vmem:[%s12267_s23 + $0x540] sm:$0xff] }
  0xc8   : > { %6903 = vmatpush.bf16.msra.mxu2 %v11303_v38  ;;  %v11332_v38 = vld [vmem:[%s12267_s23 + $0x580] sm:$0xff] }
  0xc9   : > { %6916 = vmatpush.bf16.msra.mxu3 %v11311_v39  ;;  %v11340_v39 = vld [vmem:[%s12267_s23 + $0x5c0] sm:$0xff] }
  0xca   : > { %6878 = vmatpush.bf16.msra.mxu0 %v11286_v40  ;;  %v11355_v40 = vld [vmem:[%s12267_s23 + $0x638] sm:$0xff] }
  0xcb   : > { %6891 = vmatpush.bf16.msra.mxu1 %v11294_v41  ;;  %v11363_v41 = vld [vmem:[%s12267_s23 + $0x678] sm:$0xff] }
  0xcc   : > { %6904 = vmatpush.bf16.msra.mxu2 %v11302_v42  ;;  %v11371_v42 = vld [vmem:[%s12267_s23 + $0x6b8] sm:$0xff] }
  0xcd   : > { %6917 = vmatpush.bf16.msra.mxu3 %v11310_v43  ;;  %v11379_v43 = vld [vmem:[%s12267_s23 + $0x6f8] sm:$0xff] }
  0xce   : > { %6879 = vmatpush.bf16.msra.mxu0 %v11285_v44  ;;  %v11354_v44 = vld [vmem:[%s12267_s23 + $0x630] sm:$0xff] }
  0xcf   : > { %6892 = vmatpush.bf16.msra.mxu1 %v11293_v45  ;;  %v11362_v45 = vld [vmem:[%s12267_s23 + $0x670] sm:$0xff] }
  0xd0   : > { %6905 = vmatpush.bf16.msra.mxu2 %v11301_v46  ;;  %v11370_v46 = vld [vmem:[%s12267_s23 + $0x6b0] sm:$0xff] }
  0xd1   : > { %6918 = vmatpush.bf16.msra.mxu3 %v11309_v47  ;;  %v11378_v47 = vld [vmem:[%s12267_s23 + $0x6f0] sm:$0xff] }
  0xd2   : > { %6880 = vmatpush.bf16.msra.mxu0 %v11284_v48  ;;  %v6674_v4 = vpop.f32.mrf.mxu0  ;;  %v11353_v48 = vld [vmem:[%s12267_s23 + $0x628] sm:$0xff] }
  0xd3   : > { %6893 = vmatpush.bf16.msra.mxu1 %v11292_v49  ;;  %v6687_v7 = vpop.f32.mrf.mxu1  ;;  %v11361_v49 = vld [vmem:[%s12267_s23 + $0x668] sm:$0xff] }
  0xd4   : > { %6906 = vmatpush.bf16.msra.mxu2 %v11300_v50  ;;  %v6688_v10 = vadd.f32 %v6687_v7, %v6674_v4  ;;  %v11369_v50 = vld [vmem:[%s12267_s23 + $0x6a8] sm:$0xff]  ;;  %v11350_v4 = vld [vmem:[%s12267_s23 + $0x610] sm:$0xff] }
  0xd5   : > { %6919 = vmatpush.bf16.msra.mxu3 %v11308_v51  ;;  %6881 = vmatmul.bf16.vlgmr.msra.gmra.mxu0 %v1863_v56  ;;  %v11377_v51 = vld [vmem:[%s12267_s23 + $0x6e8] sm:$0xff] }
  0xd6   : > { %6925 = vmatpush.bf16.msrb.mxu0 %v11323_v52  ;;  %6894 = vmatmul.bf16.vlgmr.msra.gmra.mxu1 %v1864_v58  ;;  %v11376_v58 = vld [vmem:[%s12267_s23 + $0x6e0] sm:$0xff] }
  0xd7   : > { %6938 = vmatpush.bf16.msrb.mxu1 %v11331_v53  ;;  %6907 = vmatmul.bf16.vlgmr.msra.gmra.mxu2 %v1865_v57  ;;  %v11352_v53 = vld [vmem:[%s12267_s23 + $0x620] sm:$0xff] }
  0xd8   : > { %6951 = vmatpush.bf16.msrb.mxu2 %v11339_v54  ;;  %6920 = vmatmul.bf16.vlgmr.msra.gmra.mxu3 %v1866_v59  ;;  %v11360_v54 = vld [vmem:[%s12267_s23 + $0x660] sm:$0xff] }
  0xd9   : > { %6964 = vmatpush.bf16.msrb.mxu3 %v11347_v55  ;;  %v11368_v57 = vld [vmem:[%s12267_s23 + $0x6a0] sm:$0xff] }
  0xda   : > { %6926 = vmatpush.bf16.msrb.mxu0 %v11322_v60  ;;  %v6700_v15 = vpop.f32.mrf.mxu2  ;;  %v6676_v18 = vpop.f32.mrf.mxu0  ;;  %v11351_v60 = vld [vmem:[%s12267_s23 + $0x618] sm:$0xff] }
  0xdb   : > { %6939 = vmatpush.bf16.msrb.mxu1 %v11330_v61  ;;  %v6701_v16 = vadd.f32 %v6700_v15, %v6688_v10  ;;  %v6713_v17 = vpop.f32.mrf.mxu3  ;;  %v6689_v22 = vpop.f32.mrf.mxu1  ;;  %v11359_v61 = vld [vmem:[%s12267_s23 + $0x658] sm:$0xff]  ;;  %v11349_v10 = vld [vmem:[%s12267_s23 + $0x608] sm:$0xff]  ;;  %v11364_v18 = vld [vmem:[%s12267_s23 + $0x680] sm:$0xff] }
  0xdc   : > { %6952 = vmatpush.bf16.msrb.mxu2 %v11338_v62  ;;  %v11367_v62 = vld [vmem:[%s12267_s23 + $0x698] sm:$0xff] }
  0xdd   : > { %6965 = vmatpush.bf16.msrb.mxu3 %v11346_v63  ;;  %v12477_v21 = vadd.f32 %v6713_v17, %v6701_v16  ;;  %v11375_v63 = vld [vmem:[%s12267_s23 + $0x6d8] sm:$0xff]  ;;  %v11348_v16 = vld [vmem:[%s12267_s23 + $0x600] sm:$0xff] }
  0xde   : > { %6927 = vmatpush.bf16.msrb.mxu0 %v11321_v0  ;;  %v11356_v17 = vld [vmem:[%s12267_s23 + $0x640] sm:$0xff]  ;;  %v11403_v22 = vld [vmem:[%s12267_s23 + $0x7b8] sm:$0xff] }
  0xdf   : > { %6940 = vmatpush.bf16.msrb.mxu1 %v11329_v1 }
  0xe0   : > { %6953 = vmatpush.bf16.msrb.mxu2 %v11337_v2 }
  0xe1   : > { %6966 = vmatpush.bf16.msrb.mxu3 %v11345_v3 }
  0xe2   : > { %6928 = vmatpush.bf16.msrb.mxu0 %v11320_v5  ;;  %v6702_v31 = vpop.f32.mrf.mxu2  ;;  %v11358_v5 = vld [vmem:[%s12267_s23 + $0x650] sm:$0xff] }
  0xe3   : > { %6941 = vmatpush.bf16.msrb.mxu1 %v11328_v6  ;;  %v6715_v34 = vpop.f32.mrf.mxu3  ;;  %v11410_v31 = vld [vmem:[%s12267_s23 + $0x7f0] sm:$0xff] }
  0xe4   : > { %6954 = vmatpush.bf16.msrb.mxu2 %v11336_v8  ;;  %v11366_v8 = vld [vmem:[%s12267_s23 + $0x690] sm:$0xff]  ;;  %v11401_v34 = vld [vmem:[%s12267_s23 + $0x7a8] sm:$0xff] }
  0xe5   : > { %6967 = vmatpush.bf16.msrb.mxu3 %v11344_v9  ;;  %v11374_v9 = vld [vmem:[%s12267_s23 + $0x6d0] sm:$0xff] }
  0xe6   : > { %6929 = vmatpush.bf16.msrb.mxu0 %v11319_v11  ;;  %v11357_v11 = vld [vmem:[%s12267_s23 + $0x648] sm:$0xff] }
  0xe7   : > { %6942 = vmatpush.bf16.msrb.mxu1 %v11327_v12  ;;  %v11365_v12 = vld [vmem:[%s12267_s23 + $0x688] sm:$0xff] }
  0xe8   : > { %6955 = vmatpush.bf16.msrb.mxu2 %v11335_v13  ;;  %v11373_v13 = vld [vmem:[%s12267_s23 + $0x6c8] sm:$0xff] }
  0xe9   : > { %6968 = vmatpush.bf16.msrb.mxu3 %v11343_v14 }
  0xea   : > { %6930 = vmatpush.bf16.msrb.mxu0 %v11318_v19  ;;  %v11372_v19 = vld [vmem:[%s12267_s23 + $0x6c0] sm:$0xff] }
  0xeb   : > { %6943 = vmatpush.bf16.msrb.mxu1 %v11326_v20  ;;  %v11387_v20 = vld [vmem:[%s12267_s23 + $0x738] sm:$0xff] }
  0xec   : > { %6956 = vmatpush.bf16.msrb.mxu2 %v11334_v23  ;;  %v11411_v23 = vld [vmem:[%s12267_s23 + $0x7f8] sm:$0xff] }
  0xed   : > { %6969 = vmatpush.bf16.msrb.mxu3 %v11342_v24  ;;  %v1873_v24 = vld [vmem:[#allocation1] sm:$0xff] }
  0xee   : > { %6931 = vmatpush.bf16.msrb.mxu0 %v11317_v25  ;;  %v1875_v25 = vld [vmem:[#allocation1 + $0x12] sm:$0xff] }
  0xef   : > { %6944 = vmatpush.bf16.msrb.mxu1 %v11325_v26  ;;  %v1874_v26 = vld [vmem:[#allocation1 + $0x9] sm:$0xff] }
  0xf0   : > { %6957 = vmatpush.bf16.msrb.mxu2 %v11333_v27  ;;  %v1876_v27 = vld [vmem:[#allocation1 + $0x1b] sm:$0xff] }
  0xf1   : > { %6970 = vmatpush.bf16.msrb.mxu3 %v11341_v28  ;;  %v11386_v28 = vld [vmem:[%s12267_s23 + $0x730] sm:$0xff] }
  0xf2   : > { %6932 = vmatpush.bf16.msrb.mxu0 %v11316_v36  ;;  %v6726_v52 = vpop.f32.mrf.mxu0 }
  0xf3   : > { %6945 = vmatpush.bf16.msrb.mxu1 %v11324_v37  ;;  %v6727_v55 = vadd.f32 %v6726_v52, %v12477_v21  ;;  %v6739_v56 = vpop.f32.mrf.mxu1  ;;  %v11395_v21 = vld [vmem:[%s12267_s23 + $0x778] sm:$0xff] }
  0xf4   : > { %6958 = vmatpush.bf16.msrb.mxu2 %v11332_v38  ;;  %v11384_v38 = vld [vmem:[%s12267_s23 + $0x720] sm:$0xff] }
  0xf5   : > { %6971 = vmatpush.bf16.msrb.mxu3 %v11340_v39  ;;  %6933 = vmatmul.bf16.vlgmr.msrb.gmra.mxu0 %v1867_v29  ;;  %v6740_v59 = vadd.f32 %v6739_v56, %v6727_v55  ;;  %v11394_v29 = vld [vmem:[%s12267_s23 + $0x770] sm:$0xff]  ;;  %v11392_v39 = vld [vmem:[%s12267_s23 + $0x760] sm:$0xff] }
  0xf6   : > { %6977 = vmatpush.bf16.msra.mxu0 %v11355_v40  ;;  %6946 = vmatmul.bf16.vlgmr.msrb.gmra.mxu1 %v1868_v32  ;;  %v11385_v32 = vld [vmem:[%s12267_s23 + $0x728] sm:$0xff]  ;;  %v11398_v56 = vld [vmem:[%s12267_s23 + $0x790] sm:$0xff] }
  0xf7   : > { %6990 = vmatpush.bf16.msra.mxu1 %v11363_v41  ;;  %6959 = vmatmul.bf16.vlgmr.msrb.gmra.mxu2 %v1869_v30  ;;  %v11402_v30 = vld [vmem:[%s12267_s23 + $0x7b0] sm:$0xff]  ;;  %v11400_v41 = vld [vmem:[%s12267_s23 + $0x7a0] sm:$0xff] }
  0xf8   : > { %7003 = vmatpush.bf16.msra.mxu2 %v11371_v42  ;;  %6972 = vmatmul.bf16.vlgmr.msrb.gmra.mxu3 %v1870_v33  ;;  %v11393_v33 = vld [vmem:[%s12267_s23 + $0x768] sm:$0xff]  ;;  %v11408_v42 = vld [vmem:[%s12267_s23 + $0x7e0] sm:$0xff] }
  0xf9   : > { %7016 = vmatpush.bf16.msra.mxu3 %v11379_v43 }
  0xfa   : > { %6978 = vmatpush.bf16.msra.mxu0 %v11354_v44  ;;  %v6752_v0 = vpop.f32.mrf.mxu2  ;;  %v6728_v3 = vpop.f32.mrf.mxu0  ;;  %v11383_v44 = vld [vmem:[%s12267_s23 + $0x718] sm:$0xff] }
  0xfb   : > { %6991 = vmatpush.bf16.msra.mxu1 %v11362_v45  ;;  %v6753_v1 = vadd.f32 %v6752_v0, %v6740_v59  ;;  %v6765_v2 = vpop.f32.mrf.mxu3  ;;  %v6741_v7 = vpop.f32.mrf.mxu1  ;;  %v11391_v45 = vld [vmem:[%s12267_s23 + $0x758] sm:$0xff]  ;;  %v11389_v59 = vld [vmem:[%s12267_s23 + $0x748] sm:$0xff] }
  0xfc   : > { %7004 = vmatpush.bf16.msra.mxu2 %v11370_v46  ;;  %v11399_v46 = vld [vmem:[%s12267_s23 + $0x798] sm:$0xff]  ;;  %v11396_v7 = vld [vmem:[%s12267_s23 + $0x780] sm:$0xff] }
  0xfd   : > { %7017 = vmatpush.bf16.msra.mxu3 %v11378_v47  ;;  %v6766_v6 = vadd.f32 %v6765_v2, %v6753_v1  ;;  %v11407_v47 = vld [vmem:[%s12267_s23 + $0x7d8] sm:$0xff]  ;;  %v1878_v1 = vld [vmem:[#allocation1 + $0x2d] sm:$0xff] }
  0xfe   : > { %6979 = vmatpush.bf16.msra.mxu0 %v11353_v48  ;;  %v1880_v2 = vld [vmem:[#allocation1 + $0x3f] sm:$0xff] }
  0xff   : > { %6992 = vmatpush.bf16.msra.mxu1 %v11361_v49 }
 0x100   : > { %7005 = vmatpush.bf16.msra.mxu2 %v11369_v50 }
 0x101   : > { %7018 = vmatpush.bf16.msra.mxu3 %v11377_v51 }
 0x102   : > { %6980 = vmatpush.bf16.msra.mxu0 %v11352_v53  ;;  %v6754_v14 = vpop.f32.mrf.mxu2  ;;  %v11382_v53 = vld [vmem:[%s12267_s23 + $0x710] sm:$0xff] }
 0x103   : > { %6993 = vmatpush.bf16.msra.mxu1 %v11360_v54  ;;  %v6767_v15 = vpop.f32.mrf.mxu3  ;;  %v11390_v54 = vld [vmem:[%s12267_s23 + $0x750] sm:$0xff] }
 0x104   : > { %7006 = vmatpush.bf16.msra.mxu2 %v11368_v57  ;;  %v11406_v57 = vld [vmem:[%s12267_s23 + $0x7d0] sm:$0xff] }
 0x105   : > { %7019 = vmatpush.bf16.msra.mxu3 %v11376_v58  ;;  %v11381_v58 = vld [vmem:[%s12267_s23 + $0x708] sm:$0xff]  ;;  %v11426_v14 = vld [vmem:[%s12267_s23 + $0x870] sm:$0xff] }
 0x106   : > { %6981 = vmatpush.bf16.msra.mxu0 %v11351_v60  ;;  %v11397_v60 = vld [vmem:[%s12267_s23 + $0x788] sm:$0xff]  ;;  %v11434_v15 = vld [vmem:[%s12267_s23 + $0x8b0] sm:$0xff] }
 0x107   : > { %6994 = vmatpush.bf16.msra.mxu1 %v11359_v61  ;;  %v11405_v61 = vld [vmem:[%s12267_s23 + $0x7c8] sm:$0xff] }
 0x108   : > { %7007 = vmatpush.bf16.msra.mxu2 %v11367_v62  ;;  %v1877_v62 = vld [vmem:[#allocation1 + $0x24] sm:$0xff] }
 0x109   : > { %7020 = vmatpush.bf16.msra.mxu3 %v11375_v63  ;;  %v1879_v63 = vld [vmem:[#allocation1 + $0x36] sm:$0xff] }
 0x10a   : > { %6982 = vmatpush.bf16.msra.mxu0 %v11350_v4  ;;  %v297_v4 = vld [vmem:[%s12289_s12 + $0x20] sm:$0xff] }
 0x10b   : > { %6995 = vmatpush.bf16.msra.mxu1 %v11358_v5  ;;  %1882 = vst [vmem:[#allocation1] ss:$9 sm:$0xff] %v297_v4  ;;  %v11380_v5 = vld [vmem:[%s12267_s23 + $0x700] sm:$0xff]  ;;  %v11473_v4 = vld [vmem:[%s12267_s23 + $0x9e8] sm:$0xff] }
 0x10c   : > { %7008 = vmatpush.bf16.msra.mxu2 %v11366_v8  ;;  %v11404_v8 = vld [vmem:[%s12267_s23 + $0x7c0] sm:$0xff] }
 0x10d   : > { %7021 = vmatpush.bf16.msra.mxu3 %v11374_v9  ;;  %v11419_v9 = vld [vmem:[%s12267_s23 + $0x838] sm:$0xff] }
 0x10e   : > { %6983 = vmatpush.bf16.msra.mxu0 %v11349_v10  ;;  %v11427_v10 = vld [vmem:[%s12267_s23 + $0x878] sm:$0xff] }
 0x10f   : > { %6996 = vmatpush.bf16.msra.mxu1 %v11357_v11  ;;  %v11435_v11 = vld [vmem:[%s12267_s23 + $0x8b8] sm:$0xff] }
 0x110   : > { %7009 = vmatpush.bf16.msra.mxu2 %v11365_v12  ;;  %v11443_v12 = vld [vmem:[%s12267_s23 + $0x8f8] sm:$0xff] }
 0x111   : > { %7022 = vmatpush.bf16.msra.mxu3 %v11373_v13  ;;  %v11418_v13 = vld [vmem:[%s12267_s23 + $0x830] sm:$0xff] }
 0x112   : > { %6984 = vmatpush.bf16.msra.mxu0 %v11348_v16  ;;  %v6778_v36 = vpop.f32.mrf.mxu0  ;;  %v11442_v16 = vld [vmem:[%s12267_s23 + $0x8f0] sm:$0xff] }
 0x113   : > { %6997 = vmatpush.bf16.msra.mxu1 %v11356_v17  ;;  %v6779_v37 = vadd.f32 %v6778_v36, %v6766_v6  ;;  %v6791_v40 = vpop.f32.mrf.mxu1  ;;  %v11388_v6 = vld [vmem:[%s12267_s23 + $0x740] sm:$0xff]  ;;  %v11417_v17 = vld [vmem:[%s12267_s23 + $0x828] sm:$0xff] }
 0x114   : > { %7010 = vmatpush.bf16.msra.mxu2 %v11364_v18  ;;  %v11425_v18 = vld [vmem:[%s12267_s23 + $0x868] sm:$0xff] }
 0x115   : > { %7023 = vmatpush.bf16.msra.mxu3 %v11372_v19  ;;  %6985 = vmatmul.bf16.vlgmr.msra.gmra.mxu0 %v1873_v24  ;;  %v6792_v43 = vadd.f32 %v6791_v40, %v6779_v37  ;;  %v11433_v19 = vld [vmem:[%s12267_s23 + $0x8a8] sm:$0xff]  ;;  %v11424_v24 = vld [vmem:[%s12267_s23 + $0x860] sm:$0xff] }
 0x116   : > { %7029 = vmatpush.bf16.msrb.mxu0 %v11387_v20  ;;  %6998 = vmatmul.bf16.vlgmr.msra.gmra.mxu1 %v1874_v26  ;;  %v11441_v20 = vld [vmem:[%s12267_s23 + $0x8e8] sm:$0xff]  ;;  %v11432_v26 = vld [vmem:[%s12267_s23 + $0x8a0] sm:$0xff] }
 0x117   : > { %7042 = vmatpush.bf16.msrb.mxu1 %v11395_v21  ;;  %7011 = vmatmul.bf16.vlgmr.msra.gmra.mxu2 %v1875_v25 }
 0x118   : > { %7055 = vmatpush.bf16.msrb.mxu2 %v11403_v22  ;;  %7024 = vmatmul.bf16.vlgmr.msra.gmra.mxu3 %v1876_v27  ;;  %v11440_v27 = vld [vmem:[%s12267_s23 + $0x8e0] sm:$0xff] }
 0x119   : > { %7068 = vmatpush.bf16.msrb.mxu3 %v11411_v23  ;;  %v11416_v23 = vld [vmem:[%s12267_s23 + $0x820] sm:$0xff] }
 0x11a   : > { %7030 = vmatpush.bf16.msrb.mxu0 %v11386_v28  ;;  %v6804_v48 = vpop.f32.mrf.mxu2  ;;  %v6780_v51 = vpop.f32.mrf.mxu0 }
 0x11b   : > { %7043 = vmatpush.bf16.msrb.mxu1 %v11394_v29  ;;  %v6805_v49 = vadd.f32 %v6804_v48, %v6792_v43  ;;  %v6817_v50 = vpop.f32.mrf.mxu3  ;;  %v6793_v55 = vpop.f32.mrf.mxu1  ;;  %v11415_v29 = vld [vmem:[%s12267_s23 + $0x818] sm:$0xff]  ;;  %v11413_v43 = vld [vmem:[%s12267_s23 + $0x808] sm:$0xff]  ;;  %v11428_v51 = vld [vmem:[%s12267_s23 + $0x880] sm:$0xff] }
 0x11c   : > { %7056 = vmatpush.bf16.msrb.mxu2 %v11402_v30  ;;  %v11423_v30 = vld [vmem:[%s12267_s23 + $0x858] sm:$0xff] }
 0x11d   : > { %7069 = vmatpush.bf16.msrb.mxu3 %v11410_v31  ;;  %v12543_v52 = vadd.f32 %v6817_v50, %v6805_v49  ;;  %v11431_v31 = vld [vmem:[%s12267_s23 + $0x898] sm:$0xff]  ;;  %v11412_v49 = vld [vmem:[%s12267_s23 + $0x800] sm:$0xff] }
 0x11e   : > { %7031 = vmatpush.bf16.msrb.mxu0 %v11385_v32  ;;  %v11439_v32 = vld [vmem:[%s12267_s23 + $0x8d8] sm:$0xff]  ;;  %v11420_v50 = vld [vmem:[%s12267_s23 + $0x840] sm:$0xff] }
 0x11f   : > { %7044 = vmatpush.bf16.msrb.mxu1 %v11393_v33  ;;  %v11467_v55 = vld [vmem:[%s12267_s23 + $0x9b8] sm:$0xff] }
 0x120   : > { %7057 = vmatpush.bf16.msrb.mxu2 %v11401_v34 }
 0x121   : > { %7070 = vmatpush.bf16.msrb.mxu3 %v11409_v35 }
 0x122   : > { %7032 = vmatpush.bf16.msrb.mxu0 %v11384_v38  ;;  %v6806_v0 = vpop.f32.mrf.mxu2  ;;  %v11414_v38 = vld [vmem:[%s12267_s23 + $0x810] sm:$0xff] }
 0x123   : > { %7045 = vmatpush.bf16.msrb.mxu1 %v11392_v39  ;;  %v6819_v3 = vpop.f32.mrf.mxu3  ;;  %v11422_v39 = vld [vmem:[%s12267_s23 + $0x850] sm:$0xff] }
 0x124   : > { %7058 = vmatpush.bf16.msrb.mxu2 %v11400_v41  ;;  %v11430_v41 = vld [vmem:[%s12267_s23 + $0x890] sm:$0xff]  ;;  %v11465_v3 = vld [vmem:[%s12267_s23 + $0x9a8] sm:$0xff] }
 0x125   : > { %7071 = vmatpush.bf16.msrb.mxu3 %v11408_v42  ;;  %v11438_v42 = vld [vmem:[%s12267_s23 + $0x8d0] sm:$0xff] }
 0x126   : > { %7033 = vmatpush.bf16.msrb.mxu0 %v11383_v44  ;;  %v11421_v44 = vld [vmem:[%s12267_s23 + $0x848] sm:$0xff]  ;;  %v11474_v0 = vld [vmem:[%s12267_s23 + $0x9f0] sm:$0xff] }
 0x127   : > { %7046 = vmatpush.bf16.msrb.mxu1 %v11391_v45  ;;  %v11429_v45 = vld [vmem:[%s12267_s23 + $0x888] sm:$0xff] }
 0x128   : > { %7059 = vmatpush.bf16.msrb.mxu2 %v11399_v46  ;;  %v11437_v46 = vld [vmem:[%s12267_s23 + $0x8c8] sm:$0xff] }
 0x129   : > { %7072 = vmatpush.bf16.msrb.mxu3 %v11407_v47 }
 0x12a   : > { %7034 = vmatpush.bf16.msrb.mxu0 %v11382_v53  ;;  %v11451_v53 = vld [vmem:[%s12267_s23 + $0x938] sm:$0xff] }
 0x12b   : > { %7047 = vmatpush.bf16.msrb.mxu1 %v11390_v54  ;;  %v11459_v54 = vld [vmem:[%s12267_s23 + $0x978] sm:$0xff] }
 0x12c   : > { %7060 = vmatpush.bf16.msrb.mxu2 %v11398_v56  ;;  %v11475_v56 = vld [vmem:[%s12267_s23 + $0x9f8] sm:$0xff] }
 0x12d   : > { %7073 = vmatpush.bf16.msrb.mxu3 %v11406_v57  ;;  %v1883_v57 = vld [vmem:[#allocation1] sm:$0xff] }
 0x12e   : > { %7035 = vmatpush.bf16.msrb.mxu0 %v11381_v58  ;;  %v1885_v58 = vld [vmem:[#allocation1 + $0x12] sm:$0xff] }
 0x12f   : > { %7048 = vmatpush.bf16.msrb.mxu1 %v11389_v59  ;;  %v1884_v59 = vld [vmem:[#allocation1 + $0x9] sm:$0xff] }
 0x130   : > { %7061 = vmatpush.bf16.msrb.mxu2 %v11397_v60  ;;  %v1886_v60 = vld [vmem:[#allocation1 + $0x1b] sm:$0xff] }
 0x131   : > { %7074 = vmatpush.bf16.msrb.mxu3 %v11405_v61  ;;  %v11450_v61 = vld [vmem:[%s12267_s23 + $0x930] sm:$0xff] }
 0x132   : > { %7036 = vmatpush.bf16.msrb.mxu0 %v11380_v5  ;;  %v6830_v21 = vpop.f32.mrf.mxu0 }
 0x133   : > { %7049 = vmatpush.bf16.msrb.mxu1 %v11388_v6  ;;  %v6831_v22 = vadd.f32 %v6830_v21, %v12543_v52  ;;  %v6843_v25 = vpop.f32.mrf.mxu1  ;;  %v11436_v52 = vld [vmem:[%s12267_s23 + $0x8c0] sm:$0xff] }
 0x134   : > { %7062 = vmatpush.bf16.msrb.mxu2 %v11396_v7  ;;  %v11448_v7 = vld [vmem:[%s12267_s23 + $0x920] sm:$0xff] }
 0x135   : > { %7075 = vmatpush.bf16.msrb.mxu3 %v11404_v8  ;;  %7037 = vmatmul.bf16.vlgmr.msrb.gmra.mxu0 %v1877_v62  ;;  %v6844_v28 = vadd.f32 %v6843_v25, %v6831_v22  ;;  %v11458_v62 = vld [vmem:[%s12267_s23 + $0x970] sm:$0xff]  ;;  %v11456_v8 = vld [vmem:[%s12267_s23 + $0x960] sm:$0xff] }
 0x136   : > { %7081 = vmatpush.bf16.msra.mxu0 %v11419_v9  ;;  %7050 = vmatmul.bf16.vlgmr.msrb.gmra.mxu1 %v1878_v1  ;;  %v11449_v1 = vld [vmem:[%s12267_s23 + $0x928] sm:$0xff]  ;;  %v11446_v22 = vld [vmem:[%s12267_s23 + $0x910] sm:$0xff] }
 0x137   : > { %7094 = vmatpush.bf16.msra.mxu1 %v11427_v10  ;;  %7063 = vmatmul.bf16.vlgmr.msrb.gmra.mxu2 %v1879_v63  ;;  %v11466_v63 = vld [vmem:[%s12267_s23 + $0x9b0] sm:$0xff]  ;;  %v11464_v10 = vld [vmem:[%s12267_s23 + $0x9a0] sm:$0xff] }
 0x138   : > { %7107 = vmatpush.bf16.msra.mxu2 %v11435_v11  ;;  %7076 = vmatmul.bf16.vlgmr.msrb.gmra.mxu3 %v1880_v2  ;;  %v11457_v2 = vld [vmem:[%s12267_s23 + $0x968] sm:$0xff]  ;;  %v11472_v11 = vld [vmem:[%s12267_s23 + $0x9e0] sm:$0xff]  ;;  %v11462_v25 = vld [vmem:[%s12267_s23 + $0x990] sm:$0xff] }
 0x139   : > { %7120 = vmatpush.bf16.msra.mxu3 %v11443_v12 }
 0x13a   : > { %7082 = vmatpush.bf16.msra.mxu0 %v11418_v13  ;;  %v6856_v33 = vpop.f32.mrf.mxu2  ;;  %v6832_v36 = vpop.f32.mrf.mxu0  ;;  %v11447_v13 = vld [vmem:[%s12267_s23 + $0x918] sm:$0xff] }
 0x13b   : > { %7095 = vmatpush.bf16.msra.mxu1 %v11426_v14  ;;  %v6857_v34 = vadd.f32 %v6856_v33, %v6844_v28  ;;  %v6869_v35 = vpop.f32.mrf.mxu3  ;;  %v6845_v40 = vpop.f32.mrf.mxu1  ;;  %v11455_v14 = vld [vmem:[%s12267_s23 + $0x958] sm:$0xff]  ;;  %v11453_v28 = vld [vmem:[%s12267_s23 + $0x948] sm:$0xff] }
 0x13c   : > { %7108 = vmatpush.bf16.msra.mxu2 %v11434_v15  ;;  %v11463_v15 = vld [vmem:[%s12267_s23 + $0x998] sm:$0xff]  ;;  %v11460_v40 = vld [vmem:[%s12267_s23 + $0x980] sm:$0xff] }
 0x13d   : > { %7121 = vmatpush.bf16.msra.mxu3 %v11442_v16  ;;  %v6870_v37 = vadd.f32 %v6869_v35, %v6857_v34  ;;  %v11471_v16 = vld [vmem:[%s12267_s23 + $0x9d8] sm:$0xff]  ;;  %v1888_v34 = vld [vmem:[#allocation1 + $0x2d] sm:$0xff] }
 0x13e   : > { %7083 = vmatpush.bf16.msra.mxu0 %v11417_v17  ;;  %v1890_v35 = vld [vmem:[#allocation1 + $0x3f] sm:$0xff] }
 0x13f   : > { %7096 = vmatpush.bf16.msra.mxu1 %v11425_v18 }
 0x140   : > { %7109 = vmatpush.bf16.msra.mxu2 %v11433_v19 }
 0x141   : > { %7122 = vmatpush.bf16.msra.mxu3 %v11441_v20 }
 0x142   : > { %7084 = vmatpush.bf16.msra.mxu0 %v11416_v23  ;;  %v6858_v47 = vpop.f32.mrf.mxu2  ;;  %v11454_v23 = vld [vmem:[%s12267_s23 + $0x950] sm:$0xff] }
 0x143   : > { %7097 = vmatpush.bf16.msra.mxu1 %v11424_v24  ;;  %v6871_v48 = vpop.f32.mrf.mxu3  ;;  %v11490_v47 = vld [vmem:[%s12267_s23 + $0xa70] sm:$0xff] }
 0x144   : > { %7110 = vmatpush.bf16.msra.mxu2 %v11432_v26  ;;  %v11470_v26 = vld [vmem:[%s12267_s23 + $0x9d0] sm:$0xff] }
 0x145   : > { %7123 = vmatpush.bf16.msra.mxu3 %v11440_v27  ;;  %v11445_v27 = vld [vmem:[%s12267_s23 + $0x908] sm:$0xff]  ;;  %v11498_v48 = vld [vmem:[%s12267_s23 + $0xab0] sm:$0xff] }
 0x146   : > { %7085 = vmatpush.bf16.msra.mxu0 %v11415_v29  ;;  %v11461_v29 = vld [vmem:[%s12267_s23 + $0x988] sm:$0xff] }
 0x147   : > { %7098 = vmatpush.bf16.msra.mxu1 %v11423_v30  ;;  %v11469_v30 = vld [vmem:[%s12267_s23 + $0x9c8] sm:$0xff] }
 0x148   : > { %7111 = vmatpush.bf16.msra.mxu2 %v11431_v31  ;;  %v1887_v31 = vld [vmem:[#allocation1 + $0x24] sm:$0xff] }
 0x149   : > { %7124 = vmatpush.bf16.msra.mxu3 %v11439_v32  ;;  %v1889_v32 = vld [vmem:[#allocation1 + $0x36] sm:$0xff] }
 0x14a   : > { %7086 = vmatpush.bf16.msra.mxu0 %v11414_v38  ;;  %v11444_v38 = vld [vmem:[%s12267_s23 + $0x900] sm:$0xff] }
 0x14b   : > { %7099 = vmatpush.bf16.msra.mxu1 %v11422_v39  ;;  %v11452_v39 = vld [vmem:[%s12267_s23 + $0x940] sm:$0xff] }
 0x14c   : > { %7112 = vmatpush.bf16.msra.mxu2 %v11430_v41  ;;  %v11468_v41 = vld [vmem:[%s12267_s23 + $0x9c0] sm:$0xff] }
 0x14d   : > { %7125 = vmatpush.bf16.msra.mxu3 %v11438_v42  ;;  %v11483_v42 = vld [vmem:[%s12267_s23 + $0xa38] sm:$0xff] }
 0x14e   : > { %7087 = vmatpush.bf16.msra.mxu0 %v11413_v43  ;;  %v11491_v43 = vld [vmem:[%s12267_s23 + $0xa78] sm:$0xff] }
 0x14f   : > { %7100 = vmatpush.bf16.msra.mxu1 %v11421_v44  ;;  %v11499_v44 = vld [vmem:[%s12267_s23 + $0xab8] sm:$0xff] }
 0x150   : > { %7113 = vmatpush.bf16.msra.mxu2 %v11429_v45  ;;  %v11507_v45 = vld [vmem:[%s12267_s23 + $0xaf8] sm:$0xff] }
 0x151   : > { %7126 = vmatpush.bf16.msra.mxu3 %v11437_v46  ;;  %v11482_v46 = vld [vmem:[%s12267_s23 + $0xa30] sm:$0xff] }
 0x152   : > { %7088 = vmatpush.bf16.msra.mxu0 %v11412_v49  ;;  %v6882_v5 = vpop.f32.mrf.mxu0  ;;  %v11506_v49 = vld [vmem:[%s12267_s23 + $0xaf0] sm:$0xff] }
 0x153   : > { %7101 = vmatpush.bf16.msra.mxu1 %v11420_v50  ;;  %v6883_v6 = vadd.f32 %v6882_v5, %v6870_v37  ;;  %v6895_v9 = vpop.f32.mrf.mxu1  ;;  %v298_v37 = vld [vmem:[%s12289_s12 + $0x28] sm:$0xff]  ;;  %v11481_v50 = vld [vmem:[%s12267_s23 + $0xa28] sm:$0xff] }
 0x154   : > { %7114 = vmatpush.bf16.msra.mxu2 %v11428_v51  ;;  %1892 = vst [vmem:[#allocation1] ss:$9 sm:$0xff] %v298_v37  ;;  %v11489_v51 = vld [vmem:[%s12267_s23 + $0xa68] sm:$0xff] }
 0x155   : > { %7127 = vmatpush.bf16.msra.mxu3 %v11436_v52  ;;  %7089 = vmatmul.bf16.vlgmr.msra.gmra.mxu0 %v1883_v57  ;;  %v6896_v12 = vadd.f32 %v6895_v9, %v6883_v6  ;;  %v11497_v52 = vld [vmem:[%s12267_s23 + $0xaa8] sm:$0xff]  ;;  %v11488_v57 = vld [vmem:[%s12267_s23 + $0xa60] sm:$0xff] }
 0x156   : > { %7133 = vmatpush.bf16.msrb.mxu0 %v11451_v53  ;;  %7102 = vmatmul.bf16.vlgmr.msra.gmra.mxu1 %v1884_v59  ;;  %v11505_v53 = vld [vmem:[%s12267_s23 + $0xae8] sm:$0xff]  ;;  %v11496_v59 = vld [vmem:[%s12267_s23 + $0xaa0] sm:$0xff] }
 0x157   : > { %7146 = vmatpush.bf16.msrb.mxu1 %v11459_v54  ;;  %7115 = vmatmul.bf16.vlgmr.msra.gmra.mxu2 %v1885_v58  ;;  %v11537_v37 = vld [vmem:[%s12267_s23 + $0xbe8] sm:$0xff] }
 0x158   : > { %7159 = vmatpush.bf16.msrb.mxu2 %v11467_v55  ;;  %7128 = vmatmul.bf16.vlgmr.msra.gmra.mxu3 %v1886_v60  ;;  %v11504_v60 = vld [vmem:[%s12267_s23 + $0xae0] sm:$0xff] }
 0x159   : > { %7172 = vmatpush.bf16.msrb.mxu3 %v11475_v56  ;;  %v11480_v56 = vld [vmem:[%s12267_s23 + $0xa20] sm:$0xff] }
 0x15a   : > { %7134 = vmatpush.bf16.msrb.mxu0 %v11450_v61  ;;  %v6908_v17 = vpop.f32.mrf.mxu2  ;;  %v6884_v20 = vpop.f32.mrf.mxu0 }
 0x15b   : > { %7147 = vmatpush.bf16.msrb.mxu1 %v11458_v62  ;;  %v6909_v18 = vadd.f32 %v6908_v17, %v6896_v12  ;;  %v6921_v19 = vpop.f32.mrf.mxu3  ;;  %v6897_v24 = vpop.f32.mrf.mxu1  ;;  %v11479_v62 = vld [vmem:[%s12267_s23 + $0xa18] sm:$0xff]  ;;  %v11477_v12 = vld [vmem:[%s12267_s23 + $0xa08] sm:$0xff]  ;;  %v11492_v20 = vld [vmem:[%s12267_s23 + $0xa80] sm:$0xff] }
 0x15c   : > { %7160 = vmatpush.bf16.msrb.mxu2 %v11466_v63  ;;  %v11487_v63 = vld [vmem:[%s12267_s23 + $0xa58] sm:$0xff] }
 0x15d   : > { %7173 = vmatpush.bf16.msrb.mxu3 %v11474_v0  ;;  %v12611_v21 = vadd.f32 %v6921_v19, %v6909_v18  ;;  %v11495_v0 = vld [vmem:[%s12267_s23 + $0xa98] sm:$0xff]  ;;  %v11476_v18 = vld [vmem:[%s12267_s23 + $0xa00] sm:$0xff] }
 0x15e   : > { %7135 = vmatpush.bf16.msrb.mxu0 %v11449_v1  ;;  %v11503_v1 = vld [vmem:[%s12267_s23 + $0xad8] sm:$0xff]  ;;  %v11484_v19 = vld [vmem:[%s12267_s23 + $0xa40] sm:$0xff] }
 0x15f   : > { %7148 = vmatpush.bf16.msrb.mxu1 %v11457_v2  ;;  %v11531_v24 = vld [vmem:[%s12267_s23 + $0xbb8] sm:$0xff] }
 0x160   : > { %7161 = vmatpush.bf16.msrb.mxu2 %v11465_v3 }
 0x161   : > { %7174 = vmatpush.bf16.msrb.mxu3 %v11473_v4 }
 0x162   : > { %7136 = vmatpush.bf16.msrb.mxu0 %v11448_v7  ;;  %v6910_v33 = vpop.f32.mrf.mxu2  ;;  %v11478_v7 = vld [vmem:[%s12267_s23 + $0xa10] sm:$0xff] }
 0x163   : > { %7149 = vmatpush.bf16.msrb.mxu1 %v11456_v8  ;;  %v6923_v36 = vpop.f32.mrf.mxu3  ;;  %v11486_v8 = vld [vmem:[%s12267_s23 + $0xa50] sm:$0xff] }
 0x164   : > { %7162 = vmatpush.bf16.msrb.mxu2 %v11464_v10  ;;  %v11494_v10 = vld [vmem:[%s12267_s23 + $0xa90] sm:$0xff]  ;;  %v11529_v36 = vld [vmem:[%s12267_s23 + $0xba8] sm:$0xff] }
 0x165   : > { %7175 = vmatpush.bf16.msrb.mxu3 %v11472_v11  ;;  %v11502_v11 = vld [vmem:[%s12267_s23 + $0xad0] sm:$0xff] }
 0x166   : > { %7137 = vmatpush.bf16.msrb.mxu0 %v11447_v13  ;;  %v11485_v13 = vld [vmem:[%s12267_s23 + $0xa48] sm:$0xff]  ;;  %v11538_v33 = vld [vmem:[%s12267_s23 + $0xbf0] sm:$0xff] }
 0x167   : > { %7150 = vmatpush.bf16.msrb.mxu1 %v11455_v14  ;;  %v11493_v14 = vld [vmem:[%s12267_s23 + $0xa88] sm:$0xff] }
 0x168   : > { %7163 = vmatpush.bf16.msrb.mxu2 %v11463_v15  ;;  %v11501_v15 = vld [vmem:[%s12267_s23 + $0xac8] sm:$0xff] }
 0x169   : > { %7176 = vmatpush.bf16.msrb.mxu3 %v11471_v16 }
 0x16a   : > { %7138 = vmatpush.bf16.msrb.mxu0 %v11446_v22  ;;  %v11515_v22 = vld [vmem:[%s12267_s23 + $0xb38] sm:$0xff] }
 0x16b   : > { %7151 = vmatpush.bf16.msrb.mxu1 %v11454_v23  ;;  %v11523_v23 = vld [vmem:[%s12267_s23 + $0xb78] sm:$0xff] }
 0x16c   : > { %7164 = vmatpush.bf16.msrb.mxu2 %v11462_v25  ;;  %v11539_v25 = vld [vmem:[%s12267_s23 + $0xbf8] sm:$0xff] }
 0x16d   : > { %7177 = vmatpush.bf16.msrb.mxu3 %v11470_v26  ;;  %v1893_v26 = vld [vmem:[#allocation1] sm:$0xff] }
 0x16e   : > { %7139 = vmatpush.bf16.msrb.mxu0 %v11445_v27  ;;  %v1895_v27 = vld [vmem:[#allocation1 + $0x12] sm:$0xff] }
 0x16f   : > { %7152 = vmatpush.bf16.msrb.mxu1 %v11453_v28  ;;  %v1894_v28 = vld [vmem:[#allocation1 + $0x9] sm:$0xff] }
 0x170   : > { %7165 = vmatpush.bf16.msrb.mxu2 %v11461_v29  ;;  %v1896_v29 = vld [vmem:[#allocation1 + $0x1b] sm:$0xff] }
 0x171   : > { %7178 = vmatpush.bf16.msrb.mxu3 %v11469_v30  ;;  %v11514_v30 = vld [vmem:[%s12267_s23 + $0xb30] sm:$0xff] }
 0x172   : > { %7140 = vmatpush.bf16.msrb.mxu0 %v11444_v38  ;;  %v6934_v54 = vpop.f32.mrf.mxu0 }
 0x173   : > { %7153 = vmatpush.bf16.msrb.mxu1 %v11452_v39  ;;  %v6935_v55 = vadd.f32 %v6934_v54, %v12611_v21  ;;  %v6947_v58 = vpop.f32.mrf.mxu1  ;;  %v11500_v21 = vld [vmem:[%s12267_s23 + $0xac0] sm:$0xff] }
 0x174   : > { %7166 = vmatpush.bf16.msrb.mxu2 %v11460_v40  ;;  %v11512_v40 = vld [vmem:[%s12267_s23 + $0xb20] sm:$0xff] }
 0x175   : > { %7179 = vmatpush.bf16.msrb.mxu3 %v11468_v41  ;;  %7141 = vmatmul.bf16.vlgmr.msrb.gmra.mxu0 %v1887_v31  ;;  %v6948_v61 = vadd.f32 %v6947_v58, %v6935_v55  ;;  %v11522_v31 = vld [vmem:[%s12267_s23 + $0xb70] sm:$0xff]  ;;  %v11520_v41 = vld [vmem:[%s12267_s23 + $0xb60] sm:$0xff] }
 0x176   : > { %7185 = vmatpush.bf16.msra.mxu0 %v11483_v42  ;;  %7154 = vmatmul.bf16.vlgmr.msrb.gmra.mxu1 %v1888_v34  ;;  %v11513_v34 = vld [vmem:[%s12267_s23 + $0xb28] sm:$0xff]  ;;  %v11510_v55 = vld [vmem:[%s12267_s23 + $0xb10] sm:$0xff] }
 0x177   : > { %7198 = vmatpush.bf16.msra.mxu1 %v11491_v43  ;;  %7167 = vmatmul.bf16.vlgmr.msrb.gmra.mxu2 %v1889_v32  ;;  %v11530_v32 = vld [vmem:[%s12267_s23 + $0xbb0] sm:$0xff]  ;;  %v11528_v43 = vld [vmem:[%s12267_s23 + $0xba0] sm:$0xff] }
 0x178   : > { %7211 = vmatpush.bf16.msra.mxu2 %v11499_v44  ;;  %7180 = vmatmul.bf16.vlgmr.msrb.gmra.mxu3 %v1890_v35  ;;  %v11521_v35 = vld [vmem:[%s12267_s23 + $0xb68] sm:$0xff]  ;;  %v11536_v44 = vld [vmem:[%s12267_s23 + $0xbe0] sm:$0xff]  ;;  %v11526_v58 = vld [vmem:[%s12267_s23 + $0xb90] sm:$0xff] }
 0x179   : > { %7224 = vmatpush.bf16.msra.mxu3 %v11507_v45 }
 0x17a   : > { %7186 = vmatpush.bf16.msra.mxu0 %v11482_v46  ;;  %v6960_v2 = vpop.f32.mrf.mxu2  ;;  %v6936_v5 = vpop.f32.mrf.mxu0  ;;  %v11511_v46 = vld [vmem:[%s12267_s23 + $0xb18] sm:$0xff] }
 0x17b   : > { %7199 = vmatpush.bf16.msra.mxu1 %v11490_v47  ;;  %v6961_v3 = vadd.f32 %v6960_v2, %v6948_v61  ;;  %v6973_v4 = vpop.f32.mrf.mxu3  ;;  %v6949_v9 = vpop.f32.mrf.mxu1  ;;  %v11519_v47 = vld [vmem:[%s12267_s23 + $0xb58] sm:$0xff]  ;;  %v11517_v61 = vld [vmem:[%s12267_s23 + $0xb48] sm:$0xff] }
 0x17c   : > { %7212 = vmatpush.bf16.msra.mxu2 %v11498_v48  ;;  %v11527_v48 = vld [vmem:[%s12267_s23 + $0xb98] sm:$0xff]  ;;  %v11524_v9 = vld [vmem:[%s12267_s23 + $0xb80] sm:$0xff] }
 0x17d   : > { %7225 = vmatpush.bf16.msra.mxu3 %v11506_v49  ;;  %v6974_v6 = vadd.f32 %v6973_v4, %v6961_v3  ;;  %v11535_v49 = vld [vmem:[%s12267_s23 + $0xbd8] sm:$0xff]  ;;  %v1898_v3 = vld [vmem:[#allocation1 + $0x2d] sm:$0xff] }
 0x17e   : > { %7187 = vmatpush.bf16.msra.mxu0 %v11481_v50  ;;  %v1900_v4 = vld [vmem:[#allocation1 + $0x3f] sm:$0xff] }
 0x17f   : > { %7200 = vmatpush.bf16.msra.mxu1 %v11489_v51 }
 0x180   : > { %7213 = vmatpush.bf16.msra.mxu2 %v11497_v52 }
 0x181   : > { %7226 = vmatpush.bf16.msra.mxu3 %v11505_v53 }
 0x182   : > { %7188 = vmatpush.bf16.msra.mxu0 %v11480_v56  ;;  %v6962_v16 = vpop.f32.mrf.mxu2  ;;  %v11518_v56 = vld [vmem:[%s12267_s23 + $0xb50] sm:$0xff] }
 0x183   : > { %7201 = vmatpush.bf16.msra.mxu1 %v11488_v57  ;;  %v6975_v17 = vpop.f32.mrf.mxu3  ;;  %v11554_v16 = vld [vmem:[%s12267_s23 + $0xc70] sm:$0xff] }
 0x184   : > { %7214 = vmatpush.bf16.msra.mxu2 %v11496_v59  ;;  %v11534_v59 = vld [vmem:[%s12267_s23 + $0xbd0] sm:$0xff] }
 0x185   : > { %7227 = vmatpush.bf16.msra.mxu3 %v11504_v60  ;;  %v11509_v60 = vld [vmem:[%s12267_s23 + $0xb08] sm:$0xff]  ;;  %v11562_v17 = vld [vmem:[%s12267_s23 + $0xcb0] sm:$0xff] }
 0x186   : > { %7189 = vmatpush.bf16.msra.mxu0 %v11479_v62  ;;  %v11525_v62 = vld [vmem:[%s12267_s23 + $0xb88] sm:$0xff] }
 0x187   : > { %7202 = vmatpush.bf16.msra.mxu1 %v11487_v63  ;;  %v11533_v63 = vld [vmem:[%s12267_s23 + $0xbc8] sm:$0xff] }
 0x188   : > { %7215 = vmatpush.bf16.msra.mxu2 %v11495_v0  ;;  %v1897_v0 = vld [vmem:[#allocation1 + $0x24] sm:$0xff] }
 0x189   : > { %7228 = vmatpush.bf16.msra.mxu3 %v11503_v1  ;;  %v1899_v1 = vld [vmem:[#allocation1 + $0x36] sm:$0xff] }
 0x18a   : > { %7190 = vmatpush.bf16.msra.mxu0 %v11478_v7  ;;  %v11508_v7 = vld [vmem:[%s12267_s23 + $0xb00] sm:$0xff] }
 0x18b   : > { %7203 = vmatpush.bf16.msra.mxu1 %v11486_v8  ;;  %v11516_v8 = vld [vmem:[%s12267_s23 + $0xb40] sm:$0xff] }
 0x18c   : > { %7216 = vmatpush.bf16.msra.mxu2 %v11494_v10  ;;  %v11532_v10 = vld [vmem:[%s12267_s23 + $0xbc0] sm:$0xff] }
 0x18d   : > { %7229 = vmatpush.bf16.msra.mxu3 %v11502_v11  ;;  %v11547_v11 = vld [vmem:[%s12267_s23 + $0xc38] sm:$0xff] }
 0x18e   : > { %7191 = vmatpush.bf16.msra.mxu0 %v11477_v12  ;;  %v11555_v12 = vld [vmem:[%s12267_s23 + $0xc78] sm:$0xff] }
 0x18f   : > { %7204 = vmatpush.bf16.msra.mxu1 %v11485_v13  ;;  %v11563_v13 = vld [vmem:[%s12267_s23 + $0xcb8] sm:$0xff] }
 0x190   : > { %7217 = vmatpush.bf16.msra.mxu2 %v11493_v14  ;;  %v11571_v14 = vld [vmem:[%s12267_s23 + $0xcf8] sm:$0xff] }
 0x191   : > { %7230 = vmatpush.bf16.msra.mxu3 %v11501_v15  ;;  %v11546_v15 = vld [vmem:[%s12267_s23 + $0xc30] sm:$0xff] }
 0x192   : > { %7192 = vmatpush.bf16.msra.mxu0 %v11476_v18  ;;  %v6986_v38 = vpop.f32.mrf.mxu0  ;;  %v11570_v18 = vld [vmem:[%s12267_s23 + $0xcf0] sm:$0xff] }
 0x193   : > { %7205 = vmatpush.bf16.msra.mxu1 %v11484_v19  ;;  %v6987_v39 = vadd.f32 %v6986_v38, %v6974_v6  ;;  %v6999_v42 = vpop.f32.mrf.mxu1  ;;  %v299_v6 = vld [vmem:[%s12289_s12 + $0x30] sm:$0xff] }
 0x194   : > { %7218 = vmatpush.bf16.msra.mxu2 %v11492_v20  ;;  %1902 = vst [vmem:[#allocation1] ss:$9 sm:$0xff] %v299_v6  ;;  %v11545_v19 = vld [vmem:[%s12267_s23 + $0xc28] sm:$0xff] }
 0x195   : > { %7231 = vmatpush.bf16.msra.mxu3 %v11500_v21  ;;  %7193 = vmatmul.bf16.vlgmr.msra.gmra.mxu0 %v1893_v26  ;;  %v7000_v45 = vadd.f32 %v6999_v42, %v6987_v39  ;;  %v11553_v20 = vld [vmem:[%s12267_s23 + $0xc68] sm:$0xff]  ;;  %v11552_v26 = vld [vmem:[%s12267_s23 + $0xc60] sm:$0xff] }
 0x196   : > { %7237 = vmatpush.bf16.msrb.mxu0 %v11515_v22  ;;  %7206 = vmatmul.bf16.vlgmr.msra.gmra.mxu1 %v1894_v28  ;;  %v11561_v21 = vld [vmem:[%s12267_s23 + $0xca8] sm:$0xff]  ;;  %v11560_v28 = vld [vmem:[%s12267_s23 + $0xca0] sm:$0xff] }
 0x197   : > { %7250 = vmatpush.bf16.msrb.mxu1 %v11523_v23  ;;  %7219 = vmatmul.bf16.vlgmr.msra.gmra.mxu2 %v1895_v27  ;;  %v11569_v22 = vld [vmem:[%s12267_s23 + $0xce8] sm:$0xff] }
 0x198   : > { %7263 = vmatpush.bf16.msrb.mxu2 %v11531_v24  ;;  %7232 = vmatmul.bf16.vlgmr.msra.gmra.mxu3 %v1896_v29  ;;  %v11568_v29 = vld [vmem:[%s12267_s23 + $0xce0] sm:$0xff]  ;;  %v11601_v6 = vld [vmem:[%s12267_s23 + $0xde8] sm:$0xff] }
 0x199   : > { %7276 = vmatpush.bf16.msrb.mxu3 %v11539_v25  ;;  %v11544_v25 = vld [vmem:[%s12267_s23 + $0xc20] sm:$0xff] }
 0x19a   : > { %7238 = vmatpush.bf16.msrb.mxu0 %v11514_v30  ;;  %v7012_v50 = vpop.f32.mrf.mxu2  ;;  %v6988_v53 = vpop.f32.mrf.mxu0 }
 0x19b   : > { %7251 = vmatpush.bf16.msrb.mxu1 %v11522_v31  ;;  %v7013_v51 = vadd.f32 %v7012_v50, %v7000_v45  ;;  %v7025_v52 = vpop.f32.mrf.mxu3  ;;  %v7001_v57 = vpop.f32.mrf.mxu1  ;;  %v11543_v31 = vld [vmem:[%s12267_s23 + $0xc18] sm:$0xff]  ;;  %v11541_v45 = vld [vmem:[%s12267_s23 + $0xc08] sm:$0xff]  ;;  %v11556_v53 = vld [vmem:[%s12267_s23 + $0xc80] sm:$0xff] }
 0x19c   : > { %7264 = vmatpush.bf16.msrb.mxu2 %v11530_v32  ;;  %v11551_v32 = vld [vmem:[%s12267_s23 + $0xc58] sm:$0xff] }
 0x19d   : > { %7277 = vmatpush.bf16.msrb.mxu3 %v11538_v33  ;;  %v12679_v54 = vadd.f32 %v7025_v52, %v7013_v51  ;;  %v11559_v33 = vld [vmem:[%s12267_s23 + $0xc98] sm:$0xff]  ;;  %v11540_v51 = vld [vmem:[%s12267_s23 + $0xc00] sm:$0xff] }
 0x19e   : > { %7239 = vmatpush.bf16.msrb.mxu0 %v11513_v34  ;;  %v11567_v34 = vld [vmem:[%s12267_s23 + $0xcd8] sm:$0xff]  ;;  %v11548_v52 = vld [vmem:[%s12267_s23 + $0xc40] sm:$0xff] }
 0x19f   : > { %7252 = vmatpush.bf16.msrb.mxu1 %v11521_v35  ;;  %v11595_v57 = vld [vmem:[%s12267_s23 + $0xdb8] sm:$0xff] }
 0x1a0   : > { %7265 = vmatpush.bf16.msrb.mxu2 %v11529_v36 }
 0x1a1   : > { %7278 = vmatpush.bf16.msrb.mxu3 %v11537_v37 }
 0x1a2   : > { %7240 = vmatpush.bf16.msrb.mxu0 %v11512_v40  ;;  %v7014_v2 = vpop.f32.mrf.mxu2  ;;  %v11542_v40 = vld [vmem:[%s12267_s23 + $0xc10] sm:$0xff] }
 0x1a3   : > { %7253 = vmatpush.bf16.msrb.mxu1 %v11520_v41  ;;  %v7027_v5 = vpop.f32.mrf.mxu3  ;;  %v11550_v41 = vld [vmem:[%s12267_s23 + $0xc50] sm:$0xff] }
 0x1a4   : > { %7266 = vmatpush.bf16.msrb.mxu2 %v11528_v43  ;;  %v11558_v43 = vld [vmem:[%s12267_s23 + $0xc90] sm:$0xff]  ;;  %v11593_v5 = vld [vmem:[%s12267_s23 + $0xda8] sm:$0xff] }
 0x1a5   : > { %7279 = vmatpush.bf16.msrb.mxu3 %v11536_v44  ;;  %v11566_v44 = vld [vmem:[%s12267_s23 + $0xcd0] sm:$0xff] }
 0x1a6   : > { %7241 = vmatpush.bf16.msrb.mxu0 %v11511_v46  ;;  %v11549_v46 = vld [vmem:[%s12267_s23 + $0xc48] sm:$0xff]  ;;  %v11602_v2 = vld [vmem:[%s12267_s23 + $0xdf0] sm:$0xff] }
 0x1a7   : > { %7254 = vmatpush.bf16.msrb.mxu1 %v11519_v47  ;;  %v11557_v47 = vld [vmem:[%s12267_s23 + $0xc88] sm:$0xff] }
 0x1a8   : > { %7267 = vmatpush.bf16.msrb.mxu2 %v11527_v48  ;;  %v11565_v48 = vld [vmem:[%s12267_s23 + $0xcc8] sm:$0xff] }
 0x1a9   : > { %7280 = vmatpush.bf16.msrb.mxu3 %v11535_v49 }
 0x1aa   : > { %7242 = vmatpush.bf16.msrb.mxu0 %v11510_v55  ;;  %v11579_v55 = vld [vmem:[%s12267_s23 + $0xd38] sm:$0xff] }
 0x1ab   : > { %7255 = vmatpush.bf16.msrb.mxu1 %v11518_v56  ;;  %v11587_v56 = vld [vmem:[%s12267_s23 + $0xd78] sm:$0xff] }
 0x1ac   : > { %7268 = vmatpush.bf16.msrb.mxu2 %v11526_v58  ;;  %v11603_v58 = vld [vmem:[%s12267_s23 + $0xdf8] sm:$0xff] }
 0x1ad   : > { %7281 = vmatpush.bf16.msrb.mxu3 %v11534_v59  ;;  %v1903_v59 = vld [vmem:[#allocation1] sm:$0xff] }
 0x1ae   : > { %7243 = vmatpush.bf16.msrb.mxu0 %v11509_v60  ;;  %v1905_v60 = vld [vmem:[#allocation1 + $0x12] sm:$0xff] }
 0x1af   : > { %7256 = vmatpush.bf16.msrb.mxu1 %v11517_v61  ;;  %v1904_v61 = vld [vmem:[#allocation1 + $0x9] sm:$0xff] }
 0x1b0   : > { %7269 = vmatpush.bf16.msrb.mxu2 %v11525_v62  ;;  %v1906_v62 = vld [vmem:[#allocation1 + $0x1b] sm:$0xff] }
 0x1b1   : > { %7282 = vmatpush.bf16.msrb.mxu3 %v11533_v63  ;;  %v11578_v63 = vld [vmem:[%s12267_s23 + $0xd30] sm:$0xff] }
 0x1b2   : > { %7244 = vmatpush.bf16.msrb.mxu0 %v11508_v7  ;;  %v7038_v23 = vpop.f32.mrf.mxu0 }
 0x1b3   : > { %7257 = vmatpush.bf16.msrb.mxu1 %v11516_v8  ;;  %v7039_v24 = vadd.f32 %v7038_v23, %v12679_v54  ;;  %v7051_v27 = vpop.f32.mrf.mxu1  ;;  %v11564_v54 = vld [vmem:[%s12267_s23 + $0xcc0] sm:$0xff] }
 0x1b4   : > { %7270 = vmatpush.bf16.msrb.mxu2 %v11524_v9  ;;  %v11576_v9 = vld [vmem:[%s12267_s23 + $0xd20] sm:$0xff] }
 0x1b5   : > { %7283 = vmatpush.bf16.msrb.mxu3 %v11532_v10  ;;  %7245 = vmatmul.bf16.vlgmr.msrb.gmra.mxu0 %v1897_v0  ;;  %v7052_v30 = vadd.f32 %v7051_v27, %v7039_v24  ;;  %v11586_v0 = vld [vmem:[%s12267_s23 + $0xd70] sm:$0xff]  ;;  %v11584_v10 = vld [vmem:[%s12267_s23 + $0xd60] sm:$0xff] }
 0x1b6   : > { %7289 = vmatpush.bf16.msra.mxu0 %v11547_v11  ;;  %7258 = vmatmul.bf16.vlgmr.msrb.gmra.mxu1 %v1898_v3  ;;  %v11577_v3 = vld [vmem:[%s12267_s23 + $0xd28] sm:$0xff]  ;;  %v11574_v24 = vld [vmem:[%s12267_s23 + $0xd10] sm:$0xff] }
 0x1b7   : > { %7302 = vmatpush.bf16.msra.mxu1 %v11555_v12  ;;  %7271 = vmatmul.bf16.vlgmr.msrb.gmra.mxu2 %v1899_v1  ;;  %v11594_v1 = vld [vmem:[%s12267_s23 + $0xdb0] sm:$0xff]  ;;  %v11592_v12 = vld [vmem:[%s12267_s23 + $0xda0] sm:$0xff] }
 0x1b8   : > { %7315 = vmatpush.bf16.msra.mxu2 %v11563_v13  ;;  %7284 = vmatmul.bf16.vlgmr.msrb.gmra.mxu3 %v1900_v4  ;;  %v11585_v4 = vld [vmem:[%s12267_s23 + $0xd68] sm:$0xff]  ;;  %v11600_v13 = vld [vmem:[%s12267_s23 + $0xde0] sm:$0xff]  ;;  %v11590_v27 = vld [vmem:[%s12267_s23 + $0xd90] sm:$0xff] }
 0x1b9   : > { %7328 = vmatpush.bf16.msra.mxu3 %v11571_v14 }
 0x1ba   : > { %7290 = vmatpush.bf16.msra.mxu0 %v11546_v15  ;;  %v7064_v35 = vpop.f32.mrf.mxu2  ;;  %v7040_v38 = vpop.f32.mrf.mxu0  ;;  %v11575_v15 = vld [vmem:[%s12267_s23 + $0xd18] sm:$0xff] }
 0x1bb   : > { %7303 = vmatpush.bf16.msra.mxu1 %v11554_v16  ;;  %v7065_v36 = vadd.f32 %v7064_v35, %v7052_v30  ;;  %v7077_v37 = vpop.f32.mrf.mxu3  ;;  %v7053_v42 = vpop.f32.mrf.mxu1  ;;  %v11583_v16 = vld [vmem:[%s12267_s23 + $0xd58] sm:$0xff]  ;;  %v11581_v30 = vld [vmem:[%s12267_s23 + $0xd48] sm:$0xff] }
 0x1bc   : > { %7316 = vmatpush.bf16.msra.mxu2 %v11562_v17  ;;  %v11591_v17 = vld [vmem:[%s12267_s23 + $0xd98] sm:$0xff]  ;;  %v11588_v42 = vld [vmem:[%s12267_s23 + $0xd80] sm:$0xff] }
 0x1bd   : > { %7329 = vmatpush.bf16.msra.mxu3 %v11570_v18  ;;  %v7078_v39 = vadd.f32 %v7077_v37, %v7065_v36  ;;  %v11599_v18 = vld [vmem:[%s12267_s23 + $0xdd8] sm:$0xff]  ;;  %v1908_v36 = vld [vmem:[#allocation1 + $0x2d] sm:$0xff] }
 0x1be   : > { %7291 = vmatpush.bf16.msra.mxu0 %v11545_v19  ;;  %v1910_v37 = vld [vmem:[#allocation1 + $0x3f] sm:$0xff] }
 0x1bf   : > { %7304 = vmatpush.bf16.msra.mxu1 %v11553_v20 }
 0x1c0   : > { %7317 = vmatpush.bf16.msra.mxu2 %v11561_v21 }
 0x1c1   : > { %7330 = vmatpush.bf16.msra.mxu3 %v11569_v22 }
 0x1c2   : > { %7292 = vmatpush.bf16.msra.mxu0 %v11544_v25  ;;  %v7066_v49 = vpop.f32.mrf.mxu2  ;;  %v11582_v25 = vld [vmem:[%s12267_s23 + $0xd50] sm:$0xff] }
 0x1c3   : > { %7305 = vmatpush.bf16.msra.mxu1 %v11552_v26  ;;  %v7079_v50 = vpop.f32.mrf.mxu3  ;;  %v11618_v49 = vld [vmem:[%s12267_s23 + $0xe70] sm:$0xff] }
 0x1c4   : > { %7318 = vmatpush.bf16.msra.mxu2 %v11560_v28  ;;  %v11598_v28 = vld [vmem:[%s12267_s23 + $0xdd0] sm:$0xff] }
 0x1c5   : > { %7331 = vmatpush.bf16.msra.mxu3 %v11568_v29  ;;  %v11573_v29 = vld [vmem:[%s12267_s23 + $0xd08] sm:$0xff]  ;;  %v11626_v50 = vld [vmem:[%s12267_s23 + $0xeb0] sm:$0xff] }
 0x1c6   : > { %7293 = vmatpush.bf16.msra.mxu0 %v11543_v31  ;;  %v11589_v31 = vld [vmem:[%s12267_s23 + $0xd88] sm:$0xff] }
 0x1c7   : > { %7306 = vmatpush.bf16.msra.mxu1 %v11551_v32  ;;  %v11597_v32 = vld [vmem:[%s12267_s23 + $0xdc8] sm:$0xff] }
 0x1c8   : > { %7319 = vmatpush.bf16.msra.mxu2 %v11559_v33  ;;  %v1907_v33 = vld [vmem:[#allocation1 + $0x24] sm:$0xff] }
 0x1c9   : > { %7332 = vmatpush.bf16.msra.mxu3 %v11567_v34  ;;  %v1909_v34 = vld [vmem:[#allocation1 + $0x36] sm:$0xff] }
 0x1ca   : > { %7294 = vmatpush.bf16.msra.mxu0 %v11542_v40  ;;  %v11572_v40 = vld [vmem:[%s12267_s23 + $0xd00] sm:$0xff] }
 0x1cb   : > { %7307 = vmatpush.bf16.msra.mxu1 %v11550_v41  ;;  %v11580_v41 = vld [vmem:[%s12267_s23 + $0xd40] sm:$0xff] }
 0x1cc   : > { %7320 = vmatpush.bf16.msra.mxu2 %v11558_v43  ;;  %v11596_v43 = vld [vmem:[%s12267_s23 + $0xdc0] sm:$0xff] }
 0x1cd   : > { %7333 = vmatpush.bf16.msra.mxu3 %v11566_v44  ;;  %v11611_v44 = vld [vmem:[%s12267_s23 + $0xe38] sm:$0xff] }
 0x1ce   : > { %7295 = vmatpush.bf16.msra.mxu0 %v11541_v45  ;;  %v11619_v45 = vld [vmem:[%s12267_s23 + $0xe78] sm:$0xff] }
 0x1cf   : > { %7308 = vmatpush.bf16.msra.mxu1 %v11549_v46  ;;  %v11627_v46 = vld [vmem:[%s12267_s23 + $0xeb8] sm:$0xff] }
 0x1d0   : > { %7321 = vmatpush.bf16.msra.mxu2 %v11557_v47  ;;  %v11635_v47 = vld [vmem:[%s12267_s23 + $0xef8] sm:$0xff] }
 0x1d1   : > { %7334 = vmatpush.bf16.msra.mxu3 %v11565_v48  ;;  %v11610_v48 = vld [vmem:[%s12267_s23 + $0xe30] sm:$0xff] }
 0x1d2   : > { %7296 = vmatpush.bf16.msra.mxu0 %v11540_v51  ;;  %v7090_v7 = vpop.f32.mrf.mxu0  ;;  %v11634_v51 = vld [vmem:[%s12267_s23 + $0xef0] sm:$0xff] }
 0x1d3   : > { %7309 = vmatpush.bf16.msra.mxu1 %v11548_v52  ;;  %v7091_v8 = vadd.f32 %v7090_v7, %v7078_v39  ;;  %v7103_v11 = vpop.f32.mrf.mxu1  ;;  %v300_v39 = vld [vmem:[%s12289_s12 + $0x38] sm:$0xff] }
 0x1d4   : > { %7322 = vmatpush.bf16.msra.mxu2 %v11556_v53  ;;  %1912 = vst [vmem:[#allocation1] ss:$9 sm:$0xff] %v300_v39  ;;  %v11609_v52 = vld [vmem:[%s12267_s23 + $0xe28] sm:$0xff] }
 0x1d5   : > { %7335 = vmatpush.bf16.msra.mxu3 %v11564_v54  ;;  %7297 = vmatmul.bf16.vlgmr.msra.gmra.mxu0 %v1903_v59  ;;  %v7104_v14 = vadd.f32 %v7103_v11, %v7091_v8  ;;  %v11617_v53 = vld [vmem:[%s12267_s23 + $0xe68] sm:$0xff]  ;;  %v11616_v59 = vld [vmem:[%s12267_s23 + $0xe60] sm:$0xff] }
 0x1d6   : > { %7341 = vmatpush.bf16.msrb.mxu0 %v11579_v55  ;;  %7310 = vmatmul.bf16.vlgmr.msra.gmra.mxu1 %v1904_v61  ;;  %v11625_v54 = vld [vmem:[%s12267_s23 + $0xea8] sm:$0xff]  ;;  %v11624_v61 = vld [vmem:[%s12267_s23 + $0xea0] sm:$0xff] }
 0x1d7   : > { %7354 = vmatpush.bf16.msrb.mxu1 %v11587_v56  ;;  %7323 = vmatmul.bf16.vlgmr.msra.gmra.mxu2 %v1905_v60  ;;  %v11633_v55 = vld [vmem:[%s12267_s23 + $0xee8] sm:$0xff] }
 0x1d8   : > { %7367 = vmatpush.bf16.msrb.mxu2 %v11595_v57  ;;  %7336 = vmatmul.bf16.vlgmr.msra.gmra.mxu3 %v1906_v62  ;;  %v11632_v62 = vld [vmem:[%s12267_s23 + $0xee0] sm:$0xff]  ;;  %v11665_v39 = vld [vmem:[%s12267_s23 + $0xfe8] sm:$0xff] }
 0x1d9   : > { %7380 = vmatpush.bf16.msrb.mxu3 %v11603_v58  ;;  %v11608_v58 = vld [vmem:[%s12267_s23 + $0xe20] sm:$0xff] }
 0x1da   : > { %7342 = vmatpush.bf16.msrb.mxu0 %v11578_v63  ;;  %v7116_v19 = vpop.f32.mrf.mxu2  ;;  %v7092_v22 = vpop.f32.mrf.mxu0 }
 0x1db   : > { %7355 = vmatpush.bf16.msrb.mxu1 %v11586_v0  ;;  %v7117_v20 = vadd.f32 %v7116_v19, %v7104_v14  ;;  %v7129_v21 = vpop.f32.mrf.mxu3  ;;  %v7105_v26 = vpop.f32.mrf.mxu1  ;;  %v11607_v0 = vld [vmem:[%s12267_s23 + $0xe18] sm:$0xff]  ;;  %v11605_v14 = vld [vmem:[%s12267_s23 + $0xe08] sm:$0xff]  ;;  %v11620_v22 = vld [vmem:[%s12267_s23 + $0xe80] sm:$0xff] }
 0x1dc   : > { %7368 = vmatpush.bf16.msrb.mxu2 %v11594_v1  ;;  %v11615_v1 = vld [vmem:[%s12267_s23 + $0xe58] sm:$0xff] }
 0x1dd   : > { %7381 = vmatpush.bf16.msrb.mxu3 %v11602_v2  ;;  %v12747_v23 = vadd.f32 %v7129_v21, %v7117_v20  ;;  %v11623_v2 = vld [vmem:[%s12267_s23 + $0xe98] sm:$0xff]  ;;  %v11604_v20 = vld [vmem:[%s12267_s23 + $0xe00] sm:$0xff] }
 0x1de   : > { %7343 = vmatpush.bf16.msrb.mxu0 %v11577_v3  ;;  %v11631_v3 = vld [vmem:[%s12267_s23 + $0xed8] sm:$0xff]  ;;  %v11612_v21 = vld [vmem:[%s12267_s23 + $0xe40] sm:$0xff] }
 0x1df   : > { %7356 = vmatpush.bf16.msrb.mxu1 %v11585_v4  ;;  %v11659_v26 = vld [vmem:[%s12267_s23 + $0xfb8] sm:$0xff] }
 0x1e0   : > { %7369 = vmatpush.bf16.msrb.mxu2 %v11593_v5 }
 0x1e1   : > { %7382 = vmatpush.bf16.msrb.mxu3 %v11601_v6 }
 0x1e2   : > { %7344 = vmatpush.bf16.msrb.mxu0 %v11576_v9  ;;  %v7118_v35 = vpop.f32.mrf.mxu2  ;;  %v11606_v9 = vld [vmem:[%s12267_s23 + $0xe10] sm:$0xff] }
 0x1e3   : > { %7357 = vmatpush.bf16.msrb.mxu1 %v11584_v10  ;;  %v7131_v38 = vpop.f32.mrf.mxu3  ;;  %v11614_v10 = vld [vmem:[%s12267_s23 + $0xe50] sm:$0xff] }
 0x1e4   : > { %7370 = vmatpush.bf16.msrb.mxu2 %v11592_v12  ;;  %v11622_v12 = vld [vmem:[%s12267_s23 + $0xe90] sm:$0xff]  ;;  %v11657_v38 = vld [vmem:[%s12267_s23 + $0xfa8] sm:$0xff] }
 0x1e5   : > { %7383 = vmatpush.bf16.msrb.mxu3 %v11600_v13  ;;  %v11630_v13 = vld [vmem:[%s12267_s23 + $0xed0] sm:$0xff] }
 0x1e6   : > { %7345 = vmatpush.bf16.msrb.mxu0 %v11575_v15  ;;  %v11613_v15 = vld [vmem:[%s12267_s23 + $0xe48] sm:$0xff]  ;;  %v11666_v35 = vld [vmem:[%s12267_s23 + $0xff0] sm:$0xff] }
 0x1e7   : > { %7358 = vmatpush.bf16.msrb.mxu1 %v11583_v16  ;;  %v11621_v16 = vld [vmem:[%s12267_s23 + $0xe88] sm:$0xff] }
 0x1e8   : > { %7371 = vmatpush.bf16.msrb.mxu2 %v11591_v17  ;;  %v11629_v17 = vld [vmem:[%s12267_s23 + $0xec8] sm:$0xff] }
 0x1e9   : > { %7384 = vmatpush.bf16.msrb.mxu3 %v11599_v18 }
 0x1ea   : > { %7346 = vmatpush.bf16.msrb.mxu0 %v11574_v24  ;;  %v11643_v24 = vld [vmem:[%s12267_s23 + $0xf38] sm:$0xff] }
 0x1eb   : > { %7359 = vmatpush.bf16.msrb.mxu1 %v11582_v25  ;;  %v11651_v25 = vld [vmem:[%s12267_s23 + $0xf78] sm:$0xff] }
 0x1ec   : > { %7372 = vmatpush.bf16.msrb.mxu2 %v11590_v27  ;;  %v11667_v27 = vld [vmem:[%s12267_s23 + $0xff8] sm:$0xff] }
 0x1ed   : > { %7385 = vmatpush.bf16.msrb.mxu3 %v11598_v28  ;;  %v1913_v28 = vld [vmem:[#allocation1] sm:$0xff] }
 0x1ee   : > { %7347 = vmatpush.bf16.msrb.mxu0 %v11573_v29  ;;  %v1915_v29 = vld [vmem:[#allocation1 + $0x12] sm:$0xff] }
 0x1ef   : > { %7360 = vmatpush.bf16.msrb.mxu1 %v11581_v30  ;;  %v1914_v30 = vld [vmem:[#allocation1 + $0x9] sm:$0xff] }
 0x1f0   : > { %7373 = vmatpush.bf16.msrb.mxu2 %v11589_v31  ;;  %v1916_v31 = vld [vmem:[#allocation1 + $0x1b] sm:$0xff] }
 0x1f1   : > { %7386 = vmatpush.bf16.msrb.mxu3 %v11597_v32  ;;  %v11642_v32 = vld [vmem:[%s12267_s23 + $0xf30] sm:$0xff] }
 0x1f2   : > { %7348 = vmatpush.bf16.msrb.mxu0 %v11572_v40  ;;  %v7142_v56 = vpop.f32.mrf.mxu0 }
 0x1f3   : > { %7361 = vmatpush.bf16.msrb.mxu1 %v11580_v41  ;;  %v7143_v57 = vadd.f32 %v7142_v56, %v12747_v23  ;;  %v7155_v60 = vpop.f32.mrf.mxu1  ;;  %v11628_v23 = vld [vmem:[%s12267_s23 + $0xec0] sm:$0xff] }
 0x1f4   : > { %7374 = vmatpush.bf16.msrb.mxu2 %v11588_v42  ;;  %v11640_v42 = vld [vmem:[%s12267_s23 + $0xf20] sm:$0xff] }
 0x1f5   : > { %7387 = vmatpush.bf16.msrb.mxu3 %v11596_v43  ;;  %7349 = vmatmul.bf16.vlgmr.msrb.gmra.mxu0 %v1907_v33  ;;  %v7156_v63 = vadd.f32 %v7155_v60, %v7143_v57  ;;  %v11650_v33 = vld [vmem:[%s12267_s23 + $0xf70] sm:$0xff]  ;;  %v11648_v43 = vld [vmem:[%s12267_s23 + $0xf60] sm:$0xff] }
 0x1f6   : > { %7393 = vmatpush.bf16.msra.mxu0 %v11611_v44  ;;  %7362 = vmatmul.bf16.vlgmr.msrb.gmra.mxu1 %v1908_v36  ;;  %v11641_v36 = vld [vmem:[%s12267_s23 + $0xf28] sm:$0xff]  ;;  %v11638_v57 = vld [vmem:[%s12267_s23 + $0xf10] sm:$0xff] }
 0x1f7   : > { %7406 = vmatpush.bf16.msra.mxu1 %v11619_v45  ;;  %7375 = vmatmul.bf16.vlgmr.msrb.gmra.mxu2 %v1909_v34  ;;  %v11658_v34 = vld [vmem:[%s12267_s23 + $0xfb0] sm:$0xff]  ;;  %v11656_v45 = vld [vmem:[%s12267_s23 + $0xfa0] sm:$0xff] }
 0x1f8   : > { %7419 = vmatpush.bf16.msra.mxu2 %v11627_v46  ;;  %7388 = vmatmul.bf16.vlgmr.msrb.gmra.mxu3 %v1910_v37  ;;  %v11649_v37 = vld [vmem:[%s12267_s23 + $0xf68] sm:$0xff]  ;;  %v11664_v46 = vld [vmem:[%s12267_s23 + $0xfe0] sm:$0xff]  ;;  %v11654_v60 = vld [vmem:[%s12267_s23 + $0xf90] sm:$0xff] }
 0x1f9   : > { %7432 = vmatpush.bf16.msra.mxu3 %v11635_v47 }
 0x1fa   : > { %7394 = vmatpush.bf16.msra.mxu0 %v11610_v48  ;;  %v7168_v4 = vpop.f32.mrf.mxu2  ;;  %v7144_v7 = vpop.f32.mrf.mxu0  ;;  %v11639_v48 = vld [vmem:[%s12267_s23 + $0xf18] sm:$0xff] }
 0x1fb   : > { %7407 = vmatpush.bf16.msra.mxu1 %v11618_v49  ;;  %v7169_v5 = vadd.f32 %v7168_v4, %v7156_v63  ;;  %v7181_v6 = vpop.f32.mrf.mxu3  ;;  %v7157_v11 = vpop.f32.mrf.mxu1  ;;  %v11647_v49 = vld [vmem:[%s12267_s23 + $0xf58] sm:$0xff]  ;;  %v11645_v63 = vld [vmem:[%s12267_s23 + $0xf48] sm:$0xff] }
 0x1fc   : > { %7420 = vmatpush.bf16.msra.mxu2 %v11626_v50  ;;  %v11655_v50 = vld [vmem:[%s12267_s23 + $0xf98] sm:$0xff]  ;;  %v11652_v11 = vld [vmem:[%s12267_s23 + $0xf80] sm:$0xff] }
 0x1fd   : > { %7433 = vmatpush.bf16.msra.mxu3 %v11634_v51  ;;  %v7182_v8 = vadd.f32 %v7181_v6, %v7169_v5  ;;  %v11663_v51 = vld [vmem:[%s12267_s23 + $0xfd8] sm:$0xff]  ;;  %v1918_v5 = vld [vmem:[#allocation1 + $0x2d] sm:$0xff] }
 0x1fe   : > { %7395 = vmatpush.bf16.msra.mxu0 %v11609_v52  ;;  %v1920_v6 = vld [vmem:[#allocation1 + $0x3f] sm:$0xff] }
 0x1ff   : > { %7408 = vmatpush.bf16.msra.mxu1 %v11617_v53 }
 0x200   : > { %7421 = vmatpush.bf16.msra.mxu2 %v11625_v54 }
 0x201   : > { %7434 = vmatpush.bf16.msra.mxu3 %v11633_v55 }
 0x202   : > { %7396 = vmatpush.bf16.msra.mxu0 %v11608_v58  ;;  %v7170_v18 = vpop.f32.mrf.mxu2  ;;  %v11646_v58 = vld [vmem:[%s12267_s23 + $0xf50] sm:$0xff] }
 0x203   : > { %7409 = vmatpush.bf16.msra.mxu1 %v11616_v59  ;;  %v7183_v19 = vpop.f32.mrf.mxu3  ;;  %v11682_v18 = vld [vmem:[%s12267_s23 + $0x1070] sm:$0xff] }
 0x204   : > { %7422 = vmatpush.bf16.msra.mxu2 %v11624_v61  ;;  %v11662_v61 = vld [vmem:[%s12267_s23 + $0xfd0] sm:$0xff] }
 0x205   : > { %7435 = vmatpush.bf16.msra.mxu3 %v11632_v62  ;;  %v11637_v62 = vld [vmem:[%s12267_s23 + $0xf08] sm:$0xff]  ;;  %v11690_v19 = vld [vmem:[%s12267_s23 + $0x10b0] sm:$0xff] }
 0x206   : > { %7397 = vmatpush.bf16.msra.mxu0 %v11607_v0  ;;  %v11653_v0 = vld [vmem:[%s12267_s23 + $0xf88] sm:$0xff] }
 0x207   : > { %7410 = vmatpush.bf16.msra.mxu1 %v11615_v1  ;;  %v11661_v1 = vld [vmem:[%s12267_s23 + $0xfc8] sm:$0xff] }
 0x208   : > { %7423 = vmatpush.bf16.msra.mxu2 %v11623_v2  ;;  %v1917_v2 = vld [vmem:[#allocation1 + $0x24] sm:$0xff] }
 0x209   : > { %7436 = vmatpush.bf16.msra.mxu3 %v11631_v3  ;;  %v1919_v3 = vld [vmem:[#allocation1 + $0x36] sm:$0xff] }
 0x20a   : > { %7398 = vmatpush.bf16.msra.mxu0 %v11606_v9  ;;  %v11636_v9 = vld [vmem:[%s12267_s23 + $0xf00] sm:$0xff] }
 0x20b   : > { %7411 = vmatpush.bf16.msra.mxu1 %v11614_v10  ;;  %v11644_v10 = vld [vmem:[%s12267_s23 + $0xf40] sm:$0xff] }
 0x20c   : > { %7424 = vmatpush.bf16.msra.mxu2 %v11622_v12  ;;  %v11660_v12 = vld [vmem:[%s12267_s23 + $0xfc0] sm:$0xff] }
 0x20d   : > { %7437 = vmatpush.bf16.msra.mxu3 %v11630_v13  ;;  %v11675_v13 = vld [vmem:[%s12267_s23 + $0x1038] sm:$0xff] }
 0x20e   : > { %7399 = vmatpush.bf16.msra.mxu0 %v11605_v14  ;;  %v11683_v14 = vld [vmem:[%s12267_s23 + $0x1078] sm:$0xff] }
 0x20f   : > { %7412 = vmatpush.bf16.msra.mxu1 %v11613_v15  ;;  %v11691_v15 = vld [vmem:[%s12267_s23 + $0x10b8] sm:$0xff] }
 0x210   : > { %7425 = vmatpush.bf16.msra.mxu2 %v11621_v16  ;;  %v11699_v16 = vld [vmem:[%s12267_s23 + $0x10f8] sm:$0xff] }
 0x211   : > { %7438 = vmatpush.bf16.msra.mxu3 %v11629_v17  ;;  %v11674_v17 = vld [vmem:[%s12267_s23 + $0x1030] sm:$0xff] }
 0x212   : > { %7400 = vmatpush.bf16.msra.mxu0 %v11604_v20  ;;  %v7194_v40 = vpop.f32.mrf.mxu0  ;;  %v11698_v20 = vld [vmem:[%s12267_s23 + $0x10f0] sm:$0xff] }
 0x213   : > { %7413 = vmatpush.bf16.msra.mxu1 %v11612_v21  ;;  %v7195_v41 = vadd.f32 %v7194_v40, %v7182_v8  ;;  %v7207_v44 = vpop.f32.mrf.mxu1  ;;  %v301_v8 = vld [vmem:[%s12289_s12 + $0x40] sm:$0xff]  ;;  %v11673_v21 = vld [vmem:[%s12267_s23 + $0x1028] sm:$0xff] }
 0x214   : > { %7426 = vmatpush.bf16.msra.mxu2 %v11620_v22  ;;  %1922 = vst [vmem:[#allocation1] ss:$9 sm:$0xff] %v301_v8  ;;  %v11681_v22 = vld [vmem:[%s12267_s23 + $0x1068] sm:$0xff] }
 0x215   : > { %7439 = vmatpush.bf16.msra.mxu3 %v11628_v23  ;;  %7401 = vmatmul.bf16.vlgmr.msra.gmra.mxu0 %v1913_v28  ;;  %v7208_v47 = vadd.f32 %v7207_v44, %v7195_v41  ;;  %v11689_v23 = vld [vmem:[%s12267_s23 + $0x10a8] sm:$0xff]  ;;  %v11680_v28 = vld [vmem:[%s12267_s23 + $0x1060] sm:$0xff] }
 0x216   : > { %7445 = vmatpush.bf16.msrb.mxu0 %v11643_v24  ;;  %7414 = vmatmul.bf16.vlgmr.msra.gmra.mxu1 %v1914_v30  ;;  %v11697_v24 = vld [vmem:[%s12267_s23 + $0x10e8] sm:$0xff]  ;;  %v11688_v30 = vld [vmem:[%s12267_s23 + $0x10a0] sm:$0xff] }
 0x217   : > { %7458 = vmatpush.bf16.msrb.mxu1 %v11651_v25  ;;  %7427 = vmatmul.bf16.vlgmr.msra.gmra.mxu2 %v1915_v29  ;;  %v11729_v8 = vld [vmem:[%s12267_s23 + $0x11e8] sm:$0xff] }
 0x218   : > { %7471 = vmatpush.bf16.msrb.mxu2 %v11659_v26  ;;  %7440 = vmatmul.bf16.vlgmr.msra.gmra.mxu3 %v1916_v31  ;;  %v11696_v31 = vld [vmem:[%s12267_s23 + $0x10e0] sm:$0xff] }
 0x219   : > { %7484 = vmatpush.bf16.msrb.mxu3 %v11667_v27  ;;  %v11672_v27 = vld [vmem:[%s12267_s23 + $0x1020] sm:$0xff] }
 0x21a   : > { %7446 = vmatpush.bf16.msrb.mxu0 %v11642_v32  ;;  %v7220_v52 = vpop.f32.mrf.mxu2  ;;  %v7196_v55 = vpop.f32.mrf.mxu0 }
 0x21b   : > { %7459 = vmatpush.bf16.msrb.mxu1 %v11650_v33  ;;  %v7221_v53 = vadd.f32 %v7220_v52, %v7208_v47  ;;  %v7233_v54 = vpop.f32.mrf.mxu3  ;;  %v7209_v59 = vpop.f32.mrf.mxu1  ;;  %v11671_v33 = vld [vmem:[%s12267_s23 + $0x1018] sm:$0xff]  ;;  %v11669_v47 = vld [vmem:[%s12267_s23 + $0x1008] sm:$0xff]  ;;  %v11684_v55 = vld [vmem:[%s12267_s23 + $0x1080] sm:$0xff] }
 0x21c   : > { %7472 = vmatpush.bf16.msrb.mxu2 %v11658_v34  ;;  %v11679_v34 = vld [vmem:[%s12267_s23 + $0x1058] sm:$0xff] }
 0x21d   : > { %7485 = vmatpush.bf16.msrb.mxu3 %v11666_v35  ;;  %v12815_v56 = vadd.f32 %v7233_v54, %v7221_v53  ;;  %v11687_v35 = vld [vmem:[%s12267_s23 + $0x1098] sm:$0xff]  ;;  %v11668_v53 = vld [vmem:[%s12267_s23 + $0x1000] sm:$0xff] }
 0x21e   : > { %7447 = vmatpush.bf16.msrb.mxu0 %v11641_v36  ;;  %v11695_v36 = vld [vmem:[%s12267_s23 + $0x10d8] sm:$0xff]  ;;  %v11676_v54 = vld [vmem:[%s12267_s23 + $0x1040] sm:$0xff] }
 0x21f   : > { %7460 = vmatpush.bf16.msrb.mxu1 %v11649_v37  ;;  %v11723_v59 = vld [vmem:[%s12267_s23 + $0x11b8] sm:$0xff] }
 0x220   : > { %7473 = vmatpush.bf16.msrb.mxu2 %v11657_v38 }
 0x221   : > { %7486 = vmatpush.bf16.msrb.mxu3 %v11665_v39 }
 0x222   : > { %7448 = vmatpush.bf16.msrb.mxu0 %v11640_v42  ;;  %v7222_v4 = vpop.f32.mrf.mxu2  ;;  %v11670_v42 = vld [vmem:[%s12267_s23 + $0x1010] sm:$0xff] }
 0x223   : > { %7461 = vmatpush.bf16.msrb.mxu1 %v11648_v43  ;;  %v7235_v7 = vpop.f32.mrf.mxu3  ;;  %v11678_v43 = vld [vmem:[%s12267_s23 + $0x1050] sm:$0xff] }
 0x224   : > { %7474 = vmatpush.bf16.msrb.mxu2 %v11656_v45  ;;  %v11686_v45 = vld [vmem:[%s12267_s23 + $0x1090] sm:$0xff]  ;;  %v11721_v7 = vld [vmem:[%s12267_s23 + $0x11a8] sm:$0xff] }
 0x225   : > { %7487 = vmatpush.bf16.msrb.mxu3 %v11664_v46  ;;  %v11694_v46 = vld [vmem:[%s12267_s23 + $0x10d0] sm:$0xff] }
 0x226   : > { %7449 = vmatpush.bf16.msrb.mxu0 %v11639_v48  ;;  %v11677_v48 = vld [vmem:[%s12267_s23 + $0x1048] sm:$0xff]  ;;  %v11730_v4 = vld [vmem:[%s12267_s23 + $0x11f0] sm:$0xff] }
 0x227   : > { %7462 = vmatpush.bf16.msrb.mxu1 %v11647_v49  ;;  %v11685_v49 = vld [vmem:[%s12267_s23 + $0x1088] sm:$0xff] }
 0x228   : > { %7475 = vmatpush.bf16.msrb.mxu2 %v11655_v50  ;;  %v11693_v50 = vld [vmem:[%s12267_s23 + $0x10c8] sm:$0xff] }
 0x229   : > { %7488 = vmatpush.bf16.msrb.mxu3 %v11663_v51 }
 0x22a   : > { %7450 = vmatpush.bf16.msrb.mxu0 %v11638_v57  ;;  %v11707_v57 = vld [vmem:[%s12267_s23 + $0x1138] sm:$0xff] }
 0x22b   : > { %7463 = vmatpush.bf16.msrb.mxu1 %v11646_v58  ;;  %v11715_v58 = vld [vmem:[%s12267_s23 + $0x1178] sm:$0xff] }
 0x22c   : > { %7476 = vmatpush.bf16.msrb.mxu2 %v11654_v60  ;;  %v11731_v60 = vld [vmem:[%s12267_s23 + $0x11f8] sm:$0xff] }
 0x22d   : > { %7489 = vmatpush.bf16.msrb.mxu3 %v11662_v61  ;;  %v1923_v61 = vld [vmem:[#allocation1] sm:$0xff] }
 0x22e   : > { %7451 = vmatpush.bf16.msrb.mxu0 %v11637_v62  ;;  %v1925_v62 = vld [vmem:[#allocation1 + $0x12] sm:$0xff] }
 0x22f   : > { %7464 = vmatpush.bf16.msrb.mxu1 %v11645_v63  ;;  %v1924_v63 = vld [vmem:[#allocation1 + $0x9] sm:$0xff] }
 0x230   : > { %7477 = vmatpush.bf16.msrb.mxu2 %v11653_v0  ;;  %v1926_v0 = vld [vmem:[#allocation1 + $0x1b] sm:$0xff] }
 0x231   : > { %7490 = vmatpush.bf16.msrb.mxu3 %v11661_v1  ;;  %v11706_v1 = vld [vmem:[%s12267_s23 + $0x1130] sm:$0xff] }
 0x232   : > { %7452 = vmatpush.bf16.msrb.mxu0 %v11636_v9  ;;  %v7246_v25 = vpop.f32.mrf.mxu0 }
 0x233   : > { %7465 = vmatpush.bf16.msrb.mxu1 %v11644_v10  ;;  %v7247_v26 = vadd.f32 %v7246_v25, %v12815_v56  ;;  %v7259_v29 = vpop.f32.mrf.mxu1  ;;  %v11692_v56 = vld [vmem:[%s12267_s23 + $0x10c0] sm:$0xff] }
 0x234   : > { %7478 = vmatpush.bf16.msrb.mxu2 %v11652_v11  ;;  %v11704_v11 = vld [vmem:[%s12267_s23 + $0x1120] sm:$0xff] }
 0x235   : > { %7491 = vmatpush.bf16.msrb.mxu3 %v11660_v12  ;;  %7453 = vmatmul.bf16.vlgmr.msrb.gmra.mxu0 %v1917_v2  ;;  %v7260_v32 = vadd.f32 %v7259_v29, %v7247_v26  ;;  %v11714_v2 = vld [vmem:[%s12267_s23 + $0x1170] sm:$0xff]  ;;  %v11712_v12 = vld [vmem:[%s12267_s23 + $0x1160] sm:$0xff] }
 0x236   : > { %7497 = vmatpush.bf16.msra.mxu0 %v11675_v13  ;;  %7466 = vmatmul.bf16.vlgmr.msrb.gmra.mxu1 %v1918_v5  ;;  %v11705_v5 = vld [vmem:[%s12267_s23 + $0x1128] sm:$0xff]  ;;  %v11702_v26 = vld [vmem:[%s12267_s23 + $0x1110] sm:$0xff] }
 0x237   : > { %7510 = vmatpush.bf16.msra.mxu1 %v11683_v14  ;;  %7479 = vmatmul.bf16.vlgmr.msrb.gmra.mxu2 %v1919_v3  ;;  %v11722_v3 = vld [vmem:[%s12267_s23 + $0x11b0] sm:$0xff]  ;;  %v11720_v14 = vld [vmem:[%s12267_s23 + $0x11a0] sm:$0xff] }
 0x238   : > { %7523 = vmatpush.bf16.msra.mxu2 %v11691_v15  ;;  %7492 = vmatmul.bf16.vlgmr.msrb.gmra.mxu3 %v1920_v6  ;;  %v11713_v6 = vld [vmem:[%s12267_s23 + $0x1168] sm:$0xff]  ;;  %v11728_v15 = vld [vmem:[%s12267_s23 + $0x11e0] sm:$0xff]  ;;  %v11718_v29 = vld [vmem:[%s12267_s23 + $0x1190] sm:$0xff] }
 0x239   : > { %7536 = vmatpush.bf16.msra.mxu3 %v11699_v16 }
 0x23a   : > { %7498 = vmatpush.bf16.msra.mxu0 %v11674_v17  ;;  %v7272_v37 = vpop.f32.mrf.mxu2  ;;  %v7248_v40 = vpop.f32.mrf.mxu0  ;;  %v11703_v17 = vld [vmem:[%s12267_s23 + $0x1118] sm:$0xff] }
 0x23b   : > { %7511 = vmatpush.bf16.msra.mxu1 %v11682_v18  ;;  %v7273_v38 = vadd.f32 %v7272_v37, %v7260_v32  ;;  %v7285_v39 = vpop.f32.mrf.mxu3  ;;  %v7261_v44 = vpop.f32.mrf.mxu1  ;;  %v11711_v18 = vld [vmem:[%s12267_s23 + $0x1158] sm:$0xff]  ;;  %v11709_v32 = vld [vmem:[%s12267_s23 + $0x1148] sm:$0xff] }
 0x23c   : > { %7524 = vmatpush.bf16.msra.mxu2 %v11690_v19  ;;  %v11719_v19 = vld [vmem:[%s12267_s23 + $0x1198] sm:$0xff]  ;;  %v11716_v44 = vld [vmem:[%s12267_s23 + $0x1180] sm:$0xff] }
 0x23d   : > { %7537 = vmatpush.bf16.msra.mxu3 %v11698_v20  ;;  %v7286_v41 = vadd.f32 %v7285_v39, %v7273_v38  ;;  %v11727_v20 = vld [vmem:[%s12267_s23 + $0x11d8] sm:$0xff]  ;;  %v1928_v38 = vld [vmem:[#allocation1 + $0x2d] sm:$0xff] }
 0x23e   : > { %7499 = vmatpush.bf16.msra.mxu0 %v11673_v21  ;;  %v1930_v39 = vld [vmem:[#allocation1 + $0x3f] sm:$0xff] }
 0x23f   : > { %7512 = vmatpush.bf16.msra.mxu1 %v11681_v22 }
 0x240   : > { %7525 = vmatpush.bf16.msra.mxu2 %v11689_v23 }
 0x241   : > { %7538 = vmatpush.bf16.msra.mxu3 %v11697_v24 }
 0x242   : > { %7500 = vmatpush.bf16.msra.mxu0 %v11672_v27  ;;  %v7274_v51 = vpop.f32.mrf.mxu2  ;;  %v11710_v27 = vld [vmem:[%s12267_s23 + $0x1150] sm:$0xff] }
 0x243   : > { %7513 = vmatpush.bf16.msra.mxu1 %v11680_v28  ;;  %v7287_v52 = vpop.f32.mrf.mxu3  ;;  %v11746_v51 = vld [vmem:[%s12267_s23 + $0x1270] sm:$0xff] }
 0x244   : > { %7526 = vmatpush.bf16.msra.mxu2 %v11688_v30  ;;  %v11726_v30 = vld [vmem:[%s12267_s23 + $0x11d0] sm:$0xff] }
 0x245   : > { %7539 = vmatpush.bf16.msra.mxu3 %v11696_v31  ;;  %v11701_v31 = vld [vmem:[%s12267_s23 + $0x1108] sm:$0xff]  ;;  %v11754_v52 = vld [vmem:[%s12267_s23 + $0x12b0] sm:$0xff] }
 0x246   : > { %7501 = vmatpush.bf16.msra.mxu0 %v11671_v33  ;;  %v11717_v33 = vld [vmem:[%s12267_s23 + $0x1188] sm:$0xff] }
 0x247   : > { %7514 = vmatpush.bf16.msra.mxu1 %v11679_v34  ;;  %v11725_v34 = vld [vmem:[%s12267_s23 + $0x11c8] sm:$0xff] }
 0x248   : > { %7527 = vmatpush.bf16.msra.mxu2 %v11687_v35  ;;  %v1927_v35 = vld [vmem:[#allocation1 + $0x24] sm:$0xff] }
 0x249   : > { %7540 = vmatpush.bf16.msra.mxu3 %v11695_v36  ;;  %v1929_v36 = vld [vmem:[#allocation1 + $0x36] sm:$0xff] }
 0x24a   : > { %7502 = vmatpush.bf16.msra.mxu0 %v11670_v42  ;;  %v11700_v42 = vld [vmem:[%s12267_s23 + $0x1100] sm:$0xff] }
 0x24b   : > { %7515 = vmatpush.bf16.msra.mxu1 %v11678_v43  ;;  %v11708_v43 = vld [vmem:[%s12267_s23 + $0x1140] sm:$0xff] }
 0x24c   : > { %7528 = vmatpush.bf16.msra.mxu2 %v11686_v45  ;;  %v11724_v45 = vld [vmem:[%s12267_s23 + $0x11c0] sm:$0xff] }
 0x24d   : > { %7541 = vmatpush.bf16.msra.mxu3 %v11694_v46  ;;  %v11739_v46 = vld [vmem:[%s12267_s23 + $0x1238] sm:$0xff] }
 0x24e   : > { %7503 = vmatpush.bf16.msra.mxu0 %v11669_v47  ;;  %v11747_v47 = vld [vmem:[%s12267_s23 + $0x1278] sm:$0xff] }
 0x24f   : > { %7516 = vmatpush.bf16.msra.mxu1 %v11677_v48  ;;  %v11755_v48 = vld [vmem:[%s12267_s23 + $0x12b8] sm:$0xff] }
 0x250   : > { %7529 = vmatpush.bf16.msra.mxu2 %v11685_v49  ;;  %v11763_v49 = vld [vmem:[%s12267_s23 + $0x12f8] sm:$0xff] }
 0x251   : > { %7542 = vmatpush.bf16.msra.mxu3 %v11693_v50  ;;  %v11738_v50 = vld [vmem:[%s12267_s23 + $0x1230] sm:$0xff] }
 0x252   : > { %7504 = vmatpush.bf16.msra.mxu0 %v11668_v53  ;;  %v7298_v9 = vpop.f32.mrf.mxu0  ;;  %v11762_v53 = vld [vmem:[%s12267_s23 + $0x12f0] sm:$0xff] }
 0x253   : > { %7517 = vmatpush.bf16.msra.mxu1 %v11676_v54  ;;  %v7299_v10 = vadd.f32 %v7298_v9, %v7286_v41  ;;  %v7311_v13 = vpop.f32.mrf.mxu1  ;;  %v302_v41 = vld [vmem:[%s12289_s12 + $0x48] sm:$0xff]  ;;  %v11737_v54 = vld [vmem:[%s12267_s23 + $0x1228] sm:$0xff] }
 0x254   : > { %7530 = vmatpush.bf16.msra.mxu2 %v11684_v55  ;;  %1932 = vst [vmem:[#allocation1] ss:$9 sm:$0xff] %v302_v41  ;;  %v11745_v55 = vld [vmem:[%s12267_s23 + $0x1268] sm:$0xff] }
 0x255   : > { %7543 = vmatpush.bf16.msra.mxu3 %v11692_v56  ;;  %7505 = vmatmul.bf16.vlgmr.msra.gmra.mxu0 %v1923_v61  ;;  %v7312_v16 = vadd.f32 %v7311_v13, %v7299_v10  ;;  %v11753_v56 = vld [vmem:[%s12267_s23 + $0x12a8] sm:$0xff]  ;;  %v11744_v61 = vld [vmem:[%s12267_s23 + $0x1260] sm:$0xff] }
 0x256   : > { %7549 = vmatpush.bf16.msrb.mxu0 %v11707_v57  ;;  %7518 = vmatmul.bf16.vlgmr.msra.gmra.mxu1 %v1924_v63  ;;  %v11761_v57 = vld [vmem:[%s12267_s23 + $0x12e8] sm:$0xff]  ;;  %v11752_v63 = vld [vmem:[%s12267_s23 + $0x12a0] sm:$0xff] }
 0x257   : > { %7562 = vmatpush.bf16.msrb.mxu1 %v11715_v58  ;;  %7531 = vmatmul.bf16.vlgmr.msra.gmra.mxu2 %v1925_v62  ;;  %v11793_v41 = vld [vmem:[%s12267_s23 + $0x13e8] sm:$0xff] }
 0x258   : > { %7575 = vmatpush.bf16.msrb.mxu2 %v11723_v59  ;;  %7544 = vmatmul.bf16.vlgmr.msra.gmra.mxu3 %v1926_v0  ;;  %v11760_v0 = vld [vmem:[%s12267_s23 + $0x12e0] sm:$0xff] }
 0x259   : > { %7588 = vmatpush.bf16.msrb.mxu3 %v11731_v60  ;;  %v11736_v60 = vld [vmem:[%s12267_s23 + $0x1220] sm:$0xff] }
 0x25a   : > { %7550 = vmatpush.bf16.msrb.mxu0 %v11706_v1  ;;  %v7324_v21 = vpop.f32.mrf.mxu2  ;;  %v7300_v24 = vpop.f32.mrf.mxu0 }
 0x25b   : > { %7563 = vmatpush.bf16.msrb.mxu1 %v11714_v2  ;;  %v7325_v22 = vadd.f32 %v7324_v21, %v7312_v16  ;;  %v7337_v23 = vpop.f32.mrf.mxu3  ;;  %v7313_v28 = vpop.f32.mrf.mxu1  ;;  %v11735_v2 = vld [vmem:[%s12267_s23 + $0x1218] sm:$0xff]  ;;  %v11733_v16 = vld [vmem:[%s12267_s23 + $0x1208] sm:$0xff]  ;;  %v11748_v24 = vld [vmem:[%s12267_s23 + $0x1280] sm:$0xff] }
 0x25c   : > { %7576 = vmatpush.bf16.msrb.mxu2 %v11722_v3  ;;  %v11743_v3 = vld [vmem:[%s12267_s23 + $0x1258] sm:$0xff] }
 0x25d   : > { %7589 = vmatpush.bf16.msrb.mxu3 %v11730_v4  ;;  %v12883_v25 = vadd.f32 %v7337_v23, %v7325_v22  ;;  %v11751_v4 = vld [vmem:[%s12267_s23 + $0x1298] sm:$0xff]  ;;  %v11732_v22 = vld [vmem:[%s12267_s23 + $0x1200] sm:$0xff] }
 0x25e   : > { %7551 = vmatpush.bf16.msrb.mxu0 %v11705_v5  ;;  %v11759_v5 = vld [vmem:[%s12267_s23 + $0x12d8] sm:$0xff]  ;;  %v11740_v23 = vld [vmem:[%s12267_s23 + $0x1240] sm:$0xff] }
 0x25f   : > { %7564 = vmatpush.bf16.msrb.mxu1 %v11713_v6  ;;  %v11787_v28 = vld [vmem:[%s12267_s23 + $0x13b8] sm:$0xff] }
 0x260   : > { %7577 = vmatpush.bf16.msrb.mxu2 %v11721_v7 }
 0x261   : > { %7590 = vmatpush.bf16.msrb.mxu3 %v11729_v8 }
 0x262   : > { %7552 = vmatpush.bf16.msrb.mxu0 %v11704_v11  ;;  %v7326_v37 = vpop.f32.mrf.mxu2  ;;  %v11734_v11 = vld [vmem:[%s12267_s23 + $0x1210] sm:$0xff] }
 0x263   : > { %7565 = vmatpush.bf16.msrb.mxu1 %v11712_v12  ;;  %v7339_v40 = vpop.f32.mrf.mxu3  ;;  %v11742_v12 = vld [vmem:[%s12267_s23 + $0x1250] sm:$0xff] }
 0x264   : > { %7578 = vmatpush.bf16.msrb.mxu2 %v11720_v14  ;;  %v11750_v14 = vld [vmem:[%s12267_s23 + $0x1290] sm:$0xff]  ;;  %v11785_v40 = vld [vmem:[%s12267_s23 + $0x13a8] sm:$0xff] }
 0x265   : > { %7591 = vmatpush.bf16.msrb.mxu3 %v11728_v15  ;;  %v11758_v15 = vld [vmem:[%s12267_s23 + $0x12d0] sm:$0xff] }
 0x266   : > { %7553 = vmatpush.bf16.msrb.mxu0 %v11703_v17  ;;  %v11741_v17 = vld [vmem:[%s12267_s23 + $0x1248] sm:$0xff]  ;;  %v11794_v37 = vld [vmem:[%s12267_s23 + $0x13f0] sm:$0xff] }
 0x267   : > { %7566 = vmatpush.bf16.msrb.mxu1 %v11711_v18  ;;  %v11749_v18 = vld [vmem:[%s12267_s23 + $0x1288] sm:$0xff] }
 0x268   : > { %7579 = vmatpush.bf16.msrb.mxu2 %v11719_v19  ;;  %v11757_v19 = vld [vmem:[%s12267_s23 + $0x12c8] sm:$0xff] }
 0x269   : > { %7592 = vmatpush.bf16.msrb.mxu3 %v11727_v20 }
 0x26a   : > { %7554 = vmatpush.bf16.msrb.mxu0 %v11702_v26  ;;  %v11771_v26 = vld [vmem:[%s12267_s23 + $0x1338] sm:$0xff] }
 0x26b   : > { %7567 = vmatpush.bf16.msrb.mxu1 %v11710_v27  ;;  %v11779_v27 = vld [vmem:[%s12267_s23 + $0x1378] sm:$0xff] }
 0x26c   : > { %7580 = vmatpush.bf16.msrb.mxu2 %v11718_v29  ;;  %v11795_v29 = vld [vmem:[%s12267_s23 + $0x13f8] sm:$0xff] }
 0x26d   : > { %7593 = vmatpush.bf16.msrb.mxu3 %v11726_v30  ;;  %v1933_v30 = vld [vmem:[#allocation1] sm:$0xff] }
 0x26e   : > { %7555 = vmatpush.bf16.msrb.mxu0 %v11701_v31  ;;  %v1935_v31 = vld [vmem:[#allocation1 + $0x12] sm:$0xff] }
 0x26f   : > { %7568 = vmatpush.bf16.msrb.mxu1 %v11709_v32  ;;  %v1934_v32 = vld [vmem:[#allocation1 + $0x9] sm:$0xff] }
 0x270   : > { %7581 = vmatpush.bf16.msrb.mxu2 %v11717_v33  ;;  %v1936_v33 = vld [vmem:[#allocation1 + $0x1b] sm:$0xff] }
 0x271   : > { %7594 = vmatpush.bf16.msrb.mxu3 %v11725_v34  ;;  %v11770_v34 = vld [vmem:[%s12267_s23 + $0x1330] sm:$0xff] }
 0x272   : > { %7556 = vmatpush.bf16.msrb.mxu0 %v11700_v42  ;;  %v7350_v58 = vpop.f32.mrf.mxu0 }
 0x273   : > { %7569 = vmatpush.bf16.msrb.mxu1 %v11708_v43  ;;  %v7351_v59 = vadd.f32 %v7350_v58, %v12883_v25  ;;  %v7363_v62 = vpop.f32.mrf.mxu1  ;;  %v11756_v25 = vld [vmem:[%s12267_s23 + $0x12c0] sm:$0xff] }
 0x274   : > { %7582 = vmatpush.bf16.msrb.mxu2 %v11716_v44  ;;  %v11768_v44 = vld [vmem:[%s12267_s23 + $0x1320] sm:$0xff] }
 0x275   : > { %7595 = vmatpush.bf16.msrb.mxu3 %v11724_v45  ;;  %7557 = vmatmul.bf16.vlgmr.msrb.gmra.mxu0 %v1927_v35  ;;  %v7364_v1 = vadd.f32 %v7363_v62, %v7351_v59  ;;  %v11778_v35 = vld [vmem:[%s12267_s23 + $0x1370] sm:$0xff]  ;;  %v11776_v45 = vld [vmem:[%s12267_s23 + $0x1360] sm:$0xff] }
 0x276   : > { %7601 = vmatpush.bf16.msra.mxu0 %v11739_v46  ;;  %7570 = vmatmul.bf16.vlgmr.msrb.gmra.mxu1 %v1928_v38  ;;  %v11769_v38 = vld [vmem:[%s12267_s23 + $0x1328] sm:$0xff]  ;;  %v11766_v59 = vld [vmem:[%s12267_s23 + $0x1310] sm:$0xff] }
 0x277   : > { %7614 = vmatpush.bf16.msra.mxu1 %v11747_v47  ;;  %7583 = vmatmul.bf16.vlgmr.msrb.gmra.mxu2 %v1929_v36  ;;  %v11786_v36 = vld [vmem:[%s12267_s23 + $0x13b0] sm:$0xff]  ;;  %v11784_v47 = vld [vmem:[%s12267_s23 + $0x13a0] sm:$0xff] }
 0x278   : > { %7627 = vmatpush.bf16.msra.mxu2 %v11755_v48  ;;  %7596 = vmatmul.bf16.vlgmr.msrb.gmra.mxu3 %v1930_v39  ;;  %v11777_v39 = vld [vmem:[%s12267_s23 + $0x1368] sm:$0xff]  ;;  %v11792_v48 = vld [vmem:[%s12267_s23 + $0x13e0] sm:$0xff]  ;;  %v11782_v62 = vld [vmem:[%s12267_s23 + $0x1390] sm:$0xff] }
 0x279   : > { %7640 = vmatpush.bf16.msra.mxu3 %v11763_v49 }
 0x27a   : > { %7602 = vmatpush.bf16.msra.mxu0 %v11738_v50  ;;  %v7376_v6 = vpop.f32.mrf.mxu2  ;;  %v7352_v9 = vpop.f32.mrf.mxu0  ;;  %v11767_v50 = vld [vmem:[%s12267_s23 + $0x1318] sm:$0xff] }
 0x27b   : > { %7615 = vmatpush.bf16.msra.mxu1 %v11746_v51  ;;  %v7377_v7 = vadd.f32 %v7376_v6, %v7364_v1  ;;  %v7389_v8 = vpop.f32.mrf.mxu3  ;;  %v7365_v13 = vpop.f32.mrf.mxu1  ;;  %v11775_v51 = vld [vmem:[%s12267_s23 + $0x1358] sm:$0xff]  ;;  %v11773_v1 = vld [vmem:[%s12267_s23 + $0x1348] sm:$0xff] }
 0x27c   : > { %7628 = vmatpush.bf16.msra.mxu2 %v11754_v52  ;;  %v11783_v52 = vld [vmem:[%s12267_s23 + $0x1398] sm:$0xff]  ;;  %v11780_v13 = vld [vmem:[%s12267_s23 + $0x1380] sm:$0xff] }
 0x27d   : > { %7641 = vmatpush.bf16.msra.mxu3 %v11762_v53  ;;  %v7390_v10 = vadd.f32 %v7389_v8, %v7377_v7  ;;  %v11791_v53 = vld [vmem:[%s12267_s23 + $0x13d8] sm:$0xff]  ;;  %v1938_v7 = vld [vmem:[#allocation1 + $0x2d] sm:$0xff] }
 0x27e   : > { %7603 = vmatpush.bf16.msra.mxu0 %v11737_v54  ;;  %v1940_v8 = vld [vmem:[#allocation1 + $0x3f] sm:$0xff] }
 0x27f   : > { %7616 = vmatpush.bf16.msra.mxu1 %v11745_v55 }
 0x280   : > { %7629 = vmatpush.bf16.msra.mxu2 %v11753_v56 }
 0x281   : > { %7642 = vmatpush.bf16.msra.mxu3 %v11761_v57 }
 0x282   : > { %7604 = vmatpush.bf16.msra.mxu0 %v11736_v60  ;;  %v7378_v20 = vpop.f32.mrf.mxu2  ;;  %v11774_v60 = vld [vmem:[%s12267_s23 + $0x1350] sm:$0xff] }
 0x283   : > { %7617 = vmatpush.bf16.msra.mxu1 %v11744_v61  ;;  %v7391_v21 = vpop.f32.mrf.mxu3  ;;  %v11810_v20 = vld [vmem:[%s12267_s23 + $0x1470] sm:$0xff] }
 0x284   : > { %7630 = vmatpush.bf16.msra.mxu2 %v11752_v63  ;;  %v11790_v63 = vld [vmem:[%s12267_s23 + $0x13d0] sm:$0xff] }
 0x285   : > { %7643 = vmatpush.bf16.msra.mxu3 %v11760_v0  ;;  %v11765_v0 = vld [vmem:[%s12267_s23 + $0x1308] sm:$0xff]  ;;  %v11818_v21 = vld [vmem:[%s12267_s23 + $0x14b0] sm:$0xff] }
 0x286   : > { %7605 = vmatpush.bf16.msra.mxu0 %v11735_v2  ;;  %v11781_v2 = vld [vmem:[%s12267_s23 + $0x1388] sm:$0xff] }
 0x287   : > { %7618 = vmatpush.bf16.msra.mxu1 %v11743_v3  ;;  %v11789_v3 = vld [vmem:[%s12267_s23 + $0x13c8] sm:$0xff] }
 0x288   : > { %7631 = vmatpush.bf16.msra.mxu2 %v11751_v4  ;;  %v1937_v4 = vld [vmem:[#allocation1 + $0x24] sm:$0xff] }
 0x289   : > { %7644 = vmatpush.bf16.msra.mxu3 %v11759_v5  ;;  %v1939_v5 = vld [vmem:[#allocation1 + $0x36] sm:$0xff] }
 0x28a   : > { %7606 = vmatpush.bf16.msra.mxu0 %v11734_v11  ;;  %v11764_v11 = vld [vmem:[%s12267_s23 + $0x1300] sm:$0xff] }
 0x28b   : > { %7619 = vmatpush.bf16.msra.mxu1 %v11742_v12  ;;  %v11772_v12 = vld [vmem:[%s12267_s23 + $0x1340] sm:$0xff] }
 0x28c   : > { %7632 = vmatpush.bf16.msra.mxu2 %v11750_v14  ;;  %v11788_v14 = vld [vmem:[%s12267_s23 + $0x13c0] sm:$0xff] }
 0x28d   : > { %7645 = vmatpush.bf16.msra.mxu3 %v11758_v15  ;;  %v11803_v15 = vld [vmem:[%s12267_s23 + $0x1438] sm:$0xff] }
 0x28e   : > { %7607 = vmatpush.bf16.msra.mxu0 %v11733_v16  ;;  %v11811_v16 = vld [vmem:[%s12267_s23 + $0x1478] sm:$0xff] }
 0x28f   : > { %7620 = vmatpush.bf16.msra.mxu1 %v11741_v17  ;;  %v11819_v17 = vld [vmem:[%s12267_s23 + $0x14b8] sm:$0xff] }
 0x290   : > { %7633 = vmatpush.bf16.msra.mxu2 %v11749_v18  ;;  %v11827_v18 = vld [vmem:[%s12267_s23 + $0x14f8] sm:$0xff] }
 0x291   : > { %7646 = vmatpush.bf16.msra.mxu3 %v11757_v19  ;;  %v11802_v19 = vld [vmem:[%s12267_s23 + $0x1430] sm:$0xff] }
 0x292   : > { %7608 = vmatpush.bf16.msra.mxu0 %v11732_v22  ;;  %v7402_v42 = vpop.f32.mrf.mxu0  ;;  %v11826_v22 = vld [vmem:[%s12267_s23 + $0x14f0] sm:$0xff] }
 0x293   : > { %7621 = vmatpush.bf16.msra.mxu1 %v11740_v23  ;;  %v7403_v43 = vadd.f32 %v7402_v42, %v7390_v10  ;;  %v7415_v46 = vpop.f32.mrf.mxu1  ;;  %v303_v10 = vld [vmem:[%s12289_s12 + $0x50] sm:$0xff] }
 0x294   : > { %7634 = vmatpush.bf16.msra.mxu2 %v11748_v24  ;;  %1942 = vst [vmem:[#allocation1] ss:$9 sm:$0xff] %v303_v10  ;;  %v11801_v23 = vld [vmem:[%s12267_s23 + $0x1428] sm:$0xff] }
 0x295   : > { %7647 = vmatpush.bf16.msra.mxu3 %v11756_v25  ;;  %7609 = vmatmul.bf16.vlgmr.msra.gmra.mxu0 %v1933_v30  ;;  %v7416_v49 = vadd.f32 %v7415_v46, %v7403_v43  ;;  %v11809_v24 = vld [vmem:[%s12267_s23 + $0x1468] sm:$0xff]  ;;  %v11808_v30 = vld [vmem:[%s12267_s23 + $0x1460] sm:$0xff] }
 0x296   : > { %7653 = vmatpush.bf16.msrb.mxu0 %v11771_v26  ;;  %7622 = vmatmul.bf16.vlgmr.msra.gmra.mxu1 %v1934_v32  ;;  %v11817_v25 = vld [vmem:[%s12267_s23 + $0x14a8] sm:$0xff]  ;;  %v11816_v32 = vld [vmem:[%s12267_s23 + $0x14a0] sm:$0xff] }
 0x297   : > { %7666 = vmatpush.bf16.msrb.mxu1 %v11779_v27  ;;  %7635 = vmatmul.bf16.vlgmr.msra.gmra.mxu2 %v1935_v31  ;;  %v11825_v26 = vld [vmem:[%s12267_s23 + $0x14e8] sm:$0xff] }
 0x298   : > { %7679 = vmatpush.bf16.msrb.mxu2 %v11787_v28  ;;  %7648 = vmatmul.bf16.vlgmr.msra.gmra.mxu3 %v1936_v33  ;;  %v11824_v33 = vld [vmem:[%s12267_s23 + $0x14e0] sm:$0xff]  ;;  %v11857_v10 = vld [vmem:[%s12267_s23 + $0x15e8] sm:$0xff] }
 0x299   : > { %7692 = vmatpush.bf16.msrb.mxu3 %v11795_v29  ;;  %v11800_v29 = vld [vmem:[%s12267_s23 + $0x1420] sm:$0xff] }
 0x29a   : > { %7654 = vmatpush.bf16.msrb.mxu0 %v11770_v34  ;;  %v7428_v54 = vpop.f32.mrf.mxu2  ;;  %v7404_v57 = vpop.f32.mrf.mxu0 }
 0x29b   : > { %7667 = vmatpush.bf16.msrb.mxu1 %v11778_v35  ;;  %v7429_v55 = vadd.f32 %v7428_v54, %v7416_v49  ;;  %v7441_v56 = vpop.f32.mrf.mxu3  ;;  %v7417_v61 = vpop.f32.mrf.mxu1  ;;  %v11799_v35 = vld [vmem:[%s12267_s23 + $0x1418] sm:$0xff]  ;;  %v11797_v49 = vld [vmem:[%s12267_s23 + $0x1408] sm:$0xff]  ;;  %v11812_v57 = vld [vmem:[%s12267_s23 + $0x1480] sm:$0xff] }
 0x29c   : > { %7680 = vmatpush.bf16.msrb.mxu2 %v11786_v36  ;;  %v11807_v36 = vld [vmem:[%s12267_s23 + $0x1458] sm:$0xff] }
 0x29d   : > { %7693 = vmatpush.bf16.msrb.mxu3 %v11794_v37  ;;  %v12951_v58 = vadd.f32 %v7441_v56, %v7429_v55  ;;  %v11815_v37 = vld [vmem:[%s12267_s23 + $0x1498] sm:$0xff]  ;;  %v11796_v55 = vld [vmem:[%s12267_s23 + $0x1400] sm:$0xff] }
 0x29e   : > { %7655 = vmatpush.bf16.msrb.mxu0 %v11769_v38  ;;  %v11823_v38 = vld [vmem:[%s12267_s23 + $0x14d8] sm:$0xff]  ;;  %v11804_v56 = vld [vmem:[%s12267_s23 + $0x1440] sm:$0xff] }
 0x29f   : > { %7668 = vmatpush.bf16.msrb.mxu1 %v11777_v39  ;;  %v11851_v61 = vld [vmem:[%s12267_s23 + $0x15b8] sm:$0xff] }
 0x2a0   : > { %7681 = vmatpush.bf16.msrb.mxu2 %v11785_v40 }
 0x2a1   : > { %7694 = vmatpush.bf16.msrb.mxu3 %v11793_v41 }
 0x2a2   : > { %7656 = vmatpush.bf16.msrb.mxu0 %v11768_v44  ;;  %v7430_v6 = vpop.f32.mrf.mxu2  ;;  %v11798_v44 = vld [vmem:[%s12267_s23 + $0x1410] sm:$0xff] }
 0x2a3   : > { %7669 = vmatpush.bf16.msrb.mxu1 %v11776_v45  ;;  %v7443_v9 = vpop.f32.mrf.mxu3  ;;  %v11806_v45 = vld [vmem:[%s12267_s23 + $0x1450] sm:$0xff] }
 0x2a4   : > { %7682 = vmatpush.bf16.msrb.mxu2 %v11784_v47  ;;  %v11814_v47 = vld [vmem:[%s12267_s23 + $0x1490] sm:$0xff]  ;;  %v11849_v9 = vld [vmem:[%s12267_s23 + $0x15a8] sm:$0xff] }
 0x2a5   : > { %7695 = vmatpush.bf16.msrb.mxu3 %v11792_v48  ;;  %v11822_v48 = vld [vmem:[%s12267_s23 + $0x14d0] sm:$0xff] }
 0x2a6   : > { %7657 = vmatpush.bf16.msrb.mxu0 %v11767_v50  ;;  %v11805_v50 = vld [vmem:[%s12267_s23 + $0x1448] sm:$0xff]  ;;  %v11858_v6 = vld [vmem:[%s12267_s23 + $0x15f0] sm:$0xff] }
 0x2a7   : > { %7670 = vmatpush.bf16.msrb.mxu1 %v11775_v51  ;;  %v11813_v51 = vld [vmem:[%s12267_s23 + $0x1488] sm:$0xff] }
 0x2a8   : > { %7683 = vmatpush.bf16.msrb.mxu2 %v11783_v52  ;;  %v11821_v52 = vld [vmem:[%s12267_s23 + $0x14c8] sm:$0xff] }
 0x2a9   : > { %7696 = vmatpush.bf16.msrb.mxu3 %v11791_v53 }
 0x2aa   : > { %7658 = vmatpush.bf16.msrb.mxu0 %v11766_v59  ;;  %v11835_v59 = vld [vmem:[%s12267_s23 + $0x1538] sm:$0xff] }
 0x2ab   : > { %7671 = vmatpush.bf16.msrb.mxu1 %v11774_v60  ;;  %v11843_v60 = vld [vmem:[%s12267_s23 + $0x1578] sm:$0xff] }
 0x2ac   : > { %7684 = vmatpush.bf16.msrb.mxu2 %v11782_v62  ;;  %v11859_v62 = vld [vmem:[%s12267_s23 + $0x15f8] sm:$0xff] }
 0x2ad   : > { %7697 = vmatpush.bf16.msrb.mxu3 %v11790_v63  ;;  %v1943_v63 = vld [vmem:[#allocation1] sm:$0xff] }
 0x2ae   : > { %7659 = vmatpush.bf16.msrb.mxu0 %v11765_v0  ;;  %v1945_v0 = vld [vmem:[#allocation1 + $0x12] sm:$0xff] }
 0x2af   : > { %7672 = vmatpush.bf16.msrb.mxu1 %v11773_v1  ;;  %v1944_v1 = vld [vmem:[#allocation1 + $0x9] sm:$0xff] }
 0x2b0   : > { %7685 = vmatpush.bf16.msrb.mxu2 %v11781_v2  ;;  %v1946_v2 = vld [vmem:[#allocation1 + $0x1b] sm:$0xff] }
 0x2b1   : > { %7698 = vmatpush.bf16.msrb.mxu3 %v11789_v3  ;;  %v11834_v3 = vld [vmem:[%s12267_s23 + $0x1530] sm:$0xff] }
 0x2b2   : > { %7660 = vmatpush.bf16.msrb.mxu0 %v11764_v11  ;;  %v7454_v27 = vpop.f32.mrf.mxu0 }
 0x2b3   : > { %7673 = vmatpush.bf16.msrb.mxu1 %v11772_v12  ;;  %v7455_v28 = vadd.f32 %v7454_v27, %v12951_v58  ;;  %v7467_v31 = vpop.f32.mrf.mxu1  ;;  %v11820_v58 = vld [vmem:[%s12267_s23 + $0x14c0] sm:$0xff] }
 0x2b4   : > { %7686 = vmatpush.bf16.msrb.mxu2 %v11780_v13  ;;  %v11832_v13 = vld [vmem:[%s12267_s23 + $0x1520] sm:$0xff] }
 0x2b5   : > { %7699 = vmatpush.bf16.msrb.mxu3 %v11788_v14  ;;  %7661 = vmatmul.bf16.vlgmr.msrb.gmra.mxu0 %v1937_v4  ;;  %v7468_v34 = vadd.f32 %v7467_v31, %v7455_v28  ;;  %v11842_v4 = vld [vmem:[%s12267_s23 + $0x1570] sm:$0xff]  ;;  %v11840_v14 = vld [vmem:[%s12267_s23 + $0x1560] sm:$0xff] }
 0x2b6   : > { %7705 = vmatpush.bf16.msra.mxu0 %v11803_v15  ;;  %7674 = vmatmul.bf16.vlgmr.msrb.gmra.mxu1 %v1938_v7  ;;  %v11833_v7 = vld [vmem:[%s12267_s23 + $0x1528] sm:$0xff]  ;;  %v11830_v28 = vld [vmem:[%s12267_s23 + $0x1510] sm:$0xff] }
 0x2b7   : > { %7718 = vmatpush.bf16.msra.mxu1 %v11811_v16  ;;  %7687 = vmatmul.bf16.vlgmr.msrb.gmra.mxu2 %v1939_v5  ;;  %v11850_v5 = vld [vmem:[%s12267_s23 + $0x15b0] sm:$0xff]  ;;  %v11848_v16 = vld [vmem:[%s12267_s23 + $0x15a0] sm:$0xff] }
 0x2b8   : > { %7731 = vmatpush.bf16.msra.mxu2 %v11819_v17  ;;  %7700 = vmatmul.bf16.vlgmr.msrb.gmra.mxu3 %v1940_v8  ;;  %v11841_v8 = vld [vmem:[%s12267_s23 + $0x1568] sm:$0xff]  ;;  %v11856_v17 = vld [vmem:[%s12267_s23 + $0x15e0] sm:$0xff]  ;;  %v11846_v31 = vld [vmem:[%s12267_s23 + $0x1590] sm:$0xff] }
 0x2b9   : > { %7744 = vmatpush.bf16.msra.mxu3 %v11827_v18 }
 0x2ba   : > { %7706 = vmatpush.bf16.msra.mxu0 %v11802_v19  ;;  %v7480_v39 = vpop.f32.mrf.mxu2  ;;  %v7456_v42 = vpop.f32.mrf.mxu0  ;;  %v11831_v19 = vld [vmem:[%s12267_s23 + $0x1518] sm:$0xff] }
 0x2bb   : > { %7719 = vmatpush.bf16.msra.mxu1 %v11810_v20  ;;  %v7481_v40 = vadd.f32 %v7480_v39, %v7468_v34  ;;  %v7493_v41 = vpop.f32.mrf.mxu3  ;;  %v7469_v46 = vpop.f32.mrf.mxu1  ;;  %v11839_v20 = vld [vmem:[%s12267_s23 + $0x1558] sm:$0xff]  ;;  %v11837_v34 = vld [vmem:[%s12267_s23 + $0x1548] sm:$0xff] }
 0x2bc   : > { %7732 = vmatpush.bf16.msra.mxu2 %v11818_v21  ;;  %v11847_v21 = vld [vmem:[%s12267_s23 + $0x1598] sm:$0xff]  ;;  %v11844_v46 = vld [vmem:[%s12267_s23 + $0x1580] sm:$0xff] }
 0x2bd   : > { %7745 = vmatpush.bf16.msra.mxu3 %v11826_v22  ;;  %v7494_v43 = vadd.f32 %v7493_v41, %v7481_v40  ;;  %v11855_v22 = vld [vmem:[%s12267_s23 + $0x15d8] sm:$0xff]  ;;  %v1948_v40 = vld [vmem:[#allocation1 + $0x2d] sm:$0xff] }
 0x2be   : > { %7707 = vmatpush.bf16.msra.mxu0 %v11801_v23  ;;  %v1950_v41 = vld [vmem:[#allocation1 + $0x3f] sm:$0xff] }
 0x2bf   : > { %7720 = vmatpush.bf16.msra.mxu1 %v11809_v24 }
 0x2c0   : > { %7733 = vmatpush.bf16.msra.mxu2 %v11817_v25 }
 0x2c1   : > { %7746 = vmatpush.bf16.msra.mxu3 %v11825_v26 }
 0x2c2   : > { %7708 = vmatpush.bf16.msra.mxu0 %v11800_v29  ;;  %v7482_v53 = vpop.f32.mrf.mxu2  ;;  %v11838_v29 = vld [vmem:[%s12267_s23 + $0x1550] sm:$0xff] }
 0x2c3   : > { %7721 = vmatpush.bf16.msra.mxu1 %v11808_v30  ;;  %v7495_v54 = vpop.f32.mrf.mxu3  ;;  %v11874_v53 = vld [vmem:[%s12267_s23 + $0x1670] sm:$0xff] }
 0x2c4   : > { %7734 = vmatpush.bf16.msra.mxu2 %v11816_v32  ;;  %v11854_v32 = vld [vmem:[%s12267_s23 + $0x15d0] sm:$0xff] }
 0x2c5   : > { %7747 = vmatpush.bf16.msra.mxu3 %v11824_v33  ;;  %v11829_v33 = vld [vmem:[%s12267_s23 + $0x1508] sm:$0xff]  ;;  %v11882_v54 = vld [vmem:[%s12267_s23 + $0x16b0] sm:$0xff] }
 0x2c6   : > { %7709 = vmatpush.bf16.msra.mxu0 %v11799_v35  ;;  %v11845_v35 = vld [vmem:[%s12267_s23 + $0x1588] sm:$0xff] }
 0x2c7   : > { %7722 = vmatpush.bf16.msra.mxu1 %v11807_v36  ;;  %v11853_v36 = vld [vmem:[%s12267_s23 + $0x15c8] sm:$0xff] }
 0x2c8   : > { %7735 = vmatpush.bf16.msra.mxu2 %v11815_v37  ;;  %v1947_v37 = vld [vmem:[#allocation1 + $0x24] sm:$0xff] }
 0x2c9   : > { %7748 = vmatpush.bf16.msra.mxu3 %v11823_v38  ;;  %v1949_v38 = vld [vmem:[#allocation1 + $0x36] sm:$0xff] }
 0x2ca   : > { %7710 = vmatpush.bf16.msra.mxu0 %v11798_v44  ;;  %v11828_v44 = vld [vmem:[%s12267_s23 + $0x1500] sm:$0xff] }
 0x2cb   : > { %7723 = vmatpush.bf16.msra.mxu1 %v11806_v45  ;;  %v11836_v45 = vld [vmem:[%s12267_s23 + $0x1540] sm:$0xff] }
 0x2cc   : > { %7736 = vmatpush.bf16.msra.mxu2 %v11814_v47  ;;  %v11852_v47 = vld [vmem:[%s12267_s23 + $0x15c0] sm:$0xff] }
 0x2cd   : > { %7749 = vmatpush.bf16.msra.mxu3 %v11822_v48  ;;  %v11867_v48 = vld [vmem:[%s12267_s23 + $0x1638] sm:$0xff] }
 0x2ce   : > { %7711 = vmatpush.bf16.msra.mxu0 %v11797_v49  ;;  %v11875_v49 = vld [vmem:[%s12267_s23 + $0x1678] sm:$0xff] }
 0x2cf   : > { %7724 = vmatpush.bf16.msra.mxu1 %v11805_v50  ;;  %v11883_v50 = vld [vmem:[%s12267_s23 + $0x16b8] sm:$0xff] }
 0x2d0   : > { %7737 = vmatpush.bf16.msra.mxu2 %v11813_v51  ;;  %v11891_v51 = vld [vmem:[%s12267_s23 + $0x16f8] sm:$0xff] }
 0x2d1   : > { %7750 = vmatpush.bf16.msra.mxu3 %v11821_v52  ;;  %v11866_v52 = vld [vmem:[%s12267_s23 + $0x1630] sm:$0xff] }
 0x2d2   : > { %7712 = vmatpush.bf16.msra.mxu0 %v11796_v55  ;;  %v7506_v11 = vpop.f32.mrf.mxu0  ;;  %v11890_v55 = vld [vmem:[%s12267_s23 + $0x16f0] sm:$0xff] }
 0x2d3   : > { %7725 = vmatpush.bf16.msra.mxu1 %v11804_v56  ;;  %v7507_v12 = vadd.f32 %v7506_v11, %v7494_v43  ;;  %v7519_v15 = vpop.f32.mrf.mxu1  ;;  %v304_v43 = vld [vmem:[%s12289_s12 + $0x58] sm:$0xff] }
 0x2d4   : > { %7738 = vmatpush.bf16.msra.mxu2 %v11812_v57  ;;  %1952 = vst [vmem:[#allocation1] ss:$9 sm:$0xff] %v304_v43  ;;  %v11865_v56 = vld [vmem:[%s12267_s23 + $0x1628] sm:$0xff] }
 0x2d5   : > { %7751 = vmatpush.bf16.msra.mxu3 %v11820_v58  ;;  %7713 = vmatmul.bf16.vlgmr.msra.gmra.mxu0 %v1943_v63  ;;  %v7520_v18 = vadd.f32 %v7519_v15, %v7507_v12  ;;  %v11873_v57 = vld [vmem:[%s12267_s23 + $0x1668] sm:$0xff]  ;;  %v11872_v63 = vld [vmem:[%s12267_s23 + $0x1660] sm:$0xff] }
 0x2d6   : > { %7757 = vmatpush.bf16.msrb.mxu0 %v11835_v59  ;;  %7726 = vmatmul.bf16.vlgmr.msra.gmra.mxu1 %v1944_v1  ;;  %v11881_v58 = vld [vmem:[%s12267_s23 + $0x16a8] sm:$0xff]  ;;  %v11880_v1 = vld [vmem:[%s12267_s23 + $0x16a0] sm:$0xff] }
 0x2d7   : > { %7770 = vmatpush.bf16.msrb.mxu1 %v11843_v60  ;;  %7739 = vmatmul.bf16.vlgmr.msra.gmra.mxu2 %v1945_v0  ;;  %v11889_v59 = vld [vmem:[%s12267_s23 + $0x16e8] sm:$0xff] }
 0x2d8   : > { %7783 = vmatpush.bf16.msrb.mxu2 %v11851_v61  ;;  %7752 = vmatmul.bf16.vlgmr.msra.gmra.mxu3 %v1946_v2  ;;  %v11888_v2 = vld [vmem:[%s12267_s23 + $0x16e0] sm:$0xff]  ;;  %v11921_v43 = vld [vmem:[%s12267_s23 + $0x17e8] sm:$0xff] }
 0x2d9   : > { %7796 = vmatpush.bf16.msrb.mxu3 %v11859_v62  ;;  %v11864_v62 = vld [vmem:[%s12267_s23 + $0x1620] sm:$0xff] }
 0x2da   : > { %7758 = vmatpush.bf16.msrb.mxu0 %v11834_v3  ;;  %v7532_v23 = vpop.f32.mrf.mxu2  ;;  %v7508_v26 = vpop.f32.mrf.mxu0 }
 0x2db   : > { %7771 = vmatpush.bf16.msrb.mxu1 %v11842_v4  ;;  %v7533_v24 = vadd.f32 %v7532_v23, %v7520_v18  ;;  %v7545_v25 = vpop.f32.mrf.mxu3  ;;  %v7521_v30 = vpop.f32.mrf.mxu1  ;;  %v11863_v4 = vld [vmem:[%s12267_s23 + $0x1618] sm:$0xff]  ;;  %v11861_v18 = vld [vmem:[%s12267_s23 + $0x1608] sm:$0xff]  ;;  %v11876_v26 = vld [vmem:[%s12267_s23 + $0x1680] sm:$0xff] }
 0x2dc   : > { %7784 = vmatpush.bf16.msrb.mxu2 %v11850_v5  ;;  %v11871_v5 = vld [vmem:[%s12267_s23 + $0x1658] sm:$0xff] }
 0x2dd   : > { %7797 = vmatpush.bf16.msrb.mxu3 %v11858_v6  ;;  %v13019_v27 = vadd.f32 %v7545_v25, %v7533_v24  ;;  %v11879_v6 = vld [vmem:[%s12267_s23 + $0x1698] sm:$0xff]  ;;  %v11860_v24 = vld [vmem:[%s12267_s23 + $0x1600] sm:$0xff] }
 0x2de   : > { %7759 = vmatpush.bf16.msrb.mxu0 %v11833_v7  ;;  %v11887_v7 = vld [vmem:[%s12267_s23 + $0x16d8] sm:$0xff]  ;;  %v11868_v25 = vld [vmem:[%s12267_s23 + $0x1640] sm:$0xff] }
 0x2df   : > { %7772 = vmatpush.bf16.msrb.mxu1 %v11841_v8  ;;  %v11915_v30 = vld [vmem:[%s12267_s23 + $0x17b8] sm:$0xff] }
 0x2e0   : > { %7785 = vmatpush.bf16.msrb.mxu2 %v11849_v9 }
 0x2e1   : > { %7798 = vmatpush.bf16.msrb.mxu3 %v11857_v10 }
 0x2e2   : > { %7760 = vmatpush.bf16.msrb.mxu0 %v11832_v13  ;;  %v7534_v39 = vpop.f32.mrf.mxu2  ;;  %v11862_v13 = vld [vmem:[%s12267_s23 + $0x1610] sm:$0xff] }
 0x2e3   : > { %7773 = vmatpush.bf16.msrb.mxu1 %v11840_v14  ;;  %v7547_v42 = vpop.f32.mrf.mxu3  ;;  %v11870_v14 = vld [vmem:[%s12267_s23 + $0x1650] sm:$0xff] }
 0x2e4   : > { %7786 = vmatpush.bf16.msrb.mxu2 %v11848_v16  ;;  %v11878_v16 = vld [vmem:[%s12267_s23 + $0x1690] sm:$0xff]  ;;  %v11913_v42 = vld [vmem:[%s12267_s23 + $0x17a8] sm:$0xff] }
 0x2e5   : > { %7799 = vmatpush.bf16.msrb.mxu3 %v11856_v17  ;;  %v11886_v17 = vld [vmem:[%s12267_s23 + $0x16d0] sm:$0xff] }
 0x2e6   : > { %7761 = vmatpush.bf16.msrb.mxu0 %v11831_v19  ;;  %v11869_v19 = vld [vmem:[%s12267_s23 + $0x1648] sm:$0xff]  ;;  %v11922_v39 = vld [vmem:[%s12267_s23 + $0x17f0] sm:$0xff] }
 0x2e7   : > { %7774 = vmatpush.bf16.msrb.mxu1 %v11839_v20  ;;  %v11877_v20 = vld [vmem:[%s12267_s23 + $0x1688] sm:$0xff] }
 0x2e8   : > { %7787 = vmatpush.bf16.msrb.mxu2 %v11847_v21  ;;  %v11885_v21 = vld [vmem:[%s12267_s23 + $0x16c8] sm:$0xff] }
 0x2e9   : > { %7800 = vmatpush.bf16.msrb.mxu3 %v11855_v22 }
 0x2ea   : > { %7762 = vmatpush.bf16.msrb.mxu0 %v11830_v28  ;;  %v11899_v28 = vld [vmem:[%s12267_s23 + $0x1738] sm:$0xff] }
 0x2eb   : > { %7775 = vmatpush.bf16.msrb.mxu1 %v11838_v29  ;;  %v11907_v29 = vld [vmem:[%s12267_s23 + $0x1778] sm:$0xff] }
 0x2ec   : > { %7788 = vmatpush.bf16.msrb.mxu2 %v11846_v31  ;;  %v11923_v31 = vld [vmem:[%s12267_s23 + $0x17f8] sm:$0xff] }
 0x2ed   : > { %7801 = vmatpush.bf16.msrb.mxu3 %v11854_v32  ;;  %v1953_v32 = vld [vmem:[#allocation1] sm:$0xff] }
 0x2ee   : > { %7763 = vmatpush.bf16.msrb.mxu0 %v11829_v33  ;;  %v1955_v33 = vld [vmem:[#allocation1 + $0x12] sm:$0xff] }
 0x2ef   : > { %7776 = vmatpush.bf16.msrb.mxu1 %v11837_v34  ;;  %v1954_v34 = vld [vmem:[#allocation1 + $0x9] sm:$0xff] }
 0x2f0   : > { %7789 = vmatpush.bf16.msrb.mxu2 %v11845_v35  ;;  %v1956_v35 = vld [vmem:[#allocation1 + $0x1b] sm:$0xff] }
 0x2f1   : > { %7802 = vmatpush.bf16.msrb.mxu3 %v11853_v36  ;;  %v11898_v36 = vld [vmem:[%s12267_s23 + $0x1730] sm:$0xff] }
 0x2f2   : > { %7764 = vmatpush.bf16.msrb.mxu0 %v11828_v44  ;;  %v7558_v60 = vpop.f32.mrf.mxu0 }
 0x2f3   : > { %7777 = vmatpush.bf16.msrb.mxu1 %v11836_v45  ;;  %v7559_v61 = vadd.f32 %v7558_v60, %v13019_v27  ;;  %v7571_v0 = vpop.f32.mrf.mxu1  ;;  %v11884_v27 = vld [vmem:[%s12267_s23 + $0x16c0] sm:$0xff] }
 0x2f4   : > { %7790 = vmatpush.bf16.msrb.mxu2 %v11844_v46  ;;  %v11896_v46 = vld [vmem:[%s12267_s23 + $0x1720] sm:$0xff] }
 0x2f5   : > { %7803 = vmatpush.bf16.msrb.mxu3 %v11852_v47  ;;  %7765 = vmatmul.bf16.vlgmr.msrb.gmra.mxu0 %v1947_v37  ;;  %v7572_v3 = vadd.f32 %v7571_v0, %v7559_v61  ;;  %v11906_v37 = vld [vmem:[%s12267_s23 + $0x1770] sm:$0xff]  ;;  %v11904_v47 = vld [vmem:[%s12267_s23 + $0x1760] sm:$0xff] }
 0x2f6   : > { %7809 = vmatpush.bf16.msra.mxu0 %v11867_v48  ;;  %7778 = vmatmul.bf16.vlgmr.msrb.gmra.mxu1 %v1948_v40  ;;  %v11897_v40 = vld [vmem:[%s12267_s23 + $0x1728] sm:$0xff]  ;;  %v11894_v61 = vld [vmem:[%s12267_s23 + $0x1710] sm:$0xff] }
 0x2f7   : > { %7822 = vmatpush.bf16.msra.mxu1 %v11875_v49  ;;  %7791 = vmatmul.bf16.vlgmr.msrb.gmra.mxu2 %v1949_v38  ;;  %v11914_v38 = vld [vmem:[%s12267_s23 + $0x17b0] sm:$0xff]  ;;  %v11912_v49 = vld [vmem:[%s12267_s23 + $0x17a0] sm:$0xff] }
 0x2f8   : > { %7835 = vmatpush.bf16.msra.mxu2 %v11883_v50  ;;  %7804 = vmatmul.bf16.vlgmr.msrb.gmra.mxu3 %v1950_v41  ;;  %v11905_v41 = vld [vmem:[%s12267_s23 + $0x1768] sm:$0xff]  ;;  %v11920_v50 = vld [vmem:[%s12267_s23 + $0x17e0] sm:$0xff]  ;;  %v11910_v0 = vld [vmem:[%s12267_s23 + $0x1790] sm:$0xff] }
 0x2f9   : > { %7848 = vmatpush.bf16.msra.mxu3 %v11891_v51 }
 0x2fa   : > { %7810 = vmatpush.bf16.msra.mxu0 %v11866_v52  ;;  %v7584_v8 = vpop.f32.mrf.mxu2  ;;  %v7560_v11 = vpop.f32.mrf.mxu0  ;;  %v11895_v52 = vld [vmem:[%s12267_s23 + $0x1718] sm:$0xff] }
 0x2fb   : > { %7823 = vmatpush.bf16.msra.mxu1 %v11874_v53  ;;  %v7585_v9 = vadd.f32 %v7584_v8, %v7572_v3  ;;  %v7597_v10 = vpop.f32.mrf.mxu3  ;;  %v7573_v15 = vpop.f32.mrf.mxu1  ;;  %v11903_v53 = vld [vmem:[%s12267_s23 + $0x1758] sm:$0xff]  ;;  %v11901_v3 = vld [vmem:[%s12267_s23 + $0x1748] sm:$0xff]  ;;  %v11892_v8 = vld [vmem:[%s12267_s23 + $0x1700] sm:$0xff] }
 0x2fc   : > { %7836 = vmatpush.bf16.msra.mxu2 %v11882_v54  ;;  %v11911_v54 = vld [vmem:[%s12267_s23 + $0x1798] sm:$0xff]  ;;  %v11916_v11 = vld [vmem:[%s12267_s23 + $0x17c0] sm:$0xff] }
 0x2fd   : > { %7849 = vmatpush.bf16.msra.mxu3 %v11890_v55  ;;  %v7598_v12 = vadd.f32 %v7597_v10, %v7585_v9  ;;  %v11919_v55 = vld [vmem:[%s12267_s23 + $0x17d8] sm:$0xff]  ;;  %v11900_v9 = vld [vmem:[%s12267_s23 + $0x1740] sm:$0xff] }
 0x2fe   : > { %7811 = vmatpush.bf16.msra.mxu0 %v11865_v56  ;;  %v11908_v10 = vld [vmem:[%s12267_s23 + $0x1780] sm:$0xff]  ;;  %v1960_v15 = vld [vmem:[#allocation1 + $0x3f] sm:$0xff] }
 0x2ff   : > { %7824 = vmatpush.bf16.msra.mxu1 %v11873_v57 }
 0x300   : > { %7837 = vmatpush.bf16.msra.mxu2 %v11881_v58 }
 0x301   : > { %7850 = vmatpush.bf16.msra.mxu3 %v11889_v59 }
 0x302   : > { %7812 = vmatpush.bf16.msra.mxu0 %v11864_v62  ;;  %v7586_v22 = vpop.f32.mrf.mxu2  ;;  %v11902_v62 = vld [vmem:[%s12267_s23 + $0x1750] sm:$0xff] }
 0x303   : > { %7825 = vmatpush.bf16.msra.mxu1 %v11872_v63  ;;  %v7599_v23 = vpop.f32.mrf.mxu3 }
 0x304   : > { %7838 = vmatpush.bf16.msra.mxu2 %v11880_v1  ;;  %v11918_v1 = vld [vmem:[%s12267_s23 + $0x17d0] sm:$0xff] }
 0x305   : > { %7851 = vmatpush.bf16.msra.mxu3 %v11888_v2  ;;  %v11893_v2 = vld [vmem:[%s12267_s23 + $0x1708] sm:$0xff] }
 0x306   : > { %7813 = vmatpush.bf16.msra.mxu0 %v11863_v4  ;;  %v11909_v4 = vld [vmem:[%s12267_s23 + $0x1788] sm:$0xff] }
 0x307   : > { %7826 = vmatpush.bf16.msra.mxu1 %v11871_v5  ;;  %v11917_v5 = vld [vmem:[%s12267_s23 + $0x17c8] sm:$0xff] }
 0x308   : > { %7839 = vmatpush.bf16.msra.mxu2 %v11879_v6 }
 0x309   : > { %7852 = vmatpush.bf16.msra.mxu3 %v11887_v7 }
 0x30a   : > { %7814 = vmatpush.bf16.msra.mxu0 %v11862_v13  ;;  %v1958_v13 = vld [vmem:[#allocation1 + $0x2d] sm:$0xff] }
 0x30b   : > { %7827 = vmatpush.bf16.msra.mxu1 %v11870_v14  ;;  %v1959_v14 = vld [vmem:[#allocation1 + $0x36] sm:$0xff] }
 0x30c   : > { %7840 = vmatpush.bf16.msra.mxu2 %v11878_v16 }
 0x30d   : > { %7853 = vmatpush.bf16.msra.mxu3 %v11886_v17 }
 0x30e   : > { %7815 = vmatpush.bf16.msra.mxu0 %v11861_v18 }
 0x30f   : > { %7828 = vmatpush.bf16.msra.mxu1 %v11869_v19 }
 0x310   : > { %7841 = vmatpush.bf16.msra.mxu2 %v11877_v20 }
 0x311   : > { %7854 = vmatpush.bf16.msra.mxu3 %v11885_v21 }
 0x312   : > { %7816 = vmatpush.bf16.msra.mxu0 %v11860_v24  ;;  %v7610_v44 = vpop.f32.mrf.mxu0 }
 0x313   : > { %7829 = vmatpush.bf16.msra.mxu1 %v11868_v25  ;;  %v7611_v45 = vadd.f32 %v7610_v44, %v7598_v12  ;;  %v7623_v48 = vpop.f32.mrf.mxu1  ;;  %v1957_v12 = vld [vmem:[#allocation1 + $0x24] sm:$0xff] }
 0x314   : > { %7842 = vmatpush.bf16.msra.mxu2 %v11876_v26 }
 0x315   : > { %7855 = vmatpush.bf16.msra.mxu3 %v11884_v27  ;;  %7817 = vmatmul.bf16.vlgmr.msra.gmra.mxu0 %v1953_v32  ;;  %v7624_v51 = vadd.f32 %v7623_v48, %v7611_v45 }
 0x316   : > { %7861 = vmatpush.bf16.msrb.mxu0 %v11899_v28  ;;  %7830 = vmatmul.bf16.vlgmr.msra.gmra.mxu1 %v1954_v34 }
 0x317   : > { %7874 = vmatpush.bf16.msrb.mxu1 %v11907_v29  ;;  %7843 = vmatmul.bf16.vlgmr.msra.gmra.mxu2 %v1955_v33 }
 0x318   : > { %7887 = vmatpush.bf16.msrb.mxu2 %v11915_v30  ;;  %7856 = vmatmul.bf16.vlgmr.msra.gmra.mxu3 %v1956_v35 }
 0x319   : > { %7900 = vmatpush.bf16.msrb.mxu3 %v11923_v31 }
 0x31a   : > { %7862 = vmatpush.bf16.msrb.mxu0 %v11898_v36  ;;  %v7636_v56 = vpop.f32.mrf.mxu2  ;;  %v7612_v59 = vpop.f32.mrf.mxu0 }
 0x31b   : > { %7875 = vmatpush.bf16.msrb.mxu1 %v11906_v37  ;;  %v7637_v57 = vadd.f32 %v7636_v56, %v7624_v51  ;;  %v7649_v58 = vpop.f32.mrf.mxu3  ;;  %v7625_v63 = vpop.f32.mrf.mxu1 }
 0x31c   : > { %7888 = vmatpush.bf16.msrb.mxu2 %v11914_v38 }
 0x31d   : > { %7901 = vmatpush.bf16.msrb.mxu3 %v11922_v39  ;;  %v7650_v60 = vadd.f32 %v7649_v58, %v7637_v57 }
 0x31e   : > { %7863 = vmatpush.bf16.msrb.mxu0 %v11897_v40 }
 0x31f   : > { %7876 = vmatpush.bf16.msrb.mxu1 %v11905_v41 }
 0x320   : > { %7889 = vmatpush.bf16.msrb.mxu2 %v11913_v42 }
 0x321   : > { %7902 = vmatpush.bf16.msrb.mxu3 %v11921_v43 }
 0x322   : > { %7864 = vmatpush.bf16.msrb.mxu0 %v11896_v46  ;;  %v7638_v6 = vpop.f32.mrf.mxu2 }
 0x323   : > { %7877 = vmatpush.bf16.msrb.mxu1 %v11904_v47  ;;  %v7651_v7 = vpop.f32.mrf.mxu3 }
 0x324   : > { %7890 = vmatpush.bf16.msrb.mxu2 %v11912_v49 }
 0x325   : > { %7903 = vmatpush.bf16.msrb.mxu3 %v11920_v50 }
 0x326   : > { %7865 = vmatpush.bf16.msrb.mxu0 %v11895_v52 }
 0x327   : > { %7878 = vmatpush.bf16.msrb.mxu1 %v11903_v53 }
 0x328   : > { %7891 = vmatpush.bf16.msrb.mxu2 %v11911_v54 }
 0x329   : > { %7904 = vmatpush.bf16.msrb.mxu3 %v11919_v55 }
 0x32a   : > { %7866 = vmatpush.bf16.msrb.mxu0 %v11894_v61 }
 0x32b   : > { %7879 = vmatpush.bf16.msrb.mxu1 %v11902_v62 }
 0x32c   : > { %7892 = vmatpush.bf16.msrb.mxu2 %v11910_v0 }
 0x32d   : > { %7905 = vmatpush.bf16.msrb.mxu3 %v11918_v1 }
 0x32e   : > { %7867 = vmatpush.bf16.msrb.mxu0 %v11893_v2 }
 0x32f   : > { %7880 = vmatpush.bf16.msrb.mxu1 %v11901_v3 }
 0x330   : > { %7893 = vmatpush.bf16.msrb.mxu2 %v11909_v4 }
 0x331   : > { %7906 = vmatpush.bf16.msrb.mxu3 %v11917_v5 }
 0x332   : > { %7868 = vmatpush.bf16.msrb.mxu0 %v11892_v8  ;;  %v7662_v16 = vpop.f32.mrf.mxu0 }
 0x333   : > { %7881 = vmatpush.bf16.msrb.mxu1 %v11900_v9  ;;  %v7663_v17 = vadd.f32 %v7662_v16, %v7650_v60  ;;  %v7675_v18 = vpop.f32.mrf.mxu1  ;;  %v292_v9 = vld [vmem:[#allocation2] sm:$0x3] }
 0x334   : > { %7894 = vmatpush.bf16.msrb.mxu2 %v11908_v10 }
 0x335   : > { %7907 = vmatpush.bf16.msrb.mxu3 %v11916_v11  ;;  %7869 = vmatmul.bf16.vlgmr.msrb.gmra.mxu0 %v1957_v12  ;;  %v7676_v19 = vadd.f32 %v7675_v18, %v7663_v17 }
 0x336   : > { %7882 = vmatmul.bf16.vlgmr.msrb.gmra.mxu1 %v1958_v13 }
 0x337   : > { %7895 = vmatmul.bf16.vlgmr.msrb.gmra.mxu2 %v1959_v14 }
 0x338   : > { %7908 = vmatmul.bf16.vlgmr.msrb.gmra.mxu3 %v1960_v15 }
 0x33a   : > { %v7688_v20 = vpop.f32.mrf.mxu2  ;;  %v7664_v23 = vpop.f32.mrf.mxu0 }
 0x33b   : > { %v7689_v21 = vadd.f32 %v7688_v20, %v7676_v19  ;;  %v7701_v22 = vpop.f32.mrf.mxu3  ;;  %v7677_v25 = vpop.f32.mrf.mxu1 }
 0x33d   : > { %v7702_v24 = vadd.f32 %v7701_v22, %v7689_v21 }
 0x342   : > { %v7690_v26 = vpop.f32.mrf.mxu2 }
 0x343   : > { %v7703_v27 = vpop.f32.mrf.mxu3 }
 0x352   : > { %v7714_v28 = vpop.f32.mrf.mxu0 }
 0x353   : > { %v7715_v29 = vadd.f32 %v7714_v28, %v7702_v24  ;;  %v7727_v30 = vpop.f32.mrf.mxu1 }
 0x355   : > { %v7728_v31 = vadd.f32 %v7727_v30, %v7715_v29 }
 0x35a   : > { %v7740_v32 = vpop.f32.mrf.mxu2  ;;  %v7716_v35 = vpop.f32.mrf.mxu0 }
 0x35b   : > { %v7741_v33 = vadd.f32 %v7740_v32, %v7728_v31  ;;  %v7753_v34 = vpop.f32.mrf.mxu3  ;;  %v7729_v37 = vpop.f32.mrf.mxu1 }
 0x35d   : > { %v7754_v36 = vadd.f32 %v7753_v34, %v7741_v33 }
 0x362   : > { %v7742_v38 = vpop.f32.mrf.mxu2 }
 0x363   : > { %v7755_v39 = vpop.f32.mrf.mxu3 }
 0x372   : > { %v7766_v40 = vpop.f32.mrf.mxu0 }
 0x373   : > { %v7779_v41 = vpop.f32.mrf.mxu1  ;;  %v7767_v51 = vadd.f32 %v7766_v40, %v7754_v36 }
 0x375   : > { %v7780_v55 = vadd.f32 %v7779_v41, %v7767_v51 }
 0x37a   : > { %v7792_v42 = vpop.f32.mrf.mxu2  ;;  %v7768_v44 = vpop.f32.mrf.mxu0 }
 0x37b   : > { %v7805_v43 = vpop.f32.mrf.mxu3  ;;  %v7781_v45 = vpop.f32.mrf.mxu1  ;;  %v7793_v56 = vadd.f32 %v7792_v42, %v7780_v55 }
 0x37d   : > { %v7806_v59 = vadd.f32 %v7805_v43, %v7793_v56 }
 0x382   : > { %v7794_v46 = vpop.f32.mrf.mxu2 }
 0x383   : > { %v7807_v47 = vpop.f32.mrf.mxu3 }
 0x392   : > { %v7818_v48 = vpop.f32.mrf.mxu0 }
 0x393   : > { %v7831_v49 = vpop.f32.mrf.mxu1  ;;  %v7819_v60 = vadd.f32 %v7818_v48, %v7806_v59 }
 0x395   : > { %v7832_v61 = vadd.f32 %v7831_v49, %v7819_v60 }
 0x39a   : > { %v7844_v50 = vpop.f32.mrf.mxu2  ;;  %v7820_v53 = vpop.f32.mrf.mxu0 }
 0x39b   : > { %v7857_v52 = vpop.f32.mrf.mxu3  ;;  %v7833_v54 = vpop.f32.mrf.mxu1  ;;  %v7845_v62 = vadd.f32 %v7844_v50, %v7832_v61 }
 0x39d   : > { %v7858_v63 = vadd.f32 %v7857_v52, %v7845_v62 }
 0x3a2   : > { %v7846_v57 = vpop.f32.mrf.mxu2 }
 0x3a3   : > { %v7859_v58 = vpop.f32.mrf.mxu3 }
 0x3b2   : > { %v7870_v0 = vpop.f32.mrf.mxu0 }
 0x3b3   : > { %v7883_v1 = vpop.f32.mrf.mxu1  ;;  %v7871_v2 = vadd.f32 %v7870_v0, %v7858_v63 }
 0x3b5   : > { %v7884_v3 = vadd.f32 %v7883_v1, %v7871_v2 }
 0x3ba   : > { %v7896_v4 = vpop.f32.mrf.mxu2  ;;  %v7872_v7 = vpop.f32.mrf.mxu0 }
 0x3bb   : > { %v7909_v5 = vpop.f32.mrf.mxu3  ;;  %v7897_v6 = vadd.f32 %v7896_v4, %v7884_v3  ;;  %v7885_v8 = vpop.f32.mrf.mxu1 }
 0x3bd   : > { %v7910_v10 = vadd.f32 %v7909_v5, %v7897_v6 }
 0x3bf   : > { %v7913_v11 = vadd.f32 %v7910_v10, %v292_v9  ;;  %7918 = sbr.rel (%p11152_p5) target bundleno = 1125 (0x465), region = 52 }
 0x3c1   : > { %7914 = vst [vmem:[#allocation2] sm:$0x3] %v7913_v11 }
 0x3c2   : > { %v7898_v12 = vpop.f32.mrf.mxu2 }
 0x3c3   : > { %v7911_v13 = vpop.f32.mrf.mxu3 }
 0x3c4   : > { %v7935_v14 = vld [vmem:[%s13193_s29 + $0x78] sm:$0xff]  ;;  %v7934_v15 = vld [vmem:[%s13193_s29 + $0x70] sm:$0xff]  ;;  %v7933_v16 = vld [vmem:[%s13193_s29 + $0x68] sm:$0xff]  ;;  %s7938_s21 = scalar_select %p7936_p6, 1, 0  ;;  %vm7965_vm1 = vcmask 17408  }
 0x3c5   : > { %7945 = vmatpush.msra.mxu0 %v7935_v14  ;;  %v7932_v17 = vld [vmem:[%s13193_s29 + $0x60] sm:$0xff]  ;;  %v7931_v18 = vld [vmem:[%s13193_s29 + $0x58] sm:$0xff]  ;;  %v7930_v19 = vld [vmem:[%s13193_s29 + $0x50] sm:$0xff] }
 0x3c6   : > { %v7929_v20 = vld [vmem:[%s13193_s29 + $0x48] sm:$0xff]  ;;  %v7928_v21 = vld [vmem:[%s13193_s29 + $0x40] sm:$0xff]  ;;  %v7927_v22 = vld [vmem:[%s13193_s29 + $0x38] sm:$0xff]  ;;  %v7939_v31 = vstv %s7938_s21 }
 0x3c7   : > { %7946 = vmatpush.msra.mxu0 %v7934_v15  ;;  %v7926_v23 = vld [vmem:[%s13193_s29 + $0x30] sm:$0xff]  ;;  %v7925_v24 = vld [vmem:[%s13193_s29 + $0x28] sm:$0xff]  ;;  %v7924_v25 = vld [vmem:[%s13193_s29 + $0x20] sm:$0xff]  ;;  %vm7940_vm0 = vcmp.eq.s32.totalorder %v7939_v31, 1 }
 0x3c8   : > { %v7923_v26 = vld [vmem:[%s13193_s29 + $0x18] sm:$0xff]  ;;  %v7922_v27 = vld [vmem:[%s13193_s29 + $0x10] sm:$0xff]  ;;  %v7921_v28 = vld [vmem:[%s13193_s29 + $0x8] sm:$0xff] }
 0x3c9   : > { %7947 = vmatpush.msra.mxu0 %v7933_v16  ;;  %v7920_v29 = vld [vmem:[%s13193_s29] sm:$0xff]  ;;  %v7919_v30 = vld [vmem:[#allocation2] sm:$0x3]  ;;  %v7937_v32 = vld [vmem:[#allocation5] sm:$0x1] }
 0x3ca   : > { %v7941_v33 = vsel %vm7940_vm0, %v7937_v32, 0.0 }
 0x3cb   : > { %7948 = vmatpush.msra.mxu0 %v7932_v17  ;;  %v7943_v34 = vperm.slane %v7941_v33, 0 }
 0x3cd   : > { %7949 = vmatpush.msra.mxu0 %v7931_v18 }
 0x3cf   : > { %7950 = vmatpush.msra.mxu0 %v7930_v19 }
 0x3d1   : > { %7951 = vmatpush.msra.mxu0 %v7929_v20 }
 0x3d3   : > { %7952 = vmatpush.msra.mxu0 %v7928_v21 }
 0x3d5   : > { %7953 = vmatpush.msra.mxu0 %v7927_v22 }
 0x3d7   : > { %7954 = vmatpush.msra.mxu0 %v7926_v23 }
 0x3d9   : > { %7955 = vmatpush.msra.mxu0 %v7925_v24 }
 0x3db   : > { %7956 = vmatpush.msra.mxu0 %v7924_v25 }
 0x3dd   : > { %7957 = vmatpush.msra.mxu0 %v7923_v26 }
 0x3df   : > { %7958 = vmatpush.msra.mxu0 %v7922_v27 }
 0x3e1   : > { %7959 = vmatpush.msra.mxu0 %v7921_v28 }
 0x3e3   : > { %7960 = vmatpush.msra.mxu0 %v7920_v29 }
 0x3e4   : > { %7961 = vmatmul.f32.vlgmr.msra.gmra.mxu0 %v7919_v30 }
 0x461   : > { %v7962_v35 = vpop.f32.mrf.mxu0 }
 0x462   : > { %v7963_v36 = vadd.f32 %v7962_v35, %v7943_v34 }
 0x464   : > { %7966 = vst.msk [vmem:[%s12284_s10] sm:$0x3] %vm7965_vm1, %v7963_v36 }
 0x465 PF: > { %s13194_s22 = sld [smem:[#allocation11_spill]]  ;;  %s13197_s15 = smov %s12117_s16 }
 0x466   : > { %s13195_s18 = sld [smem:[#allocation9_spill]]  ;;  %s13198_s16 = smov %s12121_s17 }
 0x467   : > { %s13196_s19 = sld [smem:[#allocation10_spill]]  ;;  %s13199_s17 = smov %s12262_s2 }
 0x468   : > { %s13200_s20 = smov %s13203_s8  ;;  %s13201_s21 = smov %s13207_s7 }
 0x46b   : > { %s18_s22 = sadd.s32 1, %s13194_s22  }
 0x46c   : > { %p15_p7 = scmp.ge.s32.totalorder %s18_s22, 6  }
 0x46e   :  { %17 = sbr.rel (!%p15_p7) target bundleno = 9 (0x9), region = 91 }
 0x473   :  { %7986 = vsyncpa [#allocation4], 1 }
 0x474   :  { %7988 = vsyncpa [#allocation4 + $0x1], 1 }
 0x475   :  { %7989 = vsyncpa [#allocation6], 1 }

</bundles_post_ra>
